<compile_context>
chip_gen: v7x
topology: tpu7x:2x2x1
jax: 0.10.0
libtpu: 0.0.40
codegen_flags: <defaults>
</compile_context>

<pallas_src>
import functools

import jax
import jax.numpy as jnp
from jax.experimental import pallas as pl
from jax.experimental.pallas import tpu as pltpu


def _round_up(x, m):
    return ((x + m - 1) // m) * m


# ----------------------------------------------------------------------------
# Fused 3x3 conv (padding=1, stride 1 or 2) + bias + LeakyReLU
# ----------------------------------------------------------------------------
def _conv3x3_lrelu_kernel(xph_ref, w_ref, b_ref, o_ref, *, stride, hout, wout_p):
    """One (batch image, cout tile) per grid step.

    xph_ref : (nph, php, pwp, cin)    bf16  phase-decomposed zero-padded input
    w_ref   : (9, cin, tcout)         bf16  per-tap weight matrices
    b_ref   : (1, tcout)              f32
    o_ref   : (1, hout*wout_p, tcout) bf16
    """
    tcout = o_ref.shape[-1]
    acc = jnp.zeros((hout * wout_p, tcout), jnp.float32)
    # 9-tap reduction fully inside the kernel (no im2col in HBM).  Each tap is a
    # contiguous static window of one stride-phase -> plain (unstrided) loads.
    for ky in range(3):
        for kx in range(3):
            pidx = (ky % stride) * stride + (kx % stride)
            ro, co = ky // stride, kx // stride
            win = xph_ref[pidx, ro:ro + hout, co:co + wout_p, :]   # (hout, wout_p, cin)
            win = win.reshape(hout * wout_p, win.shape[-1])        # layout-exact (wout_p % 8 == 0)
            acc = acc + jnp.dot(win, w_ref[ky * 3 + kx],
                                preferred_element_type=jnp.float32)
    acc = acc + b_ref[...]
    acc = jnp.where(acc > 0, acc, 0.01 * acc)       # nn.LeakyReLU() default slope
    o_ref[0] = acc.astype(o_ref.dtype)


def conv3x3_lrelu(x_nhwc, w, b, stride):
    """x: (N,H,W,Cin), w: (3,3,Cin,Cout), b: (Cout,) -> (N,Hout,Wout,Cout) bf16."""
    n, h, wdt, cin = x_nhwc.shape
    cout = w.shape[-1]
    s = int(stride)
    hout = (h - 1) // s + 1
    wout = (wdt - 1) // s + 1
    wout_p = _round_up(wout, 8)            # keeps the in-kernel flatten layout-exact
    coutp = _round_up(cout, 128)           # lane-dense MXU operands + unmasked stores
    tcout = 128

    # Zero pad: +1 top/left (conv padding) plus enough bottom/right for the
    # wout_p over-compute and for an exact phase split when stride == 2.
    hp = _round_up(max(h + 2, (hout - 1) * s + 3), s)
    wp = _round_up(max(wdt + 2, (wout_p - 1) * s + 3), s)
    xp = jnp.pad(x_nhwc.astype(jnp.bfloat16),
                 ((0, 0), (1, hp - h - 1), (1, wp - wdt - 1), (0, 0)))

    # Phase decomposition: tap (ky,kx) at stride s == a contiguous window of
    # phase (ky%s, kx%s).  ~1x HBM traffic instead of 9x im2col.
    if s == 1:
        nph, php, pwp = 1, hp, wp
        xph = xp.reshape(n * nph, php, pwp, cin)
    else:
        php, pwp = hp // s, wp // s
        nph = s * s
        xph = xp.reshape(n, php, s, pwp, s, cin)
        xph = jnp.transpose(xph, (0, 2, 4, 1, 3, 5)).reshape(n * nph, php, pwp, cin)

    wmat = jnp.pad(w.astype(jnp.bfloat16).reshape(9, cin, cout),
                   ((0, 0), (0, 0), (0, coutp - cout)))
    bvec = jnp.pad(b.astype(jnp.float32), (0, coutp - cout)).reshape(1, coutp)

    m_img = hout * wout_p
    kernel = functools.partial(_conv3x3_lrelu_kernel, stride=s, hout=hout, wout_p=wout_p)
    flops = 2 * n * m_img * 9 * cin * coutp
    bytes_accessed = xph.size * 2 + wmat.size * 2 + bvec.size * 4 + n * m_img * coutp * 2

    out = pl.pallas_call(
        kernel,
        out_shape=jax.ShapeDtypeStruct((n, m_img, coutp), jnp.bfloat16),
        grid=(n, coutp // tcout),
        in_specs=[
            pl.BlockSpec((nph, php, pwp, cin), lambda bi, j: (bi, 0, 0, 0)),
            pl.BlockSpec((9, cin, tcout), lambda bi, j: (0, 0, j)),
            pl.BlockSpec((1, tcout), lambda bi, j: (0, j)),
        ],
        out_specs=pl.BlockSpec((1, m_img, tcout), lambda bi, j: (bi, 0, j)),
        compiler_params=pltpu.CompilerParams(
            dimension_semantics=("parallel", "parallel"),
            vmem_limit_bytes=48 * 1024 * 1024),
        cost_estimate=pl.CostEstimate(flops=flops, transcendentals=0,
                                      bytes_accessed=bytes_accessed),
    )(xph, wmat, bvec)
    # Drop the Cout / Wout padding and restore NHWC.
    return out.reshape(n, hout, wout_p, coutp)[:, :, :wout, :cout]


# ----------------------------------------------------------------------------
# Fused dense head: dense1 + LeakyReLU + dense2 + sigmoid (K-tiled reduction)
# ----------------------------------------------------------------------------
def _dense_head_kernel(x_ref, w1_ref, b1_ref, w2_ref, b2_ref, o_ref, acc_ref):
    k = pl.program_id(0)

    @pl.when(k == 0)
    def _():
        acc_ref[...] = jnp.zeros_like(acc_ref)

    acc_ref[...] += jnp.dot(x_ref[...], w1_ref[...],
                            preferred_element_type=jnp.float32)

    @pl.when(k == pl.num_programs(0) - 1)
    def _():
        h = acc_ref[...] + b1_ref[...]
        h = jnp.where(h > 0, h, 0.01 * h)                              # LeakyReLU
        logit = jnp.sum(h * w2_ref[...], axis=-1, keepdims=True) + b2_ref[...]
        # Broadcast over 128 lanes -> lane-dense (unmasked) store; sliced outside.
        o_ref[...] = jnp.broadcast_to(jax.nn.sigmoid(logit), o_ref.shape)


def dense_head(xf, w1, b1, w2, b2):
    """xf: (M, K); w1: (K, N1); b1: (N1,); w2: (N1, 1); b2: (1,) -> (M, 1) f32."""
    m, k = xf.shape
    n1 = w1.shape[1]
    n1p = _round_up(n1, 128)
    kp = _round_up(k, 128)
    tk = min(512, kp)                    # K tiles stream W1 through VMEM (fits v5e's 16 MiB)
    kp = _round_up(kp, tk)

    x_p = jnp.pad(xf.astype(jnp.bfloat16), ((0, 0), (0, kp - k)))
    w1_p = jnp.pad(w1.astype(jnp.bfloat16), ((0, kp - k), (0, n1p - n1)))
    b1_p = jnp.pad(b1.astype(jnp.float32), (0, n1p - n1)).reshape(1, n1p)
    w2_p = jnp.pad(w2.astype(jnp.float32).reshape(-1), (0, n1p - n1)).reshape(1, n1p)
    b2_p = jnp.asarray(b2, jnp.float32).reshape(1, 1)

    flops = 2 * m * kp * n1p + 2 * m * n1p
    bytes_accessed = x_p.size * 2 + w1_p.size * 2 + (b1_p.size + w2_p.size) * 4 + m * 128 * 4

    out = pl.pallas_call(
        _dense_head_kernel,
        out_shape=jax.ShapeDtypeStruct((m, 128), jnp.float32),
        grid=(kp // tk,),
        in_specs=[
            pl.BlockSpec((m, tk), lambda kk: (0, kk)),
            pl.BlockSpec((tk, n1p), lambda kk: (kk, 0)),
            pl.BlockSpec((1, n1p), lambda kk: (0, 0)),
            pl.BlockSpec((1, n1p), lambda kk: (0, 0)),
            pl.BlockSpec((1, 1), lambda kk: (0, 0)),
        ],
        out_specs=pl.BlockSpec((m, 128), lambda kk: (0, 0)),
        scratch_shapes=[pltpu.VMEM((m, n1p), jnp.float32)],
        compiler_params=pltpu.CompilerParams(
            dimension_semantics=("arbitrary",),
            vmem_limit_bytes=48 * 1024 * 1024),
        cost_estimate=pl.CostEstimate(flops=flops, transcendentals=m * 128,
                                      bytes_accessed=bytes_accessed),
    )(x_p, w1_p, b1_p, w2_p, b2_p)
    return out[:, :1]


# ----------------------------------------------------------------------------
# Architecture bookkeeping (mirrors discriminator.__init__)
# ----------------------------------------------------------------------------
def build_config(n_residual_blocks, im_channels, n_neurons_p1, n_neurons_p2, highres_size):
    blocks = [dict(cin=n_neurons_p1, cout=n_neurons_p1, stride=2)]     # residual_block_0
    size = highres_size
    input_channel = n_neurons_p1
    for blk_idx in range(1, n_residual_blocks):
        multiplier = 2 ** (blk_idx // 2 + 1)
        stride = 1 + (blk_idx + 1) % 2
        blocks.append(dict(cin=input_channel, cout=n_neurons_p1 * multiplier, stride=stride))
        input_channel = n_neurons_p1 * multiplier
        size = (size[0] // stride, size[1] // stride)
    dense1_in = input_channel * size[0] * size[1] // 4
    return dict(im_channels=im_channels, n_neurons_p1=n_neurons_p1,
                n_neurons_p2=n_neurons_p2, blocks=blocks, dense1_in=dense1_in)


def init_params(key, cfg):
    params = {}
    key, k1, k2 = jax.random.split(key, 3)
    params["conv1"] = dict(
        w=0.05 * jax.random.normal(k1, (3, 3, cfg["im_channels"], cfg["n_neurons_p1"]), jnp.float32),
        b=0.01 * jax.random.normal(k2, (cfg["n_neurons_p1"],), jnp.float32))
    params["blocks"] = []
    for blk in cfg["blocks"]:
        key, k1, k2 = jax.random.split(key, 3)
        params["blocks"].append(dict(
            w=0.05 * jax.random.normal(k1, (3, 3, blk["cin"], blk["cout"]), jnp.float32),
            b=0.01 * jax.random.normal(k2, (blk["cout"],), jnp.float32)))
    key, k1, k2, k3, k4 = jax.random.split(key, 5)
    params["dense1"] = dict(
        w=0.05 * jax.random.normal(k1, (cfg["dense1_in"], cfg["n_neurons_p2"]), jnp.float32),
        b=0.01 * jax.random.normal(k2, (cfg["n_neurons_p2"],), jnp.float32))
    params["dense2"] = dict(
        w=0.05 * jax.random.normal(k3, (cfg["n_neurons_p2"], 1), jnp.float32),
        b=0.01 * jax.random.normal(k4, (1,), jnp.float32))
    return params


# ----------------------------------------------------------------------------
# Forward pass (matches discriminator.forward)
# ----------------------------------------------------------------------------
def make_forward(cfg):
    strides = tuple(int(blk["stride"]) for blk in cfg["blocks"])   # static under jit
    d1_in = cfg["dense1_in"]

    def forward(params, x_nchw):
        x = jnp.transpose(x_nchw, (0, 2, 3, 1))                    # NCHW -> NHWC
        x = conv3x3_lrelu(x, params["conv1"]["w"], params["conv1"]["b"], stride=1)
        # TODO(synk): residual_block1lrelu is not defined in the reference file; each
        # block is implemented as Conv2d(3x3, stride, padding=1) + LeakyReLU, which
        # matches the channel/stride/size bookkeeping used by discriminator.__init__.
        for blk_p, s in zip(params["blocks"], strides):
            x = conv3x3_lrelu(x, blk_p["w"], blk_p["b"], stride=s)
        n = x.shape[0]
        x = jnp.transpose(x, (0, 3, 1, 2)).reshape(n, -1)          # torch NCHW Flatten order
        assert x.shape[1] == d1_in == params["dense1"]["w"].shape[0]
        return dense_head(x, params["dense1"]["w"], params["dense1"]["b"],
                          params["dense2"]["w"], params["dense2"]["b"])

    return forward


if __name__ == "__main__":
    # Small config consistent with the module:
    # batch=2, im_channels=3, highres_size=(16,16), n_neurons_p1=8, n_neurons_p2=32
    cfg = build_config(n_residual_blocks=7, im_channels=3,
                       n_neurons_p1=8, n_neurons_p2=32, highres_size=(16, 16))
    key = jax.random.PRNGKey(0)
    key, pkey, xkey = jax.random.split(key, 3)
    params = init_params(pkey, cfg)
    x = jax.random.normal(xkey, (2, 3, 16, 16), jnp.float32)       # NCHW, like torch

    forward = jax.jit(make_forward(cfg))
    out = jax.block_until_ready(forward(params, x))

    assert out.shape == (2, 1), out.shape
    assert bool(jnp.all(jnp.isfinite(out)))
    assert bool(jnp.all((out >= 0.0) & (out <= 1.0)))
    print("KERNEL_OK")
</pallas_src>

<mosaic_0001>
module attributes {stable_mosaic.version = 11 : i64} {
  func.func @_conv3x3_lrelu_kernel(%arg0: i32, %arg1: i32, %arg2: memref<1x18x18x3xbf16, #tpu.memory_space<vmem>>, %arg3: memref<9x3x128xbf16, #tpu.memory_space<vmem>>, %arg4: memref<1x128xf32, #tpu.memory_space<vmem>>, %arg5: memref<1x256x128xbf16, #tpu.memory_space<vmem>>) attributes {dimension_semantics = [#tpu.dimension_semantics<parallel>, #tpu.dimension_semantics<parallel>], iteration_bounds = array<i64: 2, 1>, scalar_prefetch = 0 : i64, scratch_operands = 0 : i64, tpu.core_type = #tpu.core_type<tc>, window_params = [{transform_indices = @transform_0, window_bounds = array<i64: 1, 18, 18, 3>}, {transform_indices = @transform_1, window_bounds = array<i64: 9, 3, 128>}, {transform_indices = @transform_2, window_bounds = array<i64: 1, 128>}, {transform_indices = @transform_3, window_bounds = array<i64: 1, 256, 128>}]} {
    %cst = arith.constant 0.000000e+00 : f32
    %0 = vector.broadcast %cst : f32 to vector<256x128xf32>
    %c0 = arith.constant 0 : index
    %c0_0 = arith.constant 0 : index
    %c0_1 = arith.constant 0 : index
    %c0_2 = arith.constant 0 : index
    %1 = vector.load %arg2[%c0, %c0_0, %c0_1, %c0_2] : memref<1x18x18x3xbf16, #tpu.memory_space<vmem>>, vector<1x16x16x3xbf16>
    %2 = vector.shape_cast %1 : vector<1x16x16x3xbf16> to vector<16x16x3xbf16>
    %3 = vector.shape_cast %2 : vector<16x16x3xbf16> to vector<256x3xbf16>
    %c0_3 = arith.constant 0 : index
    %c0_4 = arith.constant 0 : index
    %c0_5 = arith.constant 0 : index
    %4 = vector.load %arg3[%c0_3, %c0_4, %c0_5] : memref<9x3x128xbf16, #tpu.memory_space<vmem>>, vector<1x3x128xbf16>
    %5 = vector.shape_cast %4 : vector<1x3x128xbf16> to vector<3x128xbf16>
    %cst_6 = arith.constant dense<0.000000e+00> : vector<256x128xf32>
    %6 = tpu.matmul %3, %5, %cst_6 {dimension_numbers = #tpu.dot_dimension_numbers<[1], [0], [0], [1], [0, 0, 1, 1], [], []>} : vector<256x3xbf16>, vector<3x128xbf16>, vector<256x128xf32> -> vector<256x128xf32>
    %7 = arith.addf %0, %6 : vector<256x128xf32>
    %c0_7 = arith.constant 0 : index
    %c0_8 = arith.constant 0 : index
    %c1 = arith.constant 1 : index
    %c0_9 = arith.constant 0 : index
    %8 = vector.load %arg2[%c0_7, %c0_8, %c1, %c0_9] : memref<1x18x18x3xbf16, #tpu.memory_space<vmem>>, vector<1x16x16x3xbf16>
    %9 = vector.shape_cast %8 : vector<1x16x16x3xbf16> to vector<16x16x3xbf16>
    %10 = vector.shape_cast %9 : vector<16x16x3xbf16> to vector<256x3xbf16>
    %c1_10 = arith.constant 1 : index
    %c0_11 = arith.constant 0 : index
    %c0_12 = arith.constant 0 : index
    %11 = vector.load %arg3[%c1_10, %c0_11, %c0_12] : memref<9x3x128xbf16, #tpu.memory_space<vmem>>, vector<1x3x128xbf16>
    %12 = vector.shape_cast %11 : vector<1x3x128xbf16> to vector<3x128xbf16>
    %cst_13 = arith.constant dense<0.000000e+00> : vector<256x128xf32>
    %13 = tpu.matmul %10, %12, %cst_13 {dimension_numbers = #tpu.dot_dimension_numbers<[1], [0], [0], [1], [0, 0, 1, 1], [], []>} : vector<256x3xbf16>, vector<3x128xbf16>, vector<256x128xf32> -> vector<256x128xf32>
    %14 = arith.addf %7, %13 : vector<256x128xf32>
    %c0_14 = arith.constant 0 : index
    %c0_15 = arith.constant 0 : index
    %c2 = arith.constant 2 : index
    %c0_16 = arith.constant 0 : index
    %15 = vector.load %arg2[%c0_14, %c0_15, %c2, %c0_16] : memref<1x18x18x3xbf16, #tpu.memory_space<vmem>>, vector<1x16x16x3xbf16>
    %16 = vector.shape_cast %15 : vector<1x16x16x3xbf16> to vector<16x16x3xbf16>
    %17 = vector.shape_cast %16 : vector<16x16x3xbf16> to vector<256x3xbf16>
    %c2_17 = arith.constant 2 : index
    %c0_18 = arith.constant 0 : index
    %c0_19 = arith.constant 0 : index
    %18 = vector.load %arg3[%c2_17, %c0_18, %c0_19] : memref<9x3x128xbf16, #tpu.memory_space<vmem>>, vector<1x3x128xbf16>
    %19 = vector.shape_cast %18 : vector<1x3x128xbf16> to vector<3x128xbf16>
    %cst_20 = arith.constant dense<0.000000e+00> : vector<256x128xf32>
    %20 = tpu.matmul %17, %19, %cst_20 {dimension_numbers = #tpu.dot_dimension_numbers<[1], [0], [0], [1], [0, 0, 1, 1], [], []>} : vector<256x3xbf16>, vector<3x128xbf16>, vector<256x128xf32> -> vector<256x128xf32>
    %21 = arith.addf %14, %20 : vector<256x128xf32>
    %c0_21 = arith.constant 0 : index
    %c1_22 = arith.constant 1 : index
    %c0_23 = arith.constant 0 : index
    %c0_24 = arith.constant 0 : index
    %22 = vector.load %arg2[%c0_21, %c1_22, %c0_23, %c0_24] : memref<1x18x18x3xbf16, #tpu.memory_space<vmem>>, vector<1x16x16x3xbf16>
    %23 = vector.shape_cast %22 : vector<1x16x16x3xbf16> to vector<16x16x3xbf16>
    %24 = vector.shape_cast %23 : vector<16x16x3xbf16> to vector<256x3xbf16>
    %c3 = arith.constant 3 : index
    %c0_25 = arith.constant 0 : index
    %c0_26 = arith.constant 0 : index
    %25 = vector.load %arg3[%c3, %c0_25, %c0_26] : memref<9x3x128xbf16, #tpu.memory_space<vmem>>, vector<1x3x128xbf16>
    %26 = vector.shape_cast %25 : vector<1x3x128xbf16> to vector<3x128xbf16>
    %cst_27 = arith.constant dense<0.000000e+00> : vector<256x128xf32>
    %27 = tpu.matmul %24, %26, %cst_27 {dimension_numbers = #tpu.dot_dimension_numbers<[1], [0], [0], [1], [0, 0, 1, 1], [], []>} : vector<256x3xbf16>, vector<3x128xbf16>, vector<256x128xf32> -> vector<256x128xf32>
    %28 = arith.addf %21, %27 : vector<256x128xf32>
    %c0_28 = arith.constant 0 : index
    %c1_29 = arith.constant 1 : index
    %c1_30 = arith.constant 1 : index
    %c0_31 = arith.constant 0 : index
    %29 = vector.load %arg2[%c0_28, %c1_29, %c1_30, %c0_31] : memref<1x18x18x3xbf16, #tpu.memory_space<vmem>>, vector<1x16x16x3xbf16>
    %30 = vector.shape_cast %29 : vector<1x16x16x3xbf16> to vector<16x16x3xbf16>
    %31 = vector.shape_cast %30 : vector<16x16x3xbf16> to vector<256x3xbf16>
    %c4 = arith.constant 4 : index
    %c0_32 = arith.constant 0 : index
    %c0_33 = arith.constant 0 : index
    %32 = vector.load %arg3[%c4, %c0_32, %c0_33] : memref<9x3x128xbf16, #tpu.memory_space<vmem>>, vector<1x3x128xbf16>
    %33 = vector.shape_cast %32 : vector<1x3x128xbf16> to vector<3x128xbf16>
    %cst_34 = arith.constant dense<0.000000e+00> : vector<256x128xf32>
    %34 = tpu.matmul %31, %33, %cst_34 {dimension_numbers = #tpu.dot_dimension_numbers<[1], [0], [0], [1], [0, 0, 1, 1], [], []>} : vector<256x3xbf16>, vector<3x128xbf16>, vector<256x128xf32> -> vector<256x128xf32>
    %35 = arith.addf %28, %34 : vector<256x128xf32>
    %c0_35 = arith.constant 0 : index
    %c1_36 = arith.constant 1 : index
    %c2_37 = arith.constant 2 : index
    %c0_38 = arith.constant 0 : index
    %36 = vector.load %arg2[%c0_35, %c1_36, %c2_37, %c0_38] : memref<1x18x18x3xbf16, #tpu.memory_space<vmem>>, vector<1x16x16x3xbf16>
    %37 = vector.shape_cast %36 : vector<1x16x16x3xbf16> to vector<16x16x3xbf16>
    %38 = vector.shape_cast %37 : vector<16x16x3xbf16> to vector<256x3xbf16>
    %c5 = arith.constant 5 : index
    %c0_39 = arith.constant 0 : index
    %c0_40 = arith.constant 0 : index
    %39 = vector.load %arg3[%c5, %c0_39, %c0_40] : memref<9x3x128xbf16, #tpu.memory_space<vmem>>, vector<1x3x128xbf16>
    %40 = vector.shape_cast %39 : vector<1x3x128xbf16> to vector<3x128xbf16>
    %cst_41 = arith.constant dense<0.000000e+00> : vector<256x128xf32>
    %41 = tpu.matmul %38, %40, %cst_41 {dimension_numbers = #tpu.dot_dimension_numbers<[1], [0], [0], [1], [0, 0, 1, 1], [], []>} : vector<256x3xbf16>, vector<3x128xbf16>, vector<256x128xf32> -> vector<256x128xf32>
    %42 = arith.addf %35, %41 : vector<256x128xf32>
    %c0_42 = arith.constant 0 : index
    %c2_43 = arith.constant 2 : index
    %c0_44 = arith.constant 0 : index
    %c0_45 = arith.constant 0 : index
    %43 = vector.load %arg2[%c0_42, %c2_43, %c0_44, %c0_45] : memref<1x18x18x3xbf16, #tpu.memory_space<vmem>>, vector<1x16x16x3xbf16>
    %44 = vector.shape_cast %43 : vector<1x16x16x3xbf16> to vector<16x16x3xbf16>
    %45 = vector.shape_cast %44 : vector<16x16x3xbf16> to vector<256x3xbf16>
    %c6 = arith.constant 6 : index
    %c0_46 = arith.constant 0 : index
    %c0_47 = arith.constant 0 : index
    %46 = vector.load %arg3[%c6, %c0_46, %c0_47] : memref<9x3x128xbf16, #tpu.memory_space<vmem>>, vector<1x3x128xbf16>
    %47 = vector.shape_cast %46 : vector<1x3x128xbf16> to vector<3x128xbf16>
    %cst_48 = arith.constant dense<0.000000e+00> : vector<256x128xf32>
    %48 = tpu.matmul %45, %47, %cst_48 {dimension_numbers = #tpu.dot_dimension_numbers<[1], [0], [0], [1], [0, 0, 1, 1], [], []>} : vector<256x3xbf16>, vector<3x128xbf16>, vector<256x128xf32> -> vector<256x128xf32>
    %49 = arith.addf %42, %48 : vector<256x128xf32>
    %c0_49 = arith.constant 0 : index
    %c2_50 = arith.constant 2 : index
    %c1_51 = arith.constant 1 : index
    %c0_52 = arith.constant 0 : index
    %50 = vector.load %arg2[%c0_49, %c2_50, %c1_51, %c0_52] : memref<1x18x18x3xbf16, #tpu.memory_space<vmem>>, vector<1x16x16x3xbf16>
    %51 = vector.shape_cast %50 : vector<1x16x16x3xbf16> to vector<16x16x3xbf16>
    %52 = vector.shape_cast %51 : vector<16x16x3xbf16> to vector<256x3xbf16>
    %c7 = arith.constant 7 : index
    %c0_53 = arith.constant 0 : index
    %c0_54 = arith.constant 0 : index
    %53 = vector.load %arg3[%c7, %c0_53, %c0_54] : memref<9x3x128xbf16, #tpu.memory_space<vmem>>, vector<1x3x128xbf16>
    %54 = vector.shape_cast %53 : vector<1x3x128xbf16> to vector<3x128xbf16>
    %cst_55 = arith.constant dense<0.000000e+00> : vector<256x128xf32>
    %55 = tpu.matmul %52, %54, %cst_55 {dimension_numbers = #tpu.dot_dimension_numbers<[1], [0], [0], [1], [0, 0, 1, 1], [], []>} : vector<256x3xbf16>, vector<3x128xbf16>, vector<256x128xf32> -> vector<256x128xf32>
    %56 = arith.addf %49, %55 : vector<256x128xf32>
    %c0_56 = arith.constant 0 : index
    %c2_57 = arith.constant 2 : index
    %c2_58 = arith.constant 2 : index
    %c0_59 = arith.constant 0 : index
    %57 = vector.load %arg2[%c0_56, %c2_57, %c2_58, %c0_59] : memref<1x18x18x3xbf16, #tpu.memory_space<vmem>>, vector<1x16x16x3xbf16>
    %58 = vector.shape_cast %57 : vector<1x16x16x3xbf16> to vector<16x16x3xbf16>
    %59 = vector.shape_cast %58 : vector<16x16x3xbf16> to vector<256x3xbf16>
    %c8 = arith.constant 8 : index
    %c0_60 = arith.constant 0 : index
    %c0_61 = arith.constant 0 : index
    %60 = vector.load %arg3[%c8, %c0_60, %c0_61] : memref<9x3x128xbf16, #tpu.memory_space<vmem>>, vector<1x3x128xbf16>
    %61 = vector.shape_cast %60 : vector<1x3x128xbf16> to vector<3x128xbf16>
    %cst_62 = arith.constant dense<0.000000e+00> : vector<256x128xf32>
    %62 = tpu.matmul %59, %61, %cst_62 {dimension_numbers = #tpu.dot_dimension_numbers<[1], [0], [0], [1], [0, 0, 1, 1], [], []>} : vector<256x3xbf16>, vector<3x128xbf16>, vector<256x128xf32> -> vector<256x128xf32>
    %63 = arith.addf %56, %62 : vector<256x128xf32>
    %c0_63 = arith.constant 0 : index
    %c0_64 = arith.constant 0 : index
    %64 = vector.load %arg4[%c0_63, %c0_64] : memref<1x128xf32, #tpu.memory_space<vmem>>, vector<1x128xf32>
    %65 = vector.broadcast %64 : vector<1x128xf32> to vector<256x128xf32>
    %66 = arith.addf %63, %65 : vector<256x128xf32>
    %cst_65 = arith.constant 0.000000e+00 : f32
    %67 = vector.broadcast %cst_65 : f32 to vector<256x128xf32>
    %68 = arith.cmpf ogt, %66, %67 : vector<256x128xf32>
    %cst_66 = arith.constant 0.00999999977 : f32
    %69 = vector.broadcast %cst_66 : f32 to vector<256x128xf32>
    %70 = arith.mulf %69, %66 : vector<256x128xf32>
    %71 = arith.select %68, %66, %70 : vector<256x128xi1>, vector<256x128xf32>
    %72 = arith.truncf %71 : vector<256x128xf32> to vector<256x128xbf16>
    %c0_67 = arith.constant 0 : index
    %c0_68 = arith.constant 0 : index
    %c0_69 = arith.constant 0 : index
    %73 = vector.load %arg5[%c0_67, %c0_68, %c0_69] : memref<1x256x128xbf16, #tpu.memory_space<vmem>>, vector<1x256x128xbf16>
    %74 = vector.shape_cast %73 : vector<1x256x128xbf16> to vector<256x128xbf16>
    %75 = vector.shape_cast %72 : vector<256x128xbf16> to vector<1x256x128xbf16>
    tpu.vector_store %arg5[%c0_67, %c0_68, %c0_69], %75 {strides = array<i32>} : memref<1x256x128xbf16, #tpu.memory_space<vmem>>, vector<1x256x128xbf16>,
    return
  }
  func.func @transform_0(%arg0: i32, %arg1: i32) -> (i32, i32, i32, i32) {
    %c0_i32 = arith.constant 0 : i32
    %c0_i32_0 = arith.constant 0 : i32
    %c0_i32_1 = arith.constant 0 : i32
    %c0_i32_2 = arith.constant 0 : i32
    return %arg0, %c0_i32, %c0_i32_0, %c0_i32_1 : i32, i32, i32, i32
  }
  func.func @transform_1(%arg0: i32, %arg1: i32) -> (i32, i32, i32) {
    %c0_i32 = arith.constant 0 : i32
    %c0_i32_0 = arith.constant 0 : i32
    %c0_i32_1 = arith.constant 0 : i32
    return %c0_i32, %c0_i32_0, %arg1 : i32, i32, i32
  }
  func.func @transform_2(%arg0: i32, %arg1: i32) -> (i32, i32) {
    %c0_i32 = arith.constant 0 : i32
    %c0_i32_0 = arith.constant 0 : i32
    return %c0_i32, %arg1 : i32, i32
  }
  func.func @transform_3(%arg0: i32, %arg1: i32) -> (i32, i32, i32) {
    %c0_i32 = arith.constant 0 : i32
    %c0_i32_0 = arith.constant 0 : i32
    return %arg0, %c0_i32, %arg1 : i32, i32, i32
  }
}

module attributes {stable_mosaic.version = 11 : i64} {
  func.func @_conv3x3_lrelu_kernel(%arg0: i32, %arg1: i32, %arg2: memref<4x9x9x8xbf16, #tpu.memory_space<vmem>>, %arg3: memref<9x8x128xbf16, #tpu.memory_space<vmem>>, %arg4: memref<1x128xf32, #tpu.memory_space<vmem>>, %arg5: memref<1x64x128xbf16, #tpu.memory_space<vmem>>) attributes {dimension_semantics = [#tpu.dimension_semantics<parallel>, #tpu.dimension_semantics<parallel>], iteration_bounds = array<i64: 2, 1>, scalar_prefetch = 0 : i64, scratch_operands = 0 : i64, tpu.core_type = #tpu.core_type<tc>, window_params = [{transform_indices = @transform_0, window_bounds = array<i64: 4, 9, 9, 8>}, {transform_indices = @transform_1, window_bounds = array<i64: 9, 8, 128>}, {transform_indices = @transform_2, window_bounds = array<i64: 1, 128>}, {transform_indices = @transform_3, window_bounds = array<i64: 1, 64, 128>}]} {
    %cst = arith.constant 0.000000e+00 : f32
    %0 = vector.broadcast %cst : f32 to vector<64x128xf32>
    %c0 = arith.constant 0 : index
    %c0_0 = arith.constant 0 : index
    %c0_1 = arith.constant 0 : index
    %c0_2 = arith.constant 0 : index
    %1 = vector.load %arg2[%c0, %c0_0, %c0_1, %c0_2] : memref<4x9x9x8xbf16, #tpu.memory_space<vmem>>, vector<1x8x8x8xbf16>
    %2 = vector.shape_cast %1 : vector<1x8x8x8xbf16> to vector<8x8x8xbf16>
    %3 = vector.shape_cast %2 : vector<8x8x8xbf16> to vector<64x8xbf16>
    %c0_3 = arith.constant 0 : index
    %c0_4 = arith.constant 0 : index
    %c0_5 = arith.constant 0 : index
    %4 = vector.load %arg3[%c0_3, %c0_4, %c0_5] : memref<9x8x128xbf16, #tpu.memory_space<vmem>>, vector<1x8x128xbf16>
    %5 = vector.shape_cast %4 : vector<1x8x128xbf16> to vector<8x128xbf16>
    %cst_6 = arith.constant dense<0.000000e+00> : vector<64x128xf32>
    %6 = tpu.matmul %3, %5, %cst_6 {dimension_numbers = #tpu.dot_dimension_numbers<[1], [0], [0], [1], [0, 0, 1, 1], [], []>} : vector<64x8xbf16>, vector<8x128xbf16>, vector<64x128xf32> -> vector<64x128xf32>
    %7 = arith.addf %0, %6 : vector<64x128xf32>
    %c1 = arith.constant 1 : index
    %c0_7 = arith.constant 0 : index
    %c0_8 = arith.constant 0 : index
    %c0_9 = arith.constant 0 : index
    %8 = vector.load %arg2[%c1, %c0_7, %c0_8, %c0_9] : memref<4x9x9x8xbf16, #tpu.memory_space<vmem>>, vector<1x8x8x8xbf16>
    %9 = vector.shape_cast %8 : vector<1x8x8x8xbf16> to vector<8x8x8xbf16>
    %10 = vector.shape_cast %9 : vector<8x8x8xbf16> to vector<64x8xbf16>
    %c1_10 = arith.constant 1 : index
    %c0_11 = arith.constant 0 : index
    %c0_12 = arith.constant 0 : index
    %11 = vector.load %arg3[%c1_10, %c0_11, %c0_12] : memref<9x8x128xbf16, #tpu.memory_space<vmem>>, vector<1x8x128xbf16>
    %12 = vector.shape_cast %11 : vector<1x8x128xbf16> to vector<8x128xbf16>
    %cst_13 = arith.constant dense<0.000000e+00> : vector<64x128xf32>
    %13 = tpu.matmul %10, %12, %cst_13 {dimension_numbers = #tpu.dot_dimension_numbers<[1], [0], [0], [1], [0, 0, 1, 1], [], []>} : vector<64x8xbf16>, vector<8x128xbf16>, vector<64x128xf32> -> vector<64x128xf32>
    %14 = arith.addf %7, %13 : vector<64x128xf32>
    %c0_14 = arith.constant 0 : index
    %c0_15 = arith.constant 0 : index
    %c1_16 = arith.constant 1 : index
    %c0_17 = arith.constant 0 : index
    %15 = vector.load %arg2[%c0_14, %c0_15, %c1_16, %c0_17] : memref<4x9x9x8xbf16, #tpu.memory_space<vmem>>, vector<1x8x8x8xbf16>
    %16 = vector.shape_cast %15 : vector<1x8x8x8xbf16> to vector<8x8x8xbf16>
    %17 = vector.shape_cast %16 : vector<8x8x8xbf16> to vector<64x8xbf16>
    %c2 = arith.constant 2 : index
    %c0_18 = arith.constant 0 : index
    %c0_19 = arith.constant 0 : index
    %18 = vector.load %arg3[%c2, %c0_18, %c0_19] : memref<9x8x128xbf16, #tpu.memory_space<vmem>>, vector<1x8x128xbf16>
    %19 = vector.shape_cast %18 : vector<1x8x128xbf16> to vector<8x128xbf16>
    %cst_20 = arith.constant dense<0.000000e+00> : vector<64x128xf32>
    %20 = tpu.matmul %17, %19, %cst_20 {dimension_numbers = #tpu.dot_dimension_numbers<[1], [0], [0], [1], [0, 0, 1, 1], [], []>} : vector<64x8xbf16>, vector<8x128xbf16>, vector<64x128xf32> -> vector<64x128xf32>
    %21 = arith.addf %14, %20 : vector<64x128xf32>
    %c2_21 = arith.constant 2 : index
    %c0_22 = arith.constant 0 : index
    %c0_23 = arith.constant 0 : index
    %c0_24 = arith.constant 0 : index
    %22 = vector.load %arg2[%c2_21, %c0_22, %c0_23, %c0_24] : memref<4x9x9x8xbf16, #tpu.memory_space<vmem>>, vector<1x8x8x8xbf16>
    %23 = vector.shape_cast %22 : vector<1x8x8x8xbf16> to vector<8x8x8xbf16>
    %24 = vector.shape_cast %23 : vector<8x8x8xbf16> to vector<64x8xbf16>
    %c3 = arith.constant 3 : index
    %c0_25 = arith.constant 0 : index
    %c0_26 = arith.constant 0 : index
    %25 = vector.load %arg3[%c3, %c0_25, %c0_26] : memref<9x8x128xbf16, #tpu.memory_space<vmem>>, vector<1x8x128xbf16>
    %26 = vector.shape_cast %25 : vector<1x8x128xbf16> to vector<8x128xbf16>
    %cst_27 = arith.constant dense<0.000000e+00> : vector<64x128xf32>
    %27 = tpu.matmul %24, %26, %cst_27 {dimension_numbers = #tpu.dot_dimension_numbers<[1], [0], [0], [1], [0, 0, 1, 1], [], []>} : vector<64x8xbf16>, vector<8x128xbf16>, vector<64x128xf32> -> vector<64x128xf32>
    %28 = arith.addf %21, %27 : vector<64x128xf32>
    %c3_28 = arith.constant 3 : index
    %c0_29 = arith.constant 0 : index
    %c0_30 = arith.constant 0 : index
    %c0_31 = arith.constant 0 : index
    %29 = vector.load %arg2[%c3_28, %c0_29, %c0_30, %c0_31] : memref<4x9x9x8xbf16, #tpu.memory_space<vmem>>, vector<1x8x8x8xbf16>
    %30 = vector.shape_cast %29 : vector<1x8x8x8xbf16> to vector<8x8x8xbf16>
    %31 = vector.shape_cast %30 : vector<8x8x8xbf16> to vector<64x8xbf16>
    %c4 = arith.constant 4 : index
    %c0_32 = arith.constant 0 : index
    %c0_33 = arith.constant 0 : index
    %32 = vector.load %arg3[%c4, %c0_32, %c0_33] : memref<9x8x128xbf16, #tpu.memory_space<vmem>>, vector<1x8x128xbf16>
    %33 = vector.shape_cast %32 : vector<1x8x128xbf16> to vector<8x128xbf16>
    %cst_34 = arith.constant dense<0.000000e+00> : vector<64x128xf32>
    %34 = tpu.matmul %31, %33, %cst_34 {dimension_numbers = #tpu.dot_dimension_numbers<[1], [0], [0], [1], [0, 0, 1, 1], [], []>} : vector<64x8xbf16>, vector<8x128xbf16>, vector<64x128xf32> -> vector<64x128xf32>
    %35 = arith.addf %28, %34 : vector<64x128xf32>
    %c2_35 = arith.constant 2 : index
    %c0_36 = arith.constant 0 : index
    %c1_37 = arith.constant 1 : index
    %c0_38 = arith.constant 0 : index
    %36 = vector.load %arg2[%c2_35, %c0_36, %c1_37, %c0_38] : memref<4x9x9x8xbf16, #tpu.memory_space<vmem>>, vector<1x8x8x8xbf16>
    %37 = vector.shape_cast %36 : vector<1x8x8x8xbf16> to vector<8x8x8xbf16>
    %38 = vector.shape_cast %37 : vector<8x8x8xbf16> to vector<64x8xbf16>
    %c5 = arith.constant 5 : index
    %c0_39 = arith.constant 0 : index
    %c0_40 = arith.constant 0 : index
    %39 = vector.load %arg3[%c5, %c0_39, %c0_40] : memref<9x8x128xbf16, #tpu.memory_space<vmem>>, vector<1x8x128xbf16>
    %40 = vector.shape_cast %39 : vector<1x8x128xbf16> to vector<8x128xbf16>
    %cst_41 = arith.constant dense<0.000000e+00> : vector<64x128xf32>
    %41 = tpu.matmul %38, %40, %cst_41 {dimension_numbers = #tpu.dot_dimension_numbers<[1], [0], [0], [1], [0, 0, 1, 1], [], []>} : vector<64x8xbf16>, vector<8x128xbf16>, vector<64x128xf32> -> vector<64x128xf32>
    %42 = arith.addf %35, %41 : vector<64x128xf32>
    %c0_42 = arith.constant 0 : index
    %c1_43 = arith.constant 1 : index
    %c0_44 = arith.constant 0 : index
    %c0_45 = arith.constant 0 : index
    %43 = vector.load %arg2[%c0_42, %c1_43, %c0_44, %c0_45] : memref<4x9x9x8xbf16, #tpu.memory_space<vmem>>, vector<1x8x8x8xbf16>
    %44 = vector.shape_cast %43 : vector<1x8x8x8xbf16> to vector<8x8x8xbf16>
    %45 = vector.shape_cast %44 : vector<8x8x8xbf16> to vector<64x8xbf16>
    %c6 = arith.constant 6 : index
    %c0_46 = arith.constant 0 : index
    %c0_47 = arith.constant 0 : index
    %46 = vector.load %arg3[%c6, %c0_46, %c0_47] : memref<9x8x128xbf16, #tpu.memory_space<vmem>>, vector<1x8x128xbf16>
    %47 = vector.shape_cast %46 : vector<1x8x128xbf16> to vector<8x128xbf16>
    %cst_48 = arith.constant dense<0.000000e+00> : vector<64x128xf32>
    %48 = tpu.matmul %45, %47, %cst_48 {dimension_numbers = #tpu.dot_dimension_numbers<[1], [0], [0], [1], [0, 0, 1, 1], [], []>} : vector<64x8xbf16>, vector<8x128xbf16>, vector<64x128xf32> -> vector<64x128xf32>
    %49 = arith.addf %42, %48 : vector<64x128xf32>
    %c1_49 = arith.constant 1 : index
    %c1_50 = arith.constant 1 : index
    %c0_51 = arith.constant 0 : index
    %c0_52 = arith.constant 0 : index
    %50 = vector.load %arg2[%c1_49, %c1_50, %c0_51, %c0_52] : memref<4x9x9x8xbf16, #tpu.memory_space<vmem>>, vector<1x8x8x8xbf16>
    %51 = vector.shape_cast %50 : vector<1x8x8x8xbf16> to vector<8x8x8xbf16>
    %52 = vector.shape_cast %51 : vector<8x8x8xbf16> to vector<64x8xbf16>
    %c7 = arith.constant 7 : index
    %c0_53 = arith.constant 0 : index
    %c0_54 = arith.constant 0 : index
    %53 = vector.load %arg3[%c7, %c0_53, %c0_54] : memref<9x8x128xbf16, #tpu.memory_space<vmem>>, vector<1x8x128xbf16>
    %54 = vector.shape_cast %53 : vector<1x8x128xbf16> to vector<8x128xbf16>
    %cst_55 = arith.constant dense<0.000000e+00> : vector<64x128xf32>
    %55 = tpu.matmul %52, %54, %cst_55 {dimension_numbers = #tpu.dot_dimension_numbers<[1], [0], [0], [1], [0, 0, 1, 1], [], []>} : vector<64x8xbf16>, vector<8x128xbf16>, vector<64x128xf32> -> vector<64x128xf32>
    %56 = arith.addf %49, %55 : vector<64x128xf32>
    %c0_56 = arith.constant 0 : index
    %c1_57 = arith.constant 1 : index
    %c1_58 = arith.constant 1 : index
    %c0_59 = arith.constant 0 : index
    %57 = vector.load %arg2[%c0_56, %c1_57, %c1_58, %c0_59] : memref<4x9x9x8xbf16, #tpu.memory_space<vmem>>, vector<1x8x8x8xbf16>
    %58 = vector.shape_cast %57 : vector<1x8x8x8xbf16> to vector<8x8x8xbf16>
    %59 = vector.shape_cast %58 : vector<8x8x8xbf16> to vector<64x8xbf16>
    %c8 = arith.constant 8 : index
    %c0_60 = arith.constant 0 : index
    %c0_61 = arith.constant 0 : index
    %60 = vector.load %arg3[%c8, %c0_60, %c0_61] : memref<9x8x128xbf16, #tpu.memory_space<vmem>>, vector<1x8x128xbf16>
    %61 = vector.shape_cast %60 : vector<1x8x128xbf16> to vector<8x128xbf16>
    %cst_62 = arith.constant dense<0.000000e+00> : vector<64x128xf32>
    %62 = tpu.matmul %59, %61, %cst_62 {dimension_numbers = #tpu.dot_dimension_numbers<[1], [0], [0], [1], [0, 0, 1, 1], [], []>} : vector<64x8xbf16>, vector<8x128xbf16>, vector<64x128xf32> -> vector<64x128xf32>
    %63 = arith.addf %56, %62 : vector<64x128xf32>
    %c0_63 = arith.constant 0 : index
    %c0_64 = arith.constant 0 : index
    %64 = vector.load %arg4[%c0_63, %c0_64] : memref<1x128xf32, #tpu.memory_space<vmem>>, vector<1x128xf32>
    %65 = vector.broadcast %64 : vector<1x128xf32> to vector<64x128xf32>
    %66 = arith.addf %63, %65 : vector<64x128xf32>
    %cst_65 = arith.constant 0.000000e+00 : f32
    %67 = vector.broadcast %cst_65 : f32 to vector<64x128xf32>
    %68 = arith.cmpf ogt, %66, %67 : vector<64x128xf32>
    %cst_66 = arith.constant 0.00999999977 : f32
    %69 = vector.broadcast %cst_66 : f32 to vector<64x128xf32>
    %70 = arith.mulf %69, %66 : vector<64x128xf32>
    %71 = arith.select %68, %66, %70 : vector<64x128xi1>, vector<64x128xf32>
    %72 = arith.truncf %71 : vector<64x128xf32> to vector<64x128xbf16>
    %c0_67 = arith.constant 0 : index
    %c0_68 = arith.constant 0 : index
    %c0_69 = arith.constant 0 : index
    %73 = vector.load %arg5[%c0_67, %c0_68, %c0_69] : memref<1x64x128xbf16, #tpu.memory_space<vmem>>, vector<1x64x128xbf16>
    %74 = vector.shape_cast %73 : vector<1x64x128xbf16> to vector<64x128xbf16>
    %75 = vector.shape_cast %72 : vector<64x128xbf16> to vector<1x64x128xbf16>
    tpu.vector_store %arg5[%c0_67, %c0_68, %c0_69], %75 {strides = array<i32>} : memref<1x64x128xbf16, #tpu.memory_space<vmem>>, vector<1x64x128xbf16>,
    return
  }
  func.func @transform_0(%arg0: i32, %arg1: i32) -> (i32, i32, i32, i32) {
    %c0_i32 = arith.constant 0 : i32
    %c0_i32_0 = arith.constant 0 : i32
    %c0_i32_1 = arith.constant 0 : i32
    %c0_i32_2 = arith.constant 0 : i32
    return %arg0, %c0_i32, %c0_i32_0, %c0_i32_1 : i32, i32, i32, i32
  }
  func.func @transform_1(%arg0: i32, %arg1: i32) -> (i32, i32, i32) {
    %c0_i32 = arith.constant 0 : i32
    %c0_i32_0 = arith.constant 0 : i32
    %c0_i32_1 = arith.constant 0 : i32
    return %c0_i32, %c0_i32_0, %arg1 : i32, i32, i32
  }
  func.func @transform_2(%arg0: i32, %arg1: i32) -> (i32, i32) {
    %c0_i32 = arith.constant 0 : i32
    %c0_i32_0 = arith.constant 0 : i32
    return %c0_i32, %arg1 : i32, i32
  }
  func.func @transform_3(%arg0: i32, %arg1: i32) -> (i32, i32, i32) {
    %c0_i32 = arith.constant 0 : i32
    %c0_i32_0 = arith.constant 0 : i32
    return %arg0, %c0_i32, %arg1 : i32, i32, i32
  }
}

module attributes {stable_mosaic.version = 11 : i64} {
  func.func @_conv3x3_lrelu_kernel(%arg0: i32, %arg1: i32, %arg2: memref<1x10x10x8xbf16, #tpu.memory_space<vmem>>, %arg3: memref<9x8x128xbf16, #tpu.memory_space<vmem>>, %arg4: memref<1x128xf32, #tpu.memory_space<vmem>>, %arg5: memref<1x64x128xbf16, #tpu.memory_space<vmem>>) attributes {dimension_semantics = [#tpu.dimension_semantics<parallel>, #tpu.dimension_semantics<parallel>], iteration_bounds = array<i64: 2, 1>, scalar_prefetch = 0 : i64, scratch_operands = 0 : i64, tpu.core_type = #tpu.core_type<tc>, window_params = [{transform_indices = @transform_0, window_bounds = array<i64: 1, 10, 10, 8>}, {transform_indices = @transform_1, window_bounds = array<i64: 9, 8, 128>}, {transform_indices = @transform_2, window_bounds = array<i64: 1, 128>}, {transform_indices = @transform_3, window_bounds = array<i64: 1, 64, 128>}]} {
    %cst = arith.constant 0.000000e+00 : f32
    %0 = vector.broadcast %cst : f32 to vector<64x128xf32>
    %c0 = arith.constant 0 : index
    %c0_0 = arith.constant 0 : index
    %c0_1 = arith.constant 0 : index
    %c0_2 = arith.constant 0 : index
    %1 = vector.load %arg2[%c0, %c0_0, %c0_1, %c0_2] : memref<1x10x10x8xbf16, #tpu.memory_space<vmem>>, vector<1x8x8x8xbf16>
    %2 = vector.shape_cast %1 : vector<1x8x8x8xbf16> to vector<8x8x8xbf16>
    %3 = vector.shape_cast %2 : vector<8x8x8xbf16> to vector<64x8xbf16>
    %c0_3 = arith.constant 0 : index
    %c0_4 = arith.constant 0 : index
    %c0_5 = arith.constant 0 : index
    %4 = vector.load %arg3[%c0_3, %c0_4, %c0_5] : memref<9x8x128xbf16, #tpu.memory_space<vmem>>, vector<1x8x128xbf16>
    %5 = vector.shape_cast %4 : vector<1x8x128xbf16> to vector<8x128xbf16>
    %cst_6 = arith.constant dense<0.000000e+00> : vector<64x128xf32>
    %6 = tpu.matmul %3, %5, %cst_6 {dimension_numbers = #tpu.dot_dimension_numbers<[1], [0], [0], [1], [0, 0, 1, 1], [], []>} : vector<64x8xbf16>, vector<8x128xbf16>, vector<64x128xf32> -> vector<64x128xf32>
    %7 = arith.addf %0, %6 : vector<64x128xf32>
    %c0_7 = arith.constant 0 : index
    %c0_8 = arith.constant 0 : index
    %c1 = arith.constant 1 : index
    %c0_9 = arith.constant 0 : index
    %8 = vector.load %arg2[%c0_7, %c0_8, %c1, %c0_9] : memref<1x10x10x8xbf16, #tpu.memory_space<vmem>>, vector<1x8x8x8xbf16>
    %9 = vector.shape_cast %8 : vector<1x8x8x8xbf16> to vector<8x8x8xbf16>
    %10 = vector.shape_cast %9 : vector<8x8x8xbf16> to vector<64x8xbf16>
    %c1_10 = arith.constant 1 : index
    %c0_11 = arith.constant 0 : index
    %c0_12 = arith.constant 0 : index
    %11 = vector.load %arg3[%c1_10, %c0_11, %c0_12] : memref<9x8x128xbf16, #tpu.memory_space<vmem>>, vector<1x8x128xbf16>
    %12 = vector.shape_cast %11 : vector<1x8x128xbf16> to vector<8x128xbf16>
    %cst_13 = arith.constant dense<0.000000e+00> : vector<64x128xf32>
    %13 = tpu.matmul %10, %12, %cst_13 {dimension_numbers = #tpu.dot_dimension_numbers<[1], [0], [0], [1], [0, 0, 1, 1], [], []>} : vector<64x8xbf16>, vector<8x128xbf16>, vector<64x128xf32> -> vector<64x128xf32>
    %14 = arith.addf %7, %13 : vector<64x128xf32>
    %c0_14 = arith.constant 0 : index
    %c0_15 = arith.constant 0 : index
    %c2 = arith.constant 2 : index
    %c0_16 = arith.constant 0 : index
    %15 = vector.load %arg2[%c0_14, %c0_15, %c2, %c0_16] : memref<1x10x10x8xbf16, #tpu.memory_space<vmem>>, vector<1x8x8x8xbf16>
    %16 = vector.shape_cast %15 : vector<1x8x8x8xbf16> to vector<8x8x8xbf16>
    %17 = vector.shape_cast %16 : vector<8x8x8xbf16> to vector<64x8xbf16>
    %c2_17 = arith.constant 2 : index
    %c0_18 = arith.constant 0 : index
    %c0_19 = arith.constant 0 : index
    %18 = vector.load %arg3[%c2_17, %c0_18, %c0_19] : memref<9x8x128xbf16, #tpu.memory_space<vmem>>, vector<1x8x128xbf16>
    %19 = vector.shape_cast %18 : vector<1x8x128xbf16> to vector<8x128xbf16>
    %cst_20 = arith.constant dense<0.000000e+00> : vector<64x128xf32>
    %20 = tpu.matmul %17, %19, %cst_20 {dimension_numbers = #tpu.dot_dimension_numbers<[1], [0], [0], [1], [0, 0, 1, 1], [], []>} : vector<64x8xbf16>, vector<8x128xbf16>, vector<64x128xf32> -> vector<64x128xf32>
    %21 = arith.addf %14, %20 : vector<64x128xf32>
    %c0_21 = arith.constant 0 : index
    %c1_22 = arith.constant 1 : index
    %c0_23 = arith.constant 0 : index
    %c0_24 = arith.constant 0 : index
    %22 = vector.load %arg2[%c0_21, %c1_22, %c0_23, %c0_24] : memref<1x10x10x8xbf16, #tpu.memory_space<vmem>>, vector<1x8x8x8xbf16>
    %23 = vector.shape_cast %22 : vector<1x8x8x8xbf16> to vector<8x8x8xbf16>
    %24 = vector.shape_cast %23 : vector<8x8x8xbf16> to vector<64x8xbf16>
    %c3 = arith.constant 3 : index
    %c0_25 = arith.constant 0 : index
    %c0_26 = arith.constant 0 : index
    %25 = vector.load %arg3[%c3, %c0_25, %c0_26] : memref<9x8x128xbf16, #tpu.memory_space<vmem>>, vector<1x8x128xbf16>
    %26 = vector.shape_cast %25 : vector<1x8x128xbf16> to vector<8x128xbf16>
    %cst_27 = arith.constant dense<0.000000e+00> : vector<64x128xf32>
    %27 = tpu.matmul %24, %26, %cst_27 {dimension_numbers = #tpu.dot_dimension_numbers<[1], [0], [0], [1], [0, 0, 1, 1], [], []>} : vector<64x8xbf16>, vector<8x128xbf16>, vector<64x128xf32> -> vector<64x128xf32>
    %28 = arith.addf %21, %27 : vector<64x128xf32>
    %c0_28 = arith.constant 0 : index
    %c1_29 = arith.constant 1 : index
    %c1_30 = arith.constant 1 : index
    %c0_31 = arith.constant 0 : index
    %29 = vector.load %arg2[%c0_28, %c1_29, %c1_30, %c0_31] : memref<1x10x10x8xbf16, #tpu.memory_space<vmem>>, vector<1x8x8x8xbf16>
    %30 = vector.shape_cast %29 : vector<1x8x8x8xbf16> to vector<8x8x8xbf16>
    %31 = vector.shape_cast %30 : vector<8x8x8xbf16> to vector<64x8xbf16>
    %c4 = arith.constant 4 : index
    %c0_32 = arith.constant 0 : index
    %c0_33 = arith.constant 0 : index
    %32 = vector.load %arg3[%c4, %c0_32, %c0_33] : memref<9x8x128xbf16, #tpu.memory_space<vmem>>, vector<1x8x128xbf16>
    %33 = vector.shape_cast %32 : vector<1x8x128xbf16> to vector<8x128xbf16>
    %cst_34 = arith.constant dense<0.000000e+00> : vector<64x128xf32>
    %34 = tpu.matmul %31, %33, %cst_34 {dimension_numbers = #tpu.dot_dimension_numbers<[1], [0], [0], [1], [0, 0, 1, 1], [], []>} : vector<64x8xbf16>, vector<8x128xbf16>, vector<64x128xf32> -> vector<64x128xf32>
    %35 = arith.addf %28, %34 : vector<64x128xf32>
    %c0_35 = arith.constant 0 : index
    %c1_36 = arith.constant 1 : index
    %c2_37 = arith.constant 2 : index
    %c0_38 = arith.constant 0 : index
    %36 = vector.load %arg2[%c0_35, %c1_36, %c2_37, %c0_38] : memref<1x10x10x8xbf16, #tpu.memory_space<vmem>>, vector<1x8x8x8xbf16>
    %37 = vector.shape_cast %36 : vector<1x8x8x8xbf16> to vector<8x8x8xbf16>
    %38 = vector.shape_cast %37 : vector<8x8x8xbf16> to vector<64x8xbf16>
    %c5 = arith.constant 5 : index
    %c0_39 = arith.constant 0 : index
    %c0_40 = arith.constant 0 : index
    %39 = vector.load %arg3[%c5, %c0_39, %c0_40] : memref<9x8x128xbf16, #tpu.memory_space<vmem>>, vector<1x8x128xbf16>
    %40 = vector.shape_cast %39 : vector<1x8x128xbf16> to vector<8x128xbf16>
    %cst_41 = arith.constant dense<0.000000e+00> : vector<64x128xf32>
    %41 = tpu.matmul %38, %40, %cst_41 {dimension_numbers = #tpu.dot_dimension_numbers<[1], [0], [0], [1], [0, 0, 1, 1], [], []>} : vector<64x8xbf16>, vector<8x128xbf16>, vector<64x128xf32> -> vector<64x128xf32>
    %42 = arith.addf %35, %41 : vector<64x128xf32>
    %c0_42 = arith.constant 0 : index
    %c2_43 = arith.constant 2 : index
    %c0_44 = arith.constant 0 : index
    %c0_45 = arith.constant 0 : index
    %43 = vector.load %arg2[%c0_42, %c2_43, %c0_44, %c0_45] : memref<1x10x10x8xbf16, #tpu.memory_space<vmem>>, vector<1x8x8x8xbf16>
    %44 = vector.shape_cast %43 : vector<1x8x8x8xbf16> to vector<8x8x8xbf16>
    %45 = vector.shape_cast %44 : vector<8x8x8xbf16> to vector<64x8xbf16>
    %c6 = arith.constant 6 : index
    %c0_46 = arith.constant 0 : index
    %c0_47 = arith.constant 0 : index
    %46 = vector.load %arg3[%c6, %c0_46, %c0_47] : memref<9x8x128xbf16, #tpu.memory_space<vmem>>, vector<1x8x128xbf16>
    %47 = vector.shape_cast %46 : vector<1x8x128xbf16> to vector<8x128xbf16>
    %cst_48 = arith.constant dense<0.000000e+00> : vector<64x128xf32>
    %48 = tpu.matmul %45, %47, %cst_48 {dimension_numbers = #tpu.dot_dimension_numbers<[1], [0], [0], [1], [0, 0, 1, 1], [], []>} : vector<64x8xbf16>, vector<8x128xbf16>, vector<64x128xf32> -> vector<64x128xf32>
    %49 = arith.addf %42, %48 : vector<64x128xf32>
    %c0_49 = arith.constant 0 : index
    %c2_50 = arith.constant 2 : index
    %c1_51 = arith.constant 1 : index
    %c0_52 = arith.constant 0 : index
    %50 = vector.load %arg2[%c0_49, %c2_50, %c1_51, %c0_52] : memref<1x10x10x8xbf16, #tpu.memory_space<vmem>>, vector<1x8x8x8xbf16>
    %51 = vector.shape_cast %50 : vector<1x8x8x8xbf16> to vector<8x8x8xbf16>
    %52 = vector.shape_cast %51 : vector<8x8x8xbf16> to vector<64x8xbf16>
    %c7 = arith.constant 7 : index
    %c0_53 = arith.constant 0 : index
    %c0_54 = arith.constant 0 : index
    %53 = vector.load %arg3[%c7, %c0_53, %c0_54] : memref<9x8x128xbf16, #tpu.memory_space<vmem>>, vector<1x8x128xbf16>
    %54 = vector.shape_cast %53 : vector<1x8x128xbf16> to vector<8x128xbf16>
    %cst_55 = arith.constant dense<0.000000e+00> : vector<64x128xf32>
    %55 = tpu.matmul %52, %54, %cst_55 {dimension_numbers = #tpu.dot_dimension_numbers<[1], [0], [0], [1], [0, 0, 1, 1], [], []>} : vector<64x8xbf16>, vector<8x128xbf16>, vector<64x128xf32> -> vector<64x128xf32>
    %56 = arith.addf %49, %55 : vector<64x128xf32>
    %c0_56 = arith.constant 0 : index
    %c2_57 = arith.constant 2 : index
    %c2_58 = arith.constant 2 : index
    %c0_59 = arith.constant 0 : index
    %57 = vector.load %arg2[%c0_56, %c2_57, %c2_58, %c0_59] : memref<1x10x10x8xbf16, #tpu.memory_space<vmem>>, vector<1x8x8x8xbf16>
    %58 = vector.shape_cast %57 : vector<1x8x8x8xbf16> to vector<8x8x8xbf16>
    %59 = vector.shape_cast %58 : vector<8x8x8xbf16> to vector<64x8xbf16>
    %c8 = arith.constant 8 : index
    %c0_60 = arith.constant 0 : index
    %c0_61 = arith.constant 0 : index
    %60 = vector.load %arg3[%c8, %c0_60, %c0_61] : memref<9x8x128xbf16, #tpu.memory_space<vmem>>, vector<1x8x128xbf16>
    %61 = vector.shape_cast %60 : vector<1x8x128xbf16> to vector<8x128xbf16>
    %cst_62 = arith.constant dense<0.000000e+00> : vector<64x128xf32>
    %62 = tpu.matmul %59, %61, %cst_62 {dimension_numbers = #tpu.dot_dimension_numbers<[1], [0], [0], [1], [0, 0, 1, 1], [], []>} : vector<64x8xbf16>, vector<8x128xbf16>, vector<64x128xf32> -> vector<64x128xf32>
    %63 = arith.addf %56, %62 : vector<64x128xf32>
    %c0_63 = arith.constant 0 : index
    %c0_64 = arith.constant 0 : index
    %64 = vector.load %arg4[%c0_63, %c0_64] : memref<1x128xf32, #tpu.memory_space<vmem>>, vector<1x128xf32>
    %65 = vector.broadcast %64 : vector<1x128xf32> to vector<64x128xf32>
    %66 = arith.addf %63, %65 : vector<64x128xf32>
    %cst_65 = arith.constant 0.000000e+00 : f32
    %67 = vector.broadcast %cst_65 : f32 to vector<64x128xf32>
    %68 = arith.cmpf ogt, %66, %67 : vector<64x128xf32>
    %cst_66 = arith.constant 0.00999999977 : f32
    %69 = vector.broadcast %cst_66 : f32 to vector<64x128xf32>
    %70 = arith.mulf %69, %66 : vector<64x128xf32>
    %71 = arith.select %68, %66, %70 : vector<64x128xi1>, vector<64x128xf32>
    %72 = arith.truncf %71 : vector<64x128xf32> to vector<64x128xbf16>
    %c0_67 = arith.constant 0 : index
    %c0_68 = arith.constant 0 : index
    %c0_69 = arith.constant 0 : index
    %73 = vector.load %arg5[%c0_67, %c0_68, %c0_69] : memref<1x64x128xbf16, #tpu.memory_space<vmem>>, vector<1x64x128xbf16>
    %74 = vector.shape_cast %73 : vector<1x64x128xbf16> to vector<64x128xbf16>
    %75 = vector.shape_cast %72 : vector<64x128xbf16> to vector<1x64x128xbf16>
    tpu.vector_store %arg5[%c0_67, %c0_68, %c0_69], %75 {strides = array<i32>} : memref<1x64x128xbf16, #tpu.memory_space<vmem>>, vector<1x64x128xbf16>,
    return
  }
  func.func @transform_0(%arg0: i32, %arg1: i32) -> (i32, i32, i32, i32) {
    %c0_i32 = arith.constant 0 : i32
    %c0_i32_0 = arith.constant 0 : i32
    %c0_i32_1 = arith.constant 0 : i32
    %c0_i32_2 = arith.constant 0 : i32
    return %arg0, %c0_i32, %c0_i32_0, %c0_i32_1 : i32, i32, i32, i32
  }
  func.func @transform_1(%arg0: i32, %arg1: i32) -> (i32, i32, i32) {
    %c0_i32 = arith.constant 0 : i32
    %c0_i32_0 = arith.constant 0 : i32
    %c0_i32_1 = arith.constant 0 : i32
    return %c0_i32, %c0_i32_0, %arg1 : i32, i32, i32
  }
  func.func @transform_2(%arg0: i32, %arg1: i32) -> (i32, i32) {
    %c0_i32 = arith.constant 0 : i32
    %c0_i32_0 = arith.constant 0 : i32
    return %c0_i32, %arg1 : i32, i32
  }
  func.func @transform_3(%arg0: i32, %arg1: i32) -> (i32, i32, i32) {
    %c0_i32 = arith.constant 0 : i32
    %c0_i32_0 = arith.constant 0 : i32
    return %arg0, %c0_i32, %arg1 : i32, i32, i32
  }
}

module attributes {stable_mosaic.version = 11 : i64} {
  func.func @_conv3x3_lrelu_kernel(%arg0: i32, %arg1: i32, %arg2: memref<4x5x9x16xbf16, #tpu.memory_space<vmem>>, %arg3: memref<9x16x128xbf16, #tpu.memory_space<vmem>>, %arg4: memref<1x128xf32, #tpu.memory_space<vmem>>, %arg5: memref<1x32x128xbf16, #tpu.memory_space<vmem>>) attributes {dimension_semantics = [#tpu.dimension_semantics<parallel>, #tpu.dimension_semantics<parallel>], iteration_bounds = array<i64: 2, 1>, scalar_prefetch = 0 : i64, scratch_operands = 0 : i64, tpu.core_type = #tpu.core_type<tc>, window_params = [{transform_indices = @transform_0, window_bounds = array<i64: 4, 5, 9, 16>}, {transform_indices = @transform_1, window_bounds = array<i64: 9, 16, 128>}, {transform_indices = @transform_2, window_bounds = array<i64: 1, 128>}, {transform_indices = @transform_3, window_bounds = array<i64: 1, 32, 128>}]} {
    %cst = arith.constant 0.000000e+00 : f32
    %0 = vector.broadcast %cst : f32 to vector<32x128xf32>
    %c0 = arith.constant 0 : index
    %c0_0 = arith.constant 0 : index
    %c0_1 = arith.constant 0 : index
    %c0_2 = arith.constant 0 : index
    %1 = vector.load %arg2[%c0, %c0_0, %c0_1, %c0_2] : memref<4x5x9x16xbf16, #tpu.memory_space<vmem>>, vector<1x4x8x16xbf16>
    %2 = vector.shape_cast %1 : vector<1x4x8x16xbf16> to vector<4x8x16xbf16>
    %3 = vector.shape_cast %2 : vector<4x8x16xbf16> to vector<32x16xbf16>
    %c0_3 = arith.constant 0 : index
    %c0_4 = arith.constant 0 : index
    %c0_5 = arith.constant 0 : index
    %4 = vector.load %arg3[%c0_3, %c0_4, %c0_5] : memref<9x16x128xbf16, #tpu.memory_space<vmem>>, vector<1x16x128xbf16>
    %5 = vector.shape_cast %4 : vector<1x16x128xbf16> to vector<16x128xbf16>
    %cst_6 = arith.constant dense<0.000000e+00> : vector<32x128xf32>
    %6 = tpu.matmul %3, %5, %cst_6 {dimension_numbers = #tpu.dot_dimension_numbers<[1], [0], [0], [1], [0, 0, 1, 1], [], []>} : vector<32x16xbf16>, vector<16x128xbf16>, vector<32x128xf32> -> vector<32x128xf32>
    %7 = arith.addf %0, %6 : vector<32x128xf32>
    %c1 = arith.constant 1 : index
    %c0_7 = arith.constant 0 : index
    %c0_8 = arith.constant 0 : index
    %c0_9 = arith.constant 0 : index
    %8 = vector.load %arg2[%c1, %c0_7, %c0_8, %c0_9] : memref<4x5x9x16xbf16, #tpu.memory_space<vmem>>, vector<1x4x8x16xbf16>
    %9 = vector.shape_cast %8 : vector<1x4x8x16xbf16> to vector<4x8x16xbf16>
    %10 = vector.shape_cast %9 : vector<4x8x16xbf16> to vector<32x16xbf16>
    %c1_10 = arith.constant 1 : index
    %c0_11 = arith.constant 0 : index
    %c0_12 = arith.constant 0 : index
    %11 = vector.load %arg3[%c1_10, %c0_11, %c0_12] : memref<9x16x128xbf16, #tpu.memory_space<vmem>>, vector<1x16x128xbf16>
    %12 = vector.shape_cast %11 : vector<1x16x128xbf16> to vector<16x128xbf16>
    %cst_13 = arith.constant dense<0.000000e+00> : vector<32x128xf32>
    %13 = tpu.matmul %10, %12, %cst_13 {dimension_numbers = #tpu.dot_dimension_numbers<[1], [0], [0], [1], [0, 0, 1, 1], [], []>} : vector<32x16xbf16>, vector<16x128xbf16>, vector<32x128xf32> -> vector<32x128xf32>
    %14 = arith.addf %7, %13 : vector<32x128xf32>
    %c0_14 = arith.constant 0 : index
    %c0_15 = arith.constant 0 : index
    %c1_16 = arith.constant 1 : index
    %c0_17 = arith.constant 0 : index
    %15 = vector.load %arg2[%c0_14, %c0_15, %c1_16, %c0_17] : memref<4x5x9x16xbf16, #tpu.memory_space<vmem>>, vector<1x4x8x16xbf16>
    %16 = vector.shape_cast %15 : vector<1x4x8x16xbf16> to vector<4x8x16xbf16>
    %17 = vector.shape_cast %16 : vector<4x8x16xbf16> to vector<32x16xbf16>
    %c2 = arith.constant 2 : index
    %c0_18 = arith.constant 0 : index
    %c0_19 = arith.constant 0 : index
    %18 = vector.load %arg3[%c2, %c0_18, %c0_19] : memref<9x16x128xbf16, #tpu.memory_space<vmem>>, vector<1x16x128xbf16>
    %19 = vector.shape_cast %18 : vector<1x16x128xbf16> to vector<16x128xbf16>
    %cst_20 = arith.constant dense<0.000000e+00> : vector<32x128xf32>
    %20 = tpu.matmul %17, %19, %cst_20 {dimension_numbers = #tpu.dot_dimension_numbers<[1], [0], [0], [1], [0, 0, 1, 1], [], []>} : vector<32x16xbf16>, vector<16x128xbf16>, vector<32x128xf32> -> vector<32x128xf32>
    %21 = arith.addf %14, %20 : vector<32x128xf32>
    %c2_21 = arith.constant 2 : index
    %c0_22 = arith.constant 0 : index
    %c0_23 = arith.constant 0 : index
    %c0_24 = arith.constant 0 : index
    %22 = vector.load %arg2[%c2_21, %c0_22, %c0_23, %c0_24] : memref<4x5x9x16xbf16, #tpu.memory_space<vmem>>, vector<1x4x8x16xbf16>
    %23 = vector.shape_cast %22 : vector<1x4x8x16xbf16> to vector<4x8x16xbf16>
    %24 = vector.shape_cast %23 : vector<4x8x16xbf16> to vector<32x16xbf16>
    %c3 = arith.constant 3 : index
    %c0_25 = arith.constant 0 : index
    %c0_26 = arith.constant 0 : index
    %25 = vector.load %arg3[%c3, %c0_25, %c0_26] : memref<9x16x128xbf16, #tpu.memory_space<vmem>>, vector<1x16x128xbf16>
    %26 = vector.shape_cast %25 : vector<1x16x128xbf16> to vector<16x128xbf16>
    %cst_27 = arith.constant dense<0.000000e+00> : vector<32x128xf32>
    %27 = tpu.matmul %24, %26, %cst_27 {dimension_numbers = #tpu.dot_dimension_numbers<[1], [0], [0], [1], [0, 0, 1, 1], [], []>} : vector<32x16xbf16>, vector<16x128xbf16>, vector<32x128xf32> -> vector<32x128xf32>
    %28 = arith.addf %21, %27 : vector<32x128xf32>
    %c3_28 = arith.constant 3 : index
    %c0_29 = arith.constant 0 : index
    %c0_30 = arith.constant 0 : index
    %c0_31 = arith.constant 0 : index
    %29 = vector.load %arg2[%c3_28, %c0_29, %c0_30, %c0_31] : memref<4x5x9x16xbf16, #tpu.memory_space<vmem>>, vector<1x4x8x16xbf16>
    %30 = vector.shape_cast %29 : vector<1x4x8x16xbf16> to vector<4x8x16xbf16>
    %31 = vector.shape_cast %30 : vector<4x8x16xbf16> to vector<32x16xbf16>
    %c4 = arith.constant 4 : index
    %c0_32 = arith.constant 0 : index
    %c0_33 = arith.constant 0 : index
    %32 = vector.load %arg3[%c4, %c0_32, %c0_33] : memref<9x16x128xbf16, #tpu.memory_space<vmem>>, vector<1x16x128xbf16>
    %33 = vector.shape_cast %32 : vector<1x16x128xbf16> to vector<16x128xbf16>
    %cst_34 = arith.constant dense<0.000000e+00> : vector<32x128xf32>
    %34 = tpu.matmul %31, %33, %cst_34 {dimension_numbers = #tpu.dot_dimension_numbers<[1], [0], [0], [1], [0, 0, 1, 1], [], []>} : vector<32x16xbf16>, vector<16x128xbf16>, vector<32x128xf32> -> vector<32x128xf32>
    %35 = arith.addf %28, %34 : vector<32x128xf32>
    %c2_35 = arith.constant 2 : index
    %c0_36 = arith.constant 0 : index
    %c1_37 = arith.constant 1 : index
    %c0_38 = arith.constant 0 : index
    %36 = vector.load %arg2[%c2_35, %c0_36, %c1_37, %c0_38] : memref<4x5x9x16xbf16, #tpu.memory_space<vmem>>, vector<1x4x8x16xbf16>
    %37 = vector.shape_cast %36 : vector<1x4x8x16xbf16> to vector<4x8x16xbf16>
    %38 = vector.shape_cast %37 : vector<4x8x16xbf16> to vector<32x16xbf16>
    %c5 = arith.constant 5 : index
    %c0_39 = arith.constant 0 : index
    %c0_40 = arith.constant 0 : index
    %39 = vector.load %arg3[%c5, %c0_39, %c0_40] : memref<9x16x128xbf16, #tpu.memory_space<vmem>>, vector<1x16x128xbf16>
    %40 = vector.shape_cast %39 : vector<1x16x128xbf16> to vector<16x128xbf16>
    %cst_41 = arith.constant dense<0.000000e+00> : vector<32x128xf32>
    %41 = tpu.matmul %38, %40, %cst_41 {dimension_numbers = #tpu.dot_dimension_numbers<[1], [0], [0], [1], [0, 0, 1, 1], [], []>} : vector<32x16xbf16>, vector<16x128xbf16>, vector<32x128xf32> -> vector<32x128xf32>
    %42 = arith.addf %35, %41 : vector<32x128xf32>
    %c0_42 = arith.constant 0 : index
    %c1_43 = arith.constant 1 : index
    %c0_44 = arith.constant 0 : index
    %c0_45 = arith.constant 0 : index
    %43 = vector.load %arg2[%c0_42, %c1_43, %c0_44, %c0_45] : memref<4x5x9x16xbf16, #tpu.memory_space<vmem>>, vector<1x4x8x16xbf16>
    %44 = vector.shape_cast %43 : vector<1x4x8x16xbf16> to vector<4x8x16xbf16>
    %45 = vector.shape_cast %44 : vector<4x8x16xbf16> to vector<32x16xbf16>
    %c6 = arith.constant 6 : index
    %c0_46 = arith.constant 0 : index
    %c0_47 = arith.constant 0 : index
    %46 = vector.load %arg3[%c6, %c0_46, %c0_47] : memref<9x16x128xbf16, #tpu.memory_space<vmem>>, vector<1x16x128xbf16>
    %47 = vector.shape_cast %46 : vector<1x16x128xbf16> to vector<16x128xbf16>
    %cst_48 = arith.constant dense<0.000000e+00> : vector<32x128xf32>
    %48 = tpu.matmul %45, %47, %cst_48 {dimension_numbers = #tpu.dot_dimension_numbers<[1], [0], [0], [1], [0, 0, 1, 1], [], []>} : vector<32x16xbf16>, vector<16x128xbf16>, vector<32x128xf32> -> vector<32x128xf32>
    %49 = arith.addf %42, %48 : vector<32x128xf32>
    %c1_49 = arith.constant 1 : index
    %c1_50 = arith.constant 1 : index
    %c0_51 = arith.constant 0 : index
    %c0_52 = arith.constant 0 : index
    %50 = vector.load %arg2[%c1_49, %c1_50, %c0_51, %c0_52] : memref<4x5x9x16xbf16, #tpu.memory_space<vmem>>, vector<1x4x8x16xbf16>
    %51 = vector.shape_cast %50 : vector<1x4x8x16xbf16> to vector<4x8x16xbf16>
    %52 = vector.shape_cast %51 : vector<4x8x16xbf16> to vector<32x16xbf16>
    %c7 = arith.constant 7 : index
    %c0_53 = arith.constant 0 : index
    %c0_54 = arith.constant 0 : index
    %53 = vector.load %arg3[%c7, %c0_53, %c0_54] : memref<9x16x128xbf16, #tpu.memory_space<vmem>>, vector<1x16x128xbf16>
    %54 = vector.shape_cast %53 : vector<1x16x128xbf16> to vector<16x128xbf16>
    %cst_55 = arith.constant dense<0.000000e+00> : vector<32x128xf32>
    %55 = tpu.matmul %52, %54, %cst_55 {dimension_numbers = #tpu.dot_dimension_numbers<[1], [0], [0], [1], [0, 0, 1, 1], [], []>} : vector<32x16xbf16>, vector<16x128xbf16>, vector<32x128xf32> -> vector<32x128xf32>
    %56 = arith.addf %49, %55 : vector<32x128xf32>
    %c0_56 = arith.constant 0 : index
    %c1_57 = arith.constant 1 : index
    %c1_58 = arith.constant 1 : index
    %c0_59 = arith.constant 0 : index
    %57 = vector.load %arg2[%c0_56, %c1_57, %c1_58, %c0_59] : memref<4x5x9x16xbf16, #tpu.memory_space<vmem>>, vector<1x4x8x16xbf16>
    %58 = vector.shape_cast %57 : vector<1x4x8x16xbf16> to vector<4x8x16xbf16>
    %59 = vector.shape_cast %58 : vector<4x8x16xbf16> to vector<32x16xbf16>
    %c8 = arith.constant 8 : index
    %c0_60 = arith.constant 0 : index
    %c0_61 = arith.constant 0 : index
    %60 = vector.load %arg3[%c8, %c0_60, %c0_61] : memref<9x16x128xbf16, #tpu.memory_space<vmem>>, vector<1x16x128xbf16>
    %61 = vector.shape_cast %60 : vector<1x16x128xbf16> to vector<16x128xbf16>
    %cst_62 = arith.constant dense<0.000000e+00> : vector<32x128xf32>
    %62 = tpu.matmul %59, %61, %cst_62 {dimension_numbers = #tpu.dot_dimension_numbers<[1], [0], [0], [1], [0, 0, 1, 1], [], []>} : vector<32x16xbf16>, vector<16x128xbf16>, vector<32x128xf32> -> vector<32x128xf32>
    %63 = arith.addf %56, %62 : vector<32x128xf32>
    %c0_63 = arith.constant 0 : index
    %c0_64 = arith.constant 0 : index
    %64 = vector.load %arg4[%c0_63, %c0_64] : memref<1x128xf32, #tpu.memory_space<vmem>>, vector<1x128xf32>
    %65 = vector.broadcast %64 : vector<1x128xf32> to vector<32x128xf32>
    %66 = arith.addf %63, %65 : vector<32x128xf32>
    %cst_65 = arith.constant 0.000000e+00 : f32
    %67 = vector.broadcast %cst_65 : f32 to vector<32x128xf32>
    %68 = arith.cmpf ogt, %66, %67 : vector<32x128xf32>
    %cst_66 = arith.constant 0.00999999977 : f32
    %69 = vector.broadcast %cst_66 : f32 to vector<32x128xf32>
    %70 = arith.mulf %69, %66 : vector<32x128xf32>
    %71 = arith.select %68, %66, %70 : vector<32x128xi1>, vector<32x128xf32>
    %72 = arith.truncf %71 : vector<32x128xf32> to vector<32x128xbf16>
    %c0_67 = arith.constant 0 : index
    %c0_68 = arith.constant 0 : index
    %c0_69 = arith.constant 0 : index
    %73 = vector.load %arg5[%c0_67, %c0_68, %c0_69] : memref<1x32x128xbf16, #tpu.memory_space<vmem>>, vector<1x32x128xbf16>
    %74 = vector.shape_cast %73 : vector<1x32x128xbf16> to vector<32x128xbf16>
    %75 = vector.shape_cast %72 : vector<32x128xbf16> to vector<1x32x128xbf16>
    tpu.vector_store %arg5[%c0_67, %c0_68, %c0_69], %75 {strides = array<i32>} : memref<1x32x128xbf16, #tpu.memory_space<vmem>>, vector<1x32x128xbf16>,
    return
  }
  func.func @transform_0(%arg0: i32, %arg1: i32) -> (i32, i32, i32, i32) {
    %c0_i32 = arith.constant 0 : i32
    %c0_i32_0 = arith.constant 0 : i32
    %c0_i32_1 = arith.constant 0 : i32
    %c0_i32_2 = arith.constant 0 : i32
    return %arg0, %c0_i32, %c0_i32_0, %c0_i32_1 : i32, i32, i32, i32
  }
  func.func @transform_1(%arg0: i32, %arg1: i32) -> (i32, i32, i32) {
    %c0_i32 = arith.constant 0 : i32
    %c0_i32_0 = arith.constant 0 : i32
    %c0_i32_1 = arith.constant 0 : i32
    return %c0_i32, %c0_i32_0, %arg1 : i32, i32, i32
  }
  func.func @transform_2(%arg0: i32, %arg1: i32) -> (i32, i32) {
    %c0_i32 = arith.constant 0 : i32
    %c0_i32_0 = arith.constant 0 : i32
    return %c0_i32, %arg1 : i32, i32
  }
  func.func @transform_3(%arg0: i32, %arg1: i32) -> (i32, i32, i32) {
    %c0_i32 = arith.constant 0 : i32
    %c0_i32_0 = arith.constant 0 : i32
    return %arg0, %c0_i32, %arg1 : i32, i32, i32
  }
}

module attributes {stable_mosaic.version = 11 : i64} {
  func.func @_conv3x3_lrelu_kernel(%arg0: i32, %arg1: i32, %arg2: memref<1x6x10x32xbf16, #tpu.memory_space<vmem>>, %arg3: memref<9x32x128xbf16, #tpu.memory_space<vmem>>, %arg4: memref<1x128xf32, #tpu.memory_space<vmem>>, %arg5: memref<1x32x128xbf16, #tpu.memory_space<vmem>>) attributes {dimension_semantics = [#tpu.dimension_semantics<parallel>, #tpu.dimension_semantics<parallel>], iteration_bounds = array<i64: 2, 1>, scalar_prefetch = 0 : i64, scratch_operands = 0 : i64, tpu.core_type = #tpu.core_type<tc>, window_params = [{transform_indices = @transform_0, window_bounds = array<i64: 1, 6, 10, 32>}, {transform_indices = @transform_1, window_bounds = array<i64: 9, 32, 128>}, {transform_indices = @transform_2, window_bounds = array<i64: 1, 128>}, {transform_indices = @transform_3, window_bounds = array<i64: 1, 32, 128>}]} {
    %cst = arith.constant 0.000000e+00 : f32
    %0 = vector.broadcast %cst : f32 to vector<32x128xf32>
    %c0 = arith.constant 0 : index
    %c0_0 = arith.constant 0 : index
    %c0_1 = arith.constant 0 : index
    %c0_2 = arith.constant 0 : index
    %1 = vector.load %arg2[%c0, %c0_0, %c0_1, %c0_2] : memref<1x6x10x32xbf16, #tpu.memory_space<vmem>>, vector<1x4x8x32xbf16>
    %2 = vector.shape_cast %1 : vector<1x4x8x32xbf16> to vector<4x8x32xbf16>
    %3 = vector.shape_cast %2 : vector<4x8x32xbf16> to vector<32x32xbf16>
    %c0_3 = arith.constant 0 : index
    %c0_4 = arith.constant 0 : index
    %c0_5 = arith.constant 0 : index
    %4 = vector.load %arg3[%c0_3, %c0_4, %c0_5] : memref<9x32x128xbf16, #tpu.memory_space<vmem>>, vector<1x32x128xbf16>
    %5 = vector.shape_cast %4 : vector<1x32x128xbf16> to vector<32x128xbf16>
    %cst_6 = arith.constant dense<0.000000e+00> : vector<32x128xf32>
    %6 = tpu.matmul %3, %5, %cst_6 {dimension_numbers = #tpu.dot_dimension_numbers<[1], [0], [0], [1], [0, 0, 1, 1], [], []>} : vector<32x32xbf16>, vector<32x128xbf16>, vector<32x128xf32> -> vector<32x128xf32>
    %7 = arith.addf %0, %6 : vector<32x128xf32>
    %c0_7 = arith.constant 0 : index
    %c0_8 = arith.constant 0 : index
    %c1 = arith.constant 1 : index
    %c0_9 = arith.constant 0 : index
    %8 = vector.load %arg2[%c0_7, %c0_8, %c1, %c0_9] : memref<1x6x10x32xbf16, #tpu.memory_space<vmem>>, vector<1x4x8x32xbf16>
    %9 = vector.shape_cast %8 : vector<1x4x8x32xbf16> to vector<4x8x32xbf16>
    %10 = vector.shape_cast %9 : vector<4x8x32xbf16> to vector<32x32xbf16>
    %c1_10 = arith.constant 1 : index
    %c0_11 = arith.constant 0 : index
    %c0_12 = arith.constant 0 : index
    %11 = vector.load %arg3[%c1_10, %c0_11, %c0_12] : memref<9x32x128xbf16, #tpu.memory_space<vmem>>, vector<1x32x128xbf16>
    %12 = vector.shape_cast %11 : vector<1x32x128xbf16> to vector<32x128xbf16>
    %cst_13 = arith.constant dense<0.000000e+00> : vector<32x128xf32>
    %13 = tpu.matmul %10, %12, %cst_13 {dimension_numbers = #tpu.dot_dimension_numbers<[1], [0], [0], [1], [0, 0, 1, 1], [], []>} : vector<32x32xbf16>, vector<32x128xbf16>, vector<32x128xf32> -> vector<32x128xf32>
    %14 = arith.addf %7, %13 : vector<32x128xf32>
    %c0_14 = arith.constant 0 : index
    %c0_15 = arith.constant 0 : index
    %c2 = arith.constant 2 : index
    %c0_16 = arith.constant 0 : index
    %15 = vector.load %arg2[%c0_14, %c0_15, %c2, %c0_16] : memref<1x6x10x32xbf16, #tpu.memory_space<vmem>>, vector<1x4x8x32xbf16>
    %16 = vector.shape_cast %15 : vector<1x4x8x32xbf16> to vector<4x8x32xbf16>
    %17 = vector.shape_cast %16 : vector<4x8x32xbf16> to vector<32x32xbf16>
    %c2_17 = arith.constant 2 : index
    %c0_18 = arith.constant 0 : index
    %c0_19 = arith.constant 0 : index
    %18 = vector.load %arg3[%c2_17, %c0_18, %c0_19] : memref<9x32x128xbf16, #tpu.memory_space<vmem>>, vector<1x32x128xbf16>
    %19 = vector.shape_cast %18 : vector<1x32x128xbf16> to vector<32x128xbf16>
    %cst_20 = arith.constant dense<0.000000e+00> : vector<32x128xf32>
    %20 = tpu.matmul %17, %19, %cst_20 {dimension_numbers = #tpu.dot_dimension_numbers<[1], [0], [0], [1], [0, 0, 1, 1], [], []>} : vector<32x32xbf16>, vector<32x128xbf16>, vector<32x128xf32> -> vector<32x128xf32>
    %21 = arith.addf %14, %20 : vector<32x128xf32>
    %c0_21 = arith.constant 0 : index
    %c1_22 = arith.constant 1 : index
    %c0_23 = arith.constant 0 : index
    %c0_24 = arith.constant 0 : index
    %22 = vector.load %arg2[%c0_21, %c1_22, %c0_23, %c0_24] : memref<1x6x10x32xbf16, #tpu.memory_space<vmem>>, vector<1x4x8x32xbf16>
    %23 = vector.shape_cast %22 : vector<1x4x8x32xbf16> to vector<4x8x32xbf16>
    %24 = vector.shape_cast %23 : vector<4x8x32xbf16> to vector<32x32xbf16>
    %c3 = arith.constant 3 : index
    %c0_25 = arith.constant 0 : index
    %c0_26 = arith.constant 0 : index
    %25 = vector.load %arg3[%c3, %c0_25, %c0_26] : memref<9x32x128xbf16, #tpu.memory_space<vmem>>, vector<1x32x128xbf16>
    %26 = vector.shape_cast %25 : vector<1x32x128xbf16> to vector<32x128xbf16>
    %cst_27 = arith.constant dense<0.000000e+00> : vector<32x128xf32>
    %27 = tpu.matmul %24, %26, %cst_27 {dimension_numbers = #tpu.dot_dimension_numbers<[1], [0], [0], [1], [0, 0, 1, 1], [], []>} : vector<32x32xbf16>, vector<32x128xbf16>, vector<32x128xf32> -> vector<32x128xf32>
    %28 = arith.addf %21, %27 : vector<32x128xf32>
    %c0_28 = arith.constant 0 : index
    %c1_29 = arith.constant 1 : index
    %c1_30 = arith.constant 1 : index
    %c0_31 = arith.constant 0 : index
    %29 = vector.load %arg2[%c0_28, %c1_29, %c1_30, %c0_31] : memref<1x6x10x32xbf16, #tpu.memory_space<vmem>>, vector<1x4x8x32xbf16>
    %30 = vector.shape_cast %29 : vector<1x4x8x32xbf16> to vector<4x8x32xbf16>
    %31 = vector.shape_cast %30 : vector<4x8x32xbf16> to vector<32x32xbf16>
    %c4 = arith.constant 4 : index
    %c0_32 = arith.constant 0 : index
    %c0_33 = arith.constant 0 : index
    %32 = vector.load %arg3[%c4, %c0_32, %c0_33] : memref<9x32x128xbf16, #tpu.memory_space<vmem>>, vector<1x32x128xbf16>
    %33 = vector.shape_cast %32 : vector<1x32x128xbf16> to vector<32x128xbf16>
    %cst_34 = arith.constant dense<0.000000e+00> : vector<32x128xf32>
    %34 = tpu.matmul %31, %33, %cst_34 {dimension_numbers = #tpu.dot_dimension_numbers<[1], [0], [0], [1], [0, 0, 1, 1], [], []>} : vector<32x32xbf16>, vector<32x128xbf16>, vector<32x128xf32> -> vector<32x128xf32>
    %35 = arith.addf %28, %34 : vector<32x128xf32>
    %c0_35 = arith.constant 0 : index
    %c1_36 = arith.constant 1 : index
    %c2_37 = arith.constant 2 : index
    %c0_38 = arith.constant 0 : index
    %36 = vector.load %arg2[%c0_35, %c1_36, %c2_37, %c0_38] : memref<1x6x10x32xbf16, #tpu.memory_space<vmem>>, vector<1x4x8x32xbf16>
    %37 = vector.shape_cast %36 : vector<1x4x8x32xbf16> to vector<4x8x32xbf16>
    %38 = vector.shape_cast %37 : vector<4x8x32xbf16> to vector<32x32xbf16>
    %c5 = arith.constant 5 : index
    %c0_39 = arith.constant 0 : index
    %c0_40 = arith.constant 0 : index
    %39 = vector.load %arg3[%c5, %c0_39, %c0_40] : memref<9x32x128xbf16, #tpu.memory_space<vmem>>, vector<1x32x128xbf16>
    %40 = vector.shape_cast %39 : vector<1x32x128xbf16> to vector<32x128xbf16>
    %cst_41 = arith.constant dense<0.000000e+00> : vector<32x128xf32>
    %41 = tpu.matmul %38, %40, %cst_41 {dimension_numbers = #tpu.dot_dimension_numbers<[1], [0], [0], [1], [0, 0, 1, 1], [], []>} : vector<32x32xbf16>, vector<32x128xbf16>, vector<32x128xf32> -> vector<32x128xf32>
    %42 = arith.addf %35, %41 : vector<32x128xf32>
    %c0_42 = arith.constant 0 : index
    %c2_43 = arith.constant 2 : index
    %c0_44 = arith.constant 0 : index
    %c0_45 = arith.constant 0 : index
    %43 = vector.load %arg2[%c0_42, %c2_43, %c0_44, %c0_45] : memref<1x6x10x32xbf16, #tpu.memory_space<vmem>>, vector<1x4x8x32xbf16>
    %44 = vector.shape_cast %43 : vector<1x4x8x32xbf16> to vector<4x8x32xbf16>
    %45 = vector.shape_cast %44 : vector<4x8x32xbf16> to vector<32x32xbf16>
    %c6 = arith.constant 6 : index
    %c0_46 = arith.constant 0 : index
    %c0_47 = arith.constant 0 : index
    %46 = vector.load %arg3[%c6, %c0_46, %c0_47] : memref<9x32x128xbf16, #tpu.memory_space<vmem>>, vector<1x32x128xbf16>
    %47 = vector.shape_cast %46 : vector<1x32x128xbf16> to vector<32x128xbf16>
    %cst_48 = arith.constant dense<0.000000e+00> : vector<32x128xf32>
    %48 = tpu.matmul %45, %47, %cst_48 {dimension_numbers = #tpu.dot_dimension_numbers<[1], [0], [0], [1], [0, 0, 1, 1], [], []>} : vector<32x32xbf16>, vector<32x128xbf16>, vector<32x128xf32> -> vector<32x128xf32>
    %49 = arith.addf %42, %48 : vector<32x128xf32>
    %c0_49 = arith.constant 0 : index
    %c2_50 = arith.constant 2 : index
    %c1_51 = arith.constant 1 : index
    %c0_52 = arith.constant 0 : index
    %50 = vector.load %arg2[%c0_49, %c2_50, %c1_51, %c0_52] : memref<1x6x10x32xbf16, #tpu.memory_space<vmem>>, vector<1x4x8x32xbf16>
    %51 = vector.shape_cast %50 : vector<1x4x8x32xbf16> to vector<4x8x32xbf16>
    %52 = vector.shape_cast %51 : vector<4x8x32xbf16> to vector<32x32xbf16>
    %c7 = arith.constant 7 : index
    %c0_53 = arith.constant 0 : index
    %c0_54 = arith.constant 0 : index
    %53 = vector.load %arg3[%c7, %c0_53, %c0_54] : memref<9x32x128xbf16, #tpu.memory_space<vmem>>, vector<1x32x128xbf16>
    %54 = vector.shape_cast %53 : vector<1x32x128xbf16> to vector<32x128xbf16>
    %cst_55 = arith.constant dense<0.000000e+00> : vector<32x128xf32>
    %55 = tpu.matmul %52, %54, %cst_55 {dimension_numbers = #tpu.dot_dimension_numbers<[1], [0], [0], [1], [0, 0, 1, 1], [], []>} : vector<32x32xbf16>, vector<32x128xbf16>, vector<32x128xf32> -> vector<32x128xf32>
    %56 = arith.addf %49, %55 : vector<32x128xf32>
    %c0_56 = arith.constant 0 : index
    %c2_57 = arith.constant 2 : index
    %c2_58 = arith.constant 2 : index
    %c0_59 = arith.constant 0 : index
    %57 = vector.load %arg2[%c0_56, %c2_57, %c2_58, %c0_59] : memref<1x6x10x32xbf16, #tpu.memory_space<vmem>>, vector<1x4x8x32xbf16>
    %58 = vector.shape_cast %57 : vector<1x4x8x32xbf16> to vector<4x8x32xbf16>
    %59 = vector.shape_cast %58 : vector<4x8x32xbf16> to vector<32x32xbf16>
    %c8 = arith.constant 8 : index
    %c0_60 = arith.constant 0 : index
    %c0_61 = arith.constant 0 : index
    %60 = vector.load %arg3[%c8, %c0_60, %c0_61] : memref<9x32x128xbf16, #tpu.memory_space<vmem>>, vector<1x32x128xbf16>
    %61 = vector.shape_cast %60 : vector<1x32x128xbf16> to vector<32x128xbf16>
    %cst_62 = arith.constant dense<0.000000e+00> : vector<32x128xf32>
    %62 = tpu.matmul %59, %61, %cst_62 {dimension_numbers = #tpu.dot_dimension_numbers<[1], [0], [0], [1], [0, 0, 1, 1], [], []>} : vector<32x32xbf16>, vector<32x128xbf16>, vector<32x128xf32> -> vector<32x128xf32>
    %63 = arith.addf %56, %62 : vector<32x128xf32>
    %c0_63 = arith.constant 0 : index
    %c0_64 = arith.constant 0 : index
    %64 = vector.load %arg4[%c0_63, %c0_64] : memref<1x128xf32, #tpu.memory_space<vmem>>, vector<1x128xf32>
    %65 = vector.broadcast %64 : vector<1x128xf32> to vector<32x128xf32>
    %66 = arith.addf %63, %65 : vector<32x128xf32>
    %cst_65 = arith.constant 0.000000e+00 : f32
    %67 = vector.broadcast %cst_65 : f32 to vector<32x128xf32>
    %68 = arith.cmpf ogt, %66, %67 : vector<32x128xf32>
    %cst_66 = arith.constant 0.00999999977 : f32
    %69 = vector.broadcast %cst_66 : f32 to vector<32x128xf32>
    %70 = arith.mulf %69, %66 : vector<32x128xf32>
    %71 = arith.select %68, %66, %70 : vector<32x128xi1>, vector<32x128xf32>
    %72 = arith.truncf %71 : vector<32x128xf32> to vector<32x128xbf16>
    %c0_67 = arith.constant 0 : index
    %c0_68 = arith.constant 0 : index
    %c0_69 = arith.constant 0 : index
    %73 = vector.load %arg5[%c0_67, %c0_68, %c0_69] : memref<1x32x128xbf16, #tpu.memory_space<vmem>>, vector<1x32x128xbf16>
    %74 = vector.shape_cast %73 : vector<1x32x128xbf16> to vector<32x128xbf16>
    %75 = vector.shape_cast %72 : vector<32x128xbf16> to vector<1x32x128xbf16>
    tpu.vector_store %arg5[%c0_67, %c0_68, %c0_69], %75 {strides = array<i32>} : memref<1x32x128xbf16, #tpu.memory_space<vmem>>, vector<1x32x128xbf16>,
    return
  }
  func.func @transform_0(%arg0: i32, %arg1: i32) -> (i32, i32, i32, i32) {
    %c0_i32 = arith.constant 0 : i32
    %c0_i32_0 = arith.constant 0 : i32
    %c0_i32_1 = arith.constant 0 : i32
    %c0_i32_2 = arith.constant 0 : i32
    return %arg0, %c0_i32, %c0_i32_0, %c0_i32_1 : i32, i32, i32, i32
  }
  func.func @transform_1(%arg0: i32, %arg1: i32) -> (i32, i32, i32) {
    %c0_i32 = arith.constant 0 : i32
    %c0_i32_0 = arith.constant 0 : i32
    %c0_i32_1 = arith.constant 0 : i32
    return %c0_i32, %c0_i32_0, %arg1 : i32, i32, i32
  }
  func.func @transform_2(%arg0: i32, %arg1: i32) -> (i32, i32) {
    %c0_i32 = arith.constant 0 : i32
    %c0_i32_0 = arith.constant 0 : i32
    return %c0_i32, %arg1 : i32, i32
  }
  func.func @transform_3(%arg0: i32, %arg1: i32) -> (i32, i32, i32) {
    %c0_i32 = arith.constant 0 : i32
    %c0_i32_0 = arith.constant 0 : i32
    return %arg0, %c0_i32, %arg1 : i32, i32, i32
  }
}

module attributes {stable_mosaic.version = 11 : i64} {
  func.func @_conv3x3_lrelu_kernel(%arg0: i32, %arg1: i32, %arg2: memref<4x3x9x32xbf16, #tpu.memory_space<vmem>>, %arg3: memref<9x32x128xbf16, #tpu.memory_space<vmem>>, %arg4: memref<1x128xf32, #tpu.memory_space<vmem>>, %arg5: memref<1x16x128xbf16, #tpu.memory_space<vmem>>) attributes {dimension_semantics = [#tpu.dimension_semantics<parallel>, #tpu.dimension_semantics<parallel>], iteration_bounds = array<i64: 2, 1>, scalar_prefetch = 0 : i64, scratch_operands = 0 : i64, tpu.core_type = #tpu.core_type<tc>, window_params = [{transform_indices = @transform_0, window_bounds = array<i64: 4, 3, 9, 32>}, {transform_indices = @transform_1, window_bounds = array<i64: 9, 32, 128>}, {transform_indices = @transform_2, window_bounds = array<i64: 1, 128>}, {transform_indices = @transform_3, window_bounds = array<i64: 1, 16, 128>}]} {
    %cst = arith.constant 0.000000e+00 : f32
    %0 = vector.broadcast %cst : f32 to vector<16x128xf32>
    %c0 = arith.constant 0 : index
    %c0_0 = arith.constant 0 : index
    %c0_1 = arith.constant 0 : index
    %c0_2 = arith.constant 0 : index
    %1 = vector.load %arg2[%c0, %c0_0, %c0_1, %c0_2] : memref<4x3x9x32xbf16, #tpu.memory_space<vmem>>, vector<1x2x8x32xbf16>
    %2 = vector.shape_cast %1 : vector<1x2x8x32xbf16> to vector<2x8x32xbf16>
    %3 = vector.shape_cast %2 : vector<2x8x32xbf16> to vector<16x32xbf16>
    %c0_3 = arith.constant 0 : index
    %c0_4 = arith.constant 0 : index
    %c0_5 = arith.constant 0 : index
    %4 = vector.load %arg3[%c0_3, %c0_4, %c0_5] : memref<9x32x128xbf16, #tpu.memory_space<vmem>>, vector<1x32x128xbf16>
    %5 = vector.shape_cast %4 : vector<1x32x128xbf16> to vector<32x128xbf16>
    %cst_6 = arith.constant dense<0.000000e+00> : vector<16x128xf32>
    %6 = tpu.matmul %3, %5, %cst_6 {dimension_numbers = #tpu.dot_dimension_numbers<[1], [0], [0], [1], [0, 0, 1, 1], [], []>} : vector<16x32xbf16>, vector<32x128xbf16>, vector<16x128xf32> -> vector<16x128xf32>
    %7 = arith.addf %0, %6 : vector<16x128xf32>
    %c1 = arith.constant 1 : index
    %c0_7 = arith.constant 0 : index
    %c0_8 = arith.constant 0 : index
    %c0_9 = arith.constant 0 : index
    %8 = vector.load %arg2[%c1, %c0_7, %c0_8, %c0_9] : memref<4x3x9x32xbf16, #tpu.memory_space<vmem>>, vector<1x2x8x32xbf16>
    %9 = vector.shape_cast %8 : vector<1x2x8x32xbf16> to vector<2x8x32xbf16>
    %10 = vector.shape_cast %9 : vector<2x8x32xbf16> to vector<16x32xbf16>
    %c1_10 = arith.constant 1 : index
    %c0_11 = arith.constant 0 : index
    %c0_12 = arith.constant 0 : index
    %11 = vector.load %arg3[%c1_10, %c0_11, %c0_12] : memref<9x32x128xbf16, #tpu.memory_space<vmem>>, vector<1x32x128xbf16>
    %12 = vector.shape_cast %11 : vector<1x32x128xbf16> to vector<32x128xbf16>
    %cst_13 = arith.constant dense<0.000000e+00> : vector<16x128xf32>
    %13 = tpu.matmul %10, %12, %cst_13 {dimension_numbers = #tpu.dot_dimension_numbers<[1], [0], [0], [1], [0, 0, 1, 1], [], []>} : vector<16x32xbf16>, vector<32x128xbf16>, vector<16x128xf32> -> vector<16x128xf32>
    %14 = arith.addf %7, %13 : vector<16x128xf32>
    %c0_14 = arith.constant 0 : index
    %c0_15 = arith.constant 0 : index
    %c1_16 = arith.constant 1 : index
    %c0_17 = arith.constant 0 : index
    %15 = vector.load %arg2[%c0_14, %c0_15, %c1_16, %c0_17] : memref<4x3x9x32xbf16, #tpu.memory_space<vmem>>, vector<1x2x8x32xbf16>
    %16 = vector.shape_cast %15 : vector<1x2x8x32xbf16> to vector<2x8x32xbf16>
    %17 = vector.shape_cast %16 : vector<2x8x32xbf16> to vector<16x32xbf16>
    %c2 = arith.constant 2 : index
    %c0_18 = arith.constant 0 : index
    %c0_19 = arith.constant 0 : index
    %18 = vector.load %arg3[%c2, %c0_18, %c0_19] : memref<9x32x128xbf16, #tpu.memory_space<vmem>>, vector<1x32x128xbf16>
    %19 = vector.shape_cast %18 : vector<1x32x128xbf16> to vector<32x128xbf16>
    %cst_20 = arith.constant dense<0.000000e+00> : vector<16x128xf32>
    %20 = tpu.matmul %17, %19, %cst_20 {dimension_numbers = #tpu.dot_dimension_numbers<[1], [0], [0], [1], [0, 0, 1, 1], [], []>} : vector<16x32xbf16>, vector<32x128xbf16>, vector<16x128xf32> -> vector<16x128xf32>
    %21 = arith.addf %14, %20 : vector<16x128xf32>
    %c2_21 = arith.constant 2 : index
    %c0_22 = arith.constant 0 : index
    %c0_23 = arith.constant 0 : index
    %c0_24 = arith.constant 0 : index
    %22 = vector.load %arg2[%c2_21, %c0_22, %c0_23, %c0_24] : memref<4x3x9x32xbf16, #tpu.memory_space<vmem>>, vector<1x2x8x32xbf16>
    %23 = vector.shape_cast %22 : vector<1x2x8x32xbf16> to vector<2x8x32xbf16>
    %24 = vector.shape_cast %23 : vector<2x8x32xbf16> to vector<16x32xbf16>
    %c3 = arith.constant 3 : index
    %c0_25 = arith.constant 0 : index
    %c0_26 = arith.constant 0 : index
    %25 = vector.load %arg3[%c3, %c0_25, %c0_26] : memref<9x32x128xbf16, #tpu.memory_space<vmem>>, vector<1x32x128xbf16>
    %26 = vector.shape_cast %25 : vector<1x32x128xbf16> to vector<32x128xbf16>
    %cst_27 = arith.constant dense<0.000000e+00> : vector<16x128xf32>
    %27 = tpu.matmul %24, %26, %cst_27 {dimension_numbers = #tpu.dot_dimension_numbers<[1], [0], [0], [1], [0, 0, 1, 1], [], []>} : vector<16x32xbf16>, vector<32x128xbf16>, vector<16x128xf32> -> vector<16x128xf32>
    %28 = arith.addf %21, %27 : vector<16x128xf32>
    %c3_28 = arith.constant 3 : index
    %c0_29 = arith.constant 0 : index
    %c0_30 = arith.constant 0 : index
    %c0_31 = arith.constant 0 : index
    %29 = vector.load %arg2[%c3_28, %c0_29, %c0_30, %c0_31] : memref<4x3x9x32xbf16, #tpu.memory_space<vmem>>, vector<1x2x8x32xbf16>
    %30 = vector.shape_cast %29 : vector<1x2x8x32xbf16> to vector<2x8x32xbf16>
    %31 = vector.shape_cast %30 : vector<2x8x32xbf16> to vector<16x32xbf16>
    %c4 = arith.constant 4 : index
    %c0_32 = arith.constant 0 : index
    %c0_33 = arith.constant 0 : index
    %32 = vector.load %arg3[%c4, %c0_32, %c0_33] : memref<9x32x128xbf16, #tpu.memory_space<vmem>>, vector<1x32x128xbf16>
    %33 = vector.shape_cast %32 : vector<1x32x128xbf16> to vector<32x128xbf16>
    %cst_34 = arith.constant dense<0.000000e+00> : vector<16x128xf32>
    %34 = tpu.matmul %31, %33, %cst_34 {dimension_numbers = #tpu.dot_dimension_numbers<[1], [0], [0], [1], [0, 0, 1, 1], [], []>} : vector<16x32xbf16>, vector<32x128xbf16>, vector<16x128xf32> -> vector<16x128xf32>
    %35 = arith.addf %28, %34 : vector<16x128xf32>
    %c2_35 = arith.constant 2 : index
    %c0_36 = arith.constant 0 : index
    %c1_37 = arith.constant 1 : index
    %c0_38 = arith.constant 0 : index
    %36 = vector.load %arg2[%c2_35, %c0_36, %c1_37, %c0_38] : memref<4x3x9x32xbf16, #tpu.memory_space<vmem>>, vector<1x2x8x32xbf16>
    %37 = vector.shape_cast %36 : vector<1x2x8x32xbf16> to vector<2x8x32xbf16>
    %38 = vector.shape_cast %37 : vector<2x8x32xbf16> to vector<16x32xbf16>
    %c5 = arith.constant 5 : index
    %c0_39 = arith.constant 0 : index
    %c0_40 = arith.constant 0 : index
    %39 = vector.load %arg3[%c5, %c0_39, %c0_40] : memref<9x32x128xbf16, #tpu.memory_space<vmem>>, vector<1x32x128xbf16>
    %40 = vector.shape_cast %39 : vector<1x32x128xbf16> to vector<32x128xbf16>
    %cst_41 = arith.constant dense<0.000000e+00> : vector<16x128xf32>
    %41 = tpu.matmul %38, %40, %cst_41 {dimension_numbers = #tpu.dot_dimension_numbers<[1], [0], [0], [1], [0, 0, 1, 1], [], []>} : vector<16x32xbf16>, vector<32x128xbf16>, vector<16x128xf32> -> vector<16x128xf32>
    %42 = arith.addf %35, %41 : vector<16x128xf32>
    %c0_42 = arith.constant 0 : index
    %c1_43 = arith.constant 1 : index
    %c0_44 = arith.constant 0 : index
    %c0_45 = arith.constant 0 : index
    %43 = vector.load %arg2[%c0_42, %c1_43, %c0_44, %c0_45] : memref<4x3x9x32xbf16, #tpu.memory_space<vmem>>, vector<1x2x8x32xbf16>
    %44 = vector.shape_cast %43 : vector<1x2x8x32xbf16> to vector<2x8x32xbf16>
    %45 = vector.shape_cast %44 : vector<2x8x32xbf16> to vector<16x32xbf16>
    %c6 = arith.constant 6 : index
    %c0_46 = arith.constant 0 : index
    %c0_47 = arith.constant 0 : index
    %46 = vector.load %arg3[%c6, %c0_46, %c0_47] : memref<9x32x128xbf16, #tpu.memory_space<vmem>>, vector<1x32x128xbf16>
    %47 = vector.shape_cast %46 : vector<1x32x128xbf16> to vector<32x128xbf16>
    %cst_48 = arith.constant dense<0.000000e+00> : vector<16x128xf32>
    %48 = tpu.matmul %45, %47, %cst_48 {dimension_numbers = #tpu.dot_dimension_numbers<[1], [0], [0], [1], [0, 0, 1, 1], [], []>} : vector<16x32xbf16>, vector<32x128xbf16>, vector<16x128xf32> -> vector<16x128xf32>
    %49 = arith.addf %42, %48 : vector<16x128xf32>
    %c1_49 = arith.constant 1 : index
    %c1_50 = arith.constant 1 : index
    %c0_51 = arith.constant 0 : index
    %c0_52 = arith.constant 0 : index
    %50 = vector.load %arg2[%c1_49, %c1_50, %c0_51, %c0_52] : memref<4x3x9x32xbf16, #tpu.memory_space<vmem>>, vector<1x2x8x32xbf16>
    %51 = vector.shape_cast %50 : vector<1x2x8x32xbf16> to vector<2x8x32xbf16>
    %52 = vector.shape_cast %51 : vector<2x8x32xbf16> to vector<16x32xbf16>
    %c7 = arith.constant 7 : index
    %c0_53 = arith.constant 0 : index
    %c0_54 = arith.constant 0 : index
    %53 = vector.load %arg3[%c7, %c0_53, %c0_54] : memref<9x32x128xbf16, #tpu.memory_space<vmem>>, vector<1x32x128xbf16>
    %54 = vector.shape_cast %53 : vector<1x32x128xbf16> to vector<32x128xbf16>
    %cst_55 = arith.constant dense<0.000000e+00> : vector<16x128xf32>
    %55 = tpu.matmul %52, %54, %cst_55 {dimension_numbers = #tpu.dot_dimension_numbers<[1], [0], [0], [1], [0, 0, 1, 1], [], []>} : vector<16x32xbf16>, vector<32x128xbf16>, vector<16x128xf32> -> vector<16x128xf32>
    %56 = arith.addf %49, %55 : vector<16x128xf32>
    %c0_56 = arith.constant 0 : index
    %c1_57 = arith.constant 1 : index
    %c1_58 = arith.constant 1 : index
    %c0_59 = arith.constant 0 : index
    %57 = vector.load %arg2[%c0_56, %c1_57, %c1_58, %c0_59] : memref<4x3x9x32xbf16, #tpu.memory_space<vmem>>, vector<1x2x8x32xbf16>
    %58 = vector.shape_cast %57 : vector<1x2x8x32xbf16> to vector<2x8x32xbf16>
    %59 = vector.shape_cast %58 : vector<2x8x32xbf16> to vector<16x32xbf16>
    %c8 = arith.constant 8 : index
    %c0_60 = arith.constant 0 : index
    %c0_61 = arith.constant 0 : index
    %60 = vector.load %arg3[%c8, %c0_60, %c0_61] : memref<9x32x128xbf16, #tpu.memory_space<vmem>>, vector<1x32x128xbf16>
    %61 = vector.shape_cast %60 : vector<1x32x128xbf16> to vector<32x128xbf16>
    %cst_62 = arith.constant dense<0.000000e+00> : vector<16x128xf32>
    %62 = tpu.matmul %59, %61, %cst_62 {dimension_numbers = #tpu.dot_dimension_numbers<[1], [0], [0], [1], [0, 0, 1, 1], [], []>} : vector<16x32xbf16>, vector<32x128xbf16>, vector<16x128xf32> -> vector<16x128xf32>
    %63 = arith.addf %56, %62 : vector<16x128xf32>
    %c0_63 = arith.constant 0 : index
    %c0_64 = arith.constant 0 : index
    %64 = vector.load %arg4[%c0_63, %c0_64] : memref<1x128xf32, #tpu.memory_space<vmem>>, vector<1x128xf32>
    %65 = vector.broadcast %64 : vector<1x128xf32> to vector<16x128xf32>
    %66 = arith.addf %63, %65 : vector<16x128xf32>
    %cst_65 = arith.constant 0.000000e+00 : f32
    %67 = vector.broadcast %cst_65 : f32 to vector<16x128xf32>
    %68 = arith.cmpf ogt, %66, %67 : vector<16x128xf32>
    %cst_66 = arith.constant 0.00999999977 : f32
    %69 = vector.broadcast %cst_66 : f32 to vector<16x128xf32>
    %70 = arith.mulf %69, %66 : vector<16x128xf32>
    %71 = arith.select %68, %66, %70 : vector<16x128xi1>, vector<16x128xf32>
    %72 = arith.truncf %71 : vector<16x128xf32> to vector<16x128xbf16>
    %c0_67 = arith.constant 0 : index
    %c0_68 = arith.constant 0 : index
    %c0_69 = arith.constant 0 : index
    %73 = vector.load %arg5[%c0_67, %c0_68, %c0_69] : memref<1x16x128xbf16, #tpu.memory_space<vmem>>, vector<1x16x128xbf16>
    %74 = vector.shape_cast %73 : vector<1x16x128xbf16> to vector<16x128xbf16>
    %75 = vector.shape_cast %72 : vector<16x128xbf16> to vector<1x16x128xbf16>
    tpu.vector_store %arg5[%c0_67, %c0_68, %c0_69], %75 {strides = array<i32>} : memref<1x16x128xbf16, #tpu.memory_space<vmem>>, vector<1x16x128xbf16>,
    return
  }
  func.func @transform_0(%arg0: i32, %arg1: i32) -> (i32, i32, i32, i32) {
    %c0_i32 = arith.constant 0 : i32
    %c0_i32_0 = arith.constant 0 : i32
    %c0_i32_1 = arith.constant 0 : i32
    %c0_i32_2 = arith.constant 0 : i32
    return %arg0, %c0_i32, %c0_i32_0, %c0_i32_1 : i32, i32, i32, i32
  }
  func.func @transform_1(%arg0: i32, %arg1: i32) -> (i32, i32, i32) {
    %c0_i32 = arith.constant 0 : i32
    %c0_i32_0 = arith.constant 0 : i32
    %c0_i32_1 = arith.constant 0 : i32
    return %c0_i32, %c0_i32_0, %arg1 : i32, i32, i32
  }
  func.func @transform_2(%arg0: i32, %arg1: i32) -> (i32, i32) {
    %c0_i32 = arith.constant 0 : i32
    %c0_i32_0 = arith.constant 0 : i32
    return %c0_i32, %arg1 : i32, i32
  }
  func.func @transform_3(%arg0: i32, %arg1: i32) -> (i32, i32, i32) {
    %c0_i32 = arith.constant 0 : i32
    %c0_i32_0 = arith.constant 0 : i32
    return %arg0, %c0_i32, %arg1 : i32, i32, i32
  }
}

module attributes {stable_mosaic.version = 11 : i64} {
  func.func @_conv3x3_lrelu_kernel(%arg0: i32, %arg1: i32, %arg2: memref<1x4x10x64xbf16, #tpu.memory_space<vmem>>, %arg3: memref<9x64x128xbf16, #tpu.memory_space<vmem>>, %arg4: memref<1x128xf32, #tpu.memory_space<vmem>>, %arg5: memref<1x16x128xbf16, #tpu.memory_space<vmem>>) attributes {dimension_semantics = [#tpu.dimension_semantics<parallel>, #tpu.dimension_semantics<parallel>], iteration_bounds = array<i64: 2, 1>, scalar_prefetch = 0 : i64, scratch_operands = 0 : i64, tpu.core_type = #tpu.core_type<tc>, window_params = [{transform_indices = @transform_0, window_bounds = array<i64: 1, 4, 10, 64>}, {transform_indices = @transform_1, window_bounds = array<i64: 9, 64, 128>}, {transform_indices = @transform_2, window_bounds = array<i64: 1, 128>}, {transform_indices = @transform_3, window_bounds = array<i64: 1, 16, 128>}]} {
    %cst = arith.constant 0.000000e+00 : f32
    %0 = vector.broadcast %cst : f32 to vector<16x128xf32>
    %c0 = arith.constant 0 : index
    %c0_0 = arith.constant 0 : index
    %c0_1 = arith.constant 0 : index
    %c0_2 = arith.constant 0 : index
    %1 = vector.load %arg2[%c0, %c0_0, %c0_1, %c0_2] : memref<1x4x10x64xbf16, #tpu.memory_space<vmem>>, vector<1x2x8x64xbf16>
    %2 = vector.shape_cast %1 : vector<1x2x8x64xbf16> to vector<2x8x64xbf16>
    %3 = vector.shape_cast %2 : vector<2x8x64xbf16> to vector<16x64xbf16>
    %c0_3 = arith.constant 0 : index
    %c0_4 = arith.constant 0 : index
    %c0_5 = arith.constant 0 : index
    %4 = vector.load %arg3[%c0_3, %c0_4, %c0_5] : memref<9x64x128xbf16, #tpu.memory_space<vmem>>, vector<1x64x128xbf16>
    %5 = vector.shape_cast %4 : vector<1x64x128xbf16> to vector<64x128xbf16>
    %cst_6 = arith.constant dense<0.000000e+00> : vector<16x128xf32>
    %6 = tpu.matmul %3, %5, %cst_6 {dimension_numbers = #tpu.dot_dimension_numbers<[1], [0], [0], [1], [0, 0, 1, 1], [], []>} : vector<16x64xbf16>, vector<64x128xbf16>, vector<16x128xf32> -> vector<16x128xf32>
    %7 = arith.addf %0, %6 : vector<16x128xf32>
    %c0_7 = arith.constant 0 : index
    %c0_8 = arith.constant 0 : index
    %c1 = arith.constant 1 : index
    %c0_9 = arith.constant 0 : index
    %8 = vector.load %arg2[%c0_7, %c0_8, %c1, %c0_9] : memref<1x4x10x64xbf16, #tpu.memory_space<vmem>>, vector<1x2x8x64xbf16>
    %9 = vector.shape_cast %8 : vector<1x2x8x64xbf16> to vector<2x8x64xbf16>
    %10 = vector.shape_cast %9 : vector<2x8x64xbf16> to vector<16x64xbf16>
    %c1_10 = arith.constant 1 : index
    %c0_11 = arith.constant 0 : index
    %c0_12 = arith.constant 0 : index
    %11 = vector.load %arg3[%c1_10, %c0_11, %c0_12] : memref<9x64x128xbf16, #tpu.memory_space<vmem>>, vector<1x64x128xbf16>
    %12 = vector.shape_cast %11 : vector<1x64x128xbf16> to vector<64x128xbf16>
    %cst_13 = arith.constant dense<0.000000e+00> : vector<16x128xf32>
    %13 = tpu.matmul %10, %12, %cst_13 {dimension_numbers = #tpu.dot_dimension_numbers<[1], [0], [0], [1], [0, 0, 1, 1], [], []>} : vector<16x64xbf16>, vector<64x128xbf16>, vector<16x128xf32> -> vector<16x128xf32>
    %14 = arith.addf %7, %13 : vector<16x128xf32>
    %c0_14 = arith.constant 0 : index
    %c0_15 = arith.constant 0 : index
    %c2 = arith.constant 2 : index
    %c0_16 = arith.constant 0 : index
    %15 = vector.load %arg2[%c0_14, %c0_15, %c2, %c0_16] : memref<1x4x10x64xbf16, #tpu.memory_space<vmem>>, vector<1x2x8x64xbf16>
    %16 = vector.shape_cast %15 : vector<1x2x8x64xbf16> to vector<2x8x64xbf16>
    %17 = vector.shape_cast %16 : vector<2x8x64xbf16> to vector<16x64xbf16>
    %c2_17 = arith.constant 2 : index
    %c0_18 = arith.constant 0 : index
    %c0_19 = arith.constant 0 : index
    %18 = vector.load %arg3[%c2_17, %c0_18, %c0_19] : memref<9x64x128xbf16, #tpu.memory_space<vmem>>, vector<1x64x128xbf16>
    %19 = vector.shape_cast %18 : vector<1x64x128xbf16> to vector<64x128xbf16>
    %cst_20 = arith.constant dense<0.000000e+00> : vector<16x128xf32>
    %20 = tpu.matmul %17, %19, %cst_20 {dimension_numbers = #tpu.dot_dimension_numbers<[1], [0], [0], [1], [0, 0, 1, 1], [], []>} : vector<16x64xbf16>, vector<64x128xbf16>, vector<16x128xf32> -> vector<16x128xf32>
    %21 = arith.addf %14, %20 : vector<16x128xf32>
    %c0_21 = arith.constant 0 : index
    %c1_22 = arith.constant 1 : index
    %c0_23 = arith.constant 0 : index
    %c0_24 = arith.constant 0 : index
    %22 = vector.load %arg2[%c0_21, %c1_22, %c0_23, %c0_24] : memref<1x4x10x64xbf16, #tpu.memory_space<vmem>>, vector<1x2x8x64xbf16>
    %23 = vector.shape_cast %22 : vector<1x2x8x64xbf16> to vector<2x8x64xbf16>
    %24 = vector.shape_cast %23 : vector<2x8x64xbf16> to vector<16x64xbf16>
    %c3 = arith.constant 3 : index
    %c0_25 = arith.constant 0 : index
    %c0_26 = arith.constant 0 : index
    %25 = vector.load %arg3[%c3, %c0_25, %c0_26] : memref<9x64x128xbf16, #tpu.memory_space<vmem>>, vector<1x64x128xbf16>
    %26 = vector.shape_cast %25 : vector<1x64x128xbf16> to vector<64x128xbf16>
    %cst_27 = arith.constant dense<0.000000e+00> : vector<16x128xf32>
    %27 = tpu.matmul %24, %26, %cst_27 {dimension_numbers = #tpu.dot_dimension_numbers<[1], [0], [0], [1], [0, 0, 1, 1], [], []>} : vector<16x64xbf16>, vector<64x128xbf16>, vector<16x128xf32> -> vector<16x128xf32>
    %28 = arith.addf %21, %27 : vector<16x128xf32>
    %c0_28 = arith.constant 0 : index
    %c1_29 = arith.constant 1 : index
    %c1_30 = arith.constant 1 : index
    %c0_31 = arith.constant 0 : index
    %29 = vector.load %arg2[%c0_28, %c1_29, %c1_30, %c0_31] : memref<1x4x10x64xbf16, #tpu.memory_space<vmem>>, vector<1x2x8x64xbf16>
    %30 = vector.shape_cast %29 : vector<1x2x8x64xbf16> to vector<2x8x64xbf16>
    %31 = vector.shape_cast %30 : vector<2x8x64xbf16> to vector<16x64xbf16>
    %c4 = arith.constant 4 : index
    %c0_32 = arith.constant 0 : index
    %c0_33 = arith.constant 0 : index
    %32 = vector.load %arg3[%c4, %c0_32, %c0_33] : memref<9x64x128xbf16, #tpu.memory_space<vmem>>, vector<1x64x128xbf16>
    %33 = vector.shape_cast %32 : vector<1x64x128xbf16> to vector<64x128xbf16>
    %cst_34 = arith.constant dense<0.000000e+00> : vector<16x128xf32>
    %34 = tpu.matmul %31, %33, %cst_34 {dimension_numbers = #tpu.dot_dimension_numbers<[1], [0], [0], [1], [0, 0, 1, 1], [], []>} : vector<16x64xbf16>, vector<64x128xbf16>, vector<16x128xf32> -> vector<16x128xf32>
    %35 = arith.addf %28, %34 : vector<16x128xf32>
    %c0_35 = arith.constant 0 : index
    %c1_36 = arith.constant 1 : index
    %c2_37 = arith.constant 2 : index
    %c0_38 = arith.constant 0 : index
    %36 = vector.load %arg2[%c0_35, %c1_36, %c2_37, %c0_38] : memref<1x4x10x64xbf16, #tpu.memory_space<vmem>>, vector<1x2x8x64xbf16>
    %37 = vector.shape_cast %36 : vector<1x2x8x64xbf16> to vector<2x8x64xbf16>
    %38 = vector.shape_cast %37 : vector<2x8x64xbf16> to vector<16x64xbf16>
    %c5 = arith.constant 5 : index
    %c0_39 = arith.constant 0 : index
    %c0_40 = arith.constant 0 : index
    %39 = vector.load %arg3[%c5, %c0_39, %c0_40] : memref<9x64x128xbf16, #tpu.memory_space<vmem>>, vector<1x64x128xbf16>
    %40 = vector.shape_cast %39 : vector<1x64x128xbf16> to vector<64x128xbf16>
    %cst_41 = arith.constant dense<0.000000e+00> : vector<16x128xf32>
    %41 = tpu.matmul %38, %40, %cst_41 {dimension_numbers = #tpu.dot_dimension_numbers<[1], [0], [0], [1], [0, 0, 1, 1], [], []>} : vector<16x64xbf16>, vector<64x128xbf16>, vector<16x128xf32> -> vector<16x128xf32>
    %42 = arith.addf %35, %41 : vector<16x128xf32>
    %c0_42 = arith.constant 0 : index
    %c2_43 = arith.constant 2 : index
    %c0_44 = arith.constant 0 : index
    %c0_45 = arith.constant 0 : index
    %43 = vector.load %arg2[%c0_42, %c2_43, %c0_44, %c0_45] : memref<1x4x10x64xbf16, #tpu.memory_space<vmem>>, vector<1x2x8x64xbf16>
    %44 = vector.shape_cast %43 : vector<1x2x8x64xbf16> to vector<2x8x64xbf16>
    %45 = vector.shape_cast %44 : vector<2x8x64xbf16> to vector<16x64xbf16>
    %c6 = arith.constant 6 : index
    %c0_46 = arith.constant 0 : index
    %c0_47 = arith.constant 0 : index
    %46 = vector.load %arg3[%c6, %c0_46, %c0_47] : memref<9x64x128xbf16, #tpu.memory_space<vmem>>, vector<1x64x128xbf16>
    %47 = vector.shape_cast %46 : vector<1x64x128xbf16> to vector<64x128xbf16>
    %cst_48 = arith.constant dense<0.000000e+00> : vector<16x128xf32>
    %48 = tpu.matmul %45, %47, %cst_48 {dimension_numbers = #tpu.dot_dimension_numbers<[1], [0], [0], [1], [0, 0, 1, 1], [], []>} : vector<16x64xbf16>, vector<64x128xbf16>, vector<16x128xf32> -> vector<16x128xf32>
    %49 = arith.addf %42, %48 : vector<16x128xf32>
    %c0_49 = arith.constant 0 : index
    %c2_50 = arith.constant 2 : index
    %c1_51 = arith.constant 1 : index
    %c0_52 = arith.constant 0 : index
    %50 = vector.load %arg2[%c0_49, %c2_50, %c1_51, %c0_52] : memref<1x4x10x64xbf16, #tpu.memory_space<vmem>>, vector<1x2x8x64xbf16>
    %51 = vector.shape_cast %50 : vector<1x2x8x64xbf16> to vector<2x8x64xbf16>
    %52 = vector.shape_cast %51 : vector<2x8x64xbf16> to vector<16x64xbf16>
    %c7 = arith.constant 7 : index
    %c0_53 = arith.constant 0 : index
    %c0_54 = arith.constant 0 : index
    %53 = vector.load %arg3[%c7, %c0_53, %c0_54] : memref<9x64x128xbf16, #tpu.memory_space<vmem>>, vector<1x64x128xbf16>
    %54 = vector.shape_cast %53 : vector<1x64x128xbf16> to vector<64x128xbf16>
    %cst_55 = arith.constant dense<0.000000e+00> : vector<16x128xf32>
    %55 = tpu.matmul %52, %54, %cst_55 {dimension_numbers = #tpu.dot_dimension_numbers<[1], [0], [0], [1], [0, 0, 1, 1], [], []>} : vector<16x64xbf16>, vector<64x128xbf16>, vector<16x128xf32> -> vector<16x128xf32>
    %56 = arith.addf %49, %55 : vector<16x128xf32>
    %c0_56 = arith.constant 0 : index
    %c2_57 = arith.constant 2 : index
    %c2_58 = arith.constant 2 : index
    %c0_59 = arith.constant 0 : index
    %57 = vector.load %arg2[%c0_56, %c2_57, %c2_58, %c0_59] : memref<1x4x10x64xbf16, #tpu.memory_space<vmem>>, vector<1x2x8x64xbf16>
    %58 = vector.shape_cast %57 : vector<1x2x8x64xbf16> to vector<2x8x64xbf16>
    %59 = vector.shape_cast %58 : vector<2x8x64xbf16> to vector<16x64xbf16>
    %c8 = arith.constant 8 : index
    %c0_60 = arith.constant 0 : index
    %c0_61 = arith.constant 0 : index
    %60 = vector.load %arg3[%c8, %c0_60, %c0_61] : memref<9x64x128xbf16, #tpu.memory_space<vmem>>, vector<1x64x128xbf16>
    %61 = vector.shape_cast %60 : vector<1x64x128xbf16> to vector<64x128xbf16>
    %cst_62 = arith.constant dense<0.000000e+00> : vector<16x128xf32>
    %62 = tpu.matmul %59, %61, %cst_62 {dimension_numbers = #tpu.dot_dimension_numbers<[1], [0], [0], [1], [0, 0, 1, 1], [], []>} : vector<16x64xbf16>, vector<64x128xbf16>, vector<16x128xf32> -> vector<16x128xf32>
    %63 = arith.addf %56, %62 : vector<16x128xf32>
    %c0_63 = arith.constant 0 : index
    %c0_64 = arith.constant 0 : index
    %64 = vector.load %arg4[%c0_63, %c0_64] : memref<1x128xf32, #tpu.memory_space<vmem>>, vector<1x128xf32>
    %65 = vector.broadcast %64 : vector<1x128xf32> to vector<16x128xf32>
    %66 = arith.addf %63, %65 : vector<16x128xf32>
    %cst_65 = arith.constant 0.000000e+00 : f32
    %67 = vector.broadcast %cst_65 : f32 to vector<16x128xf32>
    %68 = arith.cmpf ogt, %66, %67 : vector<16x128xf32>
    %cst_66 = arith.constant 0.00999999977 : f32
    %69 = vector.broadcast %cst_66 : f32 to vector<16x128xf32>
    %70 = arith.mulf %69, %66 : vector<16x128xf32>
    %71 = arith.select %68, %66, %70 : vector<16x128xi1>, vector<16x128xf32>
    %72 = arith.truncf %71 : vector<16x128xf32> to vector<16x128xbf16>
    %c0_67 = arith.constant 0 : index
    %c0_68 = arith.constant 0 : index
    %c0_69 = arith.constant 0 : index
    %73 = vector.load %arg5[%c0_67, %c0_68, %c0_69] : memref<1x16x128xbf16, #tpu.memory_space<vmem>>, vector<1x16x128xbf16>
    %74 = vector.shape_cast %73 : vector<1x16x128xbf16> to vector<16x128xbf16>
    %75 = vector.shape_cast %72 : vector<16x128xbf16> to vector<1x16x128xbf16>
    tpu.vector_store %arg5[%c0_67, %c0_68, %c0_69], %75 {strides = array<i32>} : memref<1x16x128xbf16, #tpu.memory_space<vmem>>, vector<1x16x128xbf16>,
    return
  }
  func.func @transform_0(%arg0: i32, %arg1: i32) -> (i32, i32, i32, i32) {
    %c0_i32 = arith.constant 0 : i32
    %c0_i32_0 = arith.constant 0 : i32
    %c0_i32_1 = arith.constant 0 : i32
    %c0_i32_2 = arith.constant 0 : i32
    return %arg0, %c0_i32, %c0_i32_0, %c0_i32_1 : i32, i32, i32, i32
  }
  func.func @transform_1(%arg0: i32, %arg1: i32) -> (i32, i32, i32) {
    %c0_i32 = arith.constant 0 : i32
    %c0_i32_0 = arith.constant 0 : i32
    %c0_i32_1 = arith.constant 0 : i32
    return %c0_i32, %c0_i32_0, %arg1 : i32, i32, i32
  }
  func.func @transform_2(%arg0: i32, %arg1: i32) -> (i32, i32) {
    %c0_i32 = arith.constant 0 : i32
    %c0_i32_0 = arith.constant 0 : i32
    return %c0_i32, %arg1 : i32, i32
  }
  func.func @transform_3(%arg0: i32, %arg1: i32) -> (i32, i32, i32) {
    %c0_i32 = arith.constant 0 : i32
    %c0_i32_0 = arith.constant 0 : i32
    return %arg0, %c0_i32, %arg1 : i32, i32, i32
  }
}

module attributes {stable_mosaic.version = 11 : i64} {
  func.func @_conv3x3_lrelu_kernel(%arg0: i32, %arg1: i32, %arg2: memref<4x2x9x64xbf16, #tpu.memory_space<vmem>>, %arg3: memref<9x64x128xbf16, #tpu.memory_space<vmem>>, %arg4: memref<1x128xf32, #tpu.memory_space<vmem>>, %arg5: memref<1x8x128xbf16, #tpu.memory_space<vmem>>) attributes {dimension_semantics = [#tpu.dimension_semantics<parallel>, #tpu.dimension_semantics<parallel>], iteration_bounds = array<i64: 2, 1>, scalar_prefetch = 0 : i64, scratch_operands = 0 : i64, tpu.core_type = #tpu.core_type<tc>, window_params = [{transform_indices = @transform_0, window_bounds = array<i64: 4, 2, 9, 64>}, {transform_indices = @transform_1, window_bounds = array<i64: 9, 64, 128>}, {transform_indices = @transform_2, window_bounds = array<i64: 1, 128>}, {transform_indices = @transform_3, window_bounds = array<i64: 1, 8, 128>}]} {
    %cst = arith.constant 0.000000e+00 : f32
    %0 = vector.broadcast %cst : f32 to vector<8x128xf32>
    %c0 = arith.constant 0 : index
    %c0_0 = arith.constant 0 : index
    %c0_1 = arith.constant 0 : index
    %c0_2 = arith.constant 0 : index
    %1 = vector.load %arg2[%c0, %c0_0, %c0_1, %c0_2] : memref<4x2x9x64xbf16, #tpu.memory_space<vmem>>, vector<1x1x8x64xbf16>
    %2 = vector.shape_cast %1 : vector<1x1x8x64xbf16> to vector<1x8x64xbf16>
    %3 = vector.shape_cast %2 : vector<1x8x64xbf16> to vector<8x64xbf16>
    %c0_3 = arith.constant 0 : index
    %c0_4 = arith.constant 0 : index
    %c0_5 = arith.constant 0 : index
    %4 = vector.load %arg3[%c0_3, %c0_4, %c0_5] : memref<9x64x128xbf16, #tpu.memory_space<vmem>>, vector<1x64x128xbf16>
    %5 = vector.shape_cast %4 : vector<1x64x128xbf16> to vector<64x128xbf16>
    %cst_6 = arith.constant dense<0.000000e+00> : vector<8x128xf32>
    %6 = tpu.matmul %3, %5, %cst_6 {dimension_numbers = #tpu.dot_dimension_numbers<[1], [0], [0], [1], [0, 0, 1, 1], [], []>} : vector<8x64xbf16>, vector<64x128xbf16>, vector<8x128xf32> -> vector<8x128xf32>
    %7 = arith.addf %0, %6 : vector<8x128xf32>
    %c1 = arith.constant 1 : index
    %c0_7 = arith.constant 0 : index
    %c0_8 = arith.constant 0 : index
    %c0_9 = arith.constant 0 : index
    %8 = vector.load %arg2[%c1, %c0_7, %c0_8, %c0_9] : memref<4x2x9x64xbf16, #tpu.memory_space<vmem>>, vector<1x1x8x64xbf16>
    %9 = vector.shape_cast %8 : vector<1x1x8x64xbf16> to vector<1x8x64xbf16>
    %10 = vector.shape_cast %9 : vector<1x8x64xbf16> to vector<8x64xbf16>
    %c1_10 = arith.constant 1 : index
    %c0_11 = arith.constant 0 : index
    %c0_12 = arith.constant 0 : index
    %11 = vector.load %arg3[%c1_10, %c0_11, %c0_12] : memref<9x64x128xbf16, #tpu.memory_space<vmem>>, vector<1x64x128xbf16>
    %12 = vector.shape_cast %11 : vector<1x64x128xbf16> to vector<64x128xbf16>
    %cst_13 = arith.constant dense<0.000000e+00> : vector<8x128xf32>
    %13 = tpu.matmul %10, %12, %cst_13 {dimension_numbers = #tpu.dot_dimension_numbers<[1], [0], [0], [1], [0, 0, 1, 1], [], []>} : vector<8x64xbf16>, vector<64x128xbf16>, vector<8x128xf32> -> vector<8x128xf32>
    %14 = arith.addf %7, %13 : vector<8x128xf32>
    %c0_14 = arith.constant 0 : index
    %c0_15 = arith.constant 0 : index
    %c1_16 = arith.constant 1 : index
    %c0_17 = arith.constant 0 : index
    %15 = vector.load %arg2[%c0_14, %c0_15, %c1_16, %c0_17] : memref<4x2x9x64xbf16, #tpu.memory_space<vmem>>, vector<1x1x8x64xbf16>
    %16 = vector.shape_cast %15 : vector<1x1x8x64xbf16> to vector<1x8x64xbf16>
    %17 = vector.shape_cast %16 : vector<1x8x64xbf16> to vector<8x64xbf16>
    %c2 = arith.constant 2 : index
    %c0_18 = arith.constant 0 : index
    %c0_19 = arith.constant 0 : index
    %18 = vector.load %arg3[%c2, %c0_18, %c0_19] : memref<9x64x128xbf16, #tpu.memory_space<vmem>>, vector<1x64x128xbf16>
    %19 = vector.shape_cast %18 : vector<1x64x128xbf16> to vector<64x128xbf16>
    %cst_20 = arith.constant dense<0.000000e+00> : vector<8x128xf32>
    %20 = tpu.matmul %17, %19, %cst_20 {dimension_numbers = #tpu.dot_dimension_numbers<[1], [0], [0], [1], [0, 0, 1, 1], [], []>} : vector<8x64xbf16>, vector<64x128xbf16>, vector<8x128xf32> -> vector<8x128xf32>
    %21 = arith.addf %14, %20 : vector<8x128xf32>
    %c2_21 = arith.constant 2 : index
    %c0_22 = arith.constant 0 : index
    %c0_23 = arith.constant 0 : index
    %c0_24 = arith.constant 0 : index
    %22 = vector.load %arg2[%c2_21, %c0_22, %c0_23, %c0_24] : memref<4x2x9x64xbf16, #tpu.memory_space<vmem>>, vector<1x1x8x64xbf16>
    %23 = vector.shape_cast %22 : vector<1x1x8x64xbf16> to vector<1x8x64xbf16>
    %24 = vector.shape_cast %23 : vector<1x8x64xbf16> to vector<8x64xbf16>
    %c3 = arith.constant 3 : index
    %c0_25 = arith.constant 0 : index
    %c0_26 = arith.constant 0 : index
    %25 = vector.load %arg3[%c3, %c0_25, %c0_26] : memref<9x64x128xbf16, #tpu.memory_space<vmem>>, vector<1x64x128xbf16>
    %26 = vector.shape_cast %25 : vector<1x64x128xbf16> to vector<64x128xbf16>
    %cst_27 = arith.constant dense<0.000000e+00> : vector<8x128xf32>
    %27 = tpu.matmul %24, %26, %cst_27 {dimension_numbers = #tpu.dot_dimension_numbers<[1], [0], [0], [1], [0, 0, 1, 1], [], []>} : vector<8x64xbf16>, vector<64x128xbf16>, vector<8x128xf32> -> vector<8x128xf32>
    %28 = arith.addf %21, %27 : vector<8x128xf32>
    %c3_28 = arith.constant 3 : index
    %c0_29 = arith.constant 0 : index
    %c0_30 = arith.constant 0 : index
    %c0_31 = arith.constant 0 : index
    %29 = vector.load %arg2[%c3_28, %c0_29, %c0_30, %c0_31] : memref<4x2x9x64xbf16, #tpu.memory_space<vmem>>, vector<1x1x8x64xbf16>
    %30 = vector.shape_cast %29 : vector<1x1x8x64xbf16> to vector<1x8x64xbf16>
    %31 = vector.shape_cast %30 : vector<1x8x64xbf16> to vector<8x64xbf16>
    %c4 = arith.constant 4 : index
    %c0_32 = arith.constant 0 : index
    %c0_33 = arith.constant 0 : index
    %32 = vector.load %arg3[%c4, %c0_32, %c0_33] : memref<9x64x128xbf16, #tpu.memory_space<vmem>>, vector<1x64x128xbf16>
    %33 = vector.shape_cast %32 : vector<1x64x128xbf16> to vector<64x128xbf16>
    %cst_34 = arith.constant dense<0.000000e+00> : vector<8x128xf32>
    %34 = tpu.matmul %31, %33, %cst_34 {dimension_numbers = #tpu.dot_dimension_numbers<[1], [0], [0], [1], [0, 0, 1, 1], [], []>} : vector<8x64xbf16>, vector<64x128xbf16>, vector<8x128xf32> -> vector<8x128xf32>
    %35 = arith.addf %28, %34 : vector<8x128xf32>
    %c2_35 = arith.constant 2 : index
    %c0_36 = arith.constant 0 : index
    %c1_37 = arith.constant 1 : index
    %c0_38 = arith.constant 0 : index
    %36 = vector.load %arg2[%c2_35, %c0_36, %c1_37, %c0_38] : memref<4x2x9x64xbf16, #tpu.memory_space<vmem>>, vector<1x1x8x64xbf16>
    %37 = vector.shape_cast %36 : vector<1x1x8x64xbf16> to vector<1x8x64xbf16>
    %38 = vector.shape_cast %37 : vector<1x8x64xbf16> to vector<8x64xbf16>
    %c5 = arith.constant 5 : index
    %c0_39 = arith.constant 0 : index
    %c0_40 = arith.constant 0 : index
    %39 = vector.load %arg3[%c5, %c0_39, %c0_40] : memref<9x64x128xbf16, #tpu.memory_space<vmem>>, vector<1x64x128xbf16>
    %40 = vector.shape_cast %39 : vector<1x64x128xbf16> to vector<64x128xbf16>
    %cst_41 = arith.constant dense<0.000000e+00> : vector<8x128xf32>
    %41 = tpu.matmul %38, %40, %cst_41 {dimension_numbers = #tpu.dot_dimension_numbers<[1], [0], [0], [1], [0, 0, 1, 1], [], []>} : vector<8x64xbf16>, vector<64x128xbf16>, vector<8x128xf32> -> vector<8x128xf32>
    %42 = arith.addf %35, %41 : vector<8x128xf32>
    %c0_42 = arith.constant 0 : index
    %c1_43 = arith.constant 1 : index
    %c0_44 = arith.constant 0 : index
    %c0_45 = arith.constant 0 : index
    %43 = vector.load %arg2[%c0_42, %c1_43, %c0_44, %c0_45] : memref<4x2x9x64xbf16, #tpu.memory_space<vmem>>, vector<1x1x8x64xbf16>
    %44 = vector.shape_cast %43 : vector<1x1x8x64xbf16> to vector<1x8x64xbf16>
    %45 = vector.shape_cast %44 : vector<1x8x64xbf16> to vector<8x64xbf16>
    %c6 = arith.constant 6 : index
    %c0_46 = arith.constant 0 : index
    %c0_47 = arith.constant 0 : index
    %46 = vector.load %arg3[%c6, %c0_46, %c0_47] : memref<9x64x128xbf16, #tpu.memory_space<vmem>>, vector<1x64x128xbf16>
    %47 = vector.shape_cast %46 : vector<1x64x128xbf16> to vector<64x128xbf16>
    %cst_48 = arith.constant dense<0.000000e+00> : vector<8x128xf32>
    %48 = tpu.matmul %45, %47, %cst_48 {dimension_numbers = #tpu.dot_dimension_numbers<[1], [0], [0], [1], [0, 0, 1, 1], [], []>} : vector<8x64xbf16>, vector<64x128xbf16>, vector<8x128xf32> -> vector<8x128xf32>
    %49 = arith.addf %42, %48 : vector<8x128xf32>
    %c1_49 = arith.constant 1 : index
    %c1_50 = arith.constant 1 : index
    %c0_51 = arith.constant 0 : index
    %c0_52 = arith.constant 0 : index
    %50 = vector.load %arg2[%c1_49, %c1_50, %c0_51, %c0_52] : memref<4x2x9x64xbf16, #tpu.memory_space<vmem>>, vector<1x1x8x64xbf16>
    %51 = vector.shape_cast %50 : vector<1x1x8x64xbf16> to vector<1x8x64xbf16>
    %52 = vector.shape_cast %51 : vector<1x8x64xbf16> to vector<8x64xbf16>
    %c7 = arith.constant 7 : index
    %c0_53 = arith.constant 0 : index
    %c0_54 = arith.constant 0 : index
    %53 = vector.load %arg3[%c7, %c0_53, %c0_54] : memref<9x64x128xbf16, #tpu.memory_space<vmem>>, vector<1x64x128xbf16>
    %54 = vector.shape_cast %53 : vector<1x64x128xbf16> to vector<64x128xbf16>
    %cst_55 = arith.constant dense<0.000000e+00> : vector<8x128xf32>
    %55 = tpu.matmul %52, %54, %cst_55 {dimension_numbers = #tpu.dot_dimension_numbers<[1], [0], [0], [1], [0, 0, 1, 1], [], []>} : vector<8x64xbf16>, vector<64x128xbf16>, vector<8x128xf32> -> vector<8x128xf32>
    %56 = arith.addf %49, %55 : vector<8x128xf32>
    %c0_56 = arith.constant 0 : index
    %c1_57 = arith.constant 1 : index
    %c1_58 = arith.constant 1 : index
    %c0_59 = arith.constant 0 : index
    %57 = vector.load %arg2[%c0_56, %c1_57, %c1_58, %c0_59] : memref<4x2x9x64xbf16, #tpu.memory_space<vmem>>, vector<1x1x8x64xbf16>
    %58 = vector.shape_cast %57 : vector<1x1x8x64xbf16> to vector<1x8x64xbf16>
    %59 = vector.shape_cast %58 : vector<1x8x64xbf16> to vector<8x64xbf16>
    %c8 = arith.constant 8 : index
    %c0_60 = arith.constant 0 : index
    %c0_61 = arith.constant 0 : index
    %60 = vector.load %arg3[%c8, %c0_60, %c0_61] : memref<9x64x128xbf16, #tpu.memory_space<vmem>>, vector<1x64x128xbf16>
    %61 = vector.shape_cast %60 : vector<1x64x128xbf16> to vector<64x128xbf16>
    %cst_62 = arith.constant dense<0.000000e+00> : vector<8x128xf32>
    %62 = tpu.matmul %59, %61, %cst_62 {dimension_numbers = #tpu.dot_dimension_numbers<[1], [0], [0], [1], [0, 0, 1, 1], [], []>} : vector<8x64xbf16>, vector<64x128xbf16>, vector<8x128xf32> -> vector<8x128xf32>
    %63 = arith.addf %56, %62 : vector<8x128xf32>
    %c0_63 = arith.constant 0 : index
    %c0_64 = arith.constant 0 : index
    %64 = vector.load %arg4[%c0_63, %c0_64] : memref<1x128xf32, #tpu.memory_space<vmem>>, vector<1x128xf32>
    %65 = vector.broadcast %64 : vector<1x128xf32> to vector<8x128xf32>
    %66 = arith.addf %63, %65 : vector<8x128xf32>
    %cst_65 = arith.constant 0.000000e+00 : f32
    %67 = vector.broadcast %cst_65 : f32 to vector<8x128xf32>
    %68 = arith.cmpf ogt, %66, %67 : vector<8x128xf32>
    %cst_66 = arith.constant 0.00999999977 : f32
    %69 = vector.broadcast %cst_66 : f32 to vector<8x128xf32>
    %70 = arith.mulf %69, %66 : vector<8x128xf32>
    %71 = arith.select %68, %66, %70 : vector<8x128xi1>, vector<8x128xf32>
    %72 = arith.truncf %71 : vector<8x128xf32> to vector<8x128xbf16>
    %c0_67 = arith.constant 0 : index
    %c0_68 = arith.constant 0 : index
    %c0_69 = arith.constant 0 : index
    %73 = vector.load %arg5[%c0_67, %c0_68, %c0_69] : memref<1x8x128xbf16, #tpu.memory_space<vmem>>, vector<1x8x128xbf16>
    %74 = vector.shape_cast %73 : vector<1x8x128xbf16> to vector<8x128xbf16>
    %75 = vector.shape_cast %72 : vector<8x128xbf16> to vector<1x8x128xbf16>
    tpu.vector_store %arg5[%c0_67, %c0_68, %c0_69], %75 {strides = array<i32>} : memref<1x8x128xbf16, #tpu.memory_space<vmem>>, vector<1x8x128xbf16>,
    return
  }
  func.func @transform_0(%arg0: i32, %arg1: i32) -> (i32, i32, i32, i32) {
    %c0_i32 = arith.constant 0 : i32
    %c0_i32_0 = arith.constant 0 : i32
    %c0_i32_1 = arith.constant 0 : i32
    %c0_i32_2 = arith.constant 0 : i32
    return %arg0, %c0_i32, %c0_i32_0, %c0_i32_1 : i32, i32, i32, i32
  }
  func.func @transform_1(%arg0: i32, %arg1: i32) -> (i32, i32, i32) {
    %c0_i32 = arith.constant 0 : i32
    %c0_i32_0 = arith.constant 0 : i32
    %c0_i32_1 = arith.constant 0 : i32
    return %c0_i32, %c0_i32_0, %arg1 : i32, i32, i32
  }
  func.func @transform_2(%arg0: i32, %arg1: i32) -> (i32, i32) {
    %c0_i32 = arith.constant 0 : i32
    %c0_i32_0 = arith.constant 0 : i32
    return %c0_i32, %arg1 : i32, i32
  }
  func.func @transform_3(%arg0: i32, %arg1: i32) -> (i32, i32, i32) {
    %c0_i32 = arith.constant 0 : i32
    %c0_i32_0 = arith.constant 0 : i32
    return %arg0, %c0_i32, %arg1 : i32, i32, i32
  }
}

module attributes {stable_mosaic.version = 11 : i64} {
  func.func @_dense_head_kernel(%arg0: i32, %arg1: memref<2x128xbf16, #tpu.memory_space<vmem>>, %arg2: memref<128x128xbf16, #tpu.memory_space<vmem>>, %arg3: memref<1x128xf32, #tpu.memory_space<vmem>>, %arg4: memref<1x128xf32, #tpu.memory_space<vmem>>, %arg5: memref<1x1xf32, #tpu.memory_space<vmem>>, %arg6: memref<2x128xf32, #tpu.memory_space<vmem>>, %arg7: memref<2x128xf32, #tpu.memory_space<vmem>>) attributes {dimension_semantics = [#tpu.dimension_semantics<arbitrary>], iteration_bounds = array<i64: 1>, scalar_prefetch = 0 : i64, scratch_operands = 1 : i64, tpu.core_type = #tpu.core_type<tc>, window_params = [{transform_indices = @transform_0, window_bounds = array<i64: 2, 128>}, {transform_indices = @transform_1, window_bounds = array<i64: 128, 128>}, {pipeline_mode = #tpu.pipeline_mode<synchronous>, transform_indices = @transform_2, window_bounds = array<i64: 1, 128>}, {pipeline_mode = #tpu.pipeline_mode<synchronous>, transform_indices = @transform_3, window_bounds = array<i64: 1, 128>}, {pipeline_mode = #tpu.pipeline_mode<synchronous>, transform_indices = @transform_4, window_bounds = array<i64: 1, 1>}, {pipeline_mode = #tpu.pipeline_mode<synchronous>, transform_indices = @transform_5, window_bounds = array<i64: 2, 128>}]} {
    %c0_i32 = arith.constant 0 : i32
    %0 = arith.cmpi eq, %arg0, %c0_i32 : i32
    %1 = arith.extui %0 : i1 to i32
    %c0_i32_0 = arith.constant 0 : i32
    %2 = arith.cmpi ne, %1, %c0_i32_0 : i32
    scf.if %2 {
      %cst_10 = arith.constant 0.000000e+00 : f32
      %12 = vector.broadcast %cst_10 : f32 to vector<2x128xf32>
      %c0_11 = arith.constant 0 : index
      %c0_12 = arith.constant 0 : index
      %13 = vector.load %arg7[%c0_11, %c0_12] : memref<2x128xf32, #tpu.memory_space<vmem>>, vector<2x128xf32>
      tpu.vector_store %arg7[%c0_11, %c0_12], %12 {strides = array<i32>} : memref<2x128xf32, #tpu.memory_space<vmem>>, vector<2x128xf32>,
    } else {
    }
    %c0 = arith.constant 0 : index
    %c0_1 = arith.constant 0 : index
    %3 = vector.load %arg7[%c0, %c0_1] : memref<2x128xf32, #tpu.memory_space<vmem>>, vector<2x128xf32>
    %c0_2 = arith.constant 0 : index
    %c0_3 = arith.constant 0 : index
    %4 = vector.load %arg1[%c0_2, %c0_3] : memref<2x128xbf16, #tpu.memory_space<vmem>>, vector<2x128xbf16>
    %c0_4 = arith.constant 0 : index
    %c0_5 = arith.constant 0 : index
    %5 = vector.load %arg2[%c0_4, %c0_5] : memref<128x128xbf16, #tpu.memory_space<vmem>>, vector<128x128xbf16>
    %cst = arith.constant dense<0.000000e+00> : vector<2x128xf32>
    %6 = tpu.matmul %4, %5, %cst {dimension_numbers = #tpu.dot_dimension_numbers<[1], [0], [0], [1], [0, 0, 1, 1], [], []>} : vector<2x128xbf16>, vector<128x128xbf16>, vector<2x128xf32> -> vector<2x128xf32>
    %7 = arith.addf %3, %6 : vector<2x128xf32>
    %c0_6 = arith.constant 0 : index
    %c0_7 = arith.constant 0 : index
    %8 = vector.load %arg7[%c0_6, %c0_7] : memref<2x128xf32, #tpu.memory_space<vmem>>, vector<2x128xf32>
    tpu.vector_store %arg7[%c0_6, %c0_7], %7 {strides = array<i32>} : memref<2x128xf32, #tpu.memory_space<vmem>>, vector<2x128xf32>,
    %c0_i32_8 = arith.constant 0 : i32
    %9 = arith.cmpi eq, %arg0, %c0_i32_8 : i32
    %10 = arith.extui %9 : i1 to i32
    %c0_i32_9 = arith.constant 0 : i32
    %11 = arith.cmpi ne, %10, %c0_i32_9 : i32
    scf.if %11 {
      %c0_10 = arith.constant 0 : index
      %c0_11 = arith.constant 0 : index
      %12 = vector.load %arg7[%c0_10, %c0_11] : memref<2x128xf32, #tpu.memory_space<vmem>>, vector<2x128xf32>
      %c0_12 = arith.constant 0 : index
      %c0_13 = arith.constant 0 : index
      %13 = vector.load %arg3[%c0_12, %c0_13] : memref<1x128xf32, #tpu.memory_space<vmem>>, vector<1x128xf32>
      %14 = vector.broadcast %13 : vector<1x128xf32> to vector<2x128xf32>
      %15 = arith.addf %12, %14 : vector<2x128xf32>
      %cst_14 = arith.constant 0.000000e+00 : f32
      %16 = vector.broadcast %cst_14 : f32 to vector<2x128xf32>
      %17 = arith.cmpf ogt, %15, %16 : vector<2x128xf32>
      %cst_15 = arith.constant 0.00999999977 : f32
      %18 = vector.broadcast %cst_15 : f32 to vector<2x128xf32>
      %19 = arith.mulf %18, %15 : vector<2x128xf32>
      %20 = arith.select %17, %15, %19 : vector<2x128xi1>, vector<2x128xf32>
      %c0_16 = arith.constant 0 : index
      %c0_17 = arith.constant 0 : index
      %21 = vector.load %arg4[%c0_16, %c0_17] : memref<1x128xf32, #tpu.memory_space<vmem>>, vector<1x128xf32>
      %22 = vector.broadcast %21 : vector<1x128xf32> to vector<2x128xf32>
      %23 = arith.mulf %20, %22 : vector<2x128xf32>
      %cst_18 = arith.constant dense<0.000000e+00> : vector<2xf32>
      %24 = vector.multi_reduction <add>, %23, %cst_18 [1] : vector<2x128xf32> to vector<2xf32>
      %25 = vector.shape_cast %24 : vector<2xf32> to vector<2x1xf32>
      %c0_19 = arith.constant 0 : index
      %c0_20 = arith.constant 0 : index
      %26 = vector.load %arg5[%c0_19, %c0_20] : memref<1x1xf32, #tpu.memory_space<vmem>>, vector<1x1xf32>
      %27 = vector.broadcast %26 : vector<1x1xf32> to vector<2x1xf32>
      %28 = arith.addf %25, %27 : vector<2x1xf32>
      %29 = arith.negf %28 : vector<2x1xf32>
      %30 = math.exp %29 : vector<2x1xf32>
      %cst_21 = arith.constant 1.000000e+00 : f32
      %31 = vector.broadcast %cst_21 : f32 to vector<2x1xf32>
      %32 = arith.addf %31, %30 : vector<2x1xf32>
      %33 = arith.divf %31, %32 : vector<2x1xf32>
      %34 = vector.shape_cast %33 : vector<2x1xf32> to vector<2x1xf32>
      %35 = vector.broadcast %34 : vector<2x1xf32> to vector<2x128xf32>
      %c0_22 = arith.constant 0 : index
      %c0_23 = arith.constant 0 : index
      %36 = vector.load %arg6[%c0_22, %c0_23] : memref<2x128xf32, #tpu.memory_space<vmem>>, vector<2x128xf32>
      tpu.vector_store %arg6[%c0_22, %c0_23], %35 {strides = array<i32>} : memref<2x128xf32, #tpu.memory_space<vmem>>, vector<2x128xf32>,
    } else {
    }
    return
  }
  func.func @transform_0(%arg0: i32) -> (i32, i32) {
    %c0_i32 = arith.constant 0 : i32
    %c0_i32_0 = arith.constant 0 : i32
    return %c0_i32, %arg0 : i32, i32
  }
  func.func @transform_1(%arg0: i32) -> (i32, i32) {
    %c0_i32 = arith.constant 0 : i32
    %c0_i32_0 = arith.constant 0 : i32
    return %arg0, %c0_i32 : i32, i32
  }
  func.func @transform_2(%arg0: i32) -> (i32, i32) {
    %c0_i32 = arith.constant 0 : i32
    %c0_i32_0 = arith.constant 0 : i32
    %c0_i32_1 = arith.constant 0 : i32
    return %c0_i32, %c0_i32_0 : i32, i32
  }
  func.func @transform_3(%arg0: i32) -> (i32, i32) {
    %c0_i32 = arith.constant 0 : i32
    %c0_i32_0 = arith.constant 0 : i32
    %c0_i32_1 = arith.constant 0 : i32
    return %c0_i32, %c0_i32_0 : i32, i32
  }
  func.func @transform_4(%arg0: i32) -> (i32, i32) {
    %c0_i32 = arith.constant 0 : i32
    %c0_i32_0 = arith.constant 0 : i32
    %c0_i32_1 = arith.constant 0 : i32
    return %c0_i32, %c0_i32_0 : i32, i32
  }
  func.func @transform_5(%arg0: i32) -> (i32, i32) {
    %c0_i32 = arith.constant 0 : i32
    %c0_i32_0 = arith.constant 0 : i32
    %c0_i32_1 = arith.constant 0 : i32
    return %c0_i32, %c0_i32_0 : i32, i32
  }
}

</mosaic_0001>

<bundles_post_ra>
// kernel: forward.10
= control target key start
LH: loop header
LB: loop body
LE: loop exit
PB: predicated region body
PF: predicated region fallthrough
CT: control target
= control target key end

     0   :  { %s2313_s12 = smov 0   ;;  %s2315_s13 = smov 0   ;;  %s2597_s0 = inlined_call_operand.vmem [shape: bf16[8,9,9,8], index: 0, kind: input, shape index: {}]   ;;  %s2598_s1 = inlined_call_operand.vmem [shape: bf16[9,8,128], index: 1, kind: input, shape index: {}]   ;;  %s2599_s2 = inlined_call_operand.vmem [shape: f32[1,128], index: 2, kind: input, shape index: {}]   ;;  %s2600_s3 = inlined_call_operand.vmem [shape: bf16[2,64,128], index: 3, kind: output, shape index: {}]  }
   0x1   :  { %s2317_s14 = smov 0  }
   0x2 LB: > { %s25_s15 = sadd.s32 1, %s2287_s13  ;;  %p1809_p0 = scmp.ge.s32.totalorder %s2291_s14, 1  ;;  %s2291_s14 = sphi %s2317_s14, %s13_s14   ;;  %s2287_s13 = sphi %s2315_s13, %s2604_s13   ;;  %s2283_s12 = sphi %s2313_s12, %s2603_s12  }
   0x3   : > { %p27_p1 = scmp.ge.s32.totalorder %s25_s15, 2  ;;  %p170_p2 = scmp.lt.s32.totalorder %s2291_s14, 3 }
   0x5   : > { %s2606_s15 = smov (%p27_p1, %s25_s15), 0  ;;  %p171_p3 = pnand %p1809_p0, %p170_p2 }
   0x6   : > { %v1822_v0 = vld [vmem:[%s2598_s1 + $0x4] sm:$0xf] (!%p171_p3)  ;;  %vm281_vm0 = vcmask (!%p171_p3), 1043456   ;;  %v2339_v1 = vld [vmem:[%s2598_s1 + $0x10] sm:$0xf] (!%p171_p3)  ;;  %s1810_s20 = sshll.u32 (!%p171_p3), %s2283_s12, 2 }
   0x7   : > { %174 = sbr.rel (%p171_p3) target bundleno = 320 (0x140), region = 32  ;;  %2210 = vmatprep.subr.msk.bf16.mxu1 (!%p171_p3), %vm281_vm0, %v1822_v0  ;;  %2214 = vmatprep.subr.msk.bf16.mxu0 (!%p171_p3), %vm281_vm0, %v2339_v1  ;;  %v283_v2 = vsel (!%p171_p3), %vm281_vm0, %v1822_v0, 0  ;;  %v2348_v3 = vsel (!%p171_p3), %vm281_vm0, %v2339_v1, 0  ;;  %p206_p4 = scmp.lt.s32.totalorder (!%p171_p3), %s1810_s20, 7  ;;  %v236_v4 = vld [vmem:[%s2598_s1] sm:$0xf] (!%p171_p3) }
   0x8   : > { %2055 = vmatpush3.bf16.msra.mxu1 (!%p171_p3), %v283_v2  ;;  %2095 = vmatpush3.bf16.msra.mxu0 (!%p171_p3), %v2348_v3  ;;  %v1898_v5 = vld [vmem:[%s2598_s1 + $0x14] sm:$0xf] (!%p171_p3)  ;;  %vm268_vm1 = vcmask (!%p171_p3), 64512   ;;  %v383_v6 = vsel (!%p171_p3), %vm281_vm0, %v236_v4, 0  ;;  %v1915_v9 = vld [vmem:[%s2598_s1 + $0x18] sm:$0xf] (!%p171_p3) }
   0x9   : > { %2211 = vmatprep.subr.msk.bf16.mxu1 (!%p171_p3), %vm281_vm0, %v236_v4  ;;  %2216 = vmatprep.subr.msk.bf16.mxu0 (!%p171_p3), %vm281_vm0, %v1898_v5  ;;  %v1076_v7 = vsel (!%p171_p3), %vm281_vm0, %v1898_v5, 0  ;;  %v1839_v10 = vld [vmem:[%s2598_s1 + $0x8] sm:$0xf] (!%p171_p3)  ;;  %vm466_vm2 = vsmask.f32 (!%p171_p3), 3328  ;;  %v2382_v15 = vsel (!%p171_p3), %vm281_vm0, %v1915_v9, 0 }
   0xa   : > { %vm467_vm3 = vsmask.f32 (!%p171_p3), 7440  ;;  %v2385_v16 = vsel (!%p171_p3), %vm281_vm0, %v1839_v10, 0  ;;  %p219_p5 = scmp.lt.s32.totalorder (!%p171_p3), %s2283_s12, 1 }
   0xb   : > { %vm2402_vm4 = vmor (!%p171_p3), %vm466_vm2, %vm467_vm3 }
   0xe   : > { %s2608_s20 = smov (!%p206_p4, %s1810_s20), 7  ;;  %s2610_s12 = smov (!%p219_p5, %s2283_s12), 1 }
   0xf   : > { %s2220_s25 = smul.u32 72, %s2608_s20  ;;  %s1977_s18 = sshll.u32 %s2610_s12, 5 }
  0x10   : > { %s2582_s21 = scalar_lea.vmem %s2600_s3, %s1977_s18 }
  0x11   : > { %s2362_s28 = scalar_lea.vmem %s2597_s0, %s2220_s25 }
  0x12   : > { %v2245_v8 = vld [vmem:[%s2362_s28 + $0x48] ss:$8 sps:$4 sm:$0xff]   ;;  %v2246_v11 = vld [vmem:[%s2362_s28 + $0xd8] ss:$8 sps:$4 sm:$0xff]   ;;  %v1883_v19 = vld [vmem:[%s2362_s28 + $0x94] sm:$0x1] }
  0x13   : > { %2056 = vmatprep.mubr.msk.bf16.mxu1 %vm268_vm1, %v2245_v8  ;;  %v2247_v12 = vld [vmem:[%s2362_s28 + $0x58] ss:$8 sps:$4 sm:$0xff]   ;;  %2096 = vmatprep.mubr.msk.bf16.mxu0 %vm268_vm1, %v2246_v11  ;;  %v2248_v13 = vld [vmem:[%s2362_s28 + $0xe8] ss:$8 sps:$4 sm:$0xff]   ;;  %v1885_v21 = vld [vmem:[%s2362_s28 + $0x9c] sm:$0x1] }
  0x14   : > { %2057 = vmatmul.mubr.msk.bf16.vlgmr.msra.gmra.mrb[0].mxu1 %vm268_vm1, %v2247_v12  ;;  %v2249_v14 = vld [vmem:[%s2362_s28 + $0x68] ss:$8 sps:$4 sm:$0xff]   ;;  %2097 = vmatmul.mubr.msk.bf16.vlgmr.msra.gmra.mrb[0].mxu0 %vm268_vm1, %v2248_v13  ;;  %v2250_v17 = vld [vmem:[%s2362_s28 + $0x78] ss:$8 sps:$4 sm:$0xff]   ;;  %v947_v24 = vshll.u32 %v1883_v19, 16  ;;  %v961_v27 = vshll.u32 %v1885_v21, 16 }
  0x15   : > { %2065 = vmatpush3.bf16.msra.mxu1 %v383_v6  ;;  %2105 = vmatpush3.bf16.msra.mxu0 %v1076_v7  ;;  %v1882_v18 = vld [vmem:[%s2362_s28 + $0x90] sm:$0xf]  ;;  %v1884_v20 = vld [vmem:[%s2362_s28 + $0x98] sm:$0xf]  ;;  %v1886_v28 = vld [vmem:[%s2362_s28 + $0xa0] sm:$0xf] }
  0x16   : > { %2060 = vmatprep.mubr.msk.bf16.mxu1 %vm268_vm1, %v2249_v14  ;;  %v938_v22 = vshrl.u32 %v1882_v18, 16  ;;  %v941_v23 = vshll.u32 %v1882_v18, 16  ;;  %v952_v25 = vshrl.u32 %v1884_v20, 16  ;;  %2217 = vmatprep.subr.msk.bf16.mxu0 %vm281_vm0, %v1915_v9  ;;  %v955_v26 = vshll.u32 %v1884_v20, 16  ;;  %v1887_v29 = vld [vmem:[%s2362_s28 + $0xa4] sm:$0x1] }
  0x17   : > { %2212 = vmatprep.subr.msk.bf16.mxu1 %vm281_vm0, %v1839_v10  ;;  %v949_v32 = vrot.slane %v947_v24, 5  ;;  %v1888_v34 = vld [vmem:[%s2362_s28 + $0xa8] sm:$0xf]  ;;  %v963_v36 = vrot.slane %v961_v27, 5  ;;  %v1889_v37 = vld [vmem:[%s2362_s28 + $0xac] sm:$0x1] }
  0x18   : > { %v940_v30 = vrot.slane %v938_v22, 4  ;;  %v943_v31 = vrot.slane %v941_v23, 5  ;;  %v954_v33 = vrot.slane %v952_v25, 4  ;;  %v957_v35 = vrot.slane %v955_v26, 5  ;;  %v2251_v53 = vld [vmem:[%s2362_s28] ss:$8 sps:$4 sm:$0xff]  }
  0x19   : > { %v966_v38 = vshrl.u32 %v1886_v28, 16  ;;  %v969_v39 = vshll.u32 %v1886_v28, 16  ;;  %v975_v41 = vshll.u32 %v1887_v29, 16  ;;  %v980_v42 = vshrl.u32 %v1888_v34, 16  ;;  %v2252_v59 = vld [vmem:[%s2362_s28 + $0x10] ss:$8 sps:$4 sm:$0xff]  }
  0x1a   : > { %v944_v40 = vor.u32 %v943_v31, %v940_v30  ;;  %v983_v43 = vshll.u32 %v1888_v34, 16  ;;  %v958_v45 = vor.u32 %v957_v35, %v954_v33  ;;  %v989_v48 = vshll.u32 %v1889_v37, 16  ;;  %v1890_v60 = vld [vmem:[%s2362_s28 + $0xb0] sm:$0xf]  ;;  %v1891_v61 = vld [vmem:[%s2362_s28 + $0xb4] sm:$0x1] }
  0x1b   : > { %v968_v46 = vrot.slane %v966_v38, 4  ;;  %v971_v47 = vrot.slane %v969_v39, 5  ;;  %v977_v50 = vrot.slane %v975_v41, 5  ;;  %v982_v51 = vrot.slane %v980_v42, 4  ;;  %v1892_v0 = vld [vmem:[%s2362_s28 + $0xb8] sm:$0xf] }
  0x1c   : > { %2061 = vmatmul.mubr.msk.bf16.gmra.mrb[4].mxu1 %vm268_vm1, %v2250_v17  ;;  %v945_v49 = vrot.slane %v944_v40, 4  ;;  %v985_v52 = vrot.slane %v983_v43, 5  ;;  %v959_v54 = vrot.slane %v958_v45, 4  ;;  %v991_v56 = vrot.slane %v989_v48, 5  ;;  %v1893_v2 = vld [vmem:[%s2362_s28 + $0xbc] sm:$0x1] }
  0x1d   : > { %v972_v55 = vor.u32 %v971_v47, %v968_v46  ;;  %2066 = vmatprep.mubr.msk.bf16.mxu1 %vm268_vm1, %v2251_v53  ;;  %v994_v4 = vshrl.u32 %v1890_v60, 16  ;;  %v997_v7 = vshll.u32 %v1890_v60, 16  ;;  %v1003_v8 = vshll.u32 %v1891_v61, 16  ;;  %v1894_v9 = vld [vmem:[%s2362_s28 + $0xc0] sm:$0xf] }
  0x1e   : > { %v950_v57 = vsel %vm2402_vm4, %v945_v49, %v949_v32  ;;  %v986_v58 = vor.u32 %v985_v52, %v982_v51  ;;  %v964_v62 = vsel %vm2402_vm4, %v959_v54, %v963_v36  ;;  %v2421_v10 = vld [vmem:[%s2598_s1 + $0xc] sm:$0xf]  ;;  %v1008_v13 = vshrl.u32 %v1892_v0, 16  ;;  %v1895_v17 = vld [vmem:[%s2362_s28 + $0xc4] sm:$0x1] }
  0x1f   : > { %v973_v63 = vrot.slane %v972_v55, 4  ;;  %v1899_v5 = vcombine.low %v950_v57, %v964_v62  ;;  %v996_v12 = vrot.slane %v994_v4, 4  ;;  %v1011_v14 = vshll.u32 %v1892_v0, 16  ;;  %v1896_v22 = vld [vmem:[%s2362_s28 + $0xc8] sm:$0xf] }
  0x20   : > { %v987_v6 = vrot.slane %v986_v58, 4  ;;  %v999_v19 = vrot.slane %v997_v7, 5  ;;  %v1005_v20 = vrot.slane %v1003_v8, 5  ;;  %v1017_v21 = vshll.u32 %v1893_v2, 16  ;;  %v2433_v23 = vld [vmem:[%s2598_s1 + $0x1c] sm:$0xf] }
  0x21   : > { %v978_v11 = vsel %vm2402_vm4, %v973_v63, %v977_v50  ;;  %2106 = vmatprep.mubr.msk.bf16.mxu0 %vm268_vm1, %v1899_v5  ;;  %v1010_v25 = vrot.slane %v1008_v13, 4  ;;  %v1013_v26 = vrot.slane %v1011_v14, 5  ;;  %v1897_v27 = vld [vmem:[%s2362_s28 + $0xcc] sm:$0x1]  ;;  %v1022_v28 = vshrl.u32 %v1894_v9, 16 }
  0x22   : > { %v992_v18 = vsel %vm2402_vm4, %v987_v6, %v991_v56  ;;  %v1000_v29 = vor.u32 %v999_v19, %v996_v12  ;;  %v1019_v30 = vrot.slane %v1017_v21, 5  ;;  %v1025_v31 = vshll.u32 %v1894_v9, 16  ;;  %v2255_v53 = vld [vmem:[%s2362_s28 + $0x8] ss:$8 sps:$4 sm:$0xff]   ;;  %v450_v54 = vld [vmem:[%s2362_s28] sm:$0xf] }
  0x23   : > { %v1900_v24 = vcombine.low %v978_v11, %v992_v18  ;;  %v1031_v32 = vshll.u32 %v1895_v17, 16  ;;  %v1014_v33 = vor.u32 %v1013_v26, %v1010_v25  ;;  %v1024_v34 = vrot.slane %v1022_v28, 4  ;;  %v451_v56 = vld [vmem:[%s2362_s28 + $0x4] sm:$0x1]  ;;  %v452_v57 = vld [vmem:[%s2362_s28 + $0x8] sm:$0xf] }
  0x24   : > { %2067 = vmatmul.mubr.msk.bf16.vlgmr.msra.gmra.mrb[0].mxu1 %vm268_vm1, %v2252_v59  ;;  %v1036_v35 = vshrl.u32 %v1896_v22, 16  ;;  %v1039_v36 = vshll.u32 %v1896_v22, 16  ;;  %v1001_v37 = vrot.slane %v1000_v29, 4  ;;  %v1027_v38 = vrot.slane %v1025_v31, 5  ;;  %v453_v58 = vld [vmem:[%s2362_s28 + $0xc] sm:$0x1] }
  0x25   : > { %2075 = vmatpush3.bf16.msra.mxu1 %v2385_v16  ;;  %2107 = vmatmul.mubr.msk.bf16.vlgmr.msra.gmra.mrb[0].mxu0 %vm268_vm1, %v1900_v24  ;;  %v1045_v39 = vshll.u32 %v1897_v27, 16  ;;  %v2253_v16 = vld [vmem:[%s2362_s28 + $0x20] ss:$8 sps:$4 sm:$0xff]   ;;  %v1015_v40 = vrot.slane %v1014_v33, 4  ;;  %v1033_v46 = vrot.slane %v1031_v32, 5  ;;  %v470_v60 = vshrl.u32 %v450_v54, 16 }
  0x26   : > { %2213 = vmatprep.subr.msk.bf16.mxu1 %vm281_vm0, %v2421_v10  ;;  %2115 = vmatpush3.bf16.msra.mxu0 %v2382_v15  ;;  %v1038_v41 = vrot.slane %v1036_v35, 4  ;;  %v1041_v42 = vrot.slane %v1039_v36, 5  ;;  %v1006_v43 = vsel %vm2402_vm4, %v1001_v37, %v1005_v20  ;;  %v1028_v45 = vor.u32 %v1027_v38, %v1024_v34  ;;  %v2254_v15 = vld [vmem:[%s2362_s28 + $0x30] ss:$8 sps:$4 sm:$0xff]   ;;  %v455_v6 = vld [vmem:[%s2362_s28 + $0x14] sm:$0x1] }
  0x27   : > { %2218 = vmatprep.subr.msk.bf16.mxu0 %vm281_vm0, %v2433_v23  ;;  %2070 = vmatprep.mubr.msk.bf16.mxu1 %vm268_vm1, %v2253_v16  ;;  %v1020_v47 = vsel %vm2402_vm4, %v1015_v40, %v1019_v30  ;;  %v1047_v49 = vrot.slane %v1045_v39, 5  ;;  %v473_v61 = vshll.u32 %v450_v54, 16  ;;  %v479_v62 = vshll.u32 %v451_v56, 16  ;;  %v454_v63 = vld [vmem:[%s2362_s28 + $0x10] sm:$0xf] }
  0x28   : > { %v1042_v48 = vor.u32 %v1041_v42, %v1038_v41  ;;  %v1901_v50 = vcombine.low %v1006_v43, %v1020_v47  ;;  %v1029_v51 = vrot.slane %v1028_v45, 4  ;;  %v484_v2 = vshrl.u32 %v452_v57, 16  ;;  %v456_v11 = vld [vmem:[%s2362_s28 + $0x18] sm:$0xf]  ;;  %v457_v18 = vld [vmem:[%s2362_s28 + $0x1c] sm:$0x1] }
  0x29   : > { %v487_v4 = vshll.u32 %v452_v57, 16  ;;  %v493_v5 = vshll.u32 %v453_v58, 16  ;;  %v472_v7 = vrot.slane %v470_v60, 4  ;;  %v475_v8 = vrot.slane %v473_v61, 5  ;;  %v2256_v29 = vld [vmem:[%s2362_s28 + $0x18] ss:$8 sps:$4 sm:$0xff]  }
  0x2a   : > { %v1043_v52 = vrot.slane %v1042_v48, 4  ;;  %2110 = vmatprep.mubr.msk.bf16.mxu0 %vm268_vm1, %v1901_v50  ;;  %v1034_v55 = vsel %vm2402_vm4, %v1029_v51, %v1033_v46  ;;  %v481_v9 = vrot.slane %v479_v62, 5  ;;  %v498_v12 = vshrl.u32 %v454_v63, 16  ;;  %v2257_v37 = vld [vmem:[%s2362_s28 + $0x28] ss:$8 sps:$4 sm:$0xff]  }
  0x2b   : > { %v486_v13 = vrot.slane %v484_v2, 4  ;;  %v489_v14 = vrot.slane %v487_v4, 5  ;;  %v495_v17 = vrot.slane %v493_v5, 5  ;;  %v501_v19 = vshll.u32 %v454_v63, 16  ;;  %v458_v40 = vld [vmem:[%s2362_s28 + $0x20] sm:$0xf] }
  0x2c   : > { %2071 = vmatmul.mubr.msk.bf16.gmra.mrb[4].mxu1 %vm268_vm1, %v2254_v15  ;;  %v1048_v59 = vsel %vm2402_vm4, %v1043_v52, %v1047_v49  ;;  %v476_v20 = vor.u32 %v475_v8, %v472_v7  ;;  %v500_v21 = vrot.slane %v498_v12, 4  ;;  %v507_v22 = vshll.u32 %v455_v6, 16  ;;  %v459_v45 = vld [vmem:[%s2362_s28 + $0x24] sm:$0x1]  ;;  %v460_v46 = vld [vmem:[%s2362_s28 + $0x28] sm:$0xf] }
  0x2d   : > { %v1902_v0 = vcombine.low %v1034_v55, %v1048_v59  ;;  %v512_v24 = vshrl.u32 %v456_v11, 16  ;;  %v490_v25 = vor.u32 %v489_v14, %v486_v13  ;;  %v503_v26 = vrot.slane %v501_v19, 5  ;;  %v461_v48 = vld [vmem:[%s2362_s28 + $0x2c] sm:$0x1]  ;;  %v462_v55 = vld [vmem:[%s2362_s28 + $0x30] sm:$0xf] }
  0x2e   : > { %v515_v27 = vshll.u32 %v456_v11, 16  ;;  %v521_v28 = vshll.u32 %v457_v18, 16  ;;  %v1314_v30 = vsel %vm281_vm0, %v2433_v23, 0  ;;  %v477_v31 = vrot.slane %v476_v20, 4  ;;  %v2480_v23 = vld [vmem:[%s2598_s1 + $0x20] sm:$0xf] }
  0x2f   : > { %2111 = vmatmul.mubr.msk.bf16.gmra.mrb[4].mxu0 %vm268_vm1, %v1902_v0  ;;  %v509_v32 = vrot.slane %v507_v22, 5  ;;  %v514_v33 = vrot.slane %v512_v24, 4  ;;  %v491_v34 = vrot.slane %v490_v25, 4  ;;  %v504_v35 = vor.u32 %v503_v26, %v500_v21  ;;  %v463_v60 = vld [vmem:[%s2362_s28 + $0x34] sm:$0x1] }
  0x30   : > { %2116 = vmatprep.mubr.msk.bf16.mxu0 %vm268_vm1, %v2255_v53  ;;  %v517_v36 = vrot.slane %v515_v27, 5  ;;  %v482_v38 = vsel %vm2402_vm4, %v477_v31, %v481_v9  ;;  %v523_v39 = vrot.slane %v521_v28, 5  ;;  %v727_v16 = vsel %vm281_vm0, %v2421_v10, 0  ;;  %v2258_v62 = vld [vmem:[%s2362_s28 + $0x38] ss:$8 sps:$4 sm:$0xff]  }
  0x31   : > { %v496_v41 = vsel %vm2402_vm4, %v491_v34, %v495_v17  ;;  %v505_v42 = vrot.slane %v504_v35, 4  ;;  %v526_v15 = vshrl.u32 %v458_v40, 16  ;;  %v529_v49 = vshll.u32 %v458_v40, 16  ;;  %v464_v0 = vld [vmem:[%s2362_s28 + $0x38] sm:$0xf] }
  0x32   : > { %v518_v43 = vor.u32 %v517_v36, %v514_v33  ;;  %v1840_v47 = vcombine.low %v482_v38, %v496_v41  ;;  %v535_v10 = vshll.u32 %v459_v45, 16  ;;  %v540_v50 = vshrl.u32 %v460_v46, 16  ;;  %v465_v2 = vld [vmem:[%s2362_s28 + $0x3c] sm:$0x1]  ;;  %v2259_v14 = vld [vmem:[%s2362_s28 + $0x50] ss:$8 sps:$4 sm:$0xff]  }
  0x33   : > { %v510_v51 = vsel %vm2402_vm4, %v505_v42, %v509_v32  ;;  %v528_v53 = vrot.slane %v526_v15, 4  ;;  %v543_v54 = vshll.u32 %v460_v46, 16  ;;  %v531_v56 = vrot.slane %v529_v49, 5  ;;  %v2260_v35 = vld [vmem:[%s2362_s28 + $0x60] ss:$8 sps:$4 sm:$0xff]  }
  0x34   : > { %v519_v52 = vrot.slane %v518_v43, 4  ;;  %2076 = vmatprep.mubr.msk.bf16.mxu1 %vm268_vm1, %v1840_v47  ;;  %v537_v57 = vrot.slane %v535_v10, 5  ;;  %v542_v58 = vrot.slane %v540_v50, 4  ;;  %v549_v59 = vshll.u32 %v461_v48, 16  ;;  %v1942_v40 = vld [vmem:[%s2362_s28 + $0xc] sm:$0x1] }
  0x35   : > { %v545_v63 = vrot.slane %v543_v54, 5  ;;  %v554_v4 = vshrl.u32 %v462_v55, 16  ;;  %v532_v6 = vor.u32 %v531_v56, %v528_v53  ;;  %v557_v8 = vshll.u32 %v462_v55, 16  ;;  %v1943_v41 = vld [vmem:[%s2362_s28 + $0x10] sm:$0xf] }
  0x36   : > { %v524_v61 = vsel %vm2402_vm4, %v519_v52, %v523_v39  ;;  %v551_v7 = vrot.slane %v549_v59, 5  ;;  %v563_v12 = vshll.u32 %v463_v60, 16  ;;  %v568_v13 = vshrl.u32 %v464_v0, 16  ;;  %v2263_v39 = vld [vmem:[%s2362_s28 + $0x70] ss:$8 sps:$4 sm:$0xff]  }
  0x37   : > { %2117 = vmatmul.mubr.msk.bf16.vlgmr.msra.gmra.mrb[0].mxu0 %vm268_vm1, %v2256_v29  ;;  %v1841_v5 = vcombine.low %v510_v51, %v524_v61  ;;  %v546_v9 = vor.u32 %v545_v63, %v542_v58  ;;  %v556_v11 = vrot.slane %v554_v4, 4  ;;  %v533_v17 = vrot.slane %v532_v6, 4  ;;  %v1944_v42 = vld [vmem:[%s2362_s28 + $0x14] sm:$0x1]  ;;  %v1945_v48 = vld [vmem:[%s2362_s28 + $0x18] sm:$0xf] }
  0x38   : > { %2125 = vmatpush3.bf16.msra.mxu0 %v1314_v30  ;;  %2120 = vmatprep.mubr.msk.bf16.mxu0 %vm268_vm1, %v2257_v37  ;;  %v559_v18 = vrot.slane %v557_v8, 5  ;;  %v571_v19 = vshll.u32 %v464_v0, 16  ;;  %v577_v20 = vshll.u32 %v465_v2, 16  ;;  %v570_v22 = vrot.slane %v568_v13, 4  ;;  %v2261_v37 = vld [vmem:[%s2362_s28 + $0x90] ss:$8 sps:$4 sm:$0xff]  }
  0x39   : > { %2219 = vmatprep.subr.msk.bf16.mxu0 %vm281_vm0, %v2480_v23  ;;  %2077 = vmatmul.mubr.msk.bf16.vlgmr.msra.gmra.mrb[0].mxu1 %vm268_vm1, %v1841_v5  ;;  %v547_v21 = vrot.slane %v546_v9, 4  ;;  %v538_v24 = vsel %vm2402_vm4, %v533_v17, %v537_v57  ;;  %v565_v26 = vrot.slane %v563_v12, 5  ;;  %v1544_v34 = vsel %vm281_vm0, %v2480_v23, 0  ;;  %v1946_v50 = vld [vmem:[%s2362_s28 + $0x1c] sm:$0x1] }
  0x3a   : > { %2085 = vmatpush3.bf16.msra.mxu1 %v727_v16  ;;  %v560_v25 = vor.u32 %v559_v18, %v556_v11  ;;  %v573_v27 = vrot.slane %v571_v19, 5  ;;  %v579_v32 = vrot.slane %v577_v20, 5  ;;  %v1941_v16 = vld [vmem:[%s2362_s28 + $0x8] sm:$0xf]  ;;  %v1415_v23 = vshll.u32 %v1942_v40, 16 }
  0x3b   : > { %2215 = vmatprep.subr.msk.bf16.mxu1 %vm281_vm0, %v2339_v1  ;;  %v552_v28 = vsel %vm2402_vm4, %v547_v21, %v551_v7  ;;  %v1406_v43 = vshrl.u32 %v1941_v16, 16  ;;  %v1409_v45 = vshll.u32 %v1941_v16, 16  ;;  %v1420_v46 = vshrl.u32 %v1943_v41, 16  ;;  %v1947_v51 = vld [vmem:[%s2362_s28 + $0x20] sm:$0xf] }
  0x3c   : > { %v1842_v29 = vcombine.low %v538_v24, %v552_v28  ;;  %v561_v30 = vrot.slane %v560_v25, 4  ;;  %v574_v31 = vor.u32 %v573_v27, %v570_v22  ;;  %v1423_v15 = vshll.u32 %v1943_v41, 16  ;;  %v2262_v52 = vld [vmem:[%s2362_s28 + $0xa0] ss:$8 sps:$4 sm:$0xff]   ;;  %v1948_v58 = vld [vmem:[%s2362_s28 + $0x24] sm:$0x1] }
  0x3d   : > { %v1429_v47 = vshll.u32 %v1944_v42, 16  ;;  %v1408_v49 = vrot.slane %v1406_v43, 4  ;;  %v1411_v10 = vrot.slane %v1409_v45, 5  ;;  %v2264_v53 = vld [vmem:[%s2362_s28 + $0x80] ss:$8 sps:$4 sm:$0xff]   ;;  %v1417_v54 = vrot.slane %v1415_v23, 5 }
  0x3e   : > { %2080 = vmatprep.mubr.msk.bf16.mxu1 %vm268_vm1, %v1842_v29  ;;  %v566_v1 = vsel %vm2402_vm4, %v561_v30, %v565_v26  ;;  %v575_v33 = vrot.slane %v574_v31, 4  ;;  %v1422_v55 = vrot.slane %v1420_v46, 4  ;;  %v1425_v56 = vrot.slane %v1423_v15, 5  ;;  %v2265_v5 = vld [vmem:[%s2362_s28 + $0xb0] ss:$8 sps:$4 sm:$0xff]  }
  0x3f   : > { %2121 = vmatmul.mubr.msk.bf16.gmra.mrb[4].mxu0 %vm268_vm1, %v2258_v62  ;;  %v1431_v57 = vrot.slane %v1429_v47, 5  ;;  %v1412_v59 = vor.u32 %v1411_v10, %v1408_v49  ;;  %v1434_v60 = vshrl.u32 %v1945_v48, 16  ;;  %v1437_v61 = vshll.u32 %v1945_v48, 16  ;;  %v1949_v17 = vld [vmem:[%s2362_s28 + $0x28] sm:$0xf] }
  0x40   : > { %2126 = vmatprep.mubr.msk.bf16.mxu0 %vm268_vm1, %v2259_v14  ;;  %v580_v36 = vsel %vm2402_vm4, %v575_v33, %v579_v32  ;;  %v1443_v62 = vshll.u32 %v1946_v50, 16  ;;  %v1426_v63 = vor.u32 %v1425_v56, %v1422_v55  ;;  %v1448_v0 = vshrl.u32 %v1947_v51, 16  ;;  %v1950_v20 = vld [vmem:[%s2362_s28 + $0x2c] sm:$0x1]  ;;  %v1951_v21 = vld [vmem:[%s2362_s28 + $0x30] sm:$0xf] }
  0x41   : > { %v1843_v38 = vcombine.low %v566_v1, %v580_v36  ;;  %v1451_v2 = vshll.u32 %v1947_v51, 16  ;;  %v1457_v4 = vshll.u32 %v1948_v58, 16  ;;  %v1413_v6 = vrot.slane %v1412_v59, 4  ;;  %v1952_v22 = vld [vmem:[%s2362_s28 + $0x34] sm:$0x1] }
  0x42   : > { %v1436_v7 = vrot.slane %v1434_v60, 4  ;;  %v1439_v8 = vrot.slane %v1437_v61, 5  ;;  %v1445_v9 = vrot.slane %v1443_v62, 5  ;;  %v1427_v11 = vrot.slane %v1426_v63, 4  ;;  %v2266_v32 = vld [vmem:[%s2362_s28 + $0xc0] ss:$8 sps:$4 sm:$0xff]  }
  0x43   : > { %2081 = vmatmul.mubr.msk.bf16.gmra.mrb[4].mxu1 %vm268_vm1, %v1843_v38  ;;  %v1450_v12 = vrot.slane %v1448_v0, 4  ;;  %v1453_v13 = vrot.slane %v1451_v2, 5  ;;  %v1459_v14 = vrot.slane %v1457_v4, 5  ;;  %v1418_v18 = vsel %vm2402_vm4, %v1413_v6, %v1417_v54  ;;  %v1953_v36 = vld [vmem:[%s2362_s28 + $0x38] sm:$0xf] }
  0x44   : > { %2086 = vmatprep.mubr.msk.bf16.mxu1 %vm268_vm1, %v2261_v37  ;;  %v1440_v19 = vor.u32 %v1439_v8, %v1436_v7  ;;  %v1432_v24 = vsel %vm2402_vm4, %v1427_v11, %v1431_v57  ;;  %v1462_v26 = vshrl.u32 %v1949_v17, 16  ;;  %v1465_v27 = vshll.u32 %v1949_v17, 16  ;;  %v1954_v16 = vld [vmem:[%s2362_s28 + $0x3c] sm:$0x1]  ;;  %v1955_v43 = vld [vmem:[%s2362_s28 + $0x40] sm:$0xf] }
  0x45   : > { %v1454_v25 = vor.u32 %v1453_v13, %v1450_v12  ;;  %v1958_v28 = vcombine.low %v1418_v18, %v1432_v24  ;;  %v1471_v30 = vshll.u32 %v1950_v20, 16  ;;  %v1476_v31 = vshrl.u32 %v1951_v21, 16  ;;  %v1956_v45 = vld [vmem:[%s2362_s28 + $0x44] sm:$0x1]  ;;  %v2267_v15 = vld [vmem:[%s2362_s28 + $0xf8] ss:$8 sps:$4 sm:$0xff]  }
  0x46   : > { %v1441_v29 = vrot.slane %v1440_v19, 4  ;;  %v1464_v33 = vrot.slane %v1462_v26, 4  ;;  %v1490_v23 = vshrl.u32 %v1953_v36, 16  ;;  %v1493_v48 = vshll.u32 %v1953_v36, 16  ;;  %v2268_v8 = vld [vmem:[%s2362_s28 + $0x108] ss:$8 sps:$4 sm:$0xff]  }
  0x47   : > { %2127 = vmatmul.mubr.msk.bf16.vlgmr.msra.gmra.mrb[0].mxu0 %vm268_vm1, %v2260_v35  ;;  %v1455_v1 = vrot.slane %v1454_v25, 4  ;;  %v1479_v35 = vshll.u32 %v1951_v21, 16  ;;  %v1473_v37 = vrot.slane %v1471_v30, 5  ;;  %v1478_v38 = vrot.slane %v1476_v31, 4  ;;  %v1966_v18 = vld [vmem:[%s2599_s2] ss:$0 sm:$0xff] }
  0x48   : > { %2135 = vmatpush3.bf16.msra.mxu0 %v1544_v34  ;;  %2130 = vmatprep.mubr.msk.bf16.mxu0 %vm268_vm1, %v2263_v39  ;;  %v1467_v34 = vrot.slane %v1465_v27, 5  ;;  %v1485_v39 = vshll.u32 %v1952_v22, 16  ;;  %v1499_v49 = vshll.u32 %v1954_v16, 16  ;;  %v1492_v51 = vrot.slane %v1490_v23, 4 }
  0x49   : > { %v1460_v40 = vsel %vm2402_vm4, %v1455_v1, %v1459_v14  ;;  %v1481_v42 = vrot.slane %v1479_v35, 5  ;;  %v1507_v54 = vshll.u32 %v1955_v43, 16  ;;  %v1513_v55 = vshll.u32 %v1956_v45, 16 }
  0x4a   : > { %v1468_v41 = vor.u32 %v1467_v34, %v1464_v33  ;;  %v1487_v47 = vrot.slane %v1485_v39, 5  ;;  %v1501_v60 = vrot.slane %v1499_v49, 5 }
  0x4b   : > { %2087 = vmatmul.mubr.msk.bf16.vlgmr.msra.gmra.mrb[0].mxu1 %vm268_vm1, %v2262_v52  ;;  %v1482_v50 = vor.u32 %v1481_v42, %v1478_v38  ;;  %v1504_v52 = vshrl.u32 %v1955_v43, 16  ;;  %v1509_v61 = vrot.slane %v1507_v54, 5  ;;  %v1515_v4 = vrot.slane %v1513_v55, 5 }
  0x4c   : > { %2145 = vmatpush3.bf16.msra.mxu1 %v2348_v3  ;;  %2090 = vmatprep.mubr.msk.bf16.mxu1 %vm268_vm1, %v2265_v5  ;;  %v1446_v3 = vsel %vm2402_vm4, %v1441_v29, %v1445_v9  ;;  %v1469_v10 = vrot.slane %v1468_v41, 4 }
  0x4d   : > { %v1959_v46 = vcombine.low %v1446_v3, %v1460_v40  ;;  %v1483_v57 = vrot.slane %v1482_v50, 4  ;;  %v1506_v58 = vrot.slane %v1504_v52, 4 }
  0x4e   : > { %v1474_v56 = vsel %vm2402_vm4, %v1469_v10, %v1473_v37 }
  0x4f   : > { %2131 = vmatmul.mubr.msk.bf16.gmra.mrb[4].mxu0 %vm268_vm1, %v2264_v53  ;;  %v1495_v53 = vrot.slane %v1493_v48, 5  ;;  %v1488_v62 = vsel %vm2402_vm4, %v1483_v57, %v1487_v47  ;;  %v1510_v2 = vor.u32 %v1509_v61, %v1506_v58 }
  0x50   : > { %2136 = vmatprep.mubr.msk.bf16.mxu0 %vm268_vm1, %v1958_v28  ;;  %v1960_v63 = vcombine.low %v1474_v56, %v1488_v62 }
  0x51   : > { %v1496_v59 = vor.u32 %v1495_v53, %v1492_v51  ;;  %v1511_v6 = vrot.slane %v1510_v2, 4 }
  0x53   : > { %2091 = vmatmul.mubr.msk.bf16.gmra.mrb[4].mxu1 %vm268_vm1, %v2266_v32  ;;  %v1497_v0 = vrot.slane %v1496_v59, 4  ;;  %v1516_v7 = vsel %vm2402_vm4, %v1511_v6, %v1515_v4 }
  0x54   : > { %2100 = vmatprep.mubr.msk.bf16.mxu1 %vm268_vm1, %v2267_v15 }
  0x55   : > { %v1502_v5 = vsel %vm2402_vm4, %v1497_v0, %v1501_v60 }
  0x56   : > { %v1961_v9 = vcombine.low %v1502_v5, %v1516_v7 }
  0x57   : > { %2137 = vmatmul.mubr.msk.bf16.vlgmr.msra.gmra.mrb[0].mxu0 %vm268_vm1, %v1959_v46 }
  0x58   : > { %2140 = vmatprep.mubr.msk.bf16.mxu0 %vm268_vm1, %v1960_v63 }
  0x5f   : > { %2141 = vmatmul.mubr.msk.bf16.gmra.mrb[4].mxu0 %vm268_vm1, %v1961_v9  ;;  %2101 = vmatmul.mubr.msk.bf16.vlgmr.msra.gmra.mrb[4].mxu1 %vm268_vm1, %v2268_v8 }
 0x11e   : > { %v2088_v11 = vpop.f32.mrb[0].mxu1 }
 0x11f   : > { %v763_v12 = vpop.f32.mrb[1].mxu1 }
 0x120   : > { %v2089_v13 = vpop.f32.mrb[2].mxu1 }
 0x121   : > { %v766_v14 = vpop.f32.mrb[3].mxu1 }
 0x12a   : > { %v2138_v17 = vpop.f32.mrb[0].mxu0 }
 0x12b   : > { %v2146_v19 = vadd.f32 %v2138_v17, %v2088_v11  ;;  %v1580_v44 = vpop.f32.mrb[1].mxu0 }
 0x12c   : > { %v2147_v20 = vadd.f32 %v1580_v44, %v763_v12  ;;  %v2139_v21 = vpop.f32.mrb[2].mxu0 }
 0x12d   : > { %v1628_v22 = vadd.f32 %v2146_v19, %v1966_v18  ;;  %v2148_v24 = vadd.f32 %v2139_v21, %v2089_v13  ;;  %v1583_v25 = vpop.f32.mrb[3].mxu0 }
 0x12e   : > { %v1626_v26 = vadd.f32 %v2147_v20, %v1966_v18  ;;  %v2149_v27 = vadd.f32 %v1583_v25, %v766_v14 }
 0x12f   : > { %v1644_v28 = vmul.f32 0.01, %v1628_v22  ;;  %v1629_v29 = vadd.f32 %v2148_v24, %v1966_v18  ;;  %vm1636_vm5 = vcmp.gt.f32.partialorder %v1628_v22, 0.0 }
 0x130   : > { %v1642_v30 = vmul.f32 0.01, %v1626_v26  ;;  %v1627_v31 = vadd.f32 %v2149_v27, %v1966_v18  ;;  %vm1634_vm6 = vcmp.gt.f32.partialorder %v1626_v26, 0.0 }
 0x131   : > { %vm1637_vm7 = vcmp.gt.f32.partialorder %v1629_v29, 0.0  ;;  %v1645_v32 = vmul.f32 0.01, %v1629_v29  ;;  %v1652_v33 = vsel %vm1636_vm5, %v1628_v22, %v1644_v28 }
 0x132   : > { %vm1635_vm8 = vcmp.gt.f32.partialorder %v1627_v31, 0.0  ;;  %v1643_v1 = vmul.f32 0.01, %v1627_v31  ;;  %v1650_v35 = vsel %vm1634_vm6, %v1626_v26, %v1642_v30  ;;  %v2142_v37 = vpop.f32.mrb[4].mxu0  ;;  %v2102_v16 = vpop.f32.mrb[4].mxu1 }
 0x133   : > { %v1653_v34 = vsel %vm1637_vm7, %v1629_v29, %v1645_v32  ;;  %v1596_v39 = vpop.f32.mrb[5].mxu0  ;;  %v2150_v41 = vadd.f32 %v2142_v37, %v2102_v16  ;;  %v898_v42 = vpop.f32.mrb[5].mxu1 }
 0x134   : > { %v1994_v36 = vpack.c.bf16 %v1653_v34, %v1652_v33  ;;  %v1651_v3 = vsel %vm1635_vm8, %v1627_v31, %v1643_v1  ;;  %v2143_v40 = vpop.f32.mrb[6].mxu0  ;;  %v2151_v45 = vadd.f32 %v1596_v39, %v898_v42  ;;  %v2103_v23 = vpop.f32.mrb[6].mxu1 }
 0x135   : > { %v1989_v38 = vpack.c.bf16 %v1651_v3, %v1650_v35  ;;  %v1599_v43 = vpop.f32.mrb[7].mxu0  ;;  %v1632_v46 = vadd.f32 %v2150_v41, %v1966_v18  ;;  %v2152_v15 = vadd.f32 %v2143_v40, %v2103_v23  ;;  %v901_v47 = vpop.f32.mrb[7].mxu1 }
 0x136   : > { %2006 = vst [vmem:[%s2582_s21 + $0x8] sm:$0xff] %v1994_v36   ;;  %v1630_v48 = vadd.f32 %v2151_v45, %v1966_v18  ;;  %v2153_v49 = vadd.f32 %v1599_v43, %v901_v47 }
 0x137   : > { %1990 = vst [vmem:[%s2582_s21] sm:$0xff] %v1989_v38   ;;  %v1648_v10 = vmul.f32 0.01, %v1632_v46  ;;  %v1633_v50 = vadd.f32 %v2152_v15, %v1966_v18  ;;  %vm1640_vm9 = vcmp.gt.f32.partialorder %v1632_v46, 0.0 }
 0x138   : > { %v1646_v51 = vmul.f32 0.01, %v1630_v48  ;;  %v1631_v52 = vadd.f32 %v2153_v49, %v1966_v18  ;;  %vm1638_vm10 = vcmp.gt.f32.partialorder %v1630_v48, 0.0 }
 0x139   : > { %vm1641_vm11 = vcmp.gt.f32.partialorder %v1633_v50, 0.0  ;;  %v1649_v53 = vmul.f32 0.01, %v1633_v50  ;;  %v1656_v55 = vsel %vm1640_vm9, %v1632_v46, %v1648_v10 }
 0x13a   : > { %vm1639_vm12 = vcmp.gt.f32.partialorder %v1631_v52, 0.0  ;;  %v1647_v54 = vmul.f32 0.01, %v1631_v52  ;;  %v1654_v57 = vsel %vm1638_vm10, %v1630_v48, %v1646_v51 }
 0x13b   : > { %v1657_v56 = vsel %vm1641_vm11, %v1633_v50, %v1649_v53 }
 0x13c   : > { %v2004_v58 = vpack.c.bf16 %v1657_v56, %v1656_v55  ;;  %v1655_v59 = vsel %vm1639_vm12, %v1631_v52, %v1647_v54 }
 0x13d   : > { %v1999_v60 = vpack.c.bf16 %v1655_v59, %v1654_v57 }
 0x13e   : > { %2008 = vst [vmem:[%s2582_s21 + $0x18] sm:$0xff] %v2004_v58  }
 0x13f   : > { %2007 = vst [vmem:[%s2582_s21 + $0x10] sm:$0xff] %v1999_v60  }
 0x140 PF: > { %s13_s14 = sadd.s32 1, %s2291_s14   ;;  %s2603_s12 = smov %s2287_s13 }
 0x141   : > { %p10_p6 = scmp.ge.s32.totalorder %s13_s14, 4   ;;  %s2604_s13 = smov %s2606_s15 }
 0x143   :  { %12 = sbr.rel (!%p10_p6) target bundleno = 2 (0x2), region = 81 }

// kernel: forward.11
= control target key start
LH: loop header
LB: loop body
LE: loop exit
PB: predicated region body
PF: predicated region fallthrough
CT: control target
= control target key end

     0   :  { %s2423_s12 = smov 0   ;;  %s2425_s13 = smov 0   ;;  %s2958_s0 = inlined_call_operand.vmem [shape: bf16[2,10,10,8], index: 0, kind: input, shape index: {}]   ;;  %s2959_s1 = inlined_call_operand.vmem [shape: bf16[9,8,128], index: 1, kind: input, shape index: {}]   ;;  %s2960_s2 = inlined_call_operand.vmem [shape: f32[1,128], index: 2, kind: input, shape index: {}]   ;;  %s2961_s3 = inlined_call_operand.vmem [shape: bf16[2,64,128], index: 3, kind: output, shape index: {}]  }
   0x1   :  { %s2427_s14 = smov 0  }
   0x2 LB: > { %s25_s15 = sadd.s32 1, %s2397_s13  ;;  %p1916_p0 = scmp.ge.s32.totalorder %s2401_s14, 1  ;;  %s2401_s14 = sphi %s2427_s14, %s13_s14   ;;  %s2397_s13 = sphi %s2425_s13, %s2967_s13   ;;  %s2393_s12 = sphi %s2423_s12, %s2966_s12  }
   0x3   : > { %p27_p1 = scmp.ge.s32.totalorder %s25_s15, 2  ;;  %p168_p2 = scmp.lt.s32.totalorder %s2401_s14, 3 }
   0x5   : > { %s2969_s15 = smov (%p27_p1, %s25_s15), 0  ;;  %p169_p3 = pnand %p1916_p0, %p168_p2 }
   0x6   : > { %v1920_v0 = vld [vmem:[%s2959_s1 + $0x4] sm:$0xf] (!%p169_p3)  ;;  %vm382_vm0 = vcmask (!%p169_p3), 1043456   ;;  %v2447_v1 = vld [vmem:[%s2959_s1 + $0x10] sm:$0xf] (!%p169_p3)  ;;  %p202_p4 = scmp.lt.s32.totalorder (!%p169_p3), %s2393_s12, 1 }
   0x7   : > { %172 = sbr.rel (%p169_p3) target bundleno = 340 (0x154), region = 32  ;;  %2332 = vmatprep.subr.msk.bf16.mxu1 (!%p169_p3), %vm382_vm0, %v1920_v0  ;;  %2336 = vmatprep.subr.msk.bf16.mxu0 (!%p169_p3), %vm382_vm0, %v2447_v1  ;;  %v384_v2 = vsel (!%p169_p3), %vm382_vm0, %v1920_v0, 0  ;;  %v2455_v3 = vsel (!%p169_p3), %vm382_vm0, %v2447_v1, 0  ;;  %v231_v4 = vld [vmem:[%s2959_s1] sm:$0xf] (!%p169_p3)  ;;  %vm369_vm3 = vcmask (!%p169_p3), 64512  }
   0x8   : > { %2177 = vmatpush3.bf16.msra.mxu1 (!%p169_p3), %v384_v2  ;;  %2217 = vmatpush3.bf16.msra.mxu0 (!%p169_p3), %v2455_v3  ;;  %v2012_v5 = vld [vmem:[%s2959_s1 + $0x14] sm:$0xf] (!%p169_p3)  ;;  %vm240_vm1 = vsmask.f32 (!%p169_p3), 3328  ;;  %vm241_vm2 = vsmask.f32 (!%p169_p3), 7440 }
   0x9   : > { %2333 = vmatprep.subr.msk.bf16.mxu1 (!%p169_p3), %vm382_vm0, %v231_v4  ;;  %2338 = vmatprep.subr.msk.bf16.mxu0 (!%p169_p3), %vm382_vm0, %v2012_v5  ;;  %v2494_v17 = vsel (!%p169_p3), %vm382_vm0, %v231_v4, 0  ;;  %v2507_v31 = vld [vmem:[%s2959_s1 + $0x18] sm:$0xf] (!%p169_p3)  ;;  %vm2511_vm4 = vmor (!%p169_p3), %vm240_vm1, %vm241_vm2  ;;  %v2523_v42 = vsel (!%p169_p3), %vm382_vm0, %v2012_v5, 0  ;;  %vm575_vm5 = vcmask (!%p169_p3), 1042432   ;;  %vm576_vm6 = vcmask (!%p169_p3), 1046532  }
   0xa   : > { %v2530_v47 = vsel (!%p169_p3), %vm382_vm0, %v2507_v31, 0  ;;  %vm2622_vm7 = vmor (!%p169_p3), %vm575_vm5, %vm576_vm6 }
   0xe   : > { %s2971_s12 = smov (!%p202_p4, %s2393_s12), 1 }
   0xf   : > { %s2342_s24 = smul.u32 80, %s2971_s12  ;;  %s2099_s17 = sshll.u32 %s2971_s12, 5 }
  0x10   : > { %s2943_s20 = scalar_lea.vmem %s2961_s3, %s2099_s17 }
  0x11   : > { %s2472_s27 = scalar_lea.vmem %s2958_s0, %s2342_s24 }
  0x12   : > { %v2475_v6 = vld [vmem:[%s2472_s27] sm:$0xf]  ;;  %v2478_v7 = vld [vmem:[%s2472_s27 + $0x8] sm:$0xf]  ;;  %v2481_v8 = vld [vmem:[%s2472_s27 + $0x4] sm:$0x1] }
  0x13   : > { %v2484_v9 = vld [vmem:[%s2472_s27 + $0xc] sm:$0x1]  ;;  %v244_v10 = vshrl.u32 %v2475_v6, 16  ;;  %v247_v11 = vshll.u32 %v2475_v6, 16  ;;  %v253_v12 = vshll.u32 %v2481_v8, 16  ;;  %v258_v13 = vshrl.u32 %v2478_v7, 16 }
  0x14   : > { %v261_v14 = vshll.u32 %v2478_v7, 16  ;;  %v267_v15 = vshll.u32 %v2484_v9, 16  ;;  %v1971_v16 = vld [vmem:[%s2472_s27 + $0x8] sm:$0xf]  ;;  %v2497_v22 = vld [vmem:[%s2472_s27 + $0xc] sm:$0x1] }
  0x15   : > { %v246_v18 = vrot.slane %v244_v10, 4  ;;  %v249_v19 = vrot.slane %v247_v11, 5  ;;  %v255_v20 = vrot.slane %v253_v12, 5  ;;  %v260_v21 = vrot.slane %v258_v13, 4  ;;  %v1973_v25 = vld [vmem:[%s2472_s27 + $0x10] sm:$0xf] }
  0x16   : > { %v263_v23 = vrot.slane %v261_v14, 5  ;;  %v269_v24 = vrot.slane %v267_v15, 5  ;;  %v2501_v26 = vld [vmem:[%s2472_s27 + $0x14] sm:$0x1]  ;;  %v848_v28 = vshrl.u32 %v1971_v16, 16  ;;  %v851_v29 = vshll.u32 %v1971_v16, 16 }
  0x17   : > { %v250_v27 = vor.u32 %v249_v19, %v246_v18  ;;  %v857_v30 = vshll.u32 %v2497_v22, 16  ;;  %v862_v34 = vshrl.u32 %v1973_v25, 16  ;;  %v865_v35 = vshll.u32 %v1973_v25, 16  ;;  %v2517_v37 = vld [vmem:[%s2472_s27 + $0x10] sm:$0xf] }
  0x18   : > { %v264_v33 = vor.u32 %v263_v23, %v260_v21  ;;  %v871_v36 = vshll.u32 %v2501_v26, 16  ;;  %v850_v39 = vrot.slane %v848_v28, 4  ;;  %v853_v40 = vrot.slane %v851_v29, 5  ;;  %v2520_v41 = vld [vmem:[%s2472_s27 + $0x18] sm:$0xf] }
  0x19   : > { %v251_v38 = vrot.slane %v250_v27, 4  ;;  %v864_v44 = vrot.slane %v862_v34, 4  ;;  %v867_v45 = vrot.slane %v865_v35, 5  ;;  %v2526_v46 = vld [vmem:[%s2472_s27 + $0x14] sm:$0x1]  ;;  %v859_v50 = vrot.slane %v857_v30, 5 }
  0x1a   : > { %v265_v43 = vrot.slane %v264_v33, 4  ;;  %v854_v49 = vor.u32 %v853_v40, %v850_v39  ;;  %v873_v51 = vrot.slane %v871_v36, 5  ;;  %v2537_v54 = vld [vmem:[%s2472_s27 + $0x1c] sm:$0x1]  ;;  %v272_v55 = vshrl.u32 %v2517_v37, 16 }
  0x1b   : > { %v256_v48 = vsel %vm2511_vm4, %v251_v38, %v255_v20  ;;  %v868_v53 = vor.u32 %v867_v45, %v864_v44  ;;  %v275_v56 = vshll.u32 %v2517_v37, 16  ;;  %v281_v59 = vshll.u32 %v2526_v46, 16  ;;  %v1975_v2 = vld [vmem:[%s2472_s27 + $0x18] sm:$0xf]  ;;  %v2551_v12 = vld [vmem:[%s2472_s27 + $0x1c] sm:$0x1] }
  0x1c   : > { %v270_v52 = vsel %vm2511_vm4, %v265_v43, %v269_v24  ;;  %v855_v58 = vrot.slane %v854_v49, 4  ;;  %v286_v60 = vshrl.u32 %v2520_v41, 16  ;;  %v274_v62 = vrot.slane %v272_v55, 4  ;;  %v1977_v18 = vld [vmem:[%s2472_s27 + $0x20] sm:$0xf] }
  0x1d   : > { %v1921_v57 = vcombine.low %v256_v48, %v270_v52  ;;  %v869_v61 = vrot.slane %v868_v53, 4  ;;  %v277_v63 = vrot.slane %v275_v56, 5  ;;  %v289_v0 = vshll.u32 %v2520_v41, 16  ;;  %v2557_v19 = vld [vmem:[%s2472_s27 + $0x24] sm:$0x1] }
  0x1e   : > { %v860_v4 = vsel %vm2511_vm4, %v855_v58, %v859_v50  ;;  %v1087_v5 = vrot.slane %v2497_v22, 5  ;;  %v288_v10 = vrot.slane %v286_v60, 4  ;;  %v295_v11 = vshll.u32 %v2537_v54, 16  ;;  %v2564_v36 = vld [vmem:[%s2472_s27 + $0x20] sm:$0xf] }
  0x1f   : > { %2178 = vmatprep.mubr.msk.bf16.mxu1 %vm369_vm3, %v1921_v57  ;;  %v874_v13 = vsel %vm2511_vm4, %v869_v61, %v873_v51  ;;  %v278_v14 = vor.u32 %v277_v63, %v274_v62  ;;  %v283_v15 = vrot.slane %v281_v59, 5  ;;  %v291_v16 = vrot.slane %v289_v0, 5  ;;  %v2569_v44 = vld [vmem:[%s2472_s27 + $0x24] sm:$0x1]  ;;  %v2573_v51 = vld [vmem:[%s2472_s27 + $0x28] sm:$0xf] }
  0x20   : > { %v1988_v20 = vcombine.low %v860_v4, %v874_v13  ;;  %v1091_v21 = vrot.slane %v2501_v26, 5  ;;  %v297_v23 = vrot.slane %v295_v11, 5  ;;  %v876_v24 = vshrl.u32 %v1975_v2, 16  ;;  %v2579_v56 = vld [vmem:[%s2472_s27 + $0x2c] sm:$0x1] }
  0x21   : > { %v279_v25 = vrot.slane %v278_v14, 4  ;;  %v292_v27 = vor.u32 %v291_v16, %v288_v10  ;;  %v879_v28 = vshll.u32 %v1975_v2, 16  ;;  %v885_v29 = vshll.u32 %v2551_v12, 16  ;;  %v2585_v62 = vld [vmem:[%s2472_s27 + $0x30] sm:$0xf] }
  0x22   : > { %2218 = vmatprep.mubr.msk.bf16.mxu0 %vm369_vm3, %v1988_v20  ;;  %v878_v30 = vrot.slane %v876_v24, 4  ;;  %v890_v33 = vshrl.u32 %v1977_v18, 16  ;;  %v893_v34 = vshll.u32 %v1977_v18, 16  ;;  %v899_v35 = vshll.u32 %v2557_v19, 16  ;;  %v2590_v63 = vld [vmem:[%s2959_s1 + $0x8] sm:$0xf] }
  0x23   : > { %v284_v38 = vsel %vm2511_vm4, %v279_v25, %v283_v15  ;;  %v293_v39 = vrot.slane %v292_v27, 4  ;;  %v881_v40 = vrot.slane %v879_v28, 5  ;;  %v887_v43 = vrot.slane %v885_v29, 5  ;;  %v2595_v11 = vld [vmem:[%s2472_s27 + $0x38] sm:$0xf] }
  0x24   : > { %v892_v45 = vrot.slane %v890_v33, 4  ;;  %v895_v48 = vrot.slane %v893_v34, 5  ;;  %v901_v49 = vrot.slane %v899_v35, 5  ;;  %v1095_v50 = vrot.slane %v2551_v12, 5  ;;  %v2600_v18 = vld [vmem:[%s2472_s27 + $0x34] sm:$0x1] }
  0x25   : > { %v298_v52 = vsel %vm2511_vm4, %v293_v39, %v297_v23  ;;  %v882_v53 = vor.u32 %v881_v40, %v878_v30  ;;  %v1099_v55 = vrot.slane %v2557_v19, 5  ;;  %v300_v57 = vshrl.u32 %v2564_v36, 16  ;;  %v2606_v25 = vld [vmem:[%s2472_s27 + $0x3c] sm:$0x1]  ;;  %v1996_v34 = vld [vmem:[%s2472_s27 + $0x8] sm:$0xe] }
  0x26   : > { %v1922_v58 = vcombine.low %v284_v38, %v298_v52  ;;  %v896_v59 = vor.u32 %v895_v48, %v892_v45  ;;  %v303_v60 = vshll.u32 %v2564_v36, 16  ;;  %v309_v61 = vshll.u32 %v2569_v44, 16  ;;  %v2675_v19 = vld [vmem:[%s2472_s27 + $0x44] sm:$0x1] }
  0x27   : > { %v883_v0 = vrot.slane %v882_v53, 4  ;;  %v302_v2 = vrot.slane %v300_v57, 4  ;;  %v314_v4 = vshrl.u32 %v2573_v51, 16  ;;  %v317_v10 = vshll.u32 %v2573_v51, 16  ;;  %v1999_v57 = vld [vmem:[%s2472_s27 + $0x20] sm:$0xe] }
  0x28   : > { %2179 = vmatmul.mubr.msk.bf16.vlgmr.msra.gmra.mrb[0].mxu1 %vm369_vm3, %v1922_v58  ;;  %v897_v13 = vrot.slane %v896_v59, 4  ;;  %v305_v14 = vrot.slane %v303_v60, 5  ;;  %v311_v15 = vrot.slane %v309_v61, 5  ;;  %v323_v16 = vshll.u32 %v2579_v56, 16  ;;  %v2088_v53 = vld [vmem:[%s2960_s2] ss:$0 sm:$0xff] }
  0x29   : > { %2187 = vmatpush3.bf16.msra.mxu1 %v2494_v17  ;;  %v888_v20 = vsel %vm2511_vm4, %v883_v0, %v887_v43  ;;  %v316_v23 = vrot.slane %v314_v4, 4  ;;  %v319_v24 = vrot.slane %v317_v10, 5  ;;  %v328_v27 = vshrl.u32 %v2585_v62, 16  ;;  %v1997_v17 = vld [vmem:[%s2472_s27 + $0x10] sm:$0xe] }
  0x2a   : > { %v902_v28 = vsel %vm2511_vm4, %v897_v13, %v901_v49  ;;  %v306_v29 = vor.u32 %v305_v14, %v302_v2  ;;  %v325_v30 = vrot.slane %v323_v16, 5  ;;  %v331_v33 = vshll.u32 %v2585_v62, 16  ;;  %2334 = vmatprep.subr.msk.bf16.mxu1 %vm382_vm0, %v2590_v63  ;;  %v1998_v43 = vld [vmem:[%s2472_s27 + $0x18] sm:$0xe]  ;;  %v2000_v0 = vld [vmem:[%s2472_s27 + $0x28] sm:$0xe] }
  0x2b   : > { %v1989_v35 = vcombine.low %v888_v20, %v902_v28  ;;  %v320_v38 = vor.u32 %v319_v24, %v316_v23  ;;  %v330_v39 = vrot.slane %v328_v27, 4  ;;  %v337_v40 = vshll.u32 %v2600_v18, 16 }
  0x2c   : > { %v307_v45 = vrot.slane %v306_v29, 4  ;;  %v333_v48 = vrot.slane %v331_v33, 5  ;;  %v342_v49 = vshrl.u32 %v2595_v11, 16  ;;  %v345_v52 = vshll.u32 %v2595_v11, 16  ;;  %v2645_v29 = vld [vmem:[%s2472_s27 + $0x34] sm:$0x1] }
  0x2d   : > { %2219 = vmatmul.mubr.msk.bf16.vlgmr.msra.gmra.mrb[0].mxu0 %vm369_vm3, %v1989_v35  ;;  %v321_v58 = vrot.slane %v320_v38, 4  ;;  %v339_v59 = vrot.slane %v337_v40, 5  ;;  %v351_v60 = vshll.u32 %v2606_v25, 16  ;;  %v2004_v61 = vrot.slane %v1996_v34, 9  ;;  %v2002_v38 = vld [vmem:[%s2472_s27 + $0x38] sm:$0xe] }
  0x2e   : > { %2227 = vmatpush3.bf16.msra.mxu0 %v2523_v42  ;;  %v312_v2 = vsel %vm2511_vm4, %v307_v45, %v311_v15  ;;  %v334_v4 = vor.u32 %v333_v48, %v330_v39  ;;  %v344_v10 = vrot.slane %v342_v49, 4  ;;  %v347_v13 = vrot.slane %v345_v52, 5  ;;  %v2642_v42 = vld [vmem:[%s2472_s27 + $0x2c] sm:$0x1]  ;;  %v2003_v45 = vld [vmem:[%s2472_s27 + $0x40] sm:$0xe] }
  0x2f   : > { %v326_v14 = vsel %vm2511_vm4, %v321_v58, %v325_v30  ;;  %v353_v16 = vrot.slane %v351_v60, 5  ;;  %v1088_v20 = vsel %vm2622_vm7, %v2004_v61, %v1087_v5  ;;  %v2005_v23 = vrot.slane %v1997_v17, 9  ;;  %2339 = vmatprep.subr.msk.bf16.mxu0 %vm382_vm0, %v2507_v31  ;;  %v2001_v30 = vld [vmem:[%s2472_s27 + $0x30] sm:$0xe]  ;;  %v2653_v31 = vld [vmem:[%s2472_s27 + $0x3c] sm:$0x1] }
  0x30   : > { %v1923_v15 = vcombine.low %v312_v2, %v326_v14  ;;  %v335_v24 = vrot.slane %v334_v4, 4  ;;  %v348_v27 = vor.u32 %v347_v13, %v344_v10  ;;  %v2006_v28 = vrot.slane %v1998_v43, 9  ;;  %v2684_v48 = vld [vmem:[%s2959_s1 + $0xc] sm:$0xf]  ;;  %v552_v58 = vld [vmem:[%s2472_s27 + $0x8] sm:$0xe] }
  0x31   : > { %v1092_v22 = vsel %vm2622_vm7, %v2005_v23, %v1091_v21  ;;  %v2007_v5 = vrot.slane %v1999_v57, 9  ;;  %v2008_v33 = vrot.slane %v2000_v0, 9  ;;  %v1103_v39 = vrot.slane %v2642_v42, 5  ;;  %v554_v4 = vld [vmem:[%s2472_s27 + $0x18] sm:$0xe] }
  0x32   : > { %2182 = vmatprep.mubr.msk.bf16.mxu1 %vm369_vm3, %v1923_v15  ;;  %v340_v34 = vsel %vm2511_vm4, %v335_v24, %v339_v59  ;;  %v349_v17 = vrot.slane %v348_v27, 4  ;;  %v2013_v35 = vcombine.low %v1088_v20, %v1092_v22  ;;  %v1096_v26 = vsel %vm2622_vm7, %v2006_v28, %v1095_v50  ;;  %v553_v59 = vld [vmem:[%s2472_s27 + $0x10] sm:$0xe]  ;;  %v555_v20 = vld [vmem:[%s2472_s27 + $0x20] sm:$0xe] }
  0x33   : > { %v1100_v21 = vsel %vm2622_vm7, %v2007_v5, %v1099_v55  ;;  %v2009_v40 = vrot.slane %v2001_v30, 9  ;;  %v1107_v43 = vrot.slane %v2645_v29, 5  ;;  %v1929_v50 = vcombine.low %v2475_v6, %v2478_v7  ;;  %v2054_v55 = vld [vmem:[%s2959_s1 + $0x1c] sm:$0xf]  ;;  %v551_v7 = vld [vmem:[%s2472_s27] sm:$0xe] }
  0x34   : > { %v354_v12 = vsel %vm2511_vm4, %v349_v17, %v353_v16  ;;  %2228 = vmatprep.mubr.msk.bf16.mxu0 %vm369_vm3, %v2013_v35  ;;  %v2014_v52 = vcombine.low %v1096_v26, %v1100_v21  ;;  %v1104_v57 = vsel %vm2622_vm7, %v2008_v33, %v1103_v39  ;;  %v580_v60 = vrot.slane %v2481_v8, 5  ;;  %v2038_v5 = vld [vmem:[%s2472_s27 + $0x10] sm:$0xf]  ;;  %v556_v17 = vld [vmem:[%s2472_s27 + $0x28] sm:$0xe] }
  0x35   : > { %v1924_v49 = vcombine.low %v340_v34, %v354_v12  ;;  %v1108_v6 = vsel %vm2622_vm7, %v2009_v40, %v1107_v43  ;;  %v2010_v0 = vrot.slane %v2002_v38, 9  ;;  %v1111_v2 = vrot.slane %v2653_v31, 5  ;;  %v557_v35 = vld [vmem:[%s2472_s27 + $0x30] sm:$0xe]  ;;  %v2040_v26 = vld [vmem:[%s2472_s27 + $0x18] sm:$0xf] }
  0x36   : > { %v2015_v61 = vcombine.low %v1104_v57, %v1108_v6  ;;  %v584_v10 = vrot.slane %v2484_v9, 5  ;;  %v588_v13 = vrot.slane %v2526_v46, 5  ;;  %v2011_v14 = vrot.slane %v2003_v45, 9  ;;  %v2371_v38 = vld [vmem:[%s2472_s27 + $0x10] ss:$8 sps:$4 sm:$0xff]  }
  0x37   : > { %2183 = vmatmul.mubr.msk.bf16.gmra.mrb[4].mxu1 %vm369_vm3, %v1924_v49  ;;  %v1115_v16 = vrot.slane %v2675_v19, 5  ;;  %v592_v23 = vrot.slane %v2537_v54, 5  ;;  %v1937_v8 = vrot.slane %v551_v7, 9  ;;  %v1938_v15 = vrot.slane %v552_v58, 9  ;;  %v2747_v21 = vld [vmem:[%s2472_s27 + $0x38] sm:$0xe] }
  0x38   : > { %2188 = vmatprep.mubr.msk.bf16.mxu1 %vm369_vm3, %v1929_v50  ;;  %v1939_v24 = vrot.slane %v553_v59, 9  ;;  %v637_v9 = vsel %vm382_vm0, %v2590_v63, 0  ;;  %v2707_v46 = vsel %vm382_vm0, %v2054_v55, 0  ;;  %v1940_v27 = vrot.slane %v554_v4, 9  ;;  %v2750_v39 = vld [vmem:[%s2472_s27 + $0x14] sm:$0x1] }
  0x39   : > { %2229 = vmatmul.mubr.msk.bf16.vlgmr.msra.gmra.mrb[0].mxu0 %vm369_vm3, %v2014_v52  ;;  %v2711_v54 = vsel %vm382_vm0, %v2684_v48, 0  ;;  %v1112_v28 = vsel %vm2622_vm7, %v2010_v0, %v1111_v2  ;;  %v1116_v63 = vsel %vm2622_vm7, %v2011_v14, %v1115_v16  ;;  %v1941_v30 = vrot.slane %v555_v20, 9  ;;  %v2044_v52 = vld [vmem:[%s2472_s27 + $0x28] sm:$0xf]  ;;  %v2769_v59 = vld [vmem:[%s2472_s27 + $0x1c] sm:$0x1] }
  0x3a   : > { %2237 = vmatpush3.bf16.msra.mxu0 %v2530_v47  ;;  %2232 = vmatprep.mubr.msk.bf16.mxu0 %vm369_vm3, %v2015_v61  ;;  %v596_v22 = vrot.slane %v2569_v44, 5  ;;  %v1930_v33 = vcombine.low %v2517_v37, %v2520_v41  ;;  %v2726_v47 = vsel %vm2622_vm7, %v1937_v8, %v580_v60  ;;  %v2730_v34 = vsel %vm2622_vm7, %v1938_v15, %v584_v10  ;;  %v2777_v2 = vld [vmem:[%s2472_s27 + $0x24] sm:$0x1]  ;;  %v2046_v20 = vld [vmem:[%s2472_s27 + $0x30] sm:$0xf] }
  0x3b   : > { %2340 = vmatprep.subr.msk.bf16.mxu0 %vm382_vm0, %v2054_v55  ;;  %v1931_v44 = vcombine.low %v2564_v36, %v2573_v51  ;;  %v2740_v37 = vsel %vm2622_vm7, %v1939_v24, %v588_v13  ;;  %v2744_v41 = vsel %vm2622_vm7, %v1940_v27, %v592_v23  ;;  %v2016_v40 = vcombine.low %v1112_v28, %v1116_v63  ;;  %v2042_v36 = vld [vmem:[%s2472_s27 + $0x20] sm:$0xf]  ;;  %v2788_v15 = vld [vmem:[%s2472_s27 + $0x2c] sm:$0x1]  ;;  %v2373_v27 = vld [vmem:[%s2472_s27 + $0x30] ss:$8 sps:$4 sm:$0xff]  }
  0x3c   : > { %v1932_v43 = vcombine.low %v2585_v62, %v2595_v11  ;;  %v1355_v12 = vshrl.u32 %v2038_v5, 16  ;;  %v1358_v50 = vshll.u32 %v2038_v5, 16  ;;  %v1946_v51 = vcombine.low %v2726_v47, %v2730_v34  ;;  %v2372_v23 = vld [vmem:[%s2472_s27 + $0x20] ss:$8 sps:$4 sm:$0xff]   ;;  %v2048_v5 = vld [vmem:[%s2472_s27 + $0x38] sm:$0xf] }
  0x3d   : > { %v2759_v45 = vsel %vm2622_vm7, %v1941_v30, %v596_v22  ;;  %v1942_v55 = vrot.slane %v556_v17, 9  ;;  %v1369_v49 = vshrl.u32 %v2040_v26, 16  ;;  %v1947_v62 = vcombine.low %v2740_v37, %v2744_v41  ;;  %v2799_v17 = vld [vmem:[%s2472_s27 + $0x34] sm:$0x1] }
  0x3e   : > { %v600_v11 = vrot.slane %v2579_v56, 5  ;;  %v1357_v57 = vrot.slane %v1355_v12, 4  ;;  %v1360_v6 = vrot.slane %v1358_v50, 5  ;;  %v1943_v7 = vrot.slane %v557_v35, 9  ;;  %v2050_v12 = vld [vmem:[%s2472_s27 + $0x40] sm:$0xf] }
  0x3f   : > { %2189 = vmatmul.mubr.msk.bf16.vlgmr.msra.gmra.mrb[0].mxu1 %vm369_vm3, %v1930_v33  ;;  %v604_v58 = vrot.slane %v2600_v18, 5  ;;  %v1371_v60 = vrot.slane %v1369_v49, 4  ;;  %v1372_v61 = vshll.u32 %v2040_v26, 16  ;;  %v1944_v56 = vrot.slane %v2747_v21, 9  ;;  %v2809_v21 = vld [vmem:[%s2472_s27 + $0x3c] sm:$0x1] }
  0x40   : > { %2197 = vmatpush3.bf16.msra.mxu1 %v637_v9  ;;  %2192 = vmatprep.mubr.msk.bf16.mxu1 %vm369_vm3, %v1931_v44  ;;  %v1364_v0 = vshll.u32 %v2750_v39, 16  ;;  %v1383_v18 = vshrl.u32 %v2042_v36, 16  ;;  %v1386_v4 = vshll.u32 %v2042_v36, 16  ;;  %v1361_v10 = vor.u32 %v1360_v6, %v1357_v57  ;;  %v2052_v6 = vld [vmem:[%s2472_s27 + $0x48] sm:$0xf] }
  0x41   : > { %2233 = vmatmul.mubr.msk.bf16.gmra.mrb[4].mxu0 %vm369_vm3, %v2016_v40  ;;  %2335 = vmatprep.subr.msk.bf16.mxu1 %vm382_vm0, %v2684_v48  ;;  %v1374_v13 = vrot.slane %v1372_v61, 5  ;;  %v1397_v14 = vshrl.u32 %v2044_v52, 16  ;;  %v1400_v16 = vshll.u32 %v2044_v52, 16  ;;  %v2784_v48 = vsel %vm2622_vm7, %v1942_v55, %v600_v11 }
  0x42   : > { %2238 = vmatprep.mubr.msk.bf16.mxu0 %vm369_vm3, %v2371_v38  ;;  %v1378_v8 = vshll.u32 %v2769_v59, 16  ;;  %v1385_v24 = vrot.slane %v1383_v18, 4  ;;  %v1388_v9 = vrot.slane %v1386_v4, 5  ;;  %v608_v28 = vrot.slane %v2606_v25, 5  ;;  %v2806_v25 = vld [vmem:[%s2959_s1 + $0x20] sm:$0xf] }
  0x43   : > { %v1375_v63 = vor.u32 %v1374_v13, %v1371_v60  ;;  %v1399_v30 = vrot.slane %v1397_v14, 4  ;;  %v1402_v22 = vrot.slane %v1400_v16, 5  ;;  %v2795_v33 = vsel %vm2622_vm7, %v1943_v7, %v604_v58  ;;  %v2834_v13 = vld [vmem:[%s2472_s27 + $0x44] sm:$0x1] }
  0x44   : > { %v1366_v47 = vrot.slane %v1364_v0, 5  ;;  %v1392_v34 = vshll.u32 %v2777_v2, 16  ;;  %v1411_v35 = vshrl.u32 %v2046_v20, 16  ;;  %v1948_v26 = vcombine.low %v2759_v45, %v2784_v48 }
  0x45   : > { %v1362_v44 = vrot.slane %v1361_v10, 4  ;;  %v1389_v38 = vor.u32 %v1388_v9, %v1385_v24  ;;  %v1414_v40 = vshll.u32 %v2046_v20, 16  ;;  %v1376_v50 = vrot.slane %v1375_v63, 4  ;;  %v2837_v20 = vld [vmem:[%s2472_s27 + $0x4c] sm:$0x1] }
  0x46   : > { %v1380_v36 = vrot.slane %v1378_v8, 5  ;;  %v1413_v55 = vrot.slane %v1411_v35, 4  ;;  %v1425_v49 = vshrl.u32 %v2048_v5, 16  ;;  %v2816_v45 = vsel %vm2622_vm7, %v1944_v56, %v608_v28  ;;  %v2374_v8 = vld [vmem:[%s2472_s27 + $0x40] ss:$8 sps:$4 sm:$0xff]  }
  0x47   : > { %2193 = vmatmul.mubr.msk.bf16.gmra.mrb[4].mxu1 %vm369_vm3, %v1932_v43  ;;  %v1403_v52 = vor.u32 %v1402_v22, %v1399_v30  ;;  %v1406_v11 = vshll.u32 %v2788_v15, 16  ;;  %v1416_v57 = vrot.slane %v1414_v40, 5  ;;  %v2821_v7 = vrot.slane %v1392_v34, 5 }
  0x48   : > { %2198 = vmatprep.mubr.msk.bf16.mxu1 %vm369_vm3, %v1946_v51  ;;  %v1420_v43 = vshll.u32 %v2799_v17, 16  ;;  %v1427_v58 = vrot.slane %v1425_v49, 4  ;;  %v1428_v60 = vshll.u32 %v2048_v5, 16  ;;  %v1367_v51 = vsel %vm2511_vm4, %v1362_v44, %v1366_v47  ;;  %v1981_v49 = vld [vmem:[%s2472_s27 + $0x30] sm:$0xf] }
  0x49   : > { %2239 = vmatmul.mubr.msk.bf16.vlgmr.msra.gmra.mrb[0].mxu0 %vm369_vm3, %v2372_v23  ;;  %v1390_v61 = vrot.slane %v1389_v38, 4  ;;  %v1417_v56 = vor.u32 %v1416_v57, %v1413_v55  ;;  %v1439_v0 = vshrl.u32 %v2050_v12, 16  ;;  %v1381_v18 = vsel %vm2511_vm4, %v1376_v50, %v1380_v36  ;;  %v2063_v38 = vld [vmem:[%s2472_s27 + $0x10] sm:$0xe]  ;;  %v2064_v50 = vld [vmem:[%s2472_s27 + $0x18] sm:$0xe] }
  0x4a   : > { %2247 = vmatpush3.bf16.msra.mxu0 %v2707_v46  ;;  %2242 = vmatprep.mubr.msk.bf16.mxu0 %vm369_vm3, %v2373_v27  ;;  %v1430_v4 = vrot.slane %v1428_v60, 5  ;;  %v1434_v10 = vshll.u32 %v2809_v21, 16  ;;  %v1442_v46 = vshll.u32 %v2050_v12, 16  ;;  %v1404_v14 = vrot.slane %v1403_v52, 4  ;;  %v2375_v57 = vld [vmem:[%s2472_s27 + $0x8] ss:$8 sps:$4 sm:$0xff]  }
  0x4b   : > { %2341 = vmatprep.subr.msk.bf16.mxu0 %vm382_vm0, %v2806_v25  ;;  %v1408_v16 = vrot.slane %v1406_v11, 5  ;;  %v1441_v23 = vrot.slane %v1439_v0, 4  ;;  %v1453_v48 = vshrl.u32 %v2052_v6, 16  ;;  %v1422_v24 = vrot.slane %v1420_v43, 5 }
  0x4c   : > { %v1431_v9 = vor.u32 %v1430_v4, %v1427_v58  ;;  %v1444_v27 = vrot.slane %v1442_v46, 5  ;;  %v1456_v28 = vshll.u32 %v2052_v6, 16  ;;  %v2055_v63 = vcombine.low %v1367_v51, %v1381_v18 }
  0x4d   : > { %v1418_v30 = vrot.slane %v1417_v56, 4  ;;  %v1448_v22 = vshll.u32 %v2834_v13, 16  ;;  %v1455_v5 = vrot.slane %v1453_v48, 4  ;;  %v1436_v34 = vrot.slane %v1434_v10, 5 }
  0x4e   : > { %v1432_v47 = vrot.slane %v1431_v9, 4  ;;  %v1458_v35 = vrot.slane %v1456_v28, 5  ;;  %v1462_v44 = vshll.u32 %v2837_v20, 16  ;;  %v1949_v40 = vcombine.low %v2795_v33, %v2816_v45  ;;  %v1985_v28 = vld [vmem:[%s2472_s27 + $0x40] sm:$0xf] }
  0x4f   : > { %2199 = vmatmul.mubr.msk.bf16.vlgmr.msra.gmra.mrb[0].mxu1 %vm369_vm3, %v1947_v62  ;;  %v1445_v12 = vor.u32 %v1444_v27, %v1441_v23  ;;  %v1395_v37 = vsel %vm2511_vm4, %v1390_v61, %v2821_v7  ;;  %v1409_v41 = vsel %vm2511_vm4, %v1404_v14, %v1408_v16  ;;  %v1979_v62 = vld [vmem:[%s2472_s27 + $0x28] sm:$0xf]  ;;  %v1423_v33 = vsel %vm2511_vm4, %v1418_v30, %v1422_v24  ;;  %v1983_v27 = vld [vmem:[%s2472_s27 + $0x38] sm:$0xf] }
  0x50   : > { %2207 = vmatpush3.bf16.msra.mxu1 %v2711_v54  ;;  %2202 = vmatprep.mubr.msk.bf16.mxu1 %vm369_vm3, %v1948_v26  ;;  %v1459_v54 = vor.u32 %v1458_v35, %v1455_v5  ;;  %v1450_v26 = vrot.slane %v1448_v22, 5  ;;  %v2071_v36 = vrot.slane %v2063_v38, 9  ;;  %v1594_v55 = vrot.slane %v2750_v39, 5  ;;  %v2377_v38 = vld [vmem:[%s2472_s27 + $0x28] ss:$8 sps:$4 sm:$0xff]  }
  0x51   : > { %2243 = vmatmul.mubr.msk.bf16.gmra.mrb[4].mxu0 %vm369_vm3, %v2374_v8  ;;  %2337 = vmatprep.subr.msk.bf16.mxu1 %vm382_vm0, %v2447_v1  ;;  %v1437_v45 = vsel %vm2511_vm4, %v1432_v47, %v1436_v34  ;;  %v1464_v52 = vrot.slane %v1462_v44, 5  ;;  %v2072_v11 = vrot.slane %v2064_v50, 9  ;;  %v1598_v1 = vrot.slane %v2769_v59, 5  ;;  %v2065_v59 = vld [vmem:[%s2472_s27 + $0x20] sm:$0xe] }
  0x52   : > { %2248 = vmatprep.mubr.msk.bf16.mxu0 %vm369_vm3, %v2055_v63  ;;  %v1446_v6 = vrot.slane %v1445_v12, 4  ;;  %v1460_v7 = vrot.slane %v1459_v54, 4  ;;  %v904_v43 = vshrl.u32 %v1979_v62, 16  ;;  %v907_v58 = vshll.u32 %v1979_v62, 16  ;;  %v2376_v63 = vld [vmem:[%s2472_s27 + $0x18] ss:$8 sps:$4 sm:$0xff]  }
  0x53   : > { %v2056_v60 = vcombine.low %v1395_v37, %v1409_v41  ;;  %v918_v51 = vshrl.u32 %v1981_v49, 16  ;;  %v921_v61 = vshll.u32 %v1981_v49, 16  ;;  %v2057_v56 = vcombine.low %v1423_v33, %v1437_v45  ;;  %v2067_v44 = vld [vmem:[%s2472_s27 + $0x30] sm:$0xe] }
  0x54   : > { %v906_v39 = vrot.slane %v904_v43, 4  ;;  %v909_v0 = vrot.slane %v907_v58, 5  ;;  %v1651_v18 = vsel %vm382_vm0, %v2806_v25, 0  ;;  %v1451_v46 = vsel %vm2511_vm4, %v1446_v6, %v1450_v26  ;;  %v2066_v25 = vld [vmem:[%s2472_s27 + $0x28] sm:$0xe] }
  0x55   : > { %v920_v4 = vrot.slane %v918_v51, 4  ;;  %v923_v10 = vrot.slane %v921_v61, 5  ;;  %v1465_v14 = vsel %vm2511_vm4, %v1460_v7, %v1464_v52  ;;  %v1595_v16 = vsel %vm2622_vm7, %v2071_v36, %v1594_v55  ;;  %v2069_v6 = vld [vmem:[%s2472_s27 + $0x40] sm:$0xe]  ;;  %v2070_v7 = vld [vmem:[%s2472_s27 + $0x48] sm:$0xe] }
  0x56   : > { %v1599_v23 = vsel %vm2622_vm7, %v2072_v11, %v1598_v1  ;;  %v910_v48 = vor.u32 %v909_v0, %v906_v39  ;;  %v913_v8 = vshll.u32 %v2642_v42, 16  ;;  %v927_v9 = vshll.u32 %v2645_v29, 16  ;;  %v2068_v42 = vld [vmem:[%s2472_s27 + $0x38] sm:$0xe] }
  0x57   : > { %2203 = vmatmul.mubr.msk.bf16.gmra.mrb[4].mxu1 %vm369_vm3, %v1949_v40  ;;  %v924_v24 = vor.u32 %v923_v10, %v920_v4  ;;  %v2073_v30 = vrot.slane %v2065_v59, 9  ;;  %v1602_v22 = vrot.slane %v2777_v2, 5  ;;  %v2058_v5 = vcombine.low %v1451_v46, %v1465_v14 }
  0x58   : > { %2208 = vmatprep.mubr.msk.bf16.mxu1 %vm369_vm3, %v2375_v57  ;;  %v2080_v47 = vcombine.low %v1595_v16, %v1599_v23  ;;  %v2074_v34 = vrot.slane %v2066_v25, 9  ;;  %v1606_v35 = vrot.slane %v2788_v15, 5  ;;  %v932_v40 = vshrl.u32 %v1983_v27, 16  ;;  %v2378_v57 = vld [vmem:[%s2472_s27 + $0x38] ss:$8 sps:$4 sm:$0xff]  }
  0x59   : > { %2249 = vmatmul.mubr.msk.bf16.vlgmr.msra.gmra.mrb[0].mxu0 %vm369_vm3, %v2056_v60  ;;  %v935_v12 = vshll.u32 %v1983_v27, 16  ;;  %v946_v29 = vshrl.u32 %v1985_v28, 16  ;;  %v949_v50 = vshll.u32 %v1985_v28, 16  ;;  %v911_v37 = vrot.slane %v910_v48, 4 }
  0x5a   : > { %2257 = vmatpush3.bf16.msra.mxu0 %v1651_v18  ;;  %2252 = vmatprep.mubr.msk.bf16.mxu0 %vm369_vm3, %v2057_v56  ;;  %v915_v41 = vrot.slane %v913_v8, 5  ;;  %v925_v54 = vrot.slane %v924_v24, 4  ;;  %v929_v62 = vrot.slane %v927_v9, 5  ;;  %v2075_v33 = vrot.slane %v2067_v44, 9 }
  0x5b   : > { %v1610_v26 = vrot.slane %v2799_v17, 5  ;;  %v2076_v2 = vrot.slane %v2068_v42, 9  ;;  %v1614_v36 = vrot.slane %v2809_v21, 5  ;;  %v934_v15 = vrot.slane %v932_v40, 4 }
  0x5c   : > { %v937_v55 = vrot.slane %v935_v12, 5  ;;  %v948_v49 = vrot.slane %v946_v29, 4  ;;  %v951_v45 = vrot.slane %v949_v50, 5  ;;  %v941_v52 = vshll.u32 %v2653_v31, 16 }
  0x5d   : > { %v916_v17 = vsel %vm2511_vm4, %v911_v37, %v915_v41  ;;  %v930_v21 = vsel %vm2511_vm4, %v925_v54, %v929_v62  ;;  %v1607_v11 = vsel %vm2622_vm7, %v2074_v34, %v1606_v35  ;;  %v1611_v1 = vsel %vm2622_vm7, %v2075_v33, %v1610_v26 }
  0x5e   : > { %v1615_v31 = vsel %vm2622_vm7, %v2076_v2, %v1614_v36  ;;  %v955_v43 = vshll.u32 %v2675_v19, 16  ;;  %v1990_v58 = vcombine.low %v916_v17, %v930_v21  ;;  %v938_v60 = vor.u32 %v937_v55, %v934_v15 }
  0x5f   : > { %2209 = vmatmul.mubr.msk.bf16.vlgmr.msra.gmra.mrb[0].mxu1 %vm369_vm3, %v2376_v63  ;;  %v952_v51 = vor.u32 %v951_v45, %v948_v49  ;;  %v2082_v56 = vcombine.low %v1611_v1, %v1615_v31  ;;  %v2077_v39 = vrot.slane %v2069_v6, 9  ;;  %v1618_v0 = vrot.slane %v2834_v13, 5 }
  0x60   : > { %2267 = vmatpush3.bf16.msra.mxu1 %v2455_v3  ;;  %2212 = vmatprep.mubr.msk.bf16.mxu1 %vm369_vm3, %v2377_v38  ;;  %v1603_v3 = vsel %vm2622_vm7, %v2073_v30, %v1602_v22  ;;  %v2078_v18 = vrot.slane %v2070_v7, 9  ;;  %v1622_v59 = vrot.slane %v2837_v20, 5  ;;  %v943_v4 = vrot.slane %v941_v52, 5 }
  0x61   : > { %2253 = vmatmul.mubr.msk.bf16.gmra.mrb[4].mxu0 %vm369_vm3, %v2058_v5  ;;  %v2081_v61 = vcombine.low %v1603_v3, %v1607_v11  ;;  %v957_v10 = vrot.slane %v955_v43, 5  ;;  %v939_v46 = vrot.slane %v938_v60, 4  ;;  %v953_v14 = vrot.slane %v952_v51, 4 }
  0x62   : > { %2258 = vmatprep.mubr.msk.bf16.mxu0 %vm369_vm3, %v2080_v47  ;;  %v1619_v19 = vsel %vm2622_vm7, %v2077_v39, %v1618_v0  ;;  %v1623_v13 = vsel %vm2622_vm7, %v2078_v18, %v1622_v59 }
  0x63   : > { %v944_v20 = vsel %vm2511_vm4, %v939_v46, %v943_v4  ;;  %v958_v16 = vsel %vm2511_vm4, %v953_v14, %v957_v10  ;;  %v2083_v23 = vcombine.low %v1619_v19, %v1623_v13 }
  0x64   : > { %v1991_v25 = vcombine.low %v944_v20, %v958_v16 }
  0x67   : > { %2213 = vmatmul.mubr.msk.bf16.gmra.mrb[4].mxu1 %vm369_vm3, %v2378_v57 }
  0x68   : > { %2222 = vmatprep.mubr.msk.bf16.mxu1 %vm369_vm3, %v1990_v58 }
  0x69   : > { %2259 = vmatmul.mubr.msk.bf16.vlgmr.msra.gmra.mrb[0].mxu0 %vm369_vm3, %v2081_v61 }
  0x6a   : > { %2262 = vmatprep.mubr.msk.bf16.mxu0 %vm369_vm3, %v2082_v56 }
  0x71   : > { %2263 = vmatmul.mubr.msk.bf16.gmra.mrb[4].mxu0 %vm369_vm3, %v2083_v23 }
  0x73   : > { %2223 = vmatmul.mubr.msk.bf16.vlgmr.msra.gmra.mrb[4].mxu1 %vm369_vm3, %v1991_v25 }
 0x132   : > { %v2210_v48 = vpop.f32.mrb[0].mxu1 }
 0x133   : > { %v792_v8 = vpop.f32.mrb[1].mxu1 }
 0x134   : > { %v2211_v24 = vpop.f32.mrb[2].mxu1 }
 0x135   : > { %v795_v9 = vpop.f32.mrb[3].mxu1 }
 0x13c   : > { %v2260_v27 = vpop.f32.mrb[0].mxu0 }
 0x13d   : > { %v2268_v28 = vadd.f32 %v2260_v27, %v2210_v48  ;;  %v1687_v63 = vpop.f32.mrb[1].mxu0 }
 0x13e   : > { %v2269_v32 = vadd.f32 %v1687_v63, %v792_v8  ;;  %v2261_v30 = vpop.f32.mrb[2].mxu0 }
 0x13f   : > { %v1735_v22 = vadd.f32 %v2268_v28, %v2088_v53  ;;  %v2270_v5 = vadd.f32 %v2261_v30, %v2211_v24  ;;  %v1690_v47 = vpop.f32.mrb[3].mxu0 }
 0x140   : > { %v1733_v34 = vadd.f32 %v2269_v32, %v2088_v53  ;;  %v2271_v35 = vadd.f32 %v1690_v47, %v795_v9 }
 0x141   : > { %v1751_v44 = vmul.f32 0.01, %v1735_v22  ;;  %v1736_v42 = vadd.f32 %v2270_v5, %v2088_v53  ;;  %vm1743_vm8 = vcmp.gt.f32.partialorder %v1735_v22, 0.0 }
 0x142   : > { %v1749_v38 = vmul.f32 0.01, %v1733_v34  ;;  %v1734_v40 = vadd.f32 %v2271_v35, %v2088_v53  ;;  %vm1741_vm9 = vcmp.gt.f32.partialorder %v1733_v34, 0.0 }
 0x143   : > { %vm1744_vm10 = vcmp.gt.f32.partialorder %v1736_v42, 0.0  ;;  %v1752_v12 = vmul.f32 0.01, %v1736_v42  ;;  %v1759_v37 = vsel %vm1743_vm8, %v1735_v22, %v1751_v44 }
 0x144   : > { %vm1742_vm11 = vcmp.gt.f32.partialorder %v1734_v40, 0.0  ;;  %v1750_v29 = vmul.f32 0.01, %v1734_v40  ;;  %v2264_v50 = vpop.f32.mrb[4].mxu0  ;;  %v1757_v62 = vsel %vm1741_vm9, %v1733_v34, %v1749_v38 }
 0x145   : > { %v1760_v41 = vsel %vm1744_vm10, %v1736_v42, %v1752_v12  ;;  %v1703_v54 = vpop.f32.mrb[5].mxu0 }
 0x146   : > { %v2116_v33 = vpack.c.bf16 %v1760_v41, %v1759_v37  ;;  %v1758_v26 = vsel %vm1742_vm11, %v1734_v40, %v1750_v29  ;;  %v2224_v2 = vpop.f32.mrb[4].mxu1  ;;  %v2265_v36 = vpop.f32.mrb[6].mxu0 }
 0x147   : > { %v2111_v15 = vpack.c.bf16 %v1758_v26, %v1757_v62  ;;  %v2272_v55 = vadd.f32 %v2264_v50, %v2224_v2  ;;  %v1038_v49 = vpop.f32.mrb[5].mxu1  ;;  %v1706_v45 = vpop.f32.mrb[7].mxu0 }
 0x148   : > { %2128 = vst [vmem:[%s2943_s20 + $0x8] sm:$0xff] %v2116_v33   ;;  %v2273_v52 = vadd.f32 %v1703_v54, %v1038_v49  ;;  %v2225_v17 = vpop.f32.mrb[6].mxu1 }
 0x149   : > { %2112 = vst [vmem:[%s2943_s20] sm:$0xff] %v2111_v15   ;;  %v1739_v21 = vadd.f32 %v2272_v55, %v2088_v53  ;;  %v2274_v3 = vadd.f32 %v2265_v36, %v2225_v17  ;;  %v1041_v11 = vpop.f32.mrb[7].mxu1 }
 0x14a   : > { %v1737_v1 = vadd.f32 %v2273_v52, %v2088_v53  ;;  %v2275_v31 = vadd.f32 %v1706_v45, %v1041_v11 }
 0x14b   : > { %v1755_v57 = vmul.f32 0.01, %v1739_v21  ;;  %v1740_v6 = vadd.f32 %v2274_v3, %v2088_v53  ;;  %vm1747_vm12 = vcmp.gt.f32.partialorder %v1739_v21, 0.0 }
 0x14c   : > { %v1753_v7 = vmul.f32 0.01, %v1737_v1  ;;  %v1738_v43 = vadd.f32 %v2275_v31, %v2088_v53  ;;  %vm1745_vm13 = vcmp.gt.f32.partialorder %v1737_v1, 0.0 }
 0x14d   : > { %vm1748_vm14 = vcmp.gt.f32.partialorder %v1740_v6, 0.0  ;;  %v1756_v58 = vmul.f32 0.01, %v1740_v6  ;;  %v1763_v51 = vsel %vm1747_vm12, %v1739_v21, %v1755_v57 }
 0x14e   : > { %vm1746_vm15 = vcmp.gt.f32.partialorder %v1738_v43, 0.0  ;;  %v1754_v60 = vmul.f32 0.01, %v1738_v43  ;;  %v1761_v56 = vsel %vm1745_vm13, %v1737_v1, %v1753_v7 }
 0x14f   : > { %v1764_v61 = vsel %vm1748_vm14, %v1740_v6, %v1756_v58 }
 0x150   : > { %v2126_v39 = vpack.c.bf16 %v1764_v61, %v1763_v51  ;;  %v1762_v0 = vsel %vm1746_vm15, %v1738_v43, %v1754_v60 }
 0x151   : > { %v2121_v18 = vpack.c.bf16 %v1762_v0, %v1761_v56 }
 0x152   : > { %2130 = vst [vmem:[%s2943_s20 + $0x18] sm:$0xff] %v2126_v39  }
 0x153   : > { %2129 = vst [vmem:[%s2943_s20 + $0x10] sm:$0xff] %v2121_v18  }
 0x154 PF: > { %s13_s14 = sadd.s32 1, %s2401_s14   ;;  %s2966_s12 = smov %s2397_s13 }
 0x155   : > { %p10_p5 = scmp.ge.s32.totalorder %s13_s14, 4   ;;  %s2967_s13 = smov %s2969_s15 }
 0x157   :  { %12 = sbr.rel (!%p10_p5) target bundleno = 2 (0x2), region = 78 }

// kernel: forward.9
= control target key start
LH: loop header
LB: loop body
LE: loop exit
PB: predicated region body
PF: predicated region fallthrough
CT: control target
= control target key end

     0   :  { %s6784_s12 = smov 0   ;;  %s6786_s13 = smov 0   ;;  %s8615_s0 = inlined_call_operand.vmem [shape: bf16[2,18,18,3], index: 0, kind: input, shape index: {}]   ;;  %s8616_s1 = inlined_call_operand.vmem [shape: bf16[9,3,128], index: 1, kind: input, shape index: {}]   ;;  %s8617_s2 = inlined_call_operand.vmem [shape: f32[1,128], index: 2, kind: input, shape index: {}]   ;;  %s8618_s3 = inlined_call_operand.vmem [shape: bf16[2,256,128], index: 3, kind: output, shape index: {}]  }
   0x1   :  { %s6788_s14 = smov 0  }
   0x2 LB: > { %s25_s15 = sadd.s32 1, %s6757_s13  ;;  %p5191_p0 = scmp.ge.s32.totalorder %s6761_s14, 1  ;;  %s6761_s14 = sphi %s6788_s14, %s13_s14   ;;  %s6757_s13 = sphi %s6786_s13, %s8697_s13   ;;  %s6753_s12 = sphi %s6784_s12, %s8696_s12  }
   0x3   : > { %p27_p1 = scmp.ge.s32.totalorder %s25_s15, 2  ;;  %p168_p2 = scmp.lt.s32.totalorder %s6761_s14, 3 }
   0x5   : > { %s8699_s15 = smov (%p27_p1, %s25_s15), 0  ;;  %p169_p3 = pnand %p5191_p0, %p168_p2 }
   0x7   : > { %172 = sbr.rel (%p169_p3) target bundleno = 591 (0x24f), region = 32 }
   0xe   : > { %v5195_v0 = vld [vmem:[%s8616_s1 + $0x2] sm:$0x3]  ;;  %vm758_vm0 = vcmask 1040384   ;;  %vm759_vm1 = vcmask 1041408   ;;  %p202_p4 = scmp.lt.s32.totalorder %s6753_s12, 1  ;;  %v6763_v1 = vmov 65535  }
   0xf   : > { %v760_v2 = vsel %vm758_vm0, 4294967295, %v6763_v1  ;;  %v5422_v3 = vld [vmem:[%s8616_s1 + $0x8] sm:$0x3]  ;;  %v255_v5 = vld [vmem:[%s8616_s1] sm:$0x3]  ;;  %vm709_vm4 = vcmask 23552  }
  0x10   : > { %v6808_v4 = vsel %vm759_vm1, %v760_v2, 0  ;;  %s8701_s12 = smov (!%p202_p4, %s6753_s12), 1  ;;  %v5487_v9 = vld [vmem:[%s8616_s1 + $0xa] sm:$0x3]  ;;  %vm272_vm2 = vsmask.f32 3328 }
  0x11   : > { %v763_v6 = vand.u32 %v5195_v0, %v6808_v4  ;;  %v6817_v7 = vand.u32 %v5422_v3, %v6808_v4  ;;  %v6820_v8 = vand.u32 %v6808_v4, %v255_v5  ;;  %s6611_s24 = smul.u32 216, %s8701_s12  ;;  %v6827_v10 = vand.u32 %v5487_v9, %v6808_v4  ;;  %v5552_v26 = vld [vmem:[%s8616_s1 + $0xc] sm:$0x3]  ;;  %v5276_v31 = vld [vmem:[%s8616_s1 + $0x4] sm:$0x3]  ;;  %s5766_s17 = sshll.u32 %s8701_s12, 7 }
  0x12   : > { %vm273_vm3 = vsmask.f32 7440  ;;  %v6866_v42 = vand.u32 %v5552_v26, %v6808_v4  ;;  %v6869_v46 = vand.u32 %v5276_v31, %v6808_v4  ;;  %vm1266_vm6 = vcmask 1042432   ;;  %s8552_s20 = scalar_lea.vmem %s8618_s3, %s5766_s17 }
  0x13   : > { %8635 = vst [vmem:[#allocation2_spill] sm:$0xff] %v6817_v7  ;;  %6047 = vmatprep.subr.bf16.mxu1 %v763_v6  ;;  %6183 = vmatprep.subr.bf16.mxu0 %v6817_v7  ;;  %s6834_s27 = scalar_lea.vmem %s8615_s0, %s6611_s24  ;;  %vm6860_vm5 = vmor %vm272_vm2, %vm273_vm3  ;;  %vm1267_vm7 = vcmask 1046532  }
  0x14   : > { %6048 = vmatpush3.bf16.msra.mxu1 %v763_v6  ;;  %6184 = vmatpush3.bf16.msra.mxu0 %v6817_v7  ;;  %v223_v11 = vld [vmem:[%s6834_s27] sm:$0xf]  ;;  %v224_v12 = vld [vmem:[%s6834_s27 + $0x4] sm:$0xf]  ;;  %v256_v13 = vld [vmem:[%s6834_s27 + $0x8] sm:$0x1] }
  0x15   : > { %6081 = vmatprep.subr.bf16.mxu1 %v6820_v8  ;;  %6217 = vmatprep.subr.bf16.mxu0 %v6827_v10  ;;  %v276_v14 = vshrl.u32 %v223_v11, 16  ;;  %v279_v15 = vshll.u32 %v223_v11, 16  ;;  %v285_v16 = vshll.u32 %v224_v12, 16  ;;  %v289_v17 = vshrl.u32 %v224_v12, 16  ;;  %v5374_v18 = vld [vmem:[%s6834_s27 + $0xc] sm:$0xf]  ;;  %vm7081_vm8 = vmor %vm1266_vm6, %vm1267_vm7 }
  0x16   : > { %v295_v19 = vshll.u32 %v256_v13, 16  ;;  %v6843_v20 = vld [vmem:[%s6834_s27 + $0x10] sm:$0xf]  ;;  %v6846_v21 = vld [vmem:[%s6834_s27 + $0x14] sm:$0x1]  ;;  %v2083_v28 = vshrl.u32 %v5374_v18, 16 }
  0x17   : > { %v278_v22 = vrot.slane %v276_v14, 4  ;;  %v281_v23 = vrot.slane %v279_v15, 5  ;;  %v287_v24 = vrot.slane %v285_v16, 5  ;;  %v291_v25 = vrot.slane %v289_v17, 4  ;;  %v225_v36 = vld [vmem:[%s6834_s27 + $0xc] sm:$0xf] }
  0x18   : > { %v297_v27 = vrot.slane %v295_v19, 5  ;;  %v2086_v29 = vshll.u32 %v5374_v18, 16  ;;  %v2092_v30 = vshll.u32 %v6843_v20, 16  ;;  %v2096_v34 = vshrl.u32 %v6843_v20, 16  ;;  %v226_v41 = vld [vmem:[%s6834_s27 + $0x10] sm:$0xf] }
  0x19   : > { %v282_v32 = vor.u32 %v281_v23, %v278_v22  ;;  %v292_v33 = vor.u32 %v291_v25, %v287_v24  ;;  %v2102_v35 = vshll.u32 %v6846_v21, 16  ;;  %v2085_v38 = vrot.slane %v2083_v28, 4  ;;  %v257_v49 = vld [vmem:[%s6834_s27 + $0x14] sm:$0x1]  ;;  %v5377_v60 = vld [vmem:[%s6834_s27 + $0x18] sm:$0xf] }
  0x1a   : > { %v2088_v39 = vrot.slane %v2086_v29, 5  ;;  %v2094_v40 = vrot.slane %v2092_v30, 5  ;;  %v2098_v45 = vrot.slane %v2096_v34, 4  ;;  %v300_v50 = vshrl.u32 %v225_v36, 16  ;;  %v6878_v1 = vld [vmem:[%s6834_s27 + $0x1c] sm:$0xf] }
  0x1b   : > { %v283_v43 = vrot.slane %v282_v32, 4  ;;  %v293_v44 = vrot.slane %v292_v33, 4  ;;  %v2104_v48 = vrot.slane %v2102_v35, 5  ;;  %v303_v51 = vshll.u32 %v225_v36, 16  ;;  %v6886_v9 = vld [vmem:[%s6834_s27 + $0x20] sm:$0x1] }
  0x1c   : > { %v2089_v47 = vor.u32 %v2088_v39, %v2085_v38  ;;  %v2099_v54 = vor.u32 %v2098_v45, %v2094_v40  ;;  %v309_v55 = vshll.u32 %v226_v41, 16  ;;  %v302_v58 = vrot.slane %v300_v50, 4  ;;  %v227_v25 = vld [vmem:[%s6834_s27 + $0x18] sm:$0xf]  ;;  %v228_v30 = vld [vmem:[%s6834_s27 + $0x1c] sm:$0xf] }
  0x1d   : > { %v288_v52 = vsel %vm6860_vm5, %v283_v43, %v287_v24  ;;  %v298_v53 = vsel %vm6860_vm5, %v293_v44, %v297_v27  ;;  %v305_v59 = vrot.slane %v303_v51, 5  ;;  %v313_v63 = vshrl.u32 %v226_v41, 16  ;;  %v258_v38 = vld [vmem:[%s6834_s27 + $0x20] sm:$0x1] }
  0x1e   : > { %v5196_v56 = vcombine.low %v288_v52, %v298_v53  ;;  %v2090_v57 = vrot.slane %v2089_v47, 4  ;;  %v2100_v61 = vrot.slane %v2099_v54, 4  ;;  %v311_v62 = vrot.slane %v309_v55, 5  ;;  %v5380_v47 = vld [vmem:[%s6834_s27 + $0x24] sm:$0xf] }
  0x1f   : > { %v319_v0 = vshll.u32 %v257_v49, 16  ;;  %v2826_v3 = vrot.slane %v6843_v20, 5  ;;  %v2829_v5 = vrot.slane %v6846_v21, 5  ;;  %v306_v6 = vor.u32 %v305_v59, %v302_v58  ;;  %v6909_v52 = vld [vmem:[%s6834_s27 + $0x28] sm:$0xf] }
  0x20   : > { %6049 = vmatprep.mubr.msk.bf16.mxu1 %vm709_vm4, %v5196_v56  ;;  %v2095_v2 = vsel %vm6860_vm5, %v2090_v57, %v2094_v40  ;;  %v2105_v11 = vsel %vm6860_vm5, %v2100_v61, %v2104_v48  ;;  %v315_v12 = vrot.slane %v313_v63, 4  ;;  %v2107_v14 = vshrl.u32 %v5377_v60, 16  ;;  %v6915_v59 = vld [vmem:[%s6834_s27 + $0x2c] sm:$0x1]  ;;  %v7114_v21 = vld [vmem:[%s6834_s27 + $0x7c] sm:$0xf] }
  0x21   : > { %v321_v13 = vrot.slane %v319_v0, 5  ;;  %v5423_v15 = vcombine.low %v2095_v2, %v2105_v11  ;;  %v307_v16 = vrot.slane %v306_v6, 4  ;;  %v2110_v17 = vshll.u32 %v5377_v60, 16  ;;  %v229_v6 = vld [vmem:[%s6834_s27 + $0x24] sm:$0xf] }
  0x22   : > { %v2116_v18 = vshll.u32 %v6878_v1, 16  ;;  %v316_v19 = vor.u32 %v315_v12, %v311_v62  ;;  %v2109_v22 = vrot.slane %v2107_v14, 4  ;;  %v2120_v23 = vshrl.u32 %v6878_v1, 16 }
  0x23   : > { %v2126_v24 = vshll.u32 %v6886_v9, 16  ;;  %6185 = vmatprep.mubr.msk.bf16.mxu0 %vm709_vm4, %v5423_v15  ;;  %v312_v26 = vsel %vm6860_vm5, %v307_v16, %v311_v62  ;;  %v2112_v27 = vrot.slane %v2110_v17, 5  ;;  %v2833_v29 = vrot.slane %v6878_v1, 5  ;;  %v230_v15 = vld [vmem:[%s6834_s27 + $0x28] sm:$0xf] }
  0x24   : > { %v2118_v28 = vrot.slane %v2116_v18, 5  ;;  %v317_v31 = vrot.slane %v316_v19, 4  ;;  %v2122_v32 = vrot.slane %v2120_v23, 4  ;;  %v2836_v34 = vrot.slane %v6886_v9, 5  ;;  %v259_v23 = vld [vmem:[%s6834_s27 + $0x2c] sm:$0x1] }
  0x25   : > { %v2128_v33 = vrot.slane %v2126_v24, 5  ;;  %v2113_v35 = vor.u32 %v2112_v27, %v2109_v22  ;;  %v6902_v36 = vrot.slane %v2833_v29, 4  ;;  %v324_v39 = vshrl.u32 %v227_v25, 16 }
  0x26   : > { %v327_v40 = vshll.u32 %v227_v25, 16  ;;  %v322_v41 = vsel %vm6860_vm5, %v317_v31, %v321_v13  ;;  %v2123_v43 = vor.u32 %v2122_v32, %v2118_v28  ;;  %v333_v44 = vshll.u32 %v228_v30, 16  ;;  %v5383_v31 = vld [vmem:[%s6834_s27 + $0x30] sm:$0xf] }
  0x27   : > { %v337_v45 = vshrl.u32 %v228_v30, 16  ;;  %v5197_v48 = vcombine.low %v312_v26, %v322_v41  ;;  %v2114_v49 = vrot.slane %v2113_v35, 4  ;;  %v326_v50 = vrot.slane %v324_v39, 4  ;;  %v6935_v39 = vld [vmem:[%s6834_s27 + $0x34] sm:$0xf] }
  0x28   : > { %v329_v51 = vrot.slane %v327_v40, 5  ;;  %v2124_v53 = vrot.slane %v2123_v43, 4  ;;  %v335_v54 = vrot.slane %v333_v44, 5  ;;  %v343_v56 = vshll.u32 %v258_v38, 16 }
  0x29   : > { %v339_v55 = vrot.slane %v337_v45, 4  ;;  %6050 = vmatmul.mubr.msk.bf16.vlgmr.msra.gmra.mrb[0].mxu1 %vm709_vm4, %v5197_v48  ;;  %v2119_v57 = vsel %vm6860_vm5, %v2114_v49, %v2118_v28  ;;  %v2131_v60 = vshrl.u32 %v5380_v47, 16  ;;  %v2134_v61 = vshll.u32 %v5380_v47, 16  ;;  %v6942_v47 = vld [vmem:[%s6834_s27 + $0x38] sm:$0x1] }
  0x2a   : > { %v330_v58 = vor.u32 %v329_v51, %v326_v50  ;;  %6082 = vmatpush3.bf16.msra.mxu1 %v6820_v8  ;;  %v2129_v62 = vsel %vm6860_vm5, %v2124_v53, %v2128_v33  ;;  %v345_v0 = vrot.slane %v343_v56, 5  ;;  %v2140_v2 = vshll.u32 %v6909_v52, 16 }
  0x2b   : > { %v340_v63 = vor.u32 %v339_v55, %v335_v54  ;;  %v5424_v11 = vcombine.low %v2119_v57, %v2129_v62  ;;  %v2133_v13 = vrot.slane %v2131_v60, 4  ;;  %v2136_v14 = vrot.slane %v2134_v61, 5  ;;  %6115 = vmatprep.subr.bf16.mxu1 %v6869_v46  ;;  %v231_v60 = vld [vmem:[%s6834_s27 + $0x30] sm:$0xf] }
  0x2c   : > { %v331_v12 = vrot.slane %v330_v58, 4  ;;  %v2142_v17 = vrot.slane %v2140_v2, 5  ;;  %v2144_v8 = vshrl.u32 %v6909_v52, 16  ;;  %v2150_v18 = vshll.u32 %v6915_v59, 16  ;;  %v232_v2 = vld [vmem:[%s6834_s27 + $0x34] sm:$0xf] }
  0x2d   : > { %v341_v16 = vrot.slane %v340_v63, 4  ;;  %6186 = vmatmul.mubr.msk.bf16.vlgmr.msra.gmra.mrb[0].mxu0 %vm709_vm4, %v5424_v11  ;;  %v2137_v22 = vor.u32 %v2136_v14, %v2133_v13  ;;  %v348_v24 = vshrl.u32 %v229_v6, 16  ;;  %v351_v25 = vshll.u32 %v229_v6, 16  ;;  %v260_v14 = vld [vmem:[%s6834_s27 + $0x38] sm:$0x1] }
  0x2e   : > { %v336_v19 = vsel %vm6860_vm5, %v331_v12, %v335_v54  ;;  %6218 = vmatpush3.bf16.msra.mxu0 %v6827_v10  ;;  %v2146_v27 = vrot.slane %v2144_v8, 4  ;;  %v2152_v28 = vrot.slane %v2150_v18, 5  ;;  %v357_v30 = vshll.u32 %v230_v15, 16 }
  0x2f   : > { %v346_v26 = vsel %vm6860_vm5, %v341_v16, %v345_v0  ;;  %v2138_v33 = vrot.slane %v2137_v22, 4  ;;  %v350_v35 = vrot.slane %v348_v24, 4  ;;  %v353_v38 = vrot.slane %v351_v25, 5  ;;  %6251 = vmatprep.subr.bf16.mxu0 %v6866_v42  ;;  %v5386_v24 = vld [vmem:[%s6834_s27 + $0x3c] sm:$0xf] }
  0x30   : > { %v5198_v32 = vcombine.low %v336_v19, %v346_v26  ;;  %v2147_v40 = vor.u32 %v2146_v27, %v2142_v17  ;;  %v359_v41 = vrot.slane %v357_v30, 5  ;;  %v361_v43 = vshrl.u32 %v230_v15, 16  ;;  %v6959_v30 = vld [vmem:[%s6834_s27 + $0x40] sm:$0xf] }
  0x31   : > { %v367_v10 = vshll.u32 %v259_v23, 16  ;;  %v2143_v44 = vsel %vm6860_vm5, %v2138_v33, %v2142_v17  ;;  %v354_v45 = vor.u32 %v353_v38, %v350_v35  ;;  %v2155_v48 = vshrl.u32 %v5383_v31, 16 }
  0x32   : > { %6053 = vmatprep.mubr.msk.bf16.mxu1 %vm709_vm4, %v5198_v32  ;;  %v2158_v49 = vshll.u32 %v5383_v31, 16  ;;  %v2148_v50 = vrot.slane %v2147_v40, 4  ;;  %v363_v51 = vrot.slane %v361_v43, 4  ;;  %v2164_v54 = vshll.u32 %v6935_v39, 16  ;;  %v6964_v43 = vld [vmem:[%s6834_s27 + $0x44] sm:$0x1] }
  0x33   : > { %v369_v53 = vrot.slane %v367_v10, 5  ;;  %v355_v55 = vrot.slane %v354_v45, 4  ;;  %v2157_v56 = vrot.slane %v2155_v48, 4  ;;  %v2168_v58 = vshrl.u32 %v6935_v39, 16 }
  0x34   : > { %v2160_v57 = vrot.slane %v2158_v49, 5  ;;  %v2153_v61 = vsel %vm6860_vm5, %v2148_v50, %v2152_v28  ;;  %v364_v62 = vor.u32 %v363_v51, %v359_v41  ;;  %v2166_v63 = vrot.slane %v2164_v54, 5  ;;  %v233_v50 = vld [vmem:[%s6834_s27 + $0x3c] sm:$0xf] }
  0x35   : > { %v2174_v0 = vshll.u32 %v6942_v47, 16  ;;  %v5425_v6 = vcombine.low %v2143_v44, %v2153_v61  ;;  %v360_v11 = vsel %vm6860_vm5, %v355_v55, %v359_v41  ;;  %v2170_v13 = vrot.slane %v2168_v58, 4 }
  0x36   : > { %v2161_v12 = vor.u32 %v2160_v57, %v2157_v56  ;;  %v365_v15 = vrot.slane %v364_v62, 4  ;;  %v372_v17 = vshrl.u32 %v231_v60, 16  ;;  %v375_v8 = vshll.u32 %v231_v60, 16  ;;  %v234_v56 = vld [vmem:[%s6834_s27 + $0x40] sm:$0xf] }
  0x37   : > { %v2176_v16 = vrot.slane %v2174_v0, 5  ;;  %6189 = vmatprep.mubr.msk.bf16.mxu0 %vm709_vm4, %v5425_v6  ;;  %v2171_v19 = vor.u32 %v2170_v13, %v2166_v63  ;;  %v381_v22 = vshll.u32 %v232_v2, 16  ;;  %v385_v23 = vshrl.u32 %v232_v2, 16  ;;  %v261_v13 = vld [vmem:[%s6834_s27 + $0x44] sm:$0x1] }
  0x38   : > { %v2162_v18 = vrot.slane %v2161_v12, 4  ;;  %v370_v25 = vsel %vm6860_vm5, %v365_v15, %v369_v53  ;;  %v374_v26 = vrot.slane %v372_v17, 4  ;;  %v377_v27 = vrot.slane %v375_v8, 5  ;;  %v5389_v15 = vld [vmem:[%s6834_s27 + $0x48] sm:$0xf] }
  0x39   : > { %v391_v28 = vshll.u32 %v260_v14, 16  ;;  %v5199_v31 = vcombine.low %v360_v11, %v370_v25  ;;  %v2172_v33 = vrot.slane %v2171_v19, 4  ;;  %v383_v35 = vrot.slane %v381_v22, 5  ;;  %v6982_v19 = vld [vmem:[%s6834_s27 + $0x4c] sm:$0xf] }
  0x3a   : > { %v2167_v32 = vsel %vm6860_vm5, %v2162_v18, %v2166_v63  ;;  %v378_v38 = vor.u32 %v377_v27, %v374_v26  ;;  %v387_v40 = vrot.slane %v385_v23, 4  ;;  %v2179_v10 = vshrl.u32 %v5386_v24, 16 }
  0x3b   : > { %v393_v41 = vrot.slane %v391_v28, 5  ;;  %6054 = vmatmul.mubr.msk.bf16.gmra.mrb[4].mxu1 %vm709_vm4, %v5199_v31  ;;  %v2177_v44 = vsel %vm6860_vm5, %v2172_v33, %v2176_v16  ;;  %v2182_v45 = vshll.u32 %v5386_v24, 16  ;;  %v2188_v48 = vshll.u32 %v6959_v30, 16 }
  0x3c   : > { %v2192_v49 = vshrl.u32 %v6959_v30, 16  ;;  %v5426_v51 = vcombine.low %v2167_v32, %v2177_v44  ;;  %v379_v53 = vrot.slane %v378_v38, 4  ;;  %v388_v54 = vor.u32 %v387_v40, %v383_v35 }
  0x3d   : > { %v2181_v55 = vrot.slane %v2179_v10, 4  ;;  %v2184_v57 = vrot.slane %v2182_v45, 5  ;;  %v2190_v58 = vrot.slane %v2188_v48, 5  ;;  %v2198_v61 = vshll.u32 %v6964_v43, 16 }
  0x3e   : > { %v2194_v60 = vrot.slane %v2192_v49, 4  ;;  %6190 = vmatmul.mubr.msk.bf16.gmra.mrb[4].mxu0 %vm709_vm4, %v5426_v51  ;;  %v384_v62 = vsel %vm6860_vm5, %v379_v53, %v383_v35  ;;  %v389_v63 = vrot.slane %v388_v54, 4  ;;  %v396_v0 = vshrl.u32 %v233_v50, 16  ;;  %v6990_v35 = vld [vmem:[%s6834_s27 + $0x50] sm:$0x1] }
  0x3f   : > { %v399_v2 = vshll.u32 %v233_v50, 16  ;;  %v2185_v6 = vor.u32 %v2184_v57, %v2181_v55  ;;  %v2200_v12 = vrot.slane %v2198_v61, 5  ;;  %v405_v14 = vshll.u32 %v234_v56, 16  ;;  %v6997_v49 = vld [vmem:[%s6834_s27 + $0x4c] sm:$0xf] }
  0x40   : > { %v2195_v11 = vor.u32 %v2194_v60, %v2190_v58  ;;  %v394_v16 = vsel %vm6860_vm5, %v389_v63, %v393_v41  ;;  %v398_v17 = vrot.slane %v396_v0, 4  ;;  %v409_v18 = vshrl.u32 %v234_v56, 16  ;;  %v6994_v41 = vld [vmem:[%s6834_s27 + $0x48] sm:$0xf] }
  0x41   : > { %v401_v8 = vrot.slane %v399_v2, 5  ;;  %v5200_v22 = vcombine.low %v384_v62, %v394_v16  ;;  %v2186_v23 = vrot.slane %v2185_v6, 4  ;;  %v407_v25 = vrot.slane %v405_v14, 5  ;;  %v5392_v2 = vld [vmem:[%s6834_s27 + $0x54] sm:$0xf] }
  0x42   : > { %v2196_v24 = vrot.slane %v2195_v11, 4  ;;  %v411_v27 = vrot.slane %v409_v18, 4  ;;  %v415_v28 = vshll.u32 %v261_v13, 16  ;;  %v2203_v31 = vshrl.u32 %v5389_v15, 16 }
  0x43   : > { %v402_v26 = vor.u32 %v401_v8, %v398_v17  ;;  %6057 = vmatprep.mubr.msk.bf16.mxu1 %vm709_vm4, %v5200_v22  ;;  %v2191_v32 = vsel %vm6860_vm5, %v2186_v23, %v2190_v58  ;;  %v2206_v38 = vshll.u32 %v5389_v15, 16  ;;  %v2212_v40 = vshll.u32 %v6982_v19, 16  ;;  %v262_v58 = vld [vmem:[%s6834_s27 + $0x50] sm:$0x1]  ;;  %v7013_v8 = vld [vmem:[%s6834_s27 + $0x58] sm:$0xf] }
  0x44   : > { %v2201_v33 = vsel %vm6860_vm5, %v2196_v24, %v2200_v12  ;;  %v412_v45 = vor.u32 %v411_v27, %v407_v25  ;;  %v417_v48 = vrot.slane %v415_v28, 5  ;;  %v2205_v50 = vrot.slane %v2203_v31, 4  ;;  %v7019_v28 = vld [vmem:[%s6834_s27 + $0x5c] sm:$0x1] }
  0x45   : > { %v5427_v10 = vcombine.low %v2191_v32, %v2201_v33  ;;  %v403_v44 = vrot.slane %v402_v26, 4  ;;  %v2208_v51 = vrot.slane %v2206_v38, 5  ;;  %v2214_v53 = vrot.slane %v2212_v40, 5 }
  0x46   : > { %v2216_v54 = vshrl.u32 %v6982_v19, 16  ;;  %v413_v56 = vrot.slane %v412_v45, 4  ;;  %v2222_v57 = vshll.u32 %v6990_v35, 16  ;;  %v420_v60 = vshrl.u32 %v6994_v41, 16 }
  0x47   : > { %6193 = vmatprep.mubr.msk.bf16.mxu0 %vm709_vm4, %v5427_v10  ;;  %v408_v55 = vsel %vm6860_vm5, %v403_v44, %v407_v25  ;;  %v2209_v61 = vor.u32 %v2208_v51, %v2205_v50  ;;  %v423_v63 = vshll.u32 %v6994_v41, 16  ;;  %v429_v0 = vshll.u32 %v6997_v49, 16  ;;  %v7023_v10 = vld [vmem:[%s6834_s27 + $0x54] sm:$0xf]  ;;  %v7029_v51 = vld [vmem:[%s6834_s27 + $0x58] sm:$0xf] }
  0x48   : > { %v2218_v62 = vrot.slane %v2216_v54, 4  ;;  %v418_v6 = vsel %vm6860_vm5, %v413_v56, %v417_v48  ;;  %v2224_v11 = vrot.slane %v2222_v57, 5  ;;  %v422_v12 = vrot.slane %v420_v60, 4 }
  0x49   : > { %v433_v13 = vshrl.u32 %v6997_v49, 16  ;;  %v5201_v14 = vcombine.low %v408_v55, %v418_v6  ;;  %v2210_v15 = vrot.slane %v2209_v61, 4  ;;  %v425_v17 = vrot.slane %v423_v63, 5  ;;  %v263_v61 = vld [vmem:[%s6834_s27 + $0x5c] sm:$0x1] }
  0x4a   : > { %v2219_v16 = vor.u32 %v2218_v62, %v2214_v53  ;;  %v431_v18 = vrot.slane %v429_v0, 5  ;;  %v439_v23 = vshll.u32 %v262_v58, 16  ;;  %v2227_v24 = vshrl.u32 %v5392_v2, 16 }
  0x4b   : > { %v435_v22 = vrot.slane %v433_v13, 4  ;;  %6058 = vmatmul.mubr.msk.bf16.gmra.mrb[8].mxu1 %vm709_vm4, %v5201_v14  ;;  %v2215_v25 = vsel %vm6860_vm5, %v2210_v15, %v2214_v53  ;;  %v426_v27 = vor.u32 %v425_v17, %v422_v12  ;;  %v2230_v31 = vshll.u32 %v5392_v2, 16 }
  0x4c   : > { %v2220_v26 = vrot.slane %v2219_v16, 4  ;;  %v441_v33 = vrot.slane %v439_v23, 5  ;;  %v2229_v38 = vrot.slane %v2227_v24, 4  ;;  %v2236_v40 = vshll.u32 %v7013_v8, 16  ;;  %v7043_v16 = vld [vmem:[%s6834_s27 + $0x64] sm:$0xf] }
  0x4d   : > { %v436_v32 = vor.u32 %v435_v22, %v431_v18  ;;  %v427_v45 = vrot.slane %v426_v27, 4  ;;  %v2232_v48 = vrot.slane %v2230_v31, 5  ;;  %v2240_v50 = vshrl.u32 %v7013_v8, 16 }
  0x4e   : > { %v2225_v44 = vsel %vm6860_vm5, %v2220_v26, %v2224_v11  ;;  %v2238_v55 = vrot.slane %v2236_v40, 5  ;;  %v2246_v56 = vshll.u32 %v7019_v28, 16  ;;  %v444_v62 = vshrl.u32 %v7023_v10, 16  ;;  %v5395_v11 = vld [vmem:[%s6834_s27 + $0x60] sm:$0xf] }
  0x4f   : > { %v5428_v53 = vcombine.low %v2215_v25, %v2225_v44  ;;  %v437_v54 = vrot.slane %v436_v32, 4  ;;  %v432_v57 = vsel %vm6860_vm5, %v427_v45, %v431_v18  ;;  %v2233_v58 = vor.u32 %v2232_v48, %v2229_v38  ;;  %v7050_v26 = vld [vmem:[%s6834_s27 + $0x68] sm:$0x1]  ;;  %v7054_v44 = vld [vmem:[%s6834_s27 + $0x60] sm:$0xf] }
  0x50   : > { %v2242_v60 = vrot.slane %v2240_v50, 4  ;;  %v2248_v0 = vrot.slane %v2246_v56, 5  ;;  %v447_v2 = vshll.u32 %v7023_v10, 16  ;;  %v453_v6 = vshll.u32 %v7029_v51, 16 }
  0x51   : > { %6194 = vmatmul.mubr.msk.bf16.gmra.mrb[8].mxu0 %vm709_vm4, %v5428_v53  ;;  %v442_v63 = vsel %vm6860_vm5, %v437_v54, %v441_v33  ;;  %v2234_v13 = vrot.slane %v2233_v58, 4  ;;  %v446_v15 = vrot.slane %v444_v62, 4  ;;  %v457_v22 = vshrl.u32 %v7029_v51, 16  ;;  %v7060_v54 = vld [vmem:[%s6834_s27 + $0x64] sm:$0xf] }
  0x52   : > { %v5202_v12 = vcombine.low %v432_v57, %v442_v63  ;;  %v2243_v14 = vor.u32 %v2242_v60, %v2238_v55  ;;  %v449_v17 = vrot.slane %v447_v2, 5  ;;  %v455_v18 = vrot.slane %v453_v6, 5  ;;  %v264_v6 = vld [vmem:[%s6834_s27 + $0x68] sm:$0x1] }
  0x53   : > { %v463_v23 = vshll.u32 %v263_v61, 16  ;;  %v2239_v24 = vsel %vm6860_vm5, %v2234_v13, %v2238_v55  ;;  %v2251_v27 = vshrl.u32 %v5395_v11, 16  ;;  %v2254_v31 = vshll.u32 %v5395_v11, 16 }
  0x54   : > { %6061 = vmatprep.mubr.msk.bf16.mxu1 %vm709_vm4, %v5202_v12  ;;  %v2244_v25 = vrot.slane %v2243_v14, 4  ;;  %v450_v32 = vor.u32 %v449_v17, %v446_v15  ;;  %v459_v33 = vrot.slane %v457_v22, 4  ;;  %v2260_v40 = vshll.u32 %v7043_v16, 16  ;;  %v5455_v22 = vld [vmem:[%s6834_s27 + $0xc] sm:$0xe] }
  0x55   : > { %v465_v38 = vrot.slane %v463_v23, 5  ;;  %v2253_v48 = vrot.slane %v2251_v27, 4  ;;  %v2256_v50 = vrot.slane %v2254_v31, 5  ;;  %v2264_v53 = vshrl.u32 %v7043_v16, 16 }
  0x56   : > { %v2249_v45 = vsel %vm6860_vm5, %v2244_v25, %v2248_v0  ;;  %v451_v56 = vrot.slane %v450_v32, 4  ;;  %v460_v57 = vor.u32 %v459_v33, %v455_v18  ;;  %v2262_v58 = vrot.slane %v2260_v40, 5 }
  0x57   : > { %v5429_v55 = vcombine.low %v2239_v24, %v2249_v45  ;;  %v2257_v60 = vor.u32 %v2256_v50, %v2253_v48  ;;  %v2266_v61 = vrot.slane %v2264_v53, 4  ;;  %v2270_v62 = vshll.u32 %v7050_v26, 16 }
  0x58   : > { %v468_v63 = vshrl.u32 %v7054_v44, 16  ;;  %v456_v0 = vsel %vm6860_vm5, %v451_v56, %v455_v18  ;;  %v461_v2 = vrot.slane %v460_v57, 4  ;;  %v471_v11 = vshll.u32 %v7054_v44, 16  ;;  %v7075_v18 = vld [vmem:[%s6834_s27 + $0x6c] sm:$0xf] }
  0x59   : > { %6197 = vmatprep.mubr.msk.bf16.mxu0 %vm709_vm4, %v5429_v55  ;;  %v477_v12 = vshll.u32 %v7060_v54, 16  ;;  %v2258_v13 = vrot.slane %v2257_v60, 4  ;;  %v2267_v14 = vor.u32 %v2266_v61, %v2262_v58  ;;  %v2272_v15 = vrot.slane %v2270_v62, 5  ;;  %v7088_v55 = vld [vmem:[%s6834_s27 + $0x70] sm:$0xf] }
  0x5a   : > { %v470_v17 = vrot.slane %v468_v63, 4  ;;  %v466_v23 = vsel %vm6860_vm5, %v461_v2, %v465_v38  ;;  %v473_v24 = vrot.slane %v471_v11, 5  ;;  %v481_v27 = vshrl.u32 %v7060_v54, 16  ;;  %v265_v2 = vld [vmem:[%s6834_s27 + $0x74] sm:$0x1] }
  0x5b   : > { %v479_v25 = vrot.slane %v477_v12, 5  ;;  %v5203_v31 = vcombine.low %v456_v0, %v466_v23  ;;  %v2263_v32 = vsel %vm6860_vm5, %v2258_v13, %v2262_v58  ;;  %v2268_v33 = vrot.slane %v2267_v14, 4  ;;  %v266_v23 = vld [vmem:[%s6834_s27 + $0x80] sm:$0x1] }
  0x5c   : > { %v487_v40 = vshll.u32 %v264_v6, 16  ;;  %v474_v38 = vor.u32 %v473_v24, %v470_v17  ;;  %v483_v48 = vrot.slane %v481_v27, 4  ;;  %v5471_v50 = vrot.slane %v5455_v22, 9  ;;  %v5456_v6 = vld [vmem:[%s6834_s27 + $0x18] sm:$0xe] }
  0x5d   : > { %v2828_v53 = vrot.slane %v2826_v3, 4  ;;  %6062 = vmatmul.mubr.msk.bf16.gmra.mrb[12].mxu1 %vm709_vm4, %v5203_v31  ;;  %v2273_v56 = vsel %vm6860_vm5, %v2268_v33, %v2272_v15  ;;  %v492_v58 = vshrl.u32 %v7075_v18, 16  ;;  %v495_v60 = vshll.u32 %v7075_v18, 16  ;;  %v7107_v15 = vld [vmem:[%s6834_s27 + $0x78] sm:$0xf] }
  0x5e   : > { %v489_v57 = vrot.slane %v487_v40, 5  ;;  %v5430_v61 = vcombine.low %v2263_v32, %v2273_v56  ;;  %v475_v62 = vrot.slane %v474_v38, 4  ;;  %v484_v63 = vor.u32 %v483_v48, %v479_v25  ;;  %v5457_v38 = vld [vmem:[%s6834_s27 + $0x24] sm:$0xe] }
  0x5f   : > { %v2827_v0 = vsel %vm7081_vm8, %v5471_v50, %v2826_v3  ;;  %v2830_v11 = vsel %vm7081_vm8, %v2828_v53, %v2829_v5  ;;  %v494_v12 = vrot.slane %v492_v58, 4  ;;  %v497_v13 = vrot.slane %v495_v60, 5 }
  0x60   : > { %v501_v14 = vshll.u32 %v7088_v55, 16  ;;  %6198 = vmatmul.mubr.msk.bf16.gmra.mrb[12].mxu0 %vm709_vm4, %v5430_v61  ;;  %v480_v20 = vsel %vm6860_vm5, %v475_v62, %v479_v25  ;;  %v485_v3 = vrot.slane %v484_v63, 4  ;;  %v5488_v17 = vcombine.low %v2827_v0, %v2830_v11  ;;  %v7133_v61 = vld [vmem:[%s6834_s27 + $0x84] sm:$0xf] }
  0x61   : > { %v505_v22 = vshrl.u32 %v7088_v55, 16  ;;  %v498_v5 = vor.u32 %v497_v13, %v494_v12  ;;  %v511_v27 = vshll.u32 %v265_v2, 16  ;;  %v5472_v31 = vrot.slane %v5456_v6, 9 }
  0x62   : > { %v503_v24 = vrot.slane %v501_v14, 5  ;;  %v490_v32 = vsel %vm6860_vm5, %v485_v3, %v489_v57  ;;  %6219 = vmatprep.mubr.msk.bf16.mxu0 %vm709_vm4, %v5488_v17  ;;  %v2837_v25 = vsel %vm7081_vm8, %v6902_v36, %v2836_v34  ;;  %v516_v40 = vshrl.u32 %v7107_v15, 16 }
  0x63   : > { %v507_v33 = vrot.slane %v505_v22, 4  ;;  %v5204_v48 = vcombine.low %v480_v20, %v490_v32  ;;  %v499_v50 = vrot.slane %v498_v5, 4  ;;  %v513_v53 = vrot.slane %v511_v27, 5  ;;  %v267_v20 = vld [vmem:[%s6834_s27 + $0x8c] sm:$0x1] }
  0x64   : > { %v2834_v56 = vsel %vm7081_vm8, %v5472_v31, %v2833_v29  ;;  %v518_v60 = vrot.slane %v516_v40, 4  ;;  %v519_v9 = vshll.u32 %v7107_v15, 16  ;;  %v525_v36 = vshll.u32 %v7114_v21, 16  ;;  %v7141_v29 = vld [vmem:[%s6834_s27 + $0x88] sm:$0xf] }
  0x65   : > { %v508_v57 = vor.u32 %v507_v33, %v503_v24  ;;  %v5489_v58 = vcombine.low %v2834_v56, %v2837_v25  ;;  %6065 = vmatprep.mubr.msk.bf16.mxu1 %vm709_vm4, %v5204_v48  ;;  %v504_v34 = vsel %vm6860_vm5, %v499_v50, %v503_v24  ;;  %v529_v1 = vshrl.u32 %v7114_v21, 16  ;;  %v5458_v5 = vld [vmem:[%s6834_s27 + $0x30] sm:$0xe] }
  0x66   : > { %v535_v62 = vshll.u32 %v266_v23, 16  ;;  %v521_v0 = vrot.slane %v519_v9, 5  ;;  %v5473_v2 = vrot.slane %v5457_v38, 9  ;;  %v2840_v6 = vrot.slane %v6909_v52, 5  ;;  %v7160_v40 = vld [vmem:[%s6834_s27 + $0x90] sm:$0xf] }
  0x67   : > { %v509_v63 = vrot.slane %v508_v57, 4  ;;  %v527_v11 = vrot.slane %v525_v36, 5  ;;  %v531_v12 = vrot.slane %v529_v1, 4  ;;  %v2843_v14 = vrot.slane %v6915_v59, 5  ;;  %v7170_v1 = vld [vmem:[%s6834_s27 + $0x94] sm:$0xf] }
  0x68   : > { %v537_v13 = vrot.slane %v535_v62, 5  ;;  %6220 = vmatmul.mubr.msk.bf16.vlgmr.msra.gmra.mrb[0].mxu0 %vm709_vm4, %v5489_v58  ;;  %v522_v17 = vor.u32 %v521_v0, %v518_v60  ;;  %v2841_v22 = vsel %vm7081_vm8, %v5473_v2, %v2840_v6  ;;  %v2842_v23 = vrot.slane %v2840_v6, 4  ;;  %v268_v62 = vld [vmem:[%s6834_s27 + $0x98] sm:$0x1] }
  0x69   : > { %v514_v3 = vsel %vm6860_vm5, %v509_v63, %v513_v53  ;;  %6252 = vmatpush3.bf16.msra.mxu0 %v6866_v42  ;;  %v532_v52 = vor.u32 %v531_v12, %v527_v11  ;;  %v540_v27 = vshrl.u32 %v7133_v61, 16  ;;  %v543_v59 = vshll.u32 %v7133_v61, 16 }
  0x6a   : > { %v5205_v24 = vcombine.low %v504_v34, %v514_v3  ;;  %v523_v31 = vrot.slane %v522_v17, 4  ;;  %v2844_v32 = vsel %vm7081_vm8, %v2842_v23, %v2843_v14  ;;  %v549_v33 = vshll.u32 %v7141_v29, 16  ;;  %v7179_v3 = vld [vmem:[%s6834_s27 + $0x9c] sm:$0xf] }
  0x6b   : > { %v553_v25 = vshrl.u32 %v7141_v29, 16  ;;  %v533_v42 = vrot.slane %v532_v52, 4  ;;  %v5490_v38 = vcombine.low %v2841_v22, %v2844_v32  ;;  %v542_v48 = vrot.slane %v540_v27, 4  ;;  %v7190_v27 = vld [vmem:[%s6834_s27 + $0xa0] sm:$0xf] }
  0x6c   : > { %6066 = vmatmul.mubr.msk.bf16.gmra.mrb[16].mxu1 %vm709_vm4, %v5205_v24  ;;  %v545_v50 = vrot.slane %v543_v59, 5  ;;  %v528_v53 = vsel %vm6860_vm5, %v523_v31, %v527_v11  ;;  %v551_v56 = vrot.slane %v549_v33, 5  ;;  %v559_v58 = vshll.u32 %v267_v20, 16  ;;  %v5459_v11 = vld [vmem:[%s6834_s27 + $0x3c] sm:$0xe] }
  0x6d   : > { %v555_v57 = vrot.slane %v553_v25, 4  ;;  %v538_v60 = vsel %vm6860_vm5, %v533_v42, %v537_v13  ;;  %6223 = vmatprep.mubr.msk.bf16.mxu0 %vm709_vm4, %v5490_v38  ;;  %v5474_v34 = vrot.slane %v5458_v5, 9  ;;  %v2847_v36 = vrot.slane %v6935_v39, 5 }
  0x6e   : > { %v546_v9 = vor.u32 %v545_v50, %v542_v48  ;;  %v5206_v63 = vcombine.low %v528_v53, %v538_v60  ;;  %v561_v2 = vrot.slane %v559_v58, 5  ;;  %v2850_v6 = vrot.slane %v6942_v47, 5  ;;  %v269_v50 = vld [vmem:[%s6834_s27 + $0xa4] sm:$0x1]  ;;  %v5460_v53 = vld [vmem:[%s6834_s27 + $0x48] sm:$0xe] }
  0x6f   : > { %v556_v0 = vor.u32 %v555_v57, %v551_v56  ;;  %v2848_v13 = vsel %vm7081_vm8, %v5474_v34, %v2847_v36  ;;  %v2849_v14 = vrot.slane %v2847_v36, 4  ;;  %v564_v20 = vshrl.u32 %v7160_v40, 16 }
  0x70   : > { %v547_v12 = vrot.slane %v546_v9, 4  ;;  %6069 = vmatprep.mubr.msk.bf16.mxu1 %vm709_vm4, %v5206_v63  ;;  %v567_v17 = vshll.u32 %v7160_v40, 16  ;;  %v573_v22 = vshll.u32 %v7170_v1, 16  ;;  %v577_v47 = vshrl.u32 %v7170_v1, 16 }
  0x71   : > { %v557_v39 = vrot.slane %v556_v0, 4  ;;  %v2851_v5 = vsel %vm7081_vm8, %v2849_v14, %v2850_v6  ;;  %v566_v24 = vrot.slane %v564_v20, 4  ;;  %v583_v52 = vshll.u32 %v268_v62, 16 }
  0x72   : > { %v552_v23 = vsel %vm6860_vm5, %v547_v12, %v551_v56  ;;  %v5491_v31 = vcombine.low %v2848_v13, %v2851_v5  ;;  %v569_v32 = vrot.slane %v567_v17, 5  ;;  %v575_v33 = vrot.slane %v573_v22, 5  ;;  %v7211_v17 = vld [vmem:[%s6834_s27 + $0xa8] sm:$0xf] }
  0x73   : > { %v562_v59 = vsel %vm6860_vm5, %v557_v39, %v561_v2  ;;  %v579_v42 = vrot.slane %v577_v47, 4  ;;  %v585_v38 = vrot.slane %v583_v52, 5  ;;  %v5475_v48 = vrot.slane %v5459_v11, 9 }
  0x74   : > { %v5207_v25 = vcombine.low %v552_v23, %v562_v59  ;;  %6224 = vmatmul.mubr.msk.bf16.gmra.mrb[4].mxu0 %vm709_vm4, %v5491_v31  ;;  %v570_v56 = vor.u32 %v569_v32, %v566_v24  ;;  %v2854_v57 = vrot.slane %v6959_v30, 5  ;;  %v2857_v58 = vrot.slane %v6964_v43, 5  ;;  %v7216_v24 = vld [vmem:[%s6834_s27 + $0xac] sm:$0xf] }
  0x75   : > { %v588_v60 = vshrl.u32 %v7179_v3, 16  ;;  %v580_v9 = vor.u32 %v579_v42, %v575_v33  ;;  %v591_v34 = vshll.u32 %v7179_v3, 16  ;;  %v597_v36 = vshll.u32 %v7190_v27, 16 }
  0x76   : > { %6070 = vmatmul.mubr.msk.bf16.gmra.mrb[20].mxu1 %vm709_vm4, %v5207_v25  ;;  %v601_v62 = vshrl.u32 %v7190_v27, 16  ;;  %v571_v63 = vrot.slane %v570_v56, 4  ;;  %v2855_v0 = vsel %vm7081_vm8, %v5475_v48, %v2854_v57  ;;  %v2856_v30 = vrot.slane %v2854_v57, 4  ;;  %v5461_v25 = vld [vmem:[%s6834_s27 + $0x54] sm:$0xe] }
  0x77   : > { %v590_v2 = vrot.slane %v588_v60, 4  ;;  %v581_v43 = vrot.slane %v580_v9, 4  ;;  %v593_v6 = vrot.slane %v591_v34, 5  ;;  %v599_v11 = vrot.slane %v597_v36, 5  ;;  %v7231_v57 = vld [vmem:[%s6834_s27 + $0xb4] sm:$0xf] }
  0x78   : > { %v603_v12 = vrot.slane %v601_v62, 4  ;;  %v576_v13 = vsel %vm6860_vm5, %v571_v63, %v575_v33  ;;  %v2858_v14 = vsel %vm7081_vm8, %v2856_v30, %v2857_v58  ;;  %v607_v20 = vshll.u32 %v269_v50, 16  ;;  %v270_v33 = vld [vmem:[%s6834_s27 + $0xb0] sm:$0x1]  ;;  %v7240_v30 = vld [vmem:[%s6834_s27 + $0xb8] sm:$0xf] }
  0x79   : > { %v5476_v39 = vrot.slane %v5460_v53, 9  ;;  %v586_v22 = vsel %vm6860_vm5, %v581_v43, %v585_v38  ;;  %v5492_v47 = vcombine.low %v2855_v0, %v2858_v14  ;;  %v594_v23 = vor.u32 %v593_v6, %v590_v2 }
  0x7a   : > { %v604_v5 = vor.u32 %v603_v12, %v599_v11  ;;  %v5208_v52 = vcombine.low %v576_v13, %v586_v22  ;;  %v609_v59 = vrot.slane %v607_v20, 5  ;;  %v2861_v31 = vrot.slane %v6982_v19, 5  ;;  %v7246_v20 = vld [vmem:[%s6834_s27 + $0xbc] sm:$0x1] }
  0x7b   : > { %v2864_v32 = vrot.slane %v6990_v35, 5  ;;  %6227 = vmatprep.mubr.msk.bf16.mxu0 %vm709_vm4, %v5492_v47  ;;  %v595_v42 = vrot.slane %v594_v23, 4  ;;  %v612_v38 = vshrl.u32 %v7211_v17, 16  ;;  %v615_v50 = vshll.u32 %v7211_v17, 16 }
  0x7c   : > { %v605_v48 = vrot.slane %v604_v5, 4  ;;  %6073 = vmatprep.mubr.msk.bf16.mxu1 %vm709_vm4, %v5208_v52  ;;  %v2862_v53 = vsel %vm7081_vm8, %v5476_v39, %v2861_v31  ;;  %v2863_v56 = vrot.slane %v2861_v31, 4  ;;  %v621_v19 = vshll.u32 %v7216_v24, 16  ;;  %v5462_v52 = vld [vmem:[%s6834_s27 + $0x60] sm:$0xe] }
  0x7d   : > { %v625_v35 = vshrl.u32 %v7216_v24, 16  ;;  %v600_v58 = vsel %vm6860_vm5, %v595_v42, %v599_v11  ;;  %v614_v9 = vrot.slane %v612_v38, 4  ;;  %v617_v34 = vrot.slane %v615_v50, 5 }
  0x7e   : > { %v610_v60 = vsel %vm6860_vm5, %v605_v48, %v609_v59  ;;  %v2865_v62 = vsel %vm7081_vm8, %v2863_v56, %v2864_v32  ;;  %v623_v63 = vrot.slane %v621_v19, 5  ;;  %v631_v6 = vshll.u32 %v270_v33, 16  ;;  %v5463_v48 = vld [vmem:[%s6834_s27 + $0x6c] sm:$0xe]  ;;  %v5399_v19 = vld [vmem:[%s6834_s27 + $0x70] sm:$0xf] }
  0x7f   : > { %v5209_v36 = vcombine.low %v600_v58, %v610_v60  ;;  %v627_v0 = vrot.slane %v625_v35, 4  ;;  %v5493_v2 = vcombine.low %v2862_v53, %v2865_v62  ;;  %v618_v43 = vor.u32 %v617_v34, %v614_v9  ;;  %v5400_v35 = vld [vmem:[%s6834_s27 + $0x74] sm:$0x1] }
  0x80   : > { %v5477_v12 = vrot.slane %v5461_v25, 9  ;;  %v2868_v13 = vrot.slane %v7013_v8, 5  ;;  %v2871_v14 = vrot.slane %v7019_v28, 5  ;;  %v636_v39 = vshrl.u32 %v7231_v57, 16 }
  0x81   : > { %6074 = vmatmul.mubr.msk.bf16.gmra.mrb[24].mxu1 %vm709_vm4, %v5209_v36  ;;  %v628_v11 = vor.u32 %v627_v0, %v623_v63  ;;  %6228 = vmatmul.mubr.msk.bf16.gmra.mrb[8].mxu0 %vm709_vm4, %v5493_v2  ;;  %v619_v22 = vrot.slane %v618_v43, 4  ;;  %v633_v47 = vrot.slane %v631_v6, 5  ;;  %v639_v23 = vshll.u32 %v7231_v57, 16 }
  0x82   : > { %v645_v5 = vshll.u32 %v7240_v30, 16  ;;  %v2869_v8 = vsel %vm7081_vm8, %v5477_v12, %v2868_v13  ;;  %v2870_v28 = vrot.slane %v2868_v13, 4  ;;  %v638_v31 = vrot.slane %v636_v39, 4  ;;  %v5464_v13 = vld [vmem:[%s6834_s27 + $0x78] sm:$0xe] }
  0x83   : > { %v629_v59 = vrot.slane %v628_v11, 4  ;;  %v624_v32 = vsel %vm6860_vm5, %v619_v22, %v623_v63  ;;  %v641_v33 = vrot.slane %v639_v23, 5  ;;  %v649_v42 = vshrl.u32 %v7240_v30, 16  ;;  %v6685_v23 = vld [vmem:[%s6834_s27] sm:$0xf] }
  0x84   : > { %v647_v25 = vrot.slane %v645_v5, 5  ;;  %v2872_v50 = vsel %vm7081_vm8, %v2870_v28, %v2871_v14  ;;  %v655_v53 = vshll.u32 %v7246_v20, 16  ;;  %v5478_v56 = vrot.slane %v5462_v52, 9  ;;  %v7281_v5 = vld [vmem:[%s6834_s27 + $0x4] sm:$0xf] }
  0x85   : > { %v634_v38 = vsel %vm6860_vm5, %v629_v59, %v633_v47  ;;  %v5494_v60 = vcombine.low %v2869_v8, %v2872_v50  ;;  %v642_v9 = vor.u32 %v641_v33, %v638_v31  ;;  %v651_v34 = vrot.slane %v649_v42, 4  ;;  %v7285_v59 = vld [vmem:[%s6834_s27 + $0x7c] sm:$0xf]  ;;  %v7288_v8 = vld [vmem:[%s6834_s27 + $0x80] sm:$0x1] }
  0x86   : > { %v5210_v58 = vcombine.low %v624_v32, %v634_v38  ;;  %v657_v36 = vrot.slane %v655_v53, 5  ;;  %v2875_v62 = vrot.slane %v7043_v16, 5  ;;  %v2878_v63 = vrot.slane %v7050_v26, 5  ;;  %v5465_v28 = vld [vmem:[%s6834_s27 + $0x84] sm:$0xe] }
  0x87   : > { %v5479_v0 = vrot.slane %v5463_v48, 9  ;;  %6231 = vmatprep.mubr.msk.bf16.mxu0 %vm709_vm4, %v5494_v60  ;;  %v643_v2 = vrot.slane %v642_v9, 4  ;;  %v652_v43 = vor.u32 %v651_v34, %v647_v25  ;;  %v2882_v6 = vrot.slane %v5399_v19, 5  ;;  %v5405_v42 = vld [vmem:[%s6834_s27 + $0x88] sm:$0xf] }
  0x88   : > { %6077 = vmatprep.mubr.msk.bf16.mxu1 %vm709_vm4, %v5210_v58  ;;  %v2885_v12 = vrot.slane %v5400_v35, 5  ;;  %v2876_v11 = vsel %vm7081_vm8, %v5478_v56, %v2875_v62  ;;  %v2877_v16 = vrot.slane %v2875_v62, 4  ;;  %v5228_v52 = vcombine.low %v6685_v23, %v7281_v5  ;;  %v5406_v48 = vld [vmem:[%s6834_s27 + $0x8c] sm:$0x1]  ;;  %v5408_v53 = vld [vmem:[%s6834_s27 + $0x94] sm:$0xf] }
  0x89   : > { %v648_v26 = vsel %vm6860_vm5, %v643_v2, %v647_v25  ;;  %v653_v14 = vrot.slane %v652_v43, 4  ;;  %v2883_v39 = vsel %vm7081_vm8, %v5479_v0, %v2882_v6  ;;  %v2884_v22 = vrot.slane %v2882_v6, 4  ;;  %v5409_v9 = vld [vmem:[%s6834_s27 + $0x98] sm:$0x1]  ;;  %v5466_v34 = vld [vmem:[%s6834_s27 + $0x90] sm:$0xe] }
  0x8a   : > { %v2879_v47 = vsel %vm7081_vm8, %v2877_v16, %v2878_v63  ;;  %v5480_v25 = vrot.slane %v5464_v13, 9  ;;  %v2889_v56 = vrot.slane %v7285_v59, 5  ;;  %v2892_v19 = vrot.slane %v7288_v8, 5  ;;  %v5411_v0 = vld [vmem:[%s6834_s27 + $0xa0] sm:$0xf] }
  0x8b   : > { %v658_v31 = vsel %vm6860_vm5, %v653_v14, %v657_v36  ;;  %v5495_v32 = vcombine.low %v2876_v11, %v2879_v47  ;;  %v2886_v33 = vsel %vm7081_vm8, %v2884_v22, %v2885_v12  ;;  %v5481_v35 = vrot.slane %v5465_v28, 9  ;;  %v5412_v6 = vld [vmem:[%s6834_s27 + $0xa4] sm:$0x1]  ;;  %v5467_v12 = vld [vmem:[%s6834_s27 + $0x9c] sm:$0xe] }
  0x8c   : > { %v5211_v38 = vcombine.low %v648_v26, %v658_v31  ;;  %v5496_v50 = vcombine.low %v2883_v39, %v2886_v33  ;;  %v2896_v58 = vrot.slane %v5405_v42, 5  ;;  %v2899_v60 = vrot.slane %v5406_v48, 5  ;;  %v6687_v11 = vld [vmem:[%s6834_s27 + $0xc] sm:$0xf]  ;;  %v7315_v16 = vld [vmem:[%s6834_s27 + $0x10] sm:$0xf] }
  0x8d   : > { %6232 = vmatmul.mubr.msk.bf16.gmra.mrb[12].mxu0 %vm709_vm4, %v5495_v32  ;;  %v2890_v36 = vsel %vm7081_vm8, %v5480_v25, %v2889_v56  ;;  %v2891_v62 = vrot.slane %v2889_v56, 4  ;;  %v2903_v63 = vrot.slane %v5408_v53, 5  ;;  %v5229_v13 = vcombine.low %v6687_v11, %v7315_v16  ;;  %v6689_v28 = vld [vmem:[%s6834_s27 + $0x18] sm:$0xf]  ;;  %v7324_v31 = vld [vmem:[%s6834_s27 + $0x1c] sm:$0xf] }
  0x8e   : > { %6078 = vmatmul.mubr.msk.bf16.gmra.mrb[28].mxu1 %vm709_vm4, %v5211_v38  ;;  %6235 = vmatprep.mubr.msk.bf16.mxu0 %vm709_vm4, %v5496_v50  ;;  %v2897_v2 = vsel %vm7081_vm8, %v5481_v35, %v2896_v58  ;;  %v2898_v43 = vrot.slane %v2896_v58, 4  ;;  %v5482_v14 = vrot.slane %v5466_v34, 9  ;;  %v2906_v39 = vrot.slane %v5409_v9, 5  ;;  %v5414_v48 = vld [vmem:[%s6834_s27 + $0xac] sm:$0xf] }
  0x8f   : > { %6083 = vmatprep.mubr.msk.bf16.mxu1 %vm709_vm4, %v5228_v52  ;;  %v2893_v26 = vsel %vm7081_vm8, %v2891_v62, %v2892_v19  ;;  %v2905_v23 = vrot.slane %v2903_v63, 4  ;;  %v2910_v52 = vrot.slane %v5411_v0, 5  ;;  %v5230_v32 = vcombine.low %v6689_v28, %v7324_v31  ;;  %v5417_v50 = vld [vmem:[%s6834_s27 + $0xb8] sm:$0xf]  ;;  %v5415_v53 = vld [vmem:[%s6834_s27 + $0xb0] sm:$0x1] }
  0x90   : > { %v5497_v22 = vcombine.low %v2890_v36, %v2893_v26  ;;  %v2900_v47 = vsel %vm7081_vm8, %v2898_v43, %v2899_v60  ;;  %v5483_v25 = vrot.slane %v5467_v12, 9  ;;  %v2913_v42 = vrot.slane %v5412_v6, 5  ;;  %v5468_v56 = vld [vmem:[%s6834_s27 + $0xa8] sm:$0xe]  ;;  %v5633_v60 = vld [vmem:[%s8616_s1 + $0xe] sm:$0x3] }
  0x91   : > { %v5498_v33 = vcombine.low %v2897_v2, %v2900_v47  ;;  %v2912_v38 = vrot.slane %v2910_v52, 4  ;;  %v2904_v19 = vsel %vm7081_vm8, %v5482_v14, %v2903_v63  ;;  %v2907_v35 = vsel %vm7081_vm8, %v2905_v23, %v2906_v39  ;;  %v5469_v36 = vld [vmem:[%s6834_s27 + $0xb4] sm:$0xe]  ;;  %v5418_v63 = vld [vmem:[%s6834_s27 + $0xbc] sm:$0x1] }
  0x92   : > { %v2917_v58 = vrot.slane %v5414_v48, 5  ;;  %v2911_v9 = vsel %vm7081_vm8, %v5483_v25, %v2910_v52  ;;  %v2924_v62 = vrot.slane %v5417_v50, 5  ;;  %v6691_v0 = vld [vmem:[%s6834_s27 + $0x24] sm:$0xf]  ;;  %v7351_v2 = vld [vmem:[%s6834_s27 + $0x28] sm:$0xf]  ;;  %v5499_v6 = vcombine.low %v2904_v19, %v2907_v35 }
  0x93   : > { %v2914_v34 = vsel %vm7081_vm8, %v2912_v38, %v2913_v42  ;;  %v5231_v43 = vcombine.low %v6691_v0, %v7351_v2  ;;  %v5420_v12 = vld [vmem:[%s6834_s27 + $0xc4] sm:$0xf]  ;;  %v7356_v11 = vand.u32 %v5633_v60, %v6808_v4  ;;  %v2920_v14 = vrot.slane %v5415_v53, 5  ;;  %v6693_v47 = vld [vmem:[%s6834_s27 + $0x30] sm:$0xf] }
  0x94   : > { %v2919_v26 = vrot.slane %v2917_v58, 4  ;;  %v5485_v39 = vrot.slane %v5469_v36, 9  ;;  %v7363_v23 = vld [vmem:[%s6834_s27 + $0x34] sm:$0xf]  ;;  %v2926_v28 = vrot.slane %v2924_v62, 4  ;;  %v2931_v48 = vrot.slane %v5420_v12, 5 }
  0x95   : > { %6236 = vmatmul.mubr.msk.bf16.gmra.mrb[16].mxu0 %vm709_vm4, %v5497_v22  ;;  %v5341_v22 = vld [vmem:[%s8616_s1 + $0x6] sm:$0x3]  ;;  %v5232_v52 = vcombine.low %v6693_v47, %v7363_v23  ;;  %6285 = vmatprep.subr.bf16.mxu0 %v7356_v11  ;;  %v5421_v53 = vld [vmem:[%s6834_s27 + $0xc8] sm:$0x1]  ;;  %v6695_v19 = vld [vmem:[%s6834_s27 + $0x3c] sm:$0xf] }
  0x96   : > { %6084 = vmatmul.mubr.msk.bf16.vlgmr.msra.gmra.mrb[0].mxu1 %vm709_vm4, %v5229_v13  ;;  %6239 = vmatprep.mubr.msk.bf16.mxu0 %vm709_vm4, %v5498_v33  ;;  %v5500_v13 = vcombine.low %v2911_v9, %v2914_v34  ;;  %v7369_v33 = vand.u32 %v5341_v22, %v6808_v4  ;;  %v2921_v42 = vsel %vm7081_vm8, %v2919_v26, %v2920_v14  ;;  %v7387_v35 = vld [vmem:[%s6834_s27 + $0x40] sm:$0xf]  ;;  %v2933_v36 = vrot.slane %v2931_v48, 4  ;;  %v6646_v12 = vld [vmem:[%s6834_s27 + $0x18] sm:$0xff]   ;;  %v6697_v47 = vld [vmem:[%s6834_s27 + $0x8] sm:$0x1] }
  0x97   : > { %6116 = vmatpush3.bf16.msra.mxu1 %v6869_v46  ;;  %6087 = vmatprep.mubr.msk.bf16.mxu1 %vm709_vm4, %v5230_v32  ;;  %v5484_v46 = vrot.slane %v5468_v56, 9  ;;  %v2927_v32 = vrot.slane %v5418_v63, 5  ;;  %v2925_v38 = vsel %vm7081_vm8, %v5485_v39, %v2924_v62  ;;  %v5470_v56 = vld [vmem:[%s6834_s27 + $0xc0] sm:$0xe]  ;;  %v2934_v63 = vrot.slane %v5421_v53, 5 }
  0x98   : > { %6149 = vmatprep.subr.bf16.mxu1 %v7369_v33  ;;  %v5486_v34 = vrot.slane %v5470_v56, 9  ;;  %v5234_v62 = vcombine.low %v6994_v41, %v6997_v49  ;;  %v2312_v41 = vshrl.u32 %v7285_v59, 16  ;;  %v5236_v26 = vcombine.low %v7054_v44, %v7060_v54  ;;  %v1218_v22 = vld [vmem:[%s6834_s27] sm:$0xe]  ;;  %v6698_v44 = vld [vmem:[%s6834_s27 + $0x14] sm:$0x1] }
  0x99   : > { %v2918_v25 = vsel %vm7081_vm8, %v5484_v46, %v2917_v58  ;;  %v2928_v50 = vsel %vm7081_vm8, %v2926_v28, %v2927_v32  ;;  %v5233_v58 = vcombine.low %v6695_v19, %v7387_v35  ;;  %v5235_v46 = vcombine.low %v7023_v10, %v7029_v51  ;;  %v1220_v51 = vld [vmem:[%s6834_s27 + $0x18] sm:$0xe]  ;;  %v1222_v53 = vld [vmem:[%s6834_s27 + $0x30] sm:$0xe] }
  0x9a   : > { %v5501_v60 = vcombine.low %v2918_v25, %v2921_v42  ;;  %v5502_v9 = vcombine.low %v2925_v38, %v2928_v50  ;;  %v2932_v0 = vsel %vm7081_vm8, %v5486_v34, %v2931_v48  ;;  %v2314_v39 = vrot.slane %v2312_v41, 4  ;;  %v1221_v25 = vld [vmem:[%s6834_s27 + $0x24] sm:$0xe]  ;;  %v6650_v56 = vld [vmem:[%s6834_s27 + $0x30] sm:$0xff]  }
  0x9b   : > { %v1271_v10 = vrot.slane %v7281_v5, 5  ;;  %v1281_v54 = vrot.slane %v6698_v44, 5  ;;  %v5260_v28 = vrot.slane %v1218_v22, 9  ;;  %v1285_v32 = vrot.slane %v7324_v31, 5  ;;  %v6648_v38 = vld [vmem:[%s6834_s27 + $0x24] sm:$0xff]  }
  0x9c   : > { %v5237_v48 = vcombine.low %v7075_v18, %v7088_v55  ;;  %v1292_v50 = vrot.slane %v7351_v2, 5  ;;  %v5239_v31 = vcombine.low %v7133_v61, %v7141_v29  ;;  %v5698_v18 = vld [vmem:[%s8616_s1 + $0x10] sm:$0x3]  ;;  %v5262_v2 = vrot.slane %v1220_v51, 9  ;;  %v6702_v22 = vld [vmem:[%s6834_s27 + $0x4c] sm:$0xf] }
  0x9d   : > { %6240 = vmatmul.mubr.msk.bf16.gmra.mrb[20].mxu0 %vm709_vm4, %v5499_v6  ;;  %v2308_v6 = vshll.u32 %v7285_v59, 16  ;;  %v1219_v59 = vld [vmem:[%s6834_s27 + $0xc] sm:$0xe]  ;;  %v1273_v55 = vrot.slane %v1271_v10, 4  ;;  %v5263_v34 = vrot.slane %v1221_v25, 9  ;;  %v6652_v25 = vld [vmem:[%s6834_s27 + $0x3c] sm:$0xff]  }
  0x9e   : > { %6088 = vmatmul.mubr.msk.bf16.gmra.mrb[4].mxu1 %vm709_vm4, %v5231_v43  ;;  %6243 = vmatprep.mubr.msk.bf16.mxu0 %vm709_vm4, %v5500_v13  ;;  %v2935_v43 = vsel %vm7081_vm8, %v2933_v36, %v2934_v63  ;;  %v1278_v13 = vrot.slane %v7315_v16, 5  ;;  %v2318_v16 = vshll.u32 %v7288_v8, 16  ;;  %v5261_v5 = vrot.slane %v1219_v59, 9  ;;  %v1223_v63 = vld [vmem:[%s6834_s27 + $0x3c] sm:$0xe] }
  0x9f   : > { %6091 = vmatprep.mubr.msk.bf16.mxu1 %vm709_vm4, %v5232_v52  ;;  %v5503_v49 = vcombine.low %v2932_v0, %v2935_v43  ;;  %v7408_v14 = vrot.slane %v2308_v6, 5  ;;  %v1274_v52 = vrot.slane %v6697_v47, 5  ;;  %v5238_v8 = vcombine.low %v7107_v15, %v7114_v21  ;;  %v6700_v6 = vld [vmem:[%s6834_s27 + $0x2c] sm:$0x1]  ;;  %v6708_v61 = vld [vmem:[%s6834_s27 + $0x68] sm:$0x1] }
  0xa0   : > { %v1280_v19 = vrot.slane %v1278_v13, 4  ;;  %v5240_v15 = vcombine.low %v7160_v40, %v7170_v1  ;;  %v7443_v21 = vsel %vm7081_vm8, %v5260_v28, %v1271_v10  ;;  %v1287_v36 = vrot.slane %v1285_v32, 4 }
  0xa1   : > { %8640 = vst [vmem:[#allocation3_spill] sm:$0xff] %v7408_v14  ;;  %v2315_v42 = vor.u32 %v2314_v39, %v7408_v14  ;;  %v7449_v0 = vsel %vm7081_vm8, %v5261_v5, %v1278_v13  ;;  %v1294_v43 = vrot.slane %v1292_v50, 4  ;;  %v1295_v41 = vrot.slane %v6700_v6, 5  ;;  %v6704_v5 = vld [vmem:[%s6834_s27 + $0x50] sm:$0x1] }
  0xa2   : > { %v1306_v39 = vrot.slane %v7387_v35, 5  ;;  %v1313_v59 = vrot.slane %v6702_v22, 5  ;;  %v7459_v47 = vrot.slane %v2318_v16, 5  ;;  %v7469_v13 = vsel %vm7081_vm8, %v1280_v19, %v1281_v54  ;;  %v6703_v16 = vld [vmem:[%s6834_s27 + $0x44] sm:$0x1] }
  0xa3   : > { %v7473_v35 = vsel %vm7081_vm8, %v5262_v2, %v1285_v32  ;;  %v7475_v10 = vrot.slane %v2315_v42, 4  ;;  %v7493_v44 = vsel %vm7081_vm8, %v1294_v43, %v1295_v41  ;;  %v5265_v54 = vrot.slane %v1223_v63, 9 }
  0xa4   : > { %8641 = vst [vmem:[#allocation4_spill] sm:$0xff] %v7459_v47  ;;  %v1309_v28 = vrot.slane %v6703_v16, 5  ;;  %v1330_v29 = vrot.slane %v6708_v61, 5  ;;  %v6658_v61 = vld [vmem:[%s6834_s27 + $0x60] sm:$0xff]  }
  0xa5   : > { %6244 = vmatmul.mubr.msk.bf16.gmra.mrb[24].mxu0 %vm709_vm4, %v5501_v60  ;;  %v6699_v60 = vld [vmem:[%s6834_s27 + $0x20] sm:$0x1]  ;;  %8642 = vst [vmem:[#allocation5_spill] sm:$0xff] %v7475_v10  ;;  %v7527_v6 = vsel %vm7081_vm8, %v5265_v54, %v1306_v39  ;;  %v5588_v54 = vld [vmem:[%s6834_s27 + $0x24] sm:$0xf] }
  0xa6   : > { %6092 = vmatmul.mubr.msk.bf16.gmra.mrb[8].mxu1 %vm709_vm4, %v5233_v58  ;;  %6247 = vmatprep.mubr.msk.bf16.mxu0 %vm709_vm4, %v5502_v9  ;;  %v1299_v58 = vrot.slane %v7363_v23, 5  ;;  %v1288_v9 = vrot.slane %v6699_v60, 5  ;;  %v5264_v23 = vrot.slane %v1222_v53, 9  ;;  %v6654_v53 = vld [vmem:[%s6834_s27 + $0x48] sm:$0xff]   ;;  %v3665_v40 = vshll.u32 %v5588_v54, 16 }
  0xa7   : > { %6095 = vmatprep.mubr.msk.bf16.mxu1 %vm709_vm4, %v5234_v62  ;;  %v1224_v62 = vld [vmem:[%s6834_s27 + $0x48] sm:$0xe]  ;;  %v1229_v10 = vld [vmem:[%s6834_s27 + $0x84] sm:$0xe] }
  0xa8   : > { %v7489_v51 = vsel %vm7081_vm8, %v5264_v23, %v1299_v58  ;;  %v5266_v32 = vrot.slane %v1224_v62, 9  ;;  %v6706_v23 = vld [vmem:[%s6834_s27 + $0x64] sm:$0xf]  ;;  %v6709_v62 = vld [vmem:[%s6834_s27 + $0x70] sm:$0xf] }
  0xa9   : > { %v1327_v63 = vrot.slane %v6706_v23, 5 }
  0xaa   : > { %v7531_v41 = vsel %vm7081_vm8, %v5266_v32, %v1313_v59 }
  0xad   : > { %6248 = vmatmul.mubr.msk.bf16.gmra.mrb[28].mxu0 %vm709_vm4, %v5503_v49  ;;  %v7453_v49 = vand.u32 %v5698_v18, %v6808_v4  ;;  %v7465_v4 = vsel %vm7081_vm8, %v1273_v55, %v1274_v52  ;;  %v7485_v52 = vsel %vm7081_vm8, %v5263_v34, %v1292_v50  ;;  %v1316_v50 = vrot.slane %v6704_v5, 5  ;;  %v5585_v55 = vld [vmem:[%s6834_s27 + $0x18] sm:$0xf]  ;;  %v1225_v34 = vld [vmem:[%s6834_s27 + $0x54] sm:$0xe] }
  0xae   : > { %6096 = vmatmul.mubr.msk.bf16.gmra.mrb[12].mxu1 %vm709_vm4, %v5235_v46  ;;  %6253 = vmatprep.mubr.msk.bf16.mxu0 %vm709_vm4, %v6646_v12  ;;  %v1301_v46 = vrot.slane %v1299_v58, 4  ;;  %v6701_v12 = vld [vmem:[%s6834_s27 + $0x38] sm:$0x1]  ;;  %v3641_v22 = vshll.u32 %v5585_v55, 16  ;;  %v5587_v5 = vld [vmem:[%s6834_s27 + $0x20] sm:$0x1] }
  0xaf   : > { %6099 = vmatprep.mubr.msk.bf16.mxu1 %vm709_vm4, %v5236_v26  ;;  %v1302_v26 = vrot.slane %v6701_v12, 5  ;;  %v6705_v58 = vld [vmem:[%s6834_s27 + $0x58] sm:$0xf] }
  0xb0   : > { %v1320_v18 = vrot.slane %v6705_v58, 5 }
  0xb1   : > { %v7500_v42 = vsel %vm7081_vm8, %v1301_v46, %v1302_v26  ;;  %v5586_v46 = vld [vmem:[%s6834_s27 + $0x1c] sm:$0xf] }
  0xb2   : > { %v1322_v16 = vrot.slane %v1320_v18, 4 }
  0xb5   : > { %6254 = vmatmul.mubr.msk.bf16.vlgmr.msra.gmra.mrb[0].mxu0 %vm709_vm4, %v6648_v38  ;;  %v1315_v38 = vrot.slane %v1313_v59, 4  ;;  %v5267_v59 = vrot.slane %v1225_v34, 9  ;;  %v3662_v34 = vshrl.u32 %v5588_v54, 16  ;;  %v1227_v54 = vld [vmem:[%s6834_s27 + $0x6c] sm:$0xe] }
  0xb6   : > { %6100 = vmatmul.mubr.msk.bf16.gmra.mrb[16].mxu1 %vm709_vm4, %v5237_v48  ;;  %6286 = vmatpush3.bf16.msra.mxu0 %v7356_v11  ;;  %v7481_v11 = vsel %vm7081_vm8, %v1287_v36, %v1288_v9  ;;  %v1308_v48 = vrot.slane %v1306_v39, 4  ;;  %v1226_v36 = vld [vmem:[%s6834_s27 + $0x60] sm:$0xe]  ;;  %v3638_v39 = vshrl.u32 %v5585_v55, 16  ;;  %v5590_v9 = vld [vmem:[%s6834_s27 + $0x2c] sm:$0x1] }
  0xb7   : > { %6103 = vmatprep.mubr.msk.bf16.mxu1 %vm709_vm4, %v5238_v8  ;;  %6257 = vmatprep.mubr.msk.bf16.mxu0 %vm709_vm4, %v6650_v56  ;;  %v5241_v8 = vcombine.low %v7179_v3, %v7190_v27  ;;  %v5242_v56 = vcombine.low %v7211_v17, %v7216_v24  ;;  %v7541_v26 = vsel %vm7081_vm8, %v1315_v38, %v1316_v50  ;;  %v1329_v38 = vrot.slane %v1327_v63, 4 }
  0xb8   : > { %6319 = vmatprep.subr.bf16.mxu0 %v7453_v49  ;;  %v7537_v12 = vsel %vm7081_vm8, %v1308_v48, %v1309_v28  ;;  %v6707_v28 = vld [vmem:[%s6834_s27 + $0x5c] sm:$0x1]  ;;  %v5589_v48 = vld [vmem:[%s6834_s27 + $0x28] sm:$0xf]  ;;  %v3651_v50 = vshrl.u32 %v5586_v46, 16  ;;  %v3640_v1 = vrot.slane %v3638_v39, 4 }
  0xb9   : > { %v1323_v32 = vrot.slane %v6707_v28, 5  ;;  %v3675_v23 = vshrl.u32 %v5589_v48, 16  ;;  %v5591_v28 = vld [vmem:[%s6834_s27 + $0x30] sm:$0xf]  ;;  %v3657_v39 = vshll.u32 %v5587_v5, 16  ;;  %v3664_v60 = vrot.slane %v3662_v34, 4 }
  0xba   : > { %v3653_v43 = vrot.slane %v3651_v50, 4  ;;  %v3689_v2 = vshll.u32 %v5591_v28, 16  ;;  %v3681_v34 = vshll.u32 %v5590_v9, 16  ;;  %v7615_v9 = vld [vmem:[%s6834_s27 + $0x38] sm:$0x1] }
  0xbb   : > { %v7570_v58 = vsel %vm7081_vm8, %v1322_v16, %v1323_v32  ;;  %v3667_v16 = vrot.slane %v3665_v40, 5  ;;  %v3686_v32 = vshrl.u32 %v5591_v28, 16  ;;  %v5594_v40 = vld [vmem:[%s6834_s27 + $0x3c] sm:$0xf]  ;;  %8643 = vst [vmem:[#allocation6_spill] sm:$0xff] %v7615_v9  ;;  %v3705_v14 = vshll.u32 %v7615_v9, 16 }
  0xbc   : > { %v6667_v9 = vld [vmem:[%s6834_s27 + $0xc0] sm:$0xff]  }
  0xbd   : > { %6258 = vmatmul.mubr.msk.bf16.gmra.mrb[4].mxu0 %vm709_vm4, %v6652_v25  ;;  %v5268_v25 = vrot.slane %v1226_v36, 9  ;;  %v3671_v36 = vshll.u32 %v5589_v48, 16  ;;  %v3688_v28 = vrot.slane %v3686_v32, 4  ;;  %v3713_v32 = vshll.u32 %v5594_v40, 16 }
  0xbe   : > { %6104 = vmatmul.mubr.msk.bf16.gmra.mrb[20].mxu1 %vm709_vm4, %v5239_v31  ;;  %6261 = vmatprep.mubr.msk.bf16.mxu0 %vm709_vm4, %v6654_v53  ;;  %v3647_v31 = vshll.u32 %v5586_v46, 16  ;;  %v6656_v53 = vld [vmem:[%s6834_s27 + $0x54] sm:$0xff]   ;;  %v7566_v46 = vsel %vm7081_vm8, %v5267_v59, %v1320_v18  ;;  %v1334_v18 = vrot.slane %v6709_v62, 5  ;;  %v6712_v62 = vld [vmem:[%s6834_s27 + $0x80] sm:$0x1] }
  0xbf   : > { %6107 = vmatprep.mubr.msk.bf16.mxu1 %vm709_vm4, %v5240_v15  ;;  %v3643_v15 = vrot.slane %v3641_v22, 5  ;;  %v7574_v55 = vsel %vm7081_vm8, %v5268_v25, %v1327_v63  ;;  %v7579_v22 = vsel %vm7081_vm8, %v1329_v38, %v1330_v29  ;;  %v5592_v59 = vld [vmem:[%s6834_s27 + $0x34] sm:$0xf]  ;;  %v5269_v25 = vrot.slane %v1227_v54, 9  ;;  %v6660_v54 = vld [vmem:[%s6834_s27 + $0x6c] sm:$0xff]  }
  0xc0   : > { %v7581_v48 = vrot.slane %v3647_v31, 5  ;;  %v7587_v5 = vrot.slane %v3671_v36, 5  ;;  %v3677_v38 = vrot.slane %v3675_v23, 4  ;;  %v3695_v31 = vshll.u32 %v5592_v59, 16  ;;  %v6711_v36 = vld [vmem:[%s6834_s27 + $0x7c] sm:$0xf] }
  0xc1   : > { %v3644_v63 = vor.u32 %v3643_v15, %v3640_v1  ;;  %v3699_v50 = vshrl.u32 %v5592_v59, 16  ;;  %v1336_v27 = vrot.slane %v1334_v18, 4  ;;  %v3668_v1 = vor.u32 %v3667_v16, %v3664_v60  ;;  %v1228_v15 = vld [vmem:[%s6834_s27 + $0x78] sm:$0xe]  ;;  %v7620_v16 = vld [vmem:[%s6834_s27 + $0x40] sm:$0xf] }
  0xc2   : > { %v3654_v3 = vor.u32 %v3653_v43, %v7581_v48  ;;  %v1341_v23 = vrot.slane %v6711_v36, 5  ;;  %v6661_v59 = vld [vmem:[%s6834_s27 + $0x78] sm:$0xff]   ;;  %v7611_v43 = vsel %vm7081_vm8, %v5269_v25, %v1334_v18  ;;  %v7617_v29 = vrot.slane %v3695_v31, 5  ;;  %8644 = vst [vmem:[#allocation7_spill] sm:$0xff] %v7620_v16 }
  0xc3   : > { %v3645_v17 = vrot.slane %v3644_v63, 4  ;;  %v3701_v60 = vrot.slane %v3699_v50, 4  ;;  %v3683_v63 = vrot.slane %v3681_v34, 5  ;;  %v5270_v18 = vrot.slane %v1228_v15, 9 }
  0xc4   : > { %v3655_v36 = vrot.slane %v3654_v3, 4  ;;  %v3669_v25 = vrot.slane %v3668_v1, 4  ;;  %v1344_v19 = vrot.slane %v6712_v62, 5  ;;  %v3719_v3 = vshll.u32 %v7620_v16, 16 }
  0xc5   : > { %6262 = vmatmul.mubr.msk.bf16.gmra.mrb[8].mxu0 %vm709_vm4, %v6656_v53  ;;  %v3702_v62 = vor.u32 %v3701_v60, %v7617_v29  ;;  %v3715_v15 = vrot.slane %v3713_v32, 5  ;;  %v6662_v60 = vld [vmem:[%s6834_s27 + $0x84] sm:$0xff]  }
  0xc6   : > { %6108 = vmatmul.mubr.msk.bf16.gmra.mrb[24].mxu1 %vm709_vm4, %v5241_v8  ;;  %6265 = vmatprep.mubr.msk.bf16.mxu0 %vm709_vm4, %v6658_v61  ;;  %v6710_v8 = vld [vmem:[%s6834_s27 + $0x74] sm:$0x1]  ;;  %v3691_v61 = vrot.slane %v3689_v2, 5  ;;  %v3710_v2 = vshrl.u32 %v5594_v40, 16  ;;  %v3723_v40 = vshrl.u32 %v7620_v16, 16  ;;  %v7668_v32 = vrot.slane %v3719_v3, 5 }
  0xc7   : > { %6111 = vmatprep.mubr.msk.bf16.mxu1 %vm709_vm4, %v5242_v56  ;;  %v1337_v53 = vrot.slane %v6710_v8, 5  ;;  %v3659_v56 = vrot.slane %v3657_v39, 5  ;;  %v3678_v8 = vor.u32 %v3677_v38, %v7587_v5  ;;  %v1343_v38 = vrot.slane %v1341_v23, 4 }
  0xc8   : > { %v3692_v31 = vor.u32 %v3691_v61, %v3688_v28  ;;  %v3712_v1 = vrot.slane %v3710_v2, 4  ;;  %v8646_v28 = vcombine.low %v7443_v21, %v7465_v4  ;;  %v3674_v21 = vsel %vm6860_vm5, %v3669_v25, %v7587_v5  ;;  %v6663_v5 = vld [vmem:[%s6834_s27 + $0x90] sm:$0xff]   ;;  %v6714_v25 = vld [vmem:[%s6834_s27 + $0x8c] sm:$0x1] }
  0xc9   : > { %v7624_v39 = vsel %vm7081_vm8, %v1336_v27, %v1337_v53  ;;  %v3679_v50 = vrot.slane %v3678_v8, 4  ;;  %v8645_v27 = vcombine.low %v7231_v57, %v7240_v30  ;;  %v6713_v53 = vld [vmem:[%s6834_s27 + $0x88] sm:$0xf]  ;;  %v3650_v57 = vsel %vm6860_vm5, %v3645_v17, %v7581_v48 }
  0xca   : > { %v1348_v34 = vrot.slane %v6713_v53, 5  ;;  %v3660_v61 = vsel %vm6860_vm5, %v3655_v36, %v3659_v56  ;;  %v7659_v4 = vsel %vm7081_vm8, %v1343_v38, %v1344_v19  ;;  %v3693_v48 = vrot.slane %v3692_v31, 4  ;;  %v7662_v56 = vld [vmem:[%s6834_s27 + $0x44] sm:$0x1]  ;;  %v5597_v8 = vld [vmem:[%s6834_s27 + $0x48] sm:$0xf] }
  0xcb   : > { %v5271_v17 = vrot.slane %v1229_v10, 9  ;;  %8647 = vst [vmem:[#allocation8_spill] sm:$0xff] %v7662_v56  ;;  %v3707_v2 = vrot.slane %v3705_v14, 5  ;;  %v3725_v36 = vrot.slane %v3723_v40, 4  ;;  %v1351_v38 = vrot.slane %v6714_v25, 5 }
  0xcc   : > { %v1350_v19 = vrot.slane %v1348_v34, 4  ;;  %v3716_v10 = vor.u32 %v3715_v15, %v3712_v1  ;;  %v7673_v31 = vld [vmem:[%s6834_s27 + $0x4c] sm:$0xf]  ;;  %v3729_v53 = vshll.u32 %v7662_v56, 16  ;;  %v3734_v14 = vshrl.u32 %v5597_v8, 16 }
  0xcd   : > { %6266 = vmatmul.mubr.msk.bf16.gmra.mrb[12].mxu0 %vm709_vm4, %v6660_v54  ;;  %v7688_v1 = vsel %vm7081_vm8, %v5271_v17, %v1348_v34  ;;  %v5600_v15 = vld [vmem:[%s6834_s27 + $0x54] sm:$0xf] }
  0xce   : > { %6112 = vmatmul.mubr.msk.bf16.gmra.mrb[28].mxu1 %vm709_vm4, %v8645_v27  ;;  %6269 = vmatprep.mubr.msk.bf16.mxu0 %vm709_vm4, %v6661_v59  ;;  %v7652_v59 = vsel %vm7081_vm8, %v5270_v18, %v1341_v23  ;;  %v3684_v23 = vsel %vm6860_vm5, %v3679_v50, %v3683_v63  ;;  %v3703_v18 = vrot.slane %v3702_v62, 4  ;;  %v7675_v27 = vcombine.low %v3650_v57, %v3660_v61  ;;  %v1230_v63 = vld [vmem:[%s6834_s27 + $0x90] sm:$0xe]  ;;  %v6715_v57 = vld [vmem:[%s6834_s27 + $0x94] sm:$0xf] }
  0xcf   : > { %6117 = vmatprep.mubr.msk.bf16.mxu1 %vm709_vm4, %v8646_v28  ;;  %v3737_v50 = vshll.u32 %v5597_v8, 16  ;;  %v7679_v3 = vcombine.low %v3674_v21, %v3684_v23  ;;  %v3698_v62 = vsel %vm6860_vm5, %v3693_v48, %v7617_v29  ;;  %v3726_v28 = vor.u32 %v3725_v36, %v7668_v32  ;;  %v7697_v23 = vld [vmem:[%s6834_s27 + $0x58] sm:$0xf] }
  0xd0   : > { %v1355_v61 = vrot.slane %v6715_v57, 5  ;;  %v3743_v21 = vshll.u32 %v7673_v31, 16  ;;  %v3747_v8 = vshrl.u32 %v7673_v31, 16  ;;  %v8648_v29 = vcombine.low %v7449_v0, %v7469_v13  ;;  %v6716_v36 = vld [vmem:[%s6834_s27 + $0x98] sm:$0x1] }
  0xd1   : > { %v3708_v34 = vsel %vm6860_vm5, %v3703_v18, %v3707_v2  ;;  %v7708_v48 = vsel %vm7081_vm8, %v1350_v19, %v1351_v38  ;;  %v7710_v17 = vrot.slane %v3716_v10, 4  ;;  %v8649_v0 = vcombine.low %v7473_v35, %v7481_v11  ;;  %v5603_v10 = vld [vmem:[%s6834_s27 + $0x60] sm:$0xf] }
  0xd2   : > { %v7717_v13 = vrot.slane %v3729_v53, 5  ;;  %v1358_v2 = vrot.slane %v6716_v36, 5  ;;  %v3739_v18 = vrot.slane %v3737_v50, 5  ;;  %v3758_v19 = vshrl.u32 %v5600_v15, 16  ;;  %v6664_v35 = vld [vmem:[%s6834_s27 + $0x9c] sm:$0xff]   ;;  %v6665_v50 = vld [vmem:[%s6834_s27 + $0xa8] sm:$0xff]  }
  0xd3   : > { %v3761_v25 = vshll.u32 %v5600_v15, 16  ;;  %v3767_v38 = vshll.u32 %v7697_v23, 16  ;;  %v7725_v11 = vrot.slane %v3726_v28, 4  ;;  %v1357_v53 = vrot.slane %v1355_v61, 4  ;;  %v7743_v28 = vld [vmem:[%s6834_s27 + $0x50] sm:$0x1] }
  0xd4   : > { %v7730_v57 = vcombine.low %v3698_v62, %v3708_v34  ;;  %v6717_v36 = vld [vmem:[%s6834_s27 + $0xa0] sm:$0xf]  ;;  %v7748_v34 = vld [vmem:[%s6834_s27 + $0x64] sm:$0xf]  ;;  %v3782_v15 = vshrl.u32 %v5603_v10, 16  ;;  %v3785_v40 = vshll.u32 %v5603_v10, 16 }
  0xd5   : > { %6270 = vmatmul.mubr.msk.bf16.gmra.mrb[16].mxu0 %vm709_vm4, %v6662_v60  ;;  %v5272_v60 = vrot.slane %v1230_v63, 9  ;;  %v7727_v63 = vrot.slane %v3743_v21, 5  ;;  %v1231_v21 = vld [vmem:[%s6834_s27 + $0x9c] sm:$0xe]  ;;  %v1362_v62 = vrot.slane %v6717_v36, 5  ;;  %8650 = vst [vmem:[#allocation9_spill] sm:$0xff] %v7748_v34 }
  0xd6   : > { %6118 = vmatmul.mubr.msk.bf16.vlgmr.msra.gmra.mrb[0].mxu1 %vm709_vm4, %v8648_v29  ;;  %6273 = vmatprep.mubr.msk.bf16.mxu0 %vm709_vm4, %v6663_v5  ;;  %v3736_v5 = vrot.slane %v3734_v14, 4  ;;  %v3749_v14 = vrot.slane %v3747_v8, 4  ;;  %v3760_v54 = vrot.slane %v3758_v19, 4  ;;  %v3763_v56 = vrot.slane %v3761_v25, 5  ;;  %v7764_v19 = vld [vmem:[%s6834_s27 + $0x5c] sm:$0x1] }
  0xd7   : > { %6150 = vmatpush3.bf16.msra.mxu1 %v7369_v33  ;;  %6121 = vmatprep.mubr.msk.bf16.mxu1 %vm709_vm4, %v8649_v0  ;;  %v3771_v33 = vshrl.u32 %v7697_v23, 16  ;;  %v7740_v0 = vsel %vm7081_vm8, %v5272_v60, %v1355_v61  ;;  %v7750_v16 = vrot.slane %v3767_v38, 5  ;;  %v3732_v61 = vsel %vm6860_vm5, %v7725_v11, %v7717_v13  ;;  %v1232_v13 = vld [vmem:[%s6834_s27 + $0xa8] sm:$0xe] }
  0xd8   : > { %6353 = vmatprep.subr.bf16.mxu1 %v6817_v7  ;;  %v3740_v8 = vor.u32 %v3739_v18, %v3736_v5  ;;  %v7759_v60 = vsel %vm7081_vm8, %v1357_v53, %v1358_v2  ;;  %v3750_v5 = vor.u32 %v3749_v14, %v7727_v63  ;;  %v3753_v18 = vshll.u32 %v7743_v28, 16  ;;  %v7787_v7 = vld [vmem:[%s6834_s27 + $0x68] sm:$0x1] }
  0xd9   : > { %v3773_v29 = vrot.slane %v3771_v33, 4  ;;  %v8651_v25 = vcombine.low %v7485_v52, %v7493_v44  ;;  %v5273_v38 = vrot.slane %v1231_v21, 9  ;;  %v1369_v2 = vrot.slane %v7216_v24, 5  ;;  %v6718_v44 = vld [vmem:[%s6834_s27 + $0xa4] sm:$0x1]  ;;  %8653 = vst [vmem:[#allocation10_spill] sm:$0xff] %v7787_v7 }
  0xda   : > { %v3791_v33 = vshll.u32 %v7748_v34, 16  ;;  %v3795_v10 = vshrl.u32 %v7748_v34, 16  ;;  %v3741_v52 = vrot.slane %v3740_v8, 4  ;;  %v1365_v11 = vrot.slane %v6718_v44, 5 }
  0xdb   : > { %v3784_v53 = vrot.slane %v3782_v15, 4  ;;  %v3787_v14 = vrot.slane %v3785_v40, 5  ;;  %v1364_v21 = vrot.slane %v1362_v62, 4  ;;  %v3764_v24 = vor.u32 %v3763_v56, %v3760_v54  ;;  %v6719_v40 = vld [vmem:[%s6834_s27 + $0xb0] sm:$0x1] }
  0xdc   : > { %v3774_v36 = vor.u32 %v3773_v29, %v7750_v16  ;;  %v3755_v8 = vrot.slane %v3753_v18, 5  ;;  %v1371_v15 = vrot.slane %v1369_v2, 4  ;;  %v1372_v44 = vrot.slane %v6719_v40, 5  ;;  %v1233_v56 = vld [vmem:[%s6834_s27 + $0xb4] sm:$0xe] }
  0xdd   : > { %6274 = vmatmul.mubr.msk.bf16.gmra.mrb[20].mxu0 %vm709_vm4, %v6664_v35  ;;  %v8652_v35 = vcombine.low %v7489_v51, %v7500_v42  ;;  %v3751_v42 = vrot.slane %v3750_v5, 4  ;;  %v7790_v47 = vrot.slane %v3791_v33, 5  ;;  %v3797_v54 = vrot.slane %v3795_v10, 4 }
  0xde   : > { %6122 = vmatmul.mubr.msk.bf16.gmra.mrb[4].mxu1 %vm709_vm4, %v8651_v25  ;;  %6277 = vmatprep.mubr.msk.bf16.mxu0 %vm709_vm4, %v6665_v50  ;;  %v6666_v50 = vld [vmem:[%s6834_s27 + $0xb4] sm:$0xff]   ;;  %v3777_v25 = vshll.u32 %v7764_v19, 16  ;;  %v3746_v29 = vsel %vm6860_vm5, %v3741_v52, %v7727_v63  ;;  %v7798_v34 = vsel %vm7081_vm8, %v5273_v38, %v1362_v62  ;;  %v3788_v5 = vor.u32 %v3787_v14, %v3784_v53 }
  0xdf   : > { %6125 = vmatprep.mubr.msk.bf16.mxu1 %vm709_vm4, %v8652_v35  ;;  %v5274_v35 = vrot.slane %v1232_v13, 9  ;;  %v1376_v18 = vrot.slane %v7240_v30, 5  ;;  %v5606_v13 = vld [vmem:[%s6834_s27 + $0x6c] sm:$0xf]  ;;  %v7804_v40 = vsel %vm7081_vm8, %v1364_v21, %v1365_v11  ;;  %v7806_v33 = vrot.slane %v3764_v24, 4 }
  0xe0   : > { %8654 = vst [vmem:[#allocation11_spill] sm:$0xff] %v7804_v40  ;;  %v7808_v10 = vrot.slane %v3774_v36, 4  ;;  %v7810_v51 = vrot.slane %v3777_v25, 5  ;;  %v3756_v63 = vsel %vm6860_vm5, %v3751_v42, %v3755_v8  ;;  %v3801_v62 = vshll.u32 %v7787_v7, 16  ;;  %v6668_v25 = vld [vmem:[%s6834_s27 + $0xcc] sm:$0xff]  }
  0xe1   : > { %v7817_v30 = vsel %vm7081_vm8, %v5274_v35, %v1369_v2  ;;  %v5275_v38 = vrot.slane %v1233_v56, 9  ;;  %v8656_v52 = vcombine.low %v7527_v6, %v7537_v12  ;;  %v7827_v11 = vsel %vm7081_vm8, %v1371_v15, %v1372_v44  ;;  %v7831_v2 = vld [vmem:[%s6834_s27 + $0x70] sm:$0xf]  ;;  %v7874_v44 = vld [vmem:[%s6834_s27 + $0x7c] sm:$0xf] }
  0xe2   : > { %8655 = vst [vmem:[#allocation12_spill] sm:$0xff] %v7817_v30  ;;  %8657 = vst [vmem:[#allocation13_spill] sm:$0xff] %v7827_v11  ;;  %v3798_v53 = vor.u32 %v3797_v54, %v7790_v47  ;;  %v3806_v14 = vshrl.u32 %v5606_v13, 16  ;;  %v8659_v21 = vcombine.low %v7531_v41, %v7541_v26  ;;  %v8660_v6 = vsel %vm6860_vm5, %v7710_v17, %v7668_v32  ;;  %v7861_v17 = vld [vmem:[%s6834_s27 + $0x74] sm:$0x1] }
  0xe3   : > { %8658 = vst [vmem:[#allocation14_spill] sm:$0xff] %v7831_v2  ;;  %v7842_v12 = vcombine.low %v8660_v6, %v3732_v61  ;;  %v1378_v24 = vrot.slane %v1376_v18, 4  ;;  %v1379_v36 = vrot.slane %v7246_v20, 5  ;;  %v7848_v42 = vcombine.low %v3746_v29, %v3756_v63  ;;  %8661 = vst [vmem:[#allocation15_spill] sm:$0xff] %v7861_v17  ;;  %v5609_v20 = vld [vmem:[%s6834_s27 + $0x78] sm:$0xf] }
  0xe4   : > { %v7866_v8 = vrot.slane %v3801_v62, 5  ;;  %v7870_v35 = vsel %vm7081_vm8, %v5275_v38, %v1376_v18  ;;  %v3815_v15 = vshll.u32 %v7831_v2, 16  ;;  %8662 = vst [vmem:[#allocation16_spill] sm:$0xff] %v7874_v44  ;;  %v5612_v54 = vld [vmem:[%s6834_s27 + $0x84] sm:$0xf]  ;;  %v7877_v56 = vrot.slane %v3798_v53, 4 }
  0xe5   : > { %6278 = vmatmul.mubr.msk.bf16.gmra.mrb[24].mxu0 %vm709_vm4, %v6666_v50  ;;  %v3809_v50 = vshll.u32 %v5606_v13, 16  ;;  %v7879_v29 = vrot.slane %v3806_v14, 4  ;;  %v3819_v13 = vshrl.u32 %v7831_v2, 16  ;;  %v7885_v63 = vld [vmem:[%s6834_s27 + $0x88] sm:$0xf]  ;;  %v7893_v62 = vsel %vm7081_vm8, %v1378_v24, %v1379_v36 }
  0xe6   : > { %6126 = vmatmul.mubr.msk.bf16.gmra.mrb[8].mxu1 %vm709_vm4, %v8656_v52  ;;  %6281 = vmatprep.mubr.msk.bf16.mxu0 %vm709_vm4, %v6667_v9  ;;  %v7844_v9 = vrot.slane %v3788_v5, 4  ;;  %8663 = vst [vmem:[#allocation17_spill] sm:$0xff] %v7885_v63  ;;  %v3830_v38 = vshrl.u32 %v5609_v20, 16  ;;  %v3833_v52 = vshll.u32 %v5609_v20, 16  ;;  %v5615_v53 = vld [vmem:[%s6834_s27 + $0x90] sm:$0xf]  ;;  %v8665_v18 = vcombine.low %v7566_v46, %v7570_v58 }
  0xe7   : > { %6129 = vmatprep.mubr.msk.bf16.mxu1 %vm709_vm4, %v8659_v21  ;;  %v7881_v5 = vrot.slane %v3809_v50, 5  ;;  %v7897_v14 = vld [vmem:[%s6834_s27 + $0x94] sm:$0xf]  ;;  %v3839_v50 = vshll.u32 %v7874_v44, 16  ;;  %v3843_v21 = vshrl.u32 %v7874_v44, 16  ;;  %v3854_v6 = vshrl.u32 %v5612_v54, 16 }
  0xe8   : > { %8664 = vst [vmem:[#allocation18_spill] sm:$0xff] %v7897_v14  ;;  %v3857_v61 = vshll.u32 %v5612_v54, 16  ;;  %v7902_v41 = vrot.slane %v3815_v15, 5  ;;  %v3825_v24 = vshll.u32 %v7861_v17, 16  ;;  %v3863_v36 = vshll.u32 %v7885_v63, 16 }
  0xe9   : > { %v3867_v20 = vshrl.u32 %v7885_v63, 16  ;;  %v3878_v54 = vshrl.u32 %v5615_v53, 16  ;;  %v3887_v15 = vshll.u32 %v7897_v14, 16  ;;  %v3891_v26 = vshrl.u32 %v7897_v14, 16  ;;  %v5618_v32 = vld [vmem:[%s6834_s27 + $0x9c] sm:$0xf] }
  0xea   : > { %v8666_v44 = vcombine.low %v7574_v55, %v7579_v22  ;;  %v3821_v46 = vrot.slane %v3819_v13, 4  ;;  %v7927_v63 = vrot.slane %v3839_v50, 5  ;;  %v3845_v14 = vrot.slane %v3843_v21, 4  ;;  %v7930_v55 = vld [vmem:[%s6834_s27 + $0x8c] sm:$0x1] }
  0xeb   : > { %v3856_v17 = vrot.slane %v3854_v6, 4  ;;  %v3859_v2 = vrot.slane %v3857_v61, 5  ;;  %v7932_v22 = vrot.slane %v3863_v36, 5  ;;  %v3902_v7 = vshrl.u32 %v5618_v32, 16  ;;  %v7935_v58 = vld [vmem:[%s6834_s27 + $0x98] sm:$0x1] }
  0xec   : > { %v3905_v11 = vshll.u32 %v5618_v32, 16  ;;  %v3880_v13 = vrot.slane %v3878_v54, 4  ;;  %v3893_v50 = vrot.slane %v3891_v26, 4  ;;  %v3812_v21 = vor.u32 %v7881_v5, %v7879_v29 }
  0xed   : > { %6282 = vmatmul.mubr.msk.bf16.gmra.mrb[28].mxu0 %vm709_vm4, %v6668_v25  ;;  %v3881_v25 = vshll.u32 %v5615_v53, 16  ;;  %v7925_v53 = vld [vmem:[%s6834_s27 + $0x80] sm:$0x1]  ;;  %v3822_v61 = vor.u32 %v3821_v46, %v7902_v41  ;;  %v7942_v6 = vrot.slane %v3825_v24, 5  ;;  %v3846_v32 = vor.u32 %v3845_v14, %v7927_v63 }
  0xee   : > { %6130 = vmatmul.mubr.msk.bf16.gmra.mrb[12].mxu1 %vm709_vm4, %v8665_v18  ;;  %6287 = vmatprep.mubr.msk.bf16.mxu0 %vm709_vm4, %v7675_v27  ;;  %v3832_v27 = vrot.slane %v3830_v38, 4  ;;  %v3835_v18 = vrot.slane %v3833_v52, 5  ;;  %v7937_v52 = vrot.slane %v3887_v15, 5  ;;  %v3849_v36 = vshll.u32 %v7925_v53, 16 }
  0xef   : > { %6133 = vmatprep.mubr.msk.bf16.mxu1 %vm709_vm4, %v8666_v44  ;;  %v3869_v44 = vrot.slane %v3867_v20, 4  ;;  %v3883_v38 = vrot.slane %v3881_v25, 5  ;;  %v7946_v20 = vld [vmem:[%s6834_s27 + $0xa0] sm:$0xf]  ;;  %v3860_v40 = vor.u32 %v3859_v2, %v3856_v17  ;;  %v3873_v54 = vshll.u32 %v7930_v55, 16 }
  0xf0   : > { %8667 = vst [vmem:[#allocation19_spill] sm:$0xff] %v7946_v20  ;;  %v3836_v30 = vor.u32 %v3835_v18, %v3832_v27  ;;  %v5621_v25 = vld [vmem:[%s6834_s27 + $0xa8] sm:$0xf]  ;;  %v3897_v29 = vshll.u32 %v7935_v58, 16  ;;  %v3904_v5 = vrot.slane %v3902_v7, 4  ;;  %v3907_v24 = vrot.slane %v3905_v11, 5 }
  0xf1   : > { %v3870_v26 = vor.u32 %v3869_v44, %v7932_v22  ;;  %v8668_v15 = vcombine.low %v7611_v43, %v7624_v39  ;;  %v3884_v2 = vor.u32 %v3883_v38, %v3880_v13  ;;  %v3894_v17 = vor.u32 %v3893_v50, %v7937_v52 }
  0xf2   : > { %v3911_v14 = vshll.u32 %v7946_v20, 16  ;;  %v8669_v46 = vcombine.low %v7652_v59, %v7659_v4  ;;  %v3813_v7 = vrot.slane %v3812_v21, 4  ;;  %v3823_v43 = vrot.slane %v3822_v61, 4  ;;  %v7975_v21 = vld [vmem:[%s6834_s27 + $0xac] sm:$0xf] }
  0xf3   : > { %v3929_v39 = vshll.u32 %v5621_v25, 16  ;;  %v3837_v11 = vrot.slane %v3836_v30, 4  ;;  %v3847_v27 = vrot.slane %v3846_v32, 4  ;;  %v3851_v18 = vrot.slane %v3849_v36, 5  ;;  %v7984_v61 = vld [vmem:[%s6834_s27 + $0xb0] sm:$0x1] }
  0xf4   : > { %v3861_v44 = vrot.slane %v3860_v40, 4  ;;  %v3871_v13 = vrot.slane %v3870_v26, 4  ;;  %v3875_v38 = vrot.slane %v3873_v54, 5  ;;  %v3899_v50 = vrot.slane %v3897_v29, 5 }
  0xf5   : > { %6288 = vmatmul.mubr.msk.bf16.vlgmr.msra.gmra.mrb[0].mxu0 %vm709_vm4, %v7679_v3  ;;  %v3915_v3 = vshrl.u32 %v7946_v20, 16  ;;  %v3908_v59 = vor.u32 %v3907_v24, %v3904_v5  ;;  %v3885_v4 = vrot.slane %v3884_v2, 4  ;;  %v7972_v20 = vrot.slane %v3911_v14, 5 }
  0xf6   : > { %6134 = vmatmul.mubr.msk.bf16.gmra.mrb[16].mxu1 %vm709_vm4, %v8668_v15  ;;  %6320 = vmatpush3.bf16.msra.mxu0 %v7453_v49  ;;  %v3926_v49 = vshrl.u32 %v5621_v25, 16  ;;  %v7970_v15 = vld [vmem:[%s6834_s27 + $0xa4] sm:$0x1]  ;;  %v3818_v30 = vsel %vm6860_vm5, %v3813_v7, %v7902_v41  ;;  %v3828_v40 = vsel %vm6860_vm5, %v3823_v43, %v7942_v6  ;;  %v3931_v32 = vrot.slane %v3929_v39, 5 }
  0xf7   : > { %6137 = vmatprep.mubr.msk.bf16.mxu1 %vm709_vm4, %v8669_v46  ;;  %6291 = vmatprep.mubr.msk.bf16.mxu0 %vm709_vm4, %v7730_v57  ;;  %v3895_v46 = vrot.slane %v3894_v17, 4  ;;  %v3917_v57 = vrot.slane %v3915_v3, 4  ;;  %v3842_v54 = vsel %vm6860_vm5, %v3837_v11, %v7927_v63  ;;  %v3852_v25 = vsel %vm6860_vm5, %v3847_v27, %v3851_v18  ;;  %v5624_v3 = vld [vmem:[%s6834_s27 + $0xb4] sm:$0xf] }
  0xf8   : > { %v3928_v36 = vrot.slane %v3926_v49, 4  ;;  %v3866_v26 = vsel %vm6860_vm5, %v3861_v44, %v7932_v22  ;;  %v3921_v41 = vshll.u32 %v7970_v15, 16  ;;  %v3876_v6 = vsel %vm6860_vm5, %v3871_v13, %v3875_v38  ;;  %v5671_v11 = vld [vmem:[%s6834_s27 + $0x54] sm:$0xe]  ;;  %v5672_v38 = vld [vmem:[%s6834_s27 + $0x60] sm:$0xe] }
  0xf9   : > { %v7999_v29 = vrot.slane %v3908_v59, 4  ;;  %v3935_v63 = vshll.u32 %v7975_v21, 16  ;;  %v3939_v5 = vshrl.u32 %v7975_v21, 16  ;;  %v8670_v24 = vcombine.low %v7688_v1, %v7708_v48 }
  0xfa   : > { %v3900_v22 = vsel %vm6860_vm5, %v3895_v46, %v3899_v50  ;;  %v3918_v2 = vor.u32 %v3917_v57, %v7972_v20  ;;  %v3945_v17 = vshll.u32 %v7984_v61, 16  ;;  %v8671_v1 = vcombine.low %v7740_v0, %v7759_v60 }
  0xfb   : > { %v8672_v48 = vsel %vm6860_vm5, %v7808_v10, %v7810_v51  ;;  %v8674_v14 = vsel %vm6860_vm5, %v7877_v56, %v7866_v8  ;;  %v8675_v0 = vsel %vm6860_vm5, %v7844_v9, %v7790_v47  ;;  %v5292_v51 = vcombine.low %v7870_v35, %v7893_v62  ;;  %v8053_v56 = vld [vmem:[%s6834_s27 + $0xb8] sm:$0xf] }
  0xfc   : > { %v5640_v60 = vcombine.low %v8675_v0, %v8674_v14  ;;  %v3932_v10 = vor.u32 %v3931_v32, %v3928_v36  ;;  %v8046_v7 = vcombine.low %v3842_v54, %v3852_v25  ;;  %v8048_v43 = vcombine.low %v3866_v26, %v3876_v6  ;;  %v5673_v32 = vld [vmem:[%s6834_s27 + $0x6c] sm:$0xe] }
  0xfd   : > { %6292 = vmatmul.mubr.msk.bf16.gmra.mrb[4].mxu0 %vm709_vm4, %v7842_v12  ;;  %v3890_v12 = vsel %vm6860_vm5, %v3885_v4, %v7937_v52  ;;  %v8050_v8 = vrot.slane %v3921_v41, 5  ;;  %v3914_v47 = vsel %vm6860_vm5, %v7999_v29, %v7972_v20  ;;  %v8061_v9 = vrot.slane %v3935_v63, 5  ;;  %v8678_v63 = vld [vmem:[#allocation9_spill] sm:$0xff]  ;;  %v5630_v29 = vld [vmem:[%s6834_s27 + $0xcc] sm:$0xf] }
  0xfe   : > { %6138 = vmatmul.mubr.msk.bf16.gmra.mrb[20].mxu1 %vm709_vm4, %v8670_v24  ;;  %6295 = vmatprep.mubr.msk.bf16.mxu0 %vm709_vm4, %v7848_v42  ;;  %v8673_v42 = vsel %vm6860_vm5, %v7806_v33, %v7750_v16  ;;  %v5670_v16 = vld [vmem:[%s6834_s27 + $0x48] sm:$0xe]  ;;  %v8044_v33 = vcombine.low %v3818_v30, %v3828_v40  ;;  %v8055_v49 = vcombine.low %v3890_v12, %v3900_v22  ;;  %v3941_v39 = vrot.slane %v3939_v5, 4  ;;  %v8679_v24 = vld [vmem:[#allocation12_spill] sm:$0xff]  ;;  %v8680_v12 = vld [vmem:[#allocation13_spill] sm:$0xff] }
  0xff   : > { %6141 = vmatprep.mubr.msk.bf16.mxu1 %vm709_vm4, %v8671_v1  ;;  %v5639_v52 = vcombine.low %v8673_v42, %v8672_v48  ;;  %v8064_v27 = vrot.slane %v3918_v2, 4  ;;  %v8066_v18 = vrot.slane %v3945_v17, 5  ;;  %v3950_v44 = vshrl.u32 %v5624_v3, 16  ;;  %v8682_v2 = vld [vmem:[#allocation10_spill] sm:$0xff] }
 0x100   : > { %v5686_v13 = vrot.slane %v5670_v16, 9  ;;  %v8069_v50 = vrot.slane %v3932_v10, 4  ;;  %v3953_v59 = vshll.u32 %v5624_v3, 16  ;;  %v3959_v4 = vshll.u32 %v8053_v56, 16  ;;  %v8683_v48 = vld [vmem:[#allocation14_spill] sm:$0xff] }
 0x101   : > { %v4409_v46 = vrot.slane %v7673_v31, 5  ;;  %v4412_v57 = vrot.slane %v7743_v28, 5  ;;  %v5687_v30 = vrot.slane %v5671_v11, 9  ;;  %v4416_v40 = vrot.slane %v7697_v23, 5  ;;  %v8676_v31 = vld [vmem:[#allocation11_spill] sm:$0xff] }
 0x102   : > { %v4419_v36 = vrot.slane %v7764_v19, 5  ;;  %v3942_v54 = vor.u32 %v3941_v39, %v8061_v9  ;;  %v5688_v41 = vrot.slane %v5672_v38, 9  ;;  %v8677_v28 = vcombine.low %v7798_v34, %v8676_v31  ;;  %v8116_v3 = vld [vmem:[%s6834_s27 + $0xbc] sm:$0x1] }
 0x103   : > { %v8081_v25 = vsel %vm7081_vm8, %v5686_v13, %v4409_v46  ;;  %v4411_v26 = vrot.slane %v4409_v46, 4  ;;  %v3963_v23 = vshrl.u32 %v8053_v56, 16  ;;  %v8091_v19 = vsel %vm7081_vm8, %v5687_v30, %v4416_v40  ;;  %v8684_v13 = vld [vmem:[#allocation15_spill] sm:$0xff] }
 0x104   : > { %v4418_v6 = vrot.slane %v4416_v40, 4  ;;  %v4423_v5 = vrot.slane %v8678_v63, 5  ;;  %v8681_v22 = vcombine.low %v8679_v24, %v8680_v12  ;;  %v4426_v17 = vrot.slane %v8682_v2, 5  ;;  %v8134_v40 = vld [vmem:[%s6834_s27 + $0xc4] sm:$0xf]  ;;  %v8685_v12 = vld [vmem:[#allocation16_spill] sm:$0xff] }
 0x105   : > { %6296 = vmatmul.mubr.msk.bf16.gmra.mrb[8].mxu0 %vm709_vm4, %v5639_v52  ;;  %v8100_v34 = vsel %vm7081_vm8, %v4411_v26, %v4412_v57  ;;  %v5689_v1 = vrot.slane %v5673_v32, 9  ;;  %v4430_v42 = vrot.slane %v8683_v48, 5  ;;  %v5627_v52 = vld [vmem:[%s6834_s27 + $0xc0] sm:$0xf]  ;;  %v4433_v38 = vrot.slane %v8684_v13, 5  ;;  %v6669_v26 = vld [vmem:[%s6834_s27 + $0xc] sm:$0xff]  }
 0x106   : > { %6142 = vmatmul.mubr.msk.bf16.gmra.mrb[24].mxu1 %vm709_vm4, %v8677_v28  ;;  %6299 = vmatprep.mubr.msk.bf16.mxu0 %vm709_vm4, %v5640_v60  ;;  %v5703_v14 = vcombine.low %v8081_v25, %v8100_v34  ;;  %v8109_v0 = vsel %vm7081_vm8, %v4418_v6, %v4419_v36  ;;  %v8113_v60 = vsel %vm7081_vm8, %v5688_v41, %v4423_v5  ;;  %v4425_v10 = vrot.slane %v4423_v5, 4  ;;  %v5674_v32 = vld [vmem:[%s6834_s27 + $0x78] sm:$0xe]  ;;  %v5675_v2 = vld [vmem:[%s6834_s27 + $0x84] sm:$0xe] }
 0x107   : > { %6145 = vmatprep.mubr.msk.bf16.mxu1 %vm709_vm4, %v8681_v22  ;;  %v5704_v16 = vcombine.low %v8091_v19, %v8109_v0  ;;  %v8122_v39 = vsel %vm7081_vm8, %v5689_v1, %v4430_v42  ;;  %v4432_v11 = vrot.slane %v4430_v42, 4  ;;  %v3924_v46 = vsel %vm6860_vm5, %v8064_v27, %v8050_v8  ;;  %v5401_v27 = vld [vmem:[%s6834_s27 + $0x78] sm:$0xf]  ;;  %v6730_v0 = vld [vmem:[%s6834_s27 + $0xa0] sm:$0xf] }
 0x108   : > { %v8129_v57 = vrot.slane %v3950_v44, 4  ;;  %v8131_v30 = vrot.slane %v3953_v59, 5  ;;  %v8138_v36 = vsel %vm7081_vm8, %v4425_v10, %v4426_v17  ;;  %v8142_v41 = vrot.slane %v3959_v4, 5  ;;  %v8687_v48 = vld [vmem:[#allocation5_spill] sm:$0xff] }
 0x109   : > { %v3974_v31 = vshrl.u32 %v5627_v52, 16  ;;  %v5705_v28 = vcombine.low %v8113_v60, %v8138_v36  ;;  %v8148_v8 = vsel %vm7081_vm8, %v4432_v11, %v4433_v38  ;;  %v8151_v44 = vrot.slane %v3942_v54, 4  ;;  %v8688_v38 = vld [vmem:[#allocation17_spill] sm:$0xff] }
 0x10a   : > { %v3969_v59 = vshll.u32 %v8116_v3, 16  ;;  %v3977_v6 = vshll.u32 %v5627_v52, 16  ;;  %v5706_v63 = vcombine.low %v8122_v39, %v8148_v8  ;;  %v8158_v4 = vrot.slane %v3963_v23, 4  ;;  %v6733_v8 = vld [vmem:[%s6834_s27 + $0xac] sm:$0xf] }
 0x10b   : > { %v3983_v5 = vshll.u32 %v8134_v40, 16  ;;  %v5690_v24 = vrot.slane %v5674_v32, 9  ;;  %v4437_v22 = vrot.slane %v8685_v12, 5  ;;  %v3987_v54 = vshrl.u32 %v8134_v40, 16 }
 0x10c   : > { %v2299_v23 = vshrl.u32 %v5401_v27, 16  ;;  %v2302_v17 = vshll.u32 %v5401_v27, 16  ;;  %v3976_v1 = vrot.slane %v3974_v31, 4  ;;  %v5691_v10 = vrot.slane %v5675_v2, 9  ;;  %v6670_v31 = vld [vmem:[%s6834_s27 + $0x18] sm:$0xff]  }
 0x10d   : > { %6300 = vmatmul.mubr.msk.bf16.gmra.mrb[12].mxu0 %vm709_vm4, %v8044_v33  ;;  %v4440_v33 = vrot.slane %v7925_v53, 5  ;;  %v8174_v35 = vsel %vm7081_vm8, %v5690_v24, %v4437_v22  ;;  %v4439_v62 = vrot.slane %v4437_v22, 4  ;;  %v3979_v53 = vrot.slane %v3977_v6, 5  ;;  %v6671_v24 = vld [vmem:[%s6834_s27 + $0x24] sm:$0xff]  }
 0x10e   : > { %6146 = vmatmul.mubr.msk.bf16.gmra.mrb[28].mxu1 %vm709_vm4, %v5292_v51  ;;  %6303 = vmatprep.mubr.msk.bf16.mxu0 %vm709_vm4, %v8046_v7  ;;  %v8686_v51 = vld [vmem:[#allocation4_spill] sm:$0xff]  ;;  %v2301_v42 = vrot.slane %v2299_v23, 4  ;;  %v2304_v52 = vrot.slane %v2302_v17, 5  ;;  %v5645_v11 = vcombine.low %v3914_v47, %v3924_v46  ;;  %v4444_v32 = vrot.slane %v8688_v38, 5  ;;  %v8691_v38 = vld [vmem:[#allocation18_spill] sm:$0xff] }
 0x10f   : > { %6151 = vmatprep.mubr.msk.bf16.mxu1 %vm709_vm4, %v6669_v26  ;;  %v2321_v7 = vsel %vm6860_vm5, %v8687_v48, %v8686_v51  ;;  %v8187_v13 = vsel %vm7081_vm8, %v4439_v62, %v4440_v33  ;;  %v4447_v26 = vrot.slane %v7930_v55, 5  ;;  %v3938_v27 = vsel %vm6860_vm5, %v8069_v50, %v8061_v9  ;;  %v8200_v47 = vld [vmem:[%s6834_s27 + $0xd0] sm:$0xf]  ;;  %v8690_v51 = vld [vmem:[#allocation2_spill] sm:$0xff] }
 0x110   : > { %v3956_v20 = vor.u32 %v8131_v30, %v8129_v57  ;;  %v5707_v46 = vcombine.low %v8174_v35, %v8187_v13  ;;  %v2305_v6 = vor.u32 %v2304_v52, %v2301_v42  ;;  %v8205_v12 = vrot.slane %v3983_v5, 5  ;;  %v5676_v9 = vld [vmem:[%s6834_s27 + $0x90] sm:$0xe]  ;;  %v8219_v30 = vld [vmem:[%s6834_s27 + $0xc8] sm:$0x1] }
 0x111   : > { %v3989_v55 = vrot.slane %v3987_v54, 4  ;;  %v8209_v22 = vsel %vm7081_vm8, %v5691_v10, %v4444_v32  ;;  %v4446_v2 = vrot.slane %v4444_v32, 4  ;;  %v3948_v50 = vsel %vm6860_vm5, %v8151_v44, %v8066_v18  ;;  %v8689_v44 = vld [vmem:[#allocation3_spill] sm:$0xff] }
 0x112   : > { %v3966_v57 = vor.u32 %v8158_v4, %v8142_v41  ;;  %v3980_v33 = vor.u32 %v3979_v53, %v3976_v1  ;;  %v2306_v5 = vrot.slane %v2305_v6, 4  ;;  %v3998_v54 = vshrl.u32 %v5630_v29, 16 }
 0x113   : > { %v4001_v23 = vshll.u32 %v5630_v29, 16  ;;  %v4007_v17 = vshll.u32 %v8200_v47, 16  ;;  %v8226_v62 = vsel %vm7081_vm8, %v4446_v2, %v4447_v26  ;;  %v4011_v18 = vshrl.u32 %v8200_v47, 16 }
 0x114   : > { %v2311_v4 = vsel %vm6860_vm5, %v2306_v5, %v8689_v44  ;;  %v5692_v1 = vrot.slane %v5676_v9, 9  ;;  %v3971_v48 = vrot.slane %v3969_v59, 5  ;;  %v3993_v53 = vshll.u32 %v8219_v30, 16  ;;  %v5677_v9 = vld [vmem:[%s6834_s27 + $0x9c] sm:$0xe]  ;;  %v8692_v44 = vld [vmem:[#allocation19_spill] sm:$0xff] }
 0x115   : > { %6304 = vmatmul.mubr.msk.bf16.gmra.mrb[16].mxu0 %vm709_vm4, %v8048_v43  ;;  %v5708_v43 = vcombine.low %v8209_v22, %v8226_v62  ;;  %v8241_v42 = vcombine.low %v2311_v4, %v2321_v7  ;;  %v5646_v52 = vcombine.low %v3938_v27, %v3948_v50  ;;  %v3957_v10 = vrot.slane %v3956_v20, 4  ;;  %v8248_v59 = vld [vmem:[%s6834_s27 + $0xd4] sm:$0x1]  ;;  %v6673_v20 = vld [vmem:[%s6834_s27 + $0x3c] sm:$0xff]  }
 0x116   : > { %6152 = vmatmul.mubr.msk.bf16.vlgmr.msra.gmra.mrb[0].mxu1 %vm709_vm4, %v6670_v31  ;;  %6307 = vmatprep.mubr.msk.bf16.mxu0 %vm709_vm4, %v8055_v49  ;;  %v3990_v49 = vor.u32 %v3989_v55, %v8205_v12  ;;  %v4451_v32 = vrot.slane %v8691_v38, 5  ;;  %v4454_v26 = vrot.slane %v7935_v58, 5  ;;  %v3967_v31 = vrot.slane %v3966_v57, 4  ;;  %v5678_v38 = vld [vmem:[%s6834_s27 + $0xa8] sm:$0xe] }
 0x117   : > { %6354 = vmatpush3.bf16.msra.mxu1 %v8690_v51  ;;  %6155 = vmatprep.mubr.msk.bf16.mxu1 %vm709_vm4, %v6671_v24  ;;  %v3981_v29 = vrot.slane %v3980_v33, 4  ;;  %v4000_v6 = vrot.slane %v3998_v54, 4  ;;  %v4003_v2 = vrot.slane %v4001_v23, 5  ;;  %v6672_v24 = vld [vmem:[%s6834_s27 + $0x30] sm:$0xff]   ;;  %v8250_v55 = vrot.slane %v4007_v17, 5 }
 0x118   : > { %v4013_v5 = vrot.slane %v4011_v18, 4  ;;  %v8254_v7 = vsel %vm7081_vm8, %v5692_v1, %v4451_v32  ;;  %v4453_v27 = vrot.slane %v4451_v32, 4  ;;  %v3991_v50 = vrot.slane %v3990_v49, 4  ;;  %v5666_v51 = vld [vmem:[%s6834_s27 + $0x18] sm:$0xe] }
 0x119   : > { %v3995_v58 = vrot.slane %v3993_v53, 5  ;;  %v3962_v57 = vsel %vm6860_vm5, %v3957_v10, %v8142_v41  ;;  %v5693_v54 = vrot.slane %v5677_v9, 9  ;;  %v3972_v23 = vsel %vm6860_vm5, %v3967_v31, %v3971_v48  ;;  %v6720_v53 = vld [vmem:[%s6834_s27 + $0x1c] sm:$0xf] }
 0x11a   : > { %v8262_v33 = vsel %vm7081_vm8, %v4453_v27, %v4454_v26  ;;  %v4017_v17 = vshll.u32 %v8248_v59, 16  ;;  %v4458_v4 = vrot.slane %v8692_v44, 5  ;;  %v3986_v41 = vsel %vm6860_vm5, %v3981_v29, %v8205_v12  ;;  %v6674_v29 = vld [vmem:[%s6834_s27 + $0x48] sm:$0xff]  }
 0x11b   : > { %v5709_v18 = vcombine.low %v8254_v7, %v8262_v33  ;;  %v4014_v1 = vor.u32 %v4013_v5, %v8250_v55  ;;  %v4461_v48 = vrot.slane %v7970_v15, 5  ;;  %v3996_v49 = vsel %vm6860_vm5, %v3991_v50, %v3995_v58  ;;  %v6675_v5 = vld [vmem:[%s6834_s27 + $0x54] sm:$0xff]  }
 0x11c   : > { %v8285_v10 = vsel %vm7081_vm8, %v5693_v54, %v4458_v4  ;;  %v4460_v12 = vrot.slane %v4458_v4, 4  ;;  %v5647_v32 = vcombine.low %v3962_v57, %v3972_v23  ;;  %v4019_v26 = vrot.slane %v4017_v17, 5  ;;  %v5667_v23 = vld [vmem:[%s6834_s27 + $0x24] sm:$0xe]  ;;  %v6722_v4 = vld [vmem:[%s6834_s27 + $0x28] sm:$0xf] }
 0x11d   : > { %6308 = vmatmul.mubr.msk.bf16.gmra.mrb[20].mxu0 %vm709_vm4, %v5645_v11  ;;  %v4004_v11 = vor.u32 %v4003_v2, %v4000_v6  ;;  %v5682_v31 = vrot.slane %v5666_v51, 9  ;;  %v5648_v6 = vcombine.low %v3986_v41, %v3996_v49  ;;  %v4015_v9 = vrot.slane %v4014_v1, 4  ;;  %v6723_v49 = vld [vmem:[%s6834_s27 + $0x34] sm:$0xf] }
 0x11e   : > { %6156 = vmatmul.mubr.msk.bf16.gmra.mrb[4].mxu1 %vm709_vm4, %v6672_v24  ;;  %6311 = vmatprep.mubr.msk.bf16.mxu0 %vm709_vm4, %v5646_v52  ;;  %v4381_v52 = vrot.slane %v6720_v53, 5  ;;  %v8290_v15 = vsel %vm7081_vm8, %v4460_v12, %v4461_v48  ;;  %v5694_v58 = vrot.slane %v5678_v38, 9  ;;  %v4465_v57 = vrot.slane %v7975_v21, 5  ;;  %v5668_v48 = vld [vmem:[%s6834_s27 + $0x30] sm:$0xe] }
 0x11f   : > { %6159 = vmatprep.mubr.msk.bf16.mxu1 %vm709_vm4, %v6673_v20  ;;  %v4005_v2 = vrot.slane %v4004_v11, 4  ;;  %v5710_v24 = vcombine.low %v8285_v10, %v8290_v15  ;;  %v6721_v20 = vld [vmem:[%s6834_s27 + $0x20] sm:$0x1]  ;;  %v4468_v54 = vrot.slane %v7984_v61, 5  ;;  %v4020_v61 = vsel %vm6860_vm5, %v4015_v9, %v4019_v26  ;;  %v5679_v11 = vld [vmem:[%s6834_s27 + $0xb4] sm:$0xe] }
 0x120   : > { %v4383_v27 = vrot.slane %v4381_v52, 4  ;;  %v4384_v50 = vrot.slane %v6721_v20, 5  ;;  %v8303_v17 = vsel %vm7081_vm8, %v5694_v58, %v4465_v57  ;;  %v4467_v44 = vrot.slane %v4465_v57, 4  ;;  %v6724_v26 = vld [vmem:[%s6834_s27 + $0x2c] sm:$0x1]  ;;  %v8693_v58 = vld [vmem:[#allocation6_spill] sm:$0xff] }
 0x121   : > { %v4010_v21 = vsel %vm6860_vm5, %v4005_v2, %v8250_v55  ;;  %v4388_v41 = vrot.slane %v6722_v4, 5  ;;  %v4382_v1 = vsel %vm7081_vm8, %v5682_v31, %v4381_v52  ;;  %v4395_v53 = vrot.slane %v6723_v49, 5  ;;  %v6677_v20 = vld [vmem:[%s6834_s27 + $0x6c] sm:$0xff]   ;;  %v6738_v10 = vld [vmem:[%s6834_s27 + $0xc8] sm:$0x1] }
 0x122   : > { %v4385_v51 = vsel %vm7081_vm8, %v4383_v27, %v4384_v50  ;;  %v8323_v55 = vsel %vm7081_vm8, %v4467_v44, %v4468_v54  ;;  %v5683_v12 = vrot.slane %v5667_v23, 9  ;;  %v5695_v52 = vrot.slane %v5679_v11, 9  ;;  %v5680_v44 = vld [vmem:[%s6834_s27 + $0xc0] sm:$0xe]  ;;  %v5669_v11 = vld [vmem:[%s6834_s27 + $0x3c] sm:$0xe] }
 0x123   : > { %v5711_v38 = vcombine.low %v8303_v17, %v8323_v55  ;;  %v4472_v31 = vrot.slane %v8053_v56, 5  ;;  %v5699_v2 = vcombine.low %v4382_v1, %v4385_v51  ;;  %v4390_v9 = vrot.slane %v4388_v41, 4  ;;  %v8694_v56 = vld [vmem:[#allocation7_spill] sm:$0xff] }
 0x124   : > { %v4475_v27 = vrot.slane %v8116_v3, 5  ;;  %v4397_v50 = vrot.slane %v4395_v53, 4  ;;  %v4398_v57 = vrot.slane %v8693_v58, 5  ;;  %v4389_v3 = vsel %vm7081_vm8, %v5683_v12, %v4388_v41 }
 0x125   : > { %6312 = vmatmul.mubr.msk.bf16.gmra.mrb[24].mxu0 %vm709_vm4, %v5647_v32  ;;  %v5649_v32 = vcombine.low %v4010_v21, %v4020_v61  ;;  %v8335_v54 = vsel %vm7081_vm8, %v5695_v52, %v4472_v31  ;;  %v4474_v23 = vrot.slane %v4472_v31, 4  ;;  %v4402_v21 = vrot.slane %v8694_v56, 5  ;;  %v8695_v31 = vld [vmem:[#allocation8_spill] sm:$0xff] }
 0x126   : > { %6160 = vmatmul.mubr.msk.bf16.gmra.mrb[8].mxu1 %vm709_vm4, %v6674_v29  ;;  %6315 = vmatprep.mubr.msk.bf16.mxu0 %vm709_vm4, %v5648_v6  ;;  %v4391_v29 = vrot.slane %v6724_v26, 5  ;;  %v6676_v6 = vld [vmem:[%s6834_s27 + $0x60] sm:$0xff]   ;;  %v5696_v49 = vrot.slane %v5680_v44, 9  ;;  %v4479_v41 = vrot.slane %v8134_v40, 5  ;;  %v4482_v12 = vrot.slane %v8219_v30, 5 }
 0x127   : > { %6163 = vmatprep.mubr.msk.bf16.mxu1 %vm709_vm4, %v6675_v5  ;;  %v5684_v5 = vrot.slane %v5668_v48, 9  ;;  %v8342_v61 = vsel %vm7081_vm8, %v4474_v23, %v4475_v27  ;;  %v4399_v48 = vsel %vm7081_vm8, %v4397_v50, %v4398_v57  ;;  %v4404_v52 = vrot.slane %v4402_v21, 4  ;;  %v6725_v56 = vld [vmem:[%s6834_s27 + $0x70] sm:$0xf] }
 0x128   : > { %v4392_v4 = vsel %vm7081_vm8, %v4390_v9, %v4391_v29  ;;  %v5712_v1 = vcombine.low %v8335_v54, %v8342_v61  ;;  %v5685_v29 = vrot.slane %v5669_v11, 9  ;;  %v6678_v9 = vld [vmem:[%s6834_s27 + $0x78] sm:$0xff]   ;;  %v4486_v11 = vrot.slane %v8200_v47, 5 }
 0x129   : > { %v4396_v51 = vsel %vm7081_vm8, %v5684_v5, %v4395_v53  ;;  %v5700_v26 = vcombine.low %v4389_v3, %v4392_v4  ;;  %v8366_v53 = vsel %vm7081_vm8, %v5696_v49, %v4479_v41  ;;  %v4481_v5 = vrot.slane %v4479_v41, 4 }
 0x12a   : > { %v5701_v27 = vcombine.low %v4396_v51, %v4399_v48  ;;  %v4403_v57 = vsel %vm7081_vm8, %v5685_v29, %v4402_v21  ;;  %v2284_v3 = vshll.u32 %v6725_v56, 16  ;;  %v2288_v4 = vshrl.u32 %v6725_v56, 16 }
 0x12b   : > { %v8371_v40 = vsel %vm7081_vm8, %v4481_v5, %v4482_v12  ;;  %v4489_v21 = vrot.slane %v8248_v59, 5  ;;  %v6680_v12 = vld [vmem:[%s6834_s27 + $0x90] sm:$0xff]   ;;  %v6681_v59 = vld [vmem:[%s6834_s27 + $0x9c] sm:$0xff]   ;;  %v2462_v15 = vshll.u32 %v6738_v10, 16 }
 0x12c   : > { %v5713_v44 = vcombine.low %v8366_v53, %v8371_v40  ;;  %v2290_v29 = vrot.slane %v2288_v4, 4  ;;  %v6683_v4 = vld [vmem:[%s6834_s27 + $0xb4] sm:$0xff]  }
 0x12d   : > { %6316 = vmatmul.mubr.msk.bf16.gmra.mrb[28].mxu0 %vm709_vm4, %v5649_v32  ;;  %v5398_v32 = vld [vmem:[%s6834_s27 + $0x6c] sm:$0xf] }
 0x12e   : > { %6164 = vmatmul.mubr.msk.bf16.gmra.mrb[12].mxu1 %vm709_vm4, %v6676_v6  ;;  %6321 = vmatprep.mubr.msk.bf16.mxu0 %vm709_vm4, %v5699_v2  ;;  %v4405_v6 = vrot.slane %v8695_v31, 5  ;;  %v5681_v2 = vld [vmem:[%s6834_s27 + $0xcc] sm:$0xe]  ;;  %v2275_v50 = vshrl.u32 %v5398_v32, 16  ;;  %v2278_v58 = vshll.u32 %v5398_v32, 16  ;;  %v4488_v32 = vrot.slane %v4486_v11, 4 }
 0x12f   : > { %6167 = vmatprep.mubr.msk.bf16.mxu1 %vm709_vm4, %v6677_v20  ;;  %v6679_v20 = vld [vmem:[%s6834_s27 + $0x84] sm:$0xff]   ;;  %v5697_v30 = vrot.slane %v5681_v2, 9  ;;  %v6726_v2 = vld [vmem:[%s6834_s27 + $0x74] sm:$0x1] }
 0x130   : > { %v4406_v23 = vsel %vm7081_vm8, %v4404_v52, %v4405_v6  ;;  %v2277_v51 = vrot.slane %v2275_v50, 4  ;;  %v2280_v48 = vrot.slane %v2278_v58, 5  ;;  %v8393_v47 = vsel %vm7081_vm8, %v4488_v32, %v4489_v21  ;;  %v5404_v52 = vld [vmem:[%s6834_s27 + $0x84] sm:$0xf] }
 0x131   : > { %v8388_v49 = vsel %vm7081_vm8, %v5697_v30, %v4486_v11  ;;  %v5702_v41 = vcombine.low %v4403_v57, %v4406_v23  ;;  %v2326_v5 = vshll.u32 %v5404_v52, 16  ;;  %v5407_v57 = vld [vmem:[%s6834_s27 + $0x90] sm:$0xf]  ;;  %v6682_v23 = vld [vmem:[%s6834_s27 + $0xa8] sm:$0xff]  }
 0x132   : > { %v5714_v31 = vcombine.low %v8388_v49, %v8393_v47  ;;  %v2281_v6 = vor.u32 %v2280_v48, %v2277_v51  ;;  %v2347_v51 = vshrl.u32 %v5407_v57, 16  ;;  %v2350_v48 = vshll.u32 %v5407_v57, 16 }
 0x134   : > { %v2282_v30 = vrot.slane %v2281_v6, 4  ;;  %v6729_v6 = vld [vmem:[%s6834_s27 + $0x8c] sm:$0x1]  ;;  %v2352_v60 = vrot.slane %v2350_v48, 5  ;;  %v6732_v48 = vld [vmem:[%s6834_s27 + $0xa4] sm:$0x1] }
 0x135   : > { %6322 = vmatmul.mubr.msk.bf16.vlgmr.msra.gmra.mrb[0].mxu0 %vm709_vm4, %v5700_v26  ;;  %v2286_v26 = vrot.slane %v2284_v3, 5  ;;  %v5410_v3 = vld [vmem:[%s6834_s27 + $0x9c] sm:$0xf]  ;;  %v2342_v19 = vshll.u32 %v6729_v6, 16 }
 0x136   : > { %6168 = vmatmul.mubr.msk.bf16.gmra.mrb[16].mxu1 %vm709_vm4, %v6678_v9  ;;  %6325 = vmatprep.mubr.msk.bf16.mxu0 %vm709_vm4, %v5701_v27  ;;  %v2294_v9 = vshll.u32 %v6726_v2, 16  ;;  %v2323_v27 = vshrl.u32 %v5404_v52, 16  ;;  %v2374_v52 = vshll.u32 %v5410_v3, 16 }
 0x137   : > { %6171 = vmatprep.mubr.msk.bf16.mxu1 %vm709_vm4, %v6679_v20  ;;  %v2291_v45 = vor.u32 %v2290_v29, %v2286_v26  ;;  %v6727_v20 = vld [vmem:[%s6834_s27 + $0x88] sm:$0xf]  ;;  %v2287_v32 = vsel %vm6860_vm5, %v2282_v30, %v2286_v26  ;;  %v2344_v30 = vrot.slane %v2342_v19, 5 }
 0x138   : > { %v2332_v50 = vshll.u32 %v6727_v20, 16  ;;  %v2336_v58 = vshrl.u32 %v6727_v20, 16  ;;  %v2296_v25 = vrot.slane %v2294_v9, 5  ;;  %v2325_v34 = vrot.slane %v2323_v27, 4 }
 0x139   : > { %v2292_v56 = vrot.slane %v2291_v45, 4  ;;  %v2384_v45 = vshrl.u32 %v6730_v0, 16  ;;  %v2349_v27 = vrot.slane %v2347_v51, 4  ;;  %v2376_v20 = vrot.slane %v2374_v52, 5 }
 0x13a   : > { %v8412_v11 = vrot.slane %v2332_v50, 5  ;;  %v2338_v21 = vrot.slane %v2336_v58, 4  ;;  %v6684_v50 = vld [vmem:[%s6834_s27 + $0xc0] sm:$0xff]  }
 0x13b   : > { %v2297_v26 = vsel %vm6860_vm5, %v2292_v56, %v2296_v25  ;;  %v5413_v56 = vld [vmem:[%s6834_s27 + $0xa8] sm:$0xf] }
 0x13c   : > { %v2339_v9 = vor.u32 %v2338_v21, %v8412_v11  ;;  %v5431_v58 = vcombine.low %v2287_v32, %v2297_v26  ;;  %v2390_v32 = vshll.u32 %v6732_v48, 16  ;;  %v2398_v39 = vshll.u32 %v5413_v56, 16 }
 0x13d   : > { %6326 = vmatmul.mubr.msk.bf16.gmra.mrb[4].mxu0 %vm709_vm4, %v5702_v41  ;;  %v6728_v41 = vld [vmem:[%s6834_s27 + $0x94] sm:$0xf] }
 0x13e   : > { %6172 = vmatmul.mubr.msk.bf16.gmra.mrb[20].mxu1 %vm709_vm4, %v6680_v12  ;;  %6329 = vmatprep.mubr.msk.bf16.mxu0 %vm709_vm4, %v5703_v14  ;;  %v2328_v14 = vrot.slane %v2326_v5, 5  ;;  %v2356_v12 = vshll.u32 %v6728_v41, 16  ;;  %v2360_v29 = vshrl.u32 %v6728_v41, 16  ;;  %v2395_v41 = vshrl.u32 %v5413_v56, 16  ;;  %v5419_v56 = vld [vmem:[%s6834_s27 + $0xc0] sm:$0xf] }
 0x13f   : > { %6175 = vmatprep.mubr.msk.bf16.mxu1 %vm709_vm4, %v6681_v59  ;;  %v2371_v59 = vshrl.u32 %v5410_v3, 16  ;;  %v6731_v3 = vld [vmem:[%s6834_s27 + $0x98] sm:$0x1] }
 0x140   : > { %v2329_v2 = vor.u32 %v2328_v14, %v2325_v34  ;;  %v8432_v36 = vrot.slane %v2356_v12, 5  ;;  %v2340_v34 = vrot.slane %v2339_v9, 4  ;;  %v2353_v14 = vor.u32 %v2352_v60, %v2349_v27  ;;  %v5416_v12 = vld [vmem:[%s6834_s27 + $0xb4] sm:$0xf] }
 0x141   : > { %v2373_v5 = vrot.slane %v2371_v59, 4  ;;  %v2408_v59 = vshrl.u32 %v6733_v8, 16  ;;  %v2419_v35 = vshrl.u32 %v5416_v12, 16  ;;  %v2422_v13 = vshll.u32 %v5416_v12, 16 }
 0x142   : > { %v2330_v25 = vrot.slane %v2329_v2, 4  ;;  %v2345_v26 = vsel %vm6860_vm5, %v2340_v34, %v2344_v30  ;;  %v2354_v6 = vrot.slane %v2353_v14, 4  ;;  %v2392_v9 = vrot.slane %v2390_v32, 5 }
 0x143   : > { %v2377_v51 = vor.u32 %v2376_v20, %v2373_v5  ;;  %v2397_v27 = vrot.slane %v2395_v41, 4  ;;  %v2410_v20 = vrot.slane %v2408_v59, 4  ;;  %v6737_v41 = vld [vmem:[%s6834_s27 + $0xbc] sm:$0x1] }
 0x144   : > { %v2335_v52 = vsel %vm6860_vm5, %v2330_v25, %v8412_v11  ;;  %v2359_v25 = vsel %vm6860_vm5, %v2354_v6, %v8432_v36  ;;  %v2438_v7 = vshll.u32 %v6737_v41, 16 }
 0x145   : > { %6330 = vmatmul.mubr.msk.bf16.gmra.mrb[8].mxu0 %vm709_vm4, %v5704_v16  ;;  %v2380_v16 = vshll.u32 %v6730_v0, 16  ;;  %v2378_v2 = vrot.slane %v2377_v51, 4  ;;  %v5433_v11 = vcombine.low %v2335_v52, %v2345_v26 }
 0x146   : > { %6176 = vmatmul.mubr.msk.bf16.gmra.mrb[24].mxu1 %vm709_vm4, %v6682_v23  ;;  %6333 = vmatprep.mubr.msk.bf16.mxu0 %vm709_vm4, %v5705_v28  ;;  %v2362_v28 = vrot.slane %v2360_v29, 4  ;;  %v2386_v23 = vrot.slane %v2384_v45, 4 }
 0x147   : > { %6179 = vmatprep.mubr.msk.bf16.mxu1 %vm709_vm4, %v6683_v4  ;;  %v8435_v57 = vrot.slane %v2380_v16, 5  ;;  %v2366_v4 = vshll.u32 %v6731_v3, 16 }
 0x148   : > { %v2363_v21 = vor.u32 %v2362_v28, %v8432_v36  ;;  %v2400_v28 = vrot.slane %v2398_v39, 5  ;;  %v6735_v36 = vld [vmem:[%s6834_s27 + $0xb0] sm:$0x1] }
 0x149   : > { %v2387_v29 = vor.u32 %v2386_v23, %v8435_v57  ;;  %v2368_v19 = vrot.slane %v2366_v4, 5  ;;  %v2383_v14 = vsel %vm6860_vm5, %v2378_v2, %v8435_v57  ;;  %v2414_v3 = vshll.u32 %v6735_v36, 16 }
 0x14a   : > { %v2364_v45 = vrot.slane %v2363_v21, 4  ;;  %v2401_v62 = vor.u32 %v2400_v28, %v2397_v27  ;;  %v2443_v4 = vshrl.u32 %v5419_v56, 16  ;;  %v2446_v57 = vshll.u32 %v5419_v56, 16  ;;  %v6736_v21 = vld [vmem:[%s6834_s27 + $0xc4] sm:$0xf] }
 0x14b   : > { %v2388_v60 = vrot.slane %v2387_v29, 4  ;;  %v2452_v51 = vshll.u32 %v6736_v21, 16  ;;  %v2456_v48 = vshrl.u32 %v6736_v21, 16  ;;  %v2416_v39 = vrot.slane %v2414_v3, 5 }
 0x14c   : > { %v2369_v34 = vsel %vm6860_vm5, %v2364_v45, %v2368_v19  ;;  %v2402_v12 = vrot.slane %v2401_v62, 4  ;;  %v2440_v19 = vrot.slane %v2438_v7, 5  ;;  %v2464_v2 = vrot.slane %v2462_v15, 5 }
 0x14d   : > { %6334 = vmatmul.mubr.msk.bf16.gmra.mrb[12].mxu0 %vm709_vm4, %v5706_v63  ;;  %v2404_v63 = vshll.u32 %v6733_v8, 16  ;;  %v2393_v22 = vsel %vm6860_vm5, %v2388_v60, %v2392_v9  ;;  %v5434_v33 = vcombine.low %v2359_v25, %v2369_v34  ;;  %v2445_v8 = vrot.slane %v2443_v4, 4 }
 0x14e   : > { %6180 = vmatmul.mubr.msk.bf16.gmra.mrb[28].mxu1 %vm709_vm4, %v6684_v50  ;;  %6337 = vmatprep.mubr.msk.bf16.mxu0 %vm709_vm4, %v5707_v46  ;;  %v6734_v46 = vld [vmem:[%s6834_s27 + $0xb8] sm:$0xf]  ;;  %v2421_v50 = vrot.slane %v2419_v35, 4  ;;  %v2454_v59 = vrot.slane %v2452_v51, 5  ;;  %v2458_v52 = vrot.slane %v2456_v48, 4 }
 0x14f   : > { %6201 = vmatprep.mubr.msk.bf16.mxu1 %vm709_vm4, %v5431_v58  ;;  %v2428_v0 = vshll.u32 %v6734_v46, 16  ;;  %v2432_v16 = vshrl.u32 %v6734_v46, 16  ;;  %v2406_v5 = vrot.slane %v2404_v63, 5  ;;  %v2424_v58 = vrot.slane %v2422_v13, 5 }
 0x150   : > { %v2448_v63 = vrot.slane %v2446_v57, 5 }
 0x151   : > { %v2430_v30 = vrot.slane %v2428_v0, 5  ;;  %v2434_v23 = vrot.slane %v2432_v16, 4  ;;  %v2407_v35 = vsel %vm6860_vm5, %v2402_v12, %v2406_v5  ;;  %v2459_v0 = vor.u32 %v2458_v52, %v2454_v59 }
 0x152   : > { %v2449_v46 = vor.u32 %v2448_v63, %v2445_v8 }
 0x153   : > { %v2435_v32 = vor.u32 %v2434_v23, %v2430_v30  ;;  %v2460_v45 = vrot.slane %v2459_v0, 4  ;;  %v8542_v23 = vld [vmem:[%s8617_s2] ss:$0 sm:$0xff] }
 0x154   : > { %v2450_v16 = vrot.slane %v2449_v46, 4 }
 0x155   : > { %6338 = vmatmul.mubr.msk.bf16.gmra.mrb[16].mxu0 %vm709_vm4, %v5708_v43  ;;  %v2411_v43 = vor.u32 %v2410_v20, %v2406_v5  ;;  %v2436_v6 = vrot.slane %v2435_v32, 4  ;;  %v2465_v27 = vsel %vm6860_vm5, %v2460_v45, %v2464_v2 }
 0x156   : > { %6202 = vmatmul.mubr.msk.bf16.vlgmr.msra.gmra.mrb[16].mxu1 %vm709_vm4, %v8241_v42  ;;  %6341 = vmatprep.mubr.msk.bf16.mxu0 %vm709_vm4, %v5709_v18  ;;  %v2425_v42 = vor.u32 %v2424_v58, %v2421_v50  ;;  %v5435_v18 = vcombine.low %v2383_v14, %v2393_v22  ;;  %v2455_v9 = vsel %vm6860_vm5, %v2450_v16, %v2454_v59 }
 0x157   : > { %6205 = vmatprep.mubr.msk.bf16.mxu1 %vm709_vm4, %v5433_v11  ;;  %v2412_v29 = vrot.slane %v2411_v43, 4  ;;  %v2441_v17 = vsel %vm6860_vm5, %v2436_v6, %v2440_v19  ;;  %v5438_v60 = vcombine.low %v2455_v9, %v2465_v27 }
 0x158   : > { %v2426_v26 = vrot.slane %v2425_v42, 4 }
 0x159   : > { %v2417_v13 = vsel %vm6860_vm5, %v2412_v29, %v2416_v39 }
 0x15a   : > { %v5436_v55 = vcombine.low %v2407_v35, %v2417_v13 }
 0x15d   : > { %6342 = vmatmul.mubr.msk.bf16.gmra.mrb[20].mxu0 %vm709_vm4, %v5710_v24  ;;  %v2431_v24 = vsel %vm6860_vm5, %v2426_v26, %v2430_v30 }
 0x15e   : > { %6206 = vmatmul.mubr.msk.bf16.gmra.mrb[20].mxu1 %vm709_vm4, %v5434_v33  ;;  %6345 = vmatprep.mubr.msk.bf16.mxu0 %vm709_vm4, %v5711_v38  ;;  %v5437_v38 = vcombine.low %v2431_v24, %v2441_v17 }
 0x15f   : > { %6209 = vmatprep.mubr.msk.bf16.mxu1 %vm709_vm4, %v5435_v18 }
 0x165   : > { %6346 = vmatmul.mubr.msk.bf16.gmra.mrb[24].mxu0 %vm709_vm4, %v5712_v1 }
 0x166   : > { %6210 = vmatmul.mubr.msk.bf16.gmra.mrb[24].mxu1 %vm709_vm4, %v5436_v55  ;;  %6349 = vmatprep.mubr.msk.bf16.mxu0 %vm709_vm4, %v5713_v44 }
 0x167   : > { %6213 = vmatprep.mubr.msk.bf16.mxu1 %vm709_vm4, %v5437_v38 }
 0x16d   : > { %6350 = vmatmul.mubr.msk.bf16.gmra.mrb[28].mxu0 %vm709_vm4, %v5714_v31 }
 0x16e   : > { %6214 = vmatmul.mubr.msk.bf16.gmra.mrb[28].mxu1 %vm709_vm4, %v5438_v60 }
 0x1e9   : > { %v6153_v54 = vpop.f32.mrb[0].mxu1 }
 0x1ea   : > { %v1875_v61 = vpop.f32.mrb[1].mxu1 }
 0x1eb   : > { %v6154_v1 = vpop.f32.mrb[2].mxu1 }
 0x1ec   : > { %v1878_v53 = vpop.f32.mrb[3].mxu1 }
 0x1f1   : > { %v6157_v40 = vpop.f32.mrb[4].mxu1 }
 0x1f2   : > { %v1891_v44 = vpop.f32.mrb[5].mxu1 }
 0x1f3   : > { %v6158_v28 = vpop.f32.mrb[6].mxu1 }
 0x1f4   : > { %v1894_v5 = vpop.f32.mrb[7].mxu1 }
 0x1f9   : > { %v8523_v20 = vpop.f32.mrb[8].mxu1 }
 0x1fa   : > { %v8525_v37 = vpop.f32.mrb[9].mxu1 }
 0x1fb   : > { %v8527_v11 = vpop.f32.mrb[10].mxu1 }
 0x1fc   : > { %v8529_v50 = vpop.f32.mrb[11].mxu1 }
 0x201   : > { %v8531_v49 = vpop.f32.mrb[12].mxu1 }
 0x202   : > { %v8533_v47 = vpop.f32.mrb[13].mxu1 }
 0x203   : > { %v8535_v31 = vpop.f32.mrb[14].mxu1 }
 0x204   : > { %v8537_v58 = vpop.f32.mrb[15].mxu1 }
 0x208   : > { %v6323_v30 = vpop.f32.mrb[0].mxu0 }
 0x209   : > { %v6355_v56 = vadd.f32 %v6323_v30, %v6153_v54  ;;  %v4626_v25 = vpop.f32.mrb[1].mxu0 }
 0x20a   : > { %v6356_v34 = vadd.f32 %v4626_v25, %v1875_v61  ;;  %v6324_v14 = vpop.f32.mrb[2].mxu0 }
 0x20b   : > { %v4794_v22 = vadd.f32 %v6355_v56, %v8542_v23  ;;  %v6357_v62 = vadd.f32 %v6324_v14, %v6154_v1  ;;  %v4629_v43 = vpop.f32.mrb[3].mxu0 }
 0x20c   : > { %v4792_v36 = vadd.f32 %v6356_v34, %v8542_v23  ;;  %v6358_v3 = vadd.f32 %v4629_v43, %v1878_v53 }
 0x20d   : > { %v4858_v4 = vmul.f32 0.01, %v4794_v22  ;;  %v4795_v57 = vadd.f32 %v6357_v62, %v8542_v23  ;;  %vm4826_vm9 = vcmp.gt.f32.partialorder %v4794_v22, 0.0 }
 0x20e   : > { %v4856_v21 = vmul.f32 0.01, %v4792_v36  ;;  %v4793_v51 = vadd.f32 %v6358_v3, %v8542_v23  ;;  %vm4824_vm10 = vcmp.gt.f32.partialorder %v4792_v36, 0.0 }
 0x20f   : > { %vm4827_vm11 = vcmp.gt.f32.partialorder %v4795_v57, 0.0  ;;  %v4859_v48 = vmul.f32 0.01, %v4795_v57  ;;  %v4890_v41 = vsel %vm4826_vm9, %v4794_v22, %v4858_v4 }
 0x210   : > { %vm4825_vm12 = vcmp.gt.f32.partialorder %v4793_v51, 0.0  ;;  %v4857_v42 = vmul.f32 0.01, %v4793_v51  ;;  %v6327_v32 = vpop.f32.mrb[4].mxu0  ;;  %v4888_v12 = vsel %vm4824_vm10, %v4792_v36, %v4856_v21 }
 0x211   : > { %v4891_v7 = vsel %vm4827_vm11, %v4795_v57, %v4859_v48  ;;  %v6359_v33 = vadd.f32 %v6327_v32, %v6157_v40  ;;  %v4642_v18 = vpop.f32.mrb[5].mxu0 }
 0x212   : > { %v5807_v29 = vpack.c.bf16 %v4891_v7, %v4890_v41  ;;  %v4889_v39 = vsel %vm4825_vm12, %v4793_v51, %v4857_v42  ;;  %v6360_v8 = vadd.f32 %v4642_v18, %v1891_v44  ;;  %v6328_v63 = vpop.f32.mrb[6].mxu0 }
 0x213   : > { %v5802_v59 = vpack.c.bf16 %v4889_v39, %v4888_v12  ;;  %v4798_v52 = vadd.f32 %v6359_v33, %v8542_v23  ;;  %v6361_v26 = vadd.f32 %v6328_v63, %v6158_v28  ;;  %v4645_v6 = vpop.f32.mrb[7].mxu0 }
 0x214   : > { %5879 = vst [vmem:[%s8552_s20 + $0x8] sm:$0xff] %v5807_v29   ;;  %v4796_v19 = vadd.f32 %v6360_v8, %v8542_v23  ;;  %v6362_v35 = vadd.f32 %v4645_v6, %v1894_v5 }
 0x215   : > { %5803 = vst [vmem:[%s8552_s20] sm:$0xff] %v5802_v59   ;;  %v4862_v13 = vmul.f32 0.01, %v4798_v52  ;;  %v4799_v46 = vadd.f32 %v6361_v26, %v8542_v23  ;;  %vm4830_vm13 = vcmp.gt.f32.partialorder %v4798_v52, 0.0 }
 0x216   : > { %v4860_v0 = vmul.f32 0.01, %v4796_v19  ;;  %v4797_v10 = vadd.f32 %v6362_v35, %v8542_v23  ;;  %vm4828_vm14 = vcmp.gt.f32.partialorder %v4796_v19, 0.0 }
 0x217   : > { %vm4831_vm15 = vcmp.gt.f32.partialorder %v4799_v46, 0.0  ;;  %v4863_v15 = vmul.f32 0.01, %v4799_v46  ;;  %v4894_v55 = vsel %vm4830_vm13, %v4798_v52, %v4862_v13 }
 0x218   : > { %vm4829_vm0 = vcmp.gt.f32.partialorder %v4797_v10, 0.0  ;;  %v4861_v24 = vmul.f32 0.01, %v4797_v10  ;;  %v6331_v17 = vpop.f32.mrb[8].mxu0  ;;  %v4892_v2 = vsel %vm4828_vm14, %v4796_v19, %v4860_v0 }
 0x219   : > { %v4895_v38 = vsel %vm4831_vm15, %v4799_v46, %v4863_v15  ;;  %v6363_v16 = vadd.f32 %v6331_v17, %v8523_v20  ;;  %v4658_v45 = vpop.f32.mrb[9].mxu0 }
 0x21a   : > { %v5817_v9 = vpack.c.bf16 %v4895_v38, %v4894_v55  ;;  %v4893_v27 = vsel %vm4829_vm0, %v4797_v10, %v4861_v24  ;;  %v6364_v60 = vadd.f32 %v4658_v45, %v8525_v37  ;;  %v6332_v54 = vpop.f32.mrb[10].mxu0 }
 0x21b   : > { %v5812_v61 = vpack.c.bf16 %v4893_v27, %v4892_v2  ;;  %v4802_v1 = vadd.f32 %v6363_v16, %v8542_v23  ;;  %v6365_v53 = vadd.f32 %v6332_v54, %v8527_v11  ;;  %v4661_v40 = vpop.f32.mrb[11].mxu0 }
 0x21c   : > { %5881 = vst [vmem:[%s8552_s20 + $0x18] sm:$0xff] %v5817_v9   ;;  %v4800_v44 = vadd.f32 %v6364_v60, %v8542_v23  ;;  %v6366_v28 = vadd.f32 %v4661_v40, %v8529_v50 }
 0x21d   : > { %5880 = vst [vmem:[%s8552_s20 + $0x10] sm:$0xff] %v5812_v61   ;;  %v4866_v5 = vmul.f32 0.01, %v4802_v1  ;;  %v4803_v20 = vadd.f32 %v6365_v53, %v8542_v23  ;;  %vm4834_vm1 = vcmp.gt.f32.partialorder %v4802_v1, 0.0 }
 0x21e   : > { %v4864_v30 = vmul.f32 0.01, %v4800_v44  ;;  %v4801_v37 = vadd.f32 %v6366_v28, %v8542_v23  ;;  %vm4832_vm2 = vcmp.gt.f32.partialorder %v4800_v44, 0.0 }
 0x21f   : > { %vm4835_vm3 = vcmp.gt.f32.partialorder %v4803_v20, 0.0  ;;  %v4867_v56 = vmul.f32 0.01, %v4803_v20  ;;  %v4898_v34 = vsel %vm4834_vm1, %v4802_v1, %v4866_v5 }
 0x220   : > { %vm4833_vm4 = vcmp.gt.f32.partialorder %v4801_v37, 0.0  ;;  %v4865_v11 = vmul.f32 0.01, %v4801_v37  ;;  %v6335_v25 = vpop.f32.mrb[12].mxu0  ;;  %v4896_v62 = vsel %vm4832_vm2, %v4800_v44, %v4864_v30 }
 0x221   : > { %v4899_v14 = vsel %vm4835_vm3, %v4803_v20, %v4867_v56  ;;  %v6367_v50 = vadd.f32 %v6335_v25, %v8531_v49  ;;  %v4674_v22 = vpop.f32.mrb[13].mxu0 }
 0x222   : > { %v5827_v43 = vpack.c.bf16 %v4899_v14, %v4898_v34  ;;  %v4897_v36 = vsel %vm4833_vm4, %v4801_v37, %v4865_v11  ;;  %v6368_v3 = vadd.f32 %v4674_v22, %v8533_v47  ;;  %v6336_v4 = vpop.f32.mrb[14].mxu0 }
 0x223   : > { %v5822_v57 = vpack.c.bf16 %v4897_v36, %v4896_v62  ;;  %v4806_v21 = vadd.f32 %v6367_v50, %v8542_v23  ;;  %v6369_v51 = vadd.f32 %v6336_v4, %v8535_v31  ;;  %v4677_v48 = vpop.f32.mrb[15].mxu0 }
 0x224   : > { %5883 = vst [vmem:[%s8552_s20 + $0x28] sm:$0xff] %v5827_v43   ;;  %v4804_v42 = vadd.f32 %v6368_v3, %v8542_v23  ;;  %v6370_v32 = vadd.f32 %v4677_v48, %v8537_v58 }
 0x225   : > { %5882 = vst [vmem:[%s8552_s20 + $0x20] sm:$0xff] %v5822_v57   ;;  %v4870_v49 = vmul.f32 0.01, %v4806_v21  ;;  %v4807_v41 = vadd.f32 %v6369_v51, %v8542_v23  ;;  %vm4838_vm5 = vcmp.gt.f32.partialorder %v4806_v21, 0.0 }
 0x226   : > { %v4868_v7 = vmul.f32 0.01, %v4804_v42  ;;  %v4805_v47 = vadd.f32 %v6370_v32, %v8542_v23  ;;  %vm4836_vm6 = vcmp.gt.f32.partialorder %v4804_v42, 0.0 }
 0x227   : > { %vm4839_vm7 = vcmp.gt.f32.partialorder %v4807_v41, 0.0  ;;  %v4871_v33 = vmul.f32 0.01, %v4807_v41  ;;  %v4902_v12 = vsel %vm4838_vm5, %v4806_v21, %v4870_v49 }
 0x228   : > { %vm4837_vm8 = vcmp.gt.f32.partialorder %v4805_v47, 0.0  ;;  %v4869_v18 = vmul.f32 0.01, %v4805_v47  ;;  %v6339_v31 = vpop.f32.mrb[16].mxu0  ;;  %v4900_v8 = vsel %vm4836_vm6, %v4804_v42, %v4868_v7 }
 0x229   : > { %v4903_v29 = vsel %vm4839_vm7, %v4807_v41, %v4871_v33  ;;  %v6203_v39 = vpop.f32.mrb[16].mxu1  ;;  %v4690_v58 = vpop.f32.mrb[17].mxu0 }
 0x22a   : > { %v5837_v63 = vpack.c.bf16 %v4903_v29, %v4902_v12  ;;  %v4901_v59 = vsel %vm4837_vm8, %v4805_v47, %v4869_v18  ;;  %v6371_v52 = vadd.f32 %v6339_v31, %v6203_v39  ;;  %v2665_v26 = vpop.f32.mrb[17].mxu1  ;;  %v6340_v6 = vpop.f32.mrb[18].mxu0 }
 0x22b   : > { %v5832_v19 = vpack.c.bf16 %v4901_v59, %v4900_v8  ;;  %v6372_v35 = vadd.f32 %v4690_v58, %v2665_v26  ;;  %v6204_v13 = vpop.f32.mrb[18].mxu1  ;;  %v4693_v46 = vpop.f32.mrb[19].mxu0 }
 0x22c   : > { %5885 = vst [vmem:[%s8552_s20 + $0x38] sm:$0xff] %v5837_v63   ;;  %v4810_v0 = vadd.f32 %v6371_v52, %v8542_v23  ;;  %v6373_v10 = vadd.f32 %v6340_v6, %v6204_v13  ;;  %v2668_v15 = vpop.f32.mrb[19].mxu1 }
 0x22d   : > { %5884 = vst [vmem:[%s8552_s20 + $0x30] sm:$0xff] %v5832_v19   ;;  %v4808_v24 = vadd.f32 %v6372_v35, %v8542_v23  ;;  %v6374_v17 = vadd.f32 %v4693_v46, %v2668_v15 }
 0x22e   : > { %v4874_v55 = vmul.f32 0.01, %v4810_v0  ;;  %v4811_v38 = vadd.f32 %v6373_v10, %v8542_v23  ;;  %vm4842_vm9 = vcmp.gt.f32.partialorder %v4810_v0, 0.0 }
 0x22f   : > { %v4872_v16 = vmul.f32 0.01, %v4808_v24  ;;  %v4809_v45 = vadd.f32 %v6374_v17, %v8542_v23  ;;  %vm4840_vm10 = vcmp.gt.f32.partialorder %v4808_v24, 0.0 }
 0x230   : > { %vm4843_vm11 = vcmp.gt.f32.partialorder %v4811_v38, 0.0  ;;  %v4875_v2 = vmul.f32 0.01, %v4811_v38  ;;  %v6343_v9 = vpop.f32.mrb[20].mxu0  ;;  %v4906_v61 = vsel %vm4842_vm9, %v4810_v0, %v4874_v55 }
 0x231   : > { %vm4841_vm12 = vcmp.gt.f32.partialorder %v4809_v45, 0.0  ;;  %v4873_v27 = vmul.f32 0.01, %v4809_v45  ;;  %v6207_v60 = vpop.f32.mrb[20].mxu1  ;;  %v4706_v54 = vpop.f32.mrb[21].mxu0  ;;  %v4904_v28 = vsel %vm4840_vm10, %v4808_v24, %v4872_v16 }
 0x232   : > { %v4907_v1 = vsel %vm4843_vm11, %v4811_v38, %v4875_v2  ;;  %v6375_v53 = vadd.f32 %v6343_v9, %v6207_v60  ;;  %v2681_v40 = vpop.f32.mrb[21].mxu1  ;;  %v6344_v44 = vpop.f32.mrb[22].mxu0 }
 0x233   : > { %v5847_v5 = vpack.c.bf16 %v4907_v1, %v4906_v61  ;;  %v4905_v20 = vsel %vm4841_vm12, %v4809_v45, %v4873_v27  ;;  %v6376_v30 = vadd.f32 %v4706_v54, %v2681_v40  ;;  %v6208_v37 = vpop.f32.mrb[22].mxu1  ;;  %v4709_v56 = vpop.f32.mrb[23].mxu0 }
 0x234   : > { %v5842_v11 = vpack.c.bf16 %v4905_v20, %v4904_v28  ;;  %v4814_v25 = vadd.f32 %v6375_v53, %v8542_v23  ;;  %v6377_v34 = vadd.f32 %v6344_v44, %v6208_v37  ;;  %v2684_v14 = vpop.f32.mrb[23].mxu1 }
 0x235   : > { %5887 = vst [vmem:[%s8552_s20 + $0x48] sm:$0xff] %v5847_v5   ;;  %v4812_v50 = vadd.f32 %v6376_v30, %v8542_v23  ;;  %v6378_v22 = vadd.f32 %v4709_v56, %v2684_v14 }
 0x236   : > { %5886 = vst [vmem:[%s8552_s20 + $0x40] sm:$0xff] %v5842_v11   ;;  %v4878_v62 = vmul.f32 0.01, %v4814_v25  ;;  %v4815_v43 = vadd.f32 %v6377_v34, %v8542_v23  ;;  %vm4846_vm13 = vcmp.gt.f32.partialorder %v4814_v25, 0.0 }
 0x237   : > { %v4876_v36 = vmul.f32 0.01, %v4812_v50  ;;  %v4813_v3 = vadd.f32 %v6378_v22, %v8542_v23  ;;  %vm4844_vm14 = vcmp.gt.f32.partialorder %v4812_v50, 0.0 }
 0x238   : > { %vm4847_vm15 = vcmp.gt.f32.partialorder %v4815_v43, 0.0  ;;  %v4879_v4 = vmul.f32 0.01, %v4815_v43  ;;  %v6347_v57 = vpop.f32.mrb[24].mxu0  ;;  %v4910_v42 = vsel %vm4846_vm13, %v4814_v25, %v4878_v62 }
 0x239   : > { %vm4845_vm0 = vcmp.gt.f32.partialorder %v4813_v3, 0.0  ;;  %v4877_v21 = vmul.f32 0.01, %v4813_v3  ;;  %v6211_v51 = vpop.f32.mrb[24].mxu1  ;;  %v4722_v48 = vpop.f32.mrb[25].mxu0  ;;  %v4908_v47 = vsel %vm4844_vm14, %v4812_v50, %v4876_v36 }
 0x23a   : > { %v4911_v32 = vsel %vm4847_vm15, %v4815_v43, %v4879_v4  ;;  %v6379_v49 = vadd.f32 %v6347_v57, %v6211_v51  ;;  %v2697_v41 = vpop.f32.mrb[25].mxu1  ;;  %v6348_v7 = vpop.f32.mrb[26].mxu0 }
 0x23b   : > { %v5857_v33 = vpack.c.bf16 %v4911_v32, %v4910_v42  ;;  %v4909_v18 = vsel %vm4845_vm0, %v4813_v3, %v4877_v21  ;;  %v6380_v31 = vadd.f32 %v4722_v48, %v2697_v41  ;;  %v6212_v12 = vpop.f32.mrb[26].mxu1  ;;  %v4725_v29 = vpop.f32.mrb[27].mxu0 }
 0x23c   : > { %v5852_v39 = vpack.c.bf16 %v4909_v18, %v4908_v47  ;;  %v4818_v58 = vadd.f32 %v6379_v49, %v8542_v23  ;;  %v6381_v8 = vadd.f32 %v6348_v7, %v6212_v12  ;;  %v2700_v63 = vpop.f32.mrb[27].mxu1 }
 0x23d   : > { %5889 = vst [vmem:[%s8552_s20 + $0x58] sm:$0xff] %v5857_v33   ;;  %v4816_v59 = vadd.f32 %v6380_v31, %v8542_v23  ;;  %v6382_v52 = vadd.f32 %v4725_v29, %v2700_v63 }
 0x23e   : > { %5888 = vst [vmem:[%s8552_s20 + $0x50] sm:$0xff] %v5852_v39   ;;  %v4882_v26 = vmul.f32 0.01, %v4818_v58  ;;  %v4819_v6 = vadd.f32 %v6381_v8, %v8542_v23  ;;  %vm4850_vm1 = vcmp.gt.f32.partialorder %v4818_v58, 0.0 }
 0x23f   : > { %v4880_v19 = vmul.f32 0.01, %v4816_v59  ;;  %v4817_v35 = vadd.f32 %v6382_v52, %v8542_v23  ;;  %vm4848_vm2 = vcmp.gt.f32.partialorder %v4816_v59, 0.0 }
 0x240   : > { %vm4851_vm3 = vcmp.gt.f32.partialorder %v4819_v6, 0.0  ;;  %v4883_v13 = vmul.f32 0.01, %v4819_v6  ;;  %v6351_v46 = vpop.f32.mrb[28].mxu0  ;;  %v4914_v24 = vsel %vm4850_vm1, %v4818_v58, %v4882_v26 }
 0x241   : > { %vm4849_vm4 = vcmp.gt.f32.partialorder %v4817_v35, 0.0  ;;  %v4881_v0 = vmul.f32 0.01, %v4817_v35  ;;  %v6215_v10 = vpop.f32.mrb[28].mxu1  ;;  %v4738_v15 = vpop.f32.mrb[29].mxu0  ;;  %v4912_v45 = vsel %vm4848_vm2, %v4816_v59, %v4880_v19 }
 0x242   : > { %v4915_v17 = vsel %vm4851_vm3, %v4819_v6, %v4883_v13  ;;  %v6383_v55 = vadd.f32 %v6351_v46, %v6215_v10  ;;  %v2713_v38 = vpop.f32.mrb[29].mxu1  ;;  %v6352_v16 = vpop.f32.mrb[30].mxu0 }
 0x243   : > { %v5867_v2 = vpack.c.bf16 %v4915_v17, %v4914_v24  ;;  %v4913_v9 = vsel %vm4849_vm4, %v4817_v35, %v4881_v0  ;;  %v6384_v27 = vadd.f32 %v4738_v15, %v2713_v38  ;;  %v6216_v60 = vpop.f32.mrb[30].mxu1  ;;  %v4741_v54 = vpop.f32.mrb[31].mxu0 }
 0x244   : > { %v5862_v61 = vpack.c.bf16 %v4913_v9, %v4912_v45  ;;  %v4822_v1 = vadd.f32 %v6383_v55, %v8542_v23  ;;  %v6385_v53 = vadd.f32 %v6352_v16, %v6216_v60  ;;  %v2716_v40 = vpop.f32.mrb[31].mxu1 }
 0x245   : > { %5891 = vst [vmem:[%s8552_s20 + $0x68] sm:$0xff] %v5867_v2   ;;  %v4820_v44 = vadd.f32 %v6384_v27, %v8542_v23  ;;  %v6386_v28 = vadd.f32 %v4741_v54, %v2716_v40 }
 0x246   : > { %5890 = vst [vmem:[%s8552_s20 + $0x60] sm:$0xff] %v5862_v61   ;;  %v4886_v5 = vmul.f32 0.01, %v4822_v1  ;;  %v4823_v20 = vadd.f32 %v6385_v53, %v8542_v23  ;;  %vm4854_vm5 = vcmp.gt.f32.partialorder %v4822_v1, 0.0 }
 0x247   : > { %v4884_v30 = vmul.f32 0.01, %v4820_v44  ;;  %v4821_v37 = vadd.f32 %v6386_v28, %v8542_v23  ;;  %vm4852_vm6 = vcmp.gt.f32.partialorder %v4820_v44, 0.0 }
 0x248   : > { %vm4855_vm7 = vcmp.gt.f32.partialorder %v4823_v20, 0.0  ;;  %v4887_v56 = vmul.f32 0.01, %v4823_v20  ;;  %v4918_v25 = vsel %vm4854_vm5, %v4822_v1, %v4886_v5 }
 0x249   : > { %vm4853_vm8 = vcmp.gt.f32.partialorder %v4821_v37, 0.0  ;;  %v4885_v11 = vmul.f32 0.01, %v4821_v37  ;;  %v4916_v14 = vsel %vm4852_vm6, %v4820_v44, %v4884_v30 }
 0x24a   : > { %v4919_v34 = vsel %vm4855_vm7, %v4823_v20, %v4887_v56 }
 0x24b   : > { %v5877_v50 = vpack.c.bf16 %v4919_v34, %v4918_v25  ;;  %v4917_v22 = vsel %vm4853_vm8, %v4821_v37, %v4885_v11 }
 0x24c   : > { %v5872_v62 = vpack.c.bf16 %v4917_v22, %v4916_v14 }
 0x24d   : > { %5893 = vst [vmem:[%s8552_s20 + $0x78] sm:$0xff] %v5877_v50  }
 0x24e   : > { %5892 = vst [vmem:[%s8552_s20 + $0x70] sm:$0xff] %v5872_v62  }
 0x24f PF: > { %s13_s14 = sadd.s32 1, %s6761_s14   ;;  %s8696_s12 = smov %s6757_s13 }
 0x250   : > { %p10_p5 = scmp.ge.s32.totalorder %s13_s14, 4   ;;  %s8697_s13 = smov %s8699_s15 }
 0x252   :  { %12 = sbr.rel (!%p10_p5) target bundleno = 2 (0x2), region = 78 }

// kernel: forward.12
= control target key start
LH: loop header
LB: loop body
LE: loop exit
PB: predicated region body
PF: predicated region fallthrough
CT: control target
= control target key end

     0   :  { %s1616_s12 = smov 0   ;;  %s1618_s13 = smov 0   ;;  %s1782_s0 = inlined_call_operand.vmem [shape: bf16[8,5,9,16], index: 0, kind: input, shape index: {}]   ;;  %s1783_s1 = inlined_call_operand.vmem [shape: bf16[9,16,128], index: 1, kind: input, shape index: {}]   ;;  %s1784_s2 = inlined_call_operand.vmem [shape: f32[1,128], index: 2, kind: input, shape index: {}]   ;;  %s1785_s3 = inlined_call_operand.vmem [shape: bf16[2,32,128], index: 3, kind: output, shape index: {}]  }
   0x1   :  { %s1620_s14 = smov 0  }
   0x2 LB: > { %s25_s15 = sadd.s32 1, %s1590_s13  ;;  %p1288_p0 = scmp.ge.s32.totalorder %s1594_s14, 1  ;;  %s1594_s14 = sphi %s1620_s14, %s13_s14   ;;  %s1590_s13 = sphi %s1618_s13, %s1789_s13   ;;  %s1586_s12 = sphi %s1616_s12, %s1788_s12  }
   0x3   : > { %p27_p1 = scmp.ge.s32.totalorder %s25_s15, 2  ;;  %p170_p2 = scmp.lt.s32.totalorder %s1594_s14, 3 }
   0x5   : > { %s1791_s15 = smov (%p27_p1, %s25_s15), 0  ;;  %p171_p3 = pnand %p1288_p0, %p170_p2 }
   0x6   : > { %v1551_v0 = vld [vmem:[%s1783_s1 + $0x20] sm:$0xff] (!%p171_p3)   ;;  %s1289_s18 = sshll.u32 (!%p171_p3), %s1586_s12, 2  ;;  %v1552_v1 = vld [vmem:[%s1783_s1 + $0x8] sm:$0xff] (!%p171_p3)   ;;  %vm258_vm0 = vcmask (!%p171_p3), 130048   ;;  %vm393_vm1 = vsmask.f32 (!%p171_p3), 3328 }
   0x7   : > { %174 = sbr.rel (%p171_p3) target bundleno = 297 (0x129), region = 32  ;;  %p206_p4 = scmp.lt.s32.totalorder (!%p171_p3), %s1289_s18, 7  ;;  %1464 = vmatprep.subr.bf16.mxu0 (!%p171_p3), %v1551_v0  ;;  %v1555_v2 = vld [vmem:[%s1783_s1 + $0x28] sm:$0xff] (!%p171_p3)   ;;  %1440 = vmatprep.subr.bf16.mxu1 (!%p171_p3), %v1552_v1  ;;  %v1558_v3 = vld [vmem:[%s1783_s1] sm:$0xff] (!%p171_p3)   ;;  %vm394_vm2 = vsmask.f32 (!%p171_p3), 7440 }
   0x8   : > { %1465 = vmatpush3.bf16.msra.mxu0 (!%p171_p3), %v1551_v0  ;;  %1441 = vmatpush3.bf16.msra.mxu1 (!%p171_p3), %v1552_v1  ;;  %v1659_v6 = vld [vmem:[%s1783_s1 + $0x30] sm:$0xff] (!%p171_p3)   ;;  %vm1687_vm3 = vmor (!%p171_p3), %vm393_vm1, %vm394_vm2  ;;  %v1699_v55 = vld [vmem:[%s1783_s1 + $0x18] sm:$0xff] (!%p171_p3)   ;;  %p219_p5 = scmp.lt.s32.totalorder (!%p171_p3), %s1586_s12, 1 }
   0x9   : > { %1470 = vmatprep.subr.bf16.mxu0 (!%p171_p3), %v1555_v2  ;;  %1446 = vmatprep.subr.bf16.mxu1 (!%p171_p3), %v1558_v3  ;;  %v1664_v7 = vld [vmem:[%s1783_s1 + $0x10] sm:$0xff] (!%p171_p3)  }
   0xe   : > { %s1793_s18 = smov (!%p206_p4, %s1289_s18), 7  ;;  %s1795_s12 = smov (!%p219_p5, %s1586_s12), 1 }
   0xf   : > { %s1526_s25 = smul.u32 40, %s1793_s18  ;;  %s1397_s18 = sshll.u32 %s1795_s12, 4 }
  0x10   : > { %s226_s21 = scalar_lea.vmem %s1785_s3, %s1397_s18 }
  0x11   : > { %s1652_s28 = scalar_lea.vmem %s1782_s0, %s1526_s25 }
  0x12   : > { %v1553_v4 = vld [vmem:[%s1652_s28 + $0x28] ss:$8 sps:$4 sm:$0xff]   ;;  %v1554_v5 = vld [vmem:[%s1652_s28 + $0x78] ss:$8 sps:$4 sm:$0xff]   ;;  %v1339_v12 = vld [vmem:[%s1652_s28 + $0x54] sm:$0x1] }
  0x13   : > { %1442 = vmatprep.mubr.msk.bf16.mxu1 %vm258_vm0, %v1553_v4  ;;  %v1556_v8 = vld [vmem:[%s1652_s28 + $0x38] ss:$8 sps:$4 sm:$0xff]   ;;  %1466 = vmatprep.mubr.msk.bf16.mxu0 %vm258_vm0, %v1554_v5  ;;  %v1557_v9 = vld [vmem:[%s1652_s28 + $0x88] ss:$8 sps:$4 sm:$0xff]   ;;  %v1341_v14 = vld [vmem:[%s1652_s28 + $0x5c] sm:$0x1] }
  0x14   : > { %1443 = vmatmul.mubr.msk.bf16.vlgmr.msra.gmra.mrb[0].mxu1 %vm258_vm0, %v1556_v8  ;;  %v1559_v10 = vld [vmem:[%s1652_s28] ss:$8 sps:$4 sm:$0xff]   ;;  %1467 = vmatmul.mubr.msk.bf16.vlgmr.msra.gmra.mrb[0].mxu0 %vm258_vm0, %v1557_v9  ;;  %v1338_v11 = vld [vmem:[%s1652_s28 + $0x50] sm:$0xf]  ;;  %v1340_v13 = vld [vmem:[%s1652_s28 + $0x58] sm:$0xf] }
  0x15   : > { %1447 = vmatpush3.bf16.msra.mxu1 %v1558_v3  ;;  %1471 = vmatpush3.bf16.msra.mxu0 %v1555_v2  ;;  %v701_v15 = vshrl.u32 %v1338_v11, 16  ;;  %v704_v16 = vshll.u32 %v1338_v11, 16  ;;  %v710_v17 = vshll.u32 %v1339_v12, 16  ;;  %v715_v18 = vshrl.u32 %v1340_v13, 16  ;;  %v1342_v27 = vld [vmem:[%s1652_s28 + $0x60] sm:$0xf] }
  0x16   : > { %1448 = vmatprep.mubr.msk.bf16.mxu1 %vm258_vm0, %v1559_v10  ;;  %v718_v19 = vshll.u32 %v1340_v13, 16  ;;  %v724_v20 = vshll.u32 %v1341_v14, 16  ;;  %1476 = vmatprep.subr.bf16.mxu0 %v1659_v6  ;;  %v1343_v28 = vld [vmem:[%s1652_s28 + $0x64] sm:$0x1]  ;;  %v1561_v30 = vld [vmem:[%s1652_s28 + $0x10] ss:$8 sps:$4 sm:$0xff]  }
  0x17   : > { %1452 = vmatprep.subr.bf16.mxu1 %v1664_v7  ;;  %v703_v21 = vrot.slane %v701_v15, 4  ;;  %v706_v22 = vrot.slane %v704_v16, 5  ;;  %v712_v23 = vrot.slane %v710_v17, 5  ;;  %v717_v24 = vrot.slane %v715_v18, 4  ;;  %v1344_v31 = vld [vmem:[%s1652_s28 + $0x68] sm:$0xf] }
  0x18   : > { %v720_v25 = vrot.slane %v718_v19, 5  ;;  %v726_v26 = vrot.slane %v724_v20, 5  ;;  %v1345_v32 = vld [vmem:[%s1652_s28 + $0x6c] sm:$0x1]  ;;  %v729_v33 = vshrl.u32 %v1342_v27, 16  ;;  %v732_v34 = vshll.u32 %v1342_v27, 16 }
  0x19   : > { %v707_v29 = vor.u32 %v706_v22, %v703_v21  ;;  %v738_v37 = vshll.u32 %v1343_v28, 16  ;;  %v743_v38 = vshrl.u32 %v1344_v31, 16  ;;  %v746_v39 = vshll.u32 %v1344_v31, 16  ;;  %v385_v40 = vld [vmem:[%s1652_s28] sm:$0xf]  ;;  %v1564_v20 = vld [vmem:[%s1783_s1 + $0x38] sm:$0xff]  }
  0x1a   : > { %v721_v36 = vor.u32 %v720_v25, %v717_v24  ;;  %v731_v42 = vrot.slane %v729_v33, 4  ;;  %v734_v43 = vrot.slane %v732_v34, 5  ;;  %v752_v44 = vshll.u32 %v1345_v32, 16  ;;  %v386_v45 = vld [vmem:[%s1652_s28 + $0x4] sm:$0x1] }
  0x1b   : > { %v708_v41 = vrot.slane %v707_v29, 4  ;;  %v740_v47 = vrot.slane %v738_v37, 5  ;;  %v745_v48 = vrot.slane %v743_v38, 4  ;;  %v748_v49 = vrot.slane %v746_v39, 5  ;;  %v387_v50 = vld [vmem:[%s1652_s28 + $0x8] sm:$0xf] }
  0x1c   : > { %v722_v46 = vrot.slane %v721_v36, 4  ;;  %v735_v52 = vor.u32 %v734_v43, %v731_v42  ;;  %v754_v53 = vrot.slane %v752_v44, 5  ;;  %v397_v54 = vshrl.u32 %v385_v40, 16  ;;  %v388_v58 = vld [vmem:[%s1652_s28 + $0xc] sm:$0x1] }
  0x1d   : > { %v713_v51 = vsel %vm1687_vm3, %v708_v41, %v712_v23  ;;  %v749_v57 = vor.u32 %v748_v49, %v745_v48  ;;  %v400_v59 = vshll.u32 %v385_v40, 16  ;;  %v406_v60 = vshll.u32 %v386_v45, 16  ;;  %v389_v1 = vld [vmem:[%s1652_s28 + $0x10] sm:$0xf]  ;;  %v390_v9 = vld [vmem:[%s1652_s28 + $0x14] sm:$0x1] }
  0x1e   : > { %v727_v56 = vsel %vm1687_vm3, %v722_v46, %v726_v26  ;;  %v736_v62 = vrot.slane %v735_v52, 4  ;;  %v399_v63 = vrot.slane %v397_v54, 4  ;;  %v411_v0 = vshrl.u32 %v387_v50, 16  ;;  %v1563_v8 = vld [vmem:[%s1652_s28 + $0x8] ss:$8 sps:$4 sm:$0xff]   ;;  %v1569_v48 = vld [vmem:[%s1783_s1 + $0x40] sm:$0xff]  }
  0x1f   : > { %v1348_v61 = vcombine.low %v713_v51, %v727_v56  ;;  %v750_v2 = vrot.slane %v749_v57, 4  ;;  %v402_v3 = vrot.slane %v400_v59, 5  ;;  %v408_v4 = vrot.slane %v406_v60, 5  ;;  %v391_v13 = vld [vmem:[%s1652_s28 + $0x18] sm:$0xf] }
  0x20   : > { %1449 = vmatmul.mubr.msk.bf16.vlgmr.msra.gmra.mrb[0].mxu1 %vm258_vm0, %v1561_v30  ;;  %v414_v5 = vshll.u32 %v387_v50, 16  ;;  %v741_v10 = vsel %vm1687_vm3, %v736_v62, %v740_v47  ;;  %v413_v11 = vrot.slane %v411_v0, 4  ;;  %v420_v12 = vshll.u32 %v388_v58, 16  ;;  %v392_v14 = vld [vmem:[%s1652_s28 + $0x1c] sm:$0x1] }
  0x21   : > { %1453 = vmatpush3.bf16.msra.mxu1 %v1664_v7  ;;  %1472 = vmatprep.mubr.msk.bf16.mxu0 %vm258_vm0, %v1348_v61  ;;  %v755_v15 = vsel %vm1687_vm3, %v750_v2, %v754_v53  ;;  %v403_v7 = vor.u32 %v402_v3, %v399_v63  ;;  %v425_v17 = vshrl.u32 %v389_v1, 16  ;;  %v428_v21 = vshll.u32 %v389_v1, 16  ;;  %v1375_v43 = vld [vmem:[%s1652_s28 + $0x8] sm:$0xf]  ;;  %v1376_v44 = vld [vmem:[%s1652_s28 + $0xc] sm:$0x1] }
  0x22   : > { %1458 = vmatprep.subr.bf16.mxu1 %v1699_v55  ;;  %v416_v16 = vrot.slane %v414_v5, 5  ;;  %v1349_v18 = vcombine.low %v741_v10, %v755_v15  ;;  %v422_v19 = vrot.slane %v420_v12, 5  ;;  %v434_v22 = vshll.u32 %v390_v9, 16  ;;  %v1377_v45 = vld [vmem:[%s1652_s28 + $0x10] sm:$0xf] }
  0x23   : > { %v404_v23 = vrot.slane %v403_v7, 4  ;;  %v427_v25 = vrot.slane %v425_v17, 4  ;;  %v439_v26 = vshrl.u32 %v391_v13, 16  ;;  %v430_v27 = vrot.slane %v428_v21, 5  ;;  %v1565_v47 = vld [vmem:[%s1652_s28 + $0x18] ss:$8 sps:$4 sm:$0xff]  }
  0x24   : > { %v417_v24 = vor.u32 %v416_v16, %v413_v11  ;;  %1473 = vmatmul.mubr.msk.bf16.vlgmr.msra.gmra.mrb[0].mxu0 %vm258_vm0, %v1349_v18  ;;  %v442_v28 = vshll.u32 %v391_v13, 16  ;;  %v448_v29 = vshll.u32 %v392_v14, 16  ;;  %v436_v34 = vrot.slane %v434_v22, 5  ;;  %v1378_v49 = vld [vmem:[%s1652_s28 + $0x14] sm:$0x1] }
  0x25   : > { %1477 = vmatpush3.bf16.msra.mxu0 %v1659_v6  ;;  %v409_v30 = vsel %vm1687_vm3, %v404_v23, %v408_v4  ;;  %1478 = vmatprep.mubr.msk.bf16.mxu0 %vm258_vm0, %v1563_v8  ;;  %v441_v32 = vrot.slane %v439_v26, 4  ;;  %v431_v33 = vor.u32 %v430_v27, %v427_v25  ;;  %v1005_v50 = vshrl.u32 %v1375_v43, 16  ;;  %v1567_v53 = vld [vmem:[%s1652_s28 + $0x50] ss:$8 sps:$4 sm:$0xff]   ;;  %v1381_v1 = vld [vmem:[%s1652_s28 + $0x20] sm:$0xf] }
  0x26   : > { %v418_v31 = vrot.slane %v417_v24, 4  ;;  %1482 = vmatprep.subr.bf16.mxu0 %v1564_v20  ;;  %v444_v36 = vrot.slane %v442_v28, 5  ;;  %v450_v40 = vrot.slane %v448_v29, 5  ;;  %v1008_v51 = vshll.u32 %v1375_v43, 16  ;;  %v1379_v57 = vld [vmem:[%s1652_s28 + $0x18] sm:$0xf] }
  0x27   : > { %v432_v38 = vrot.slane %v431_v33, 4  ;;  %v1019_v54 = vshrl.u32 %v1377_v45, 16  ;;  %v1022_v56 = vshll.u32 %v1377_v45, 16  ;;  %v1568_v58 = vld [vmem:[%s1652_s28 + $0x30] ss:$8 sps:$4 sm:$0xff]   ;;  %v1007_v59 = vrot.slane %v1005_v50, 4 }
  0x28   : > { %v423_v37 = vsel %vm1687_vm3, %v418_v31, %v422_v19  ;;  %v445_v39 = vor.u32 %v444_v36, %v441_v32  ;;  %v1010_v60 = vrot.slane %v1008_v51, 5  ;;  %v1014_v61 = vshll.u32 %v1376_v44, 16  ;;  %v1382_v19 = vld [vmem:[%s1652_s28 + $0x24] sm:$0x1]  ;;  %v1571_v21 = vld [vmem:[%s1652_s28 + $0x40] ss:$8 sps:$4 sm:$0xff]  }
  0x29   : > { %v1311_v6 = vcombine.low %v409_v30, %v423_v37  ;;  %v437_v41 = vsel %vm1687_vm3, %v432_v38, %v436_v34  ;;  %v1028_v62 = vshll.u32 %v1378_v49, 16  ;;  %v1021_v63 = vrot.slane %v1019_v54, 4 }
  0x2a   : > { %v446_v42 = vrot.slane %v445_v39, 4  ;;  %v1024_v0 = vrot.slane %v1022_v56, 5  ;;  %v1011_v2 = vor.u32 %v1010_v60, %v1007_v59  ;;  %v1033_v3 = vshrl.u32 %v1379_v57, 16  ;;  %v1390_v39 = vld [vmem:[%s1784_s2] ss:$0 sm:$0xff] }
  0x2b   : > { %1454 = vmatprep.mubr.msk.bf16.mxu1 %vm258_vm0, %v1311_v6  ;;  %v1036_v5 = vshll.u32 %v1379_v57, 16  ;;  %v1047_v8 = vshrl.u32 %v1381_v1, 16  ;;  %v1050_v9 = vshll.u32 %v1381_v1, 16  ;;  %v1016_v11 = vrot.slane %v1014_v61, 5 }
  0x2c   : > { %v451_v46 = vsel %vm1687_vm3, %v446_v42, %v450_v40  ;;  %v1025_v4 = vor.u32 %v1024_v0, %v1021_v63  ;;  %v1012_v10 = vrot.slane %v1011_v2, 4  ;;  %v1030_v12 = vrot.slane %v1028_v62, 5 }
  0x2d   : > { %v1312_v52 = vcombine.low %v437_v41, %v451_v46  ;;  %v1035_v14 = vrot.slane %v1033_v3, 4  ;;  %v1038_v15 = vrot.slane %v1036_v5, 5  ;;  %v1049_v7 = vrot.slane %v1047_v8, 4 }
  0x2e   : > { %v1026_v13 = vrot.slane %v1025_v4, 4  ;;  %v1052_v16 = vrot.slane %v1050_v9, 5  ;;  %v1017_v17 = vsel %vm1687_vm3, %v1012_v10, %v1016_v11  ;;  %v1056_v26 = vshll.u32 %v1382_v19, 16 }
  0x2f   : > { %1455 = vmatmul.mubr.msk.bf16.vlgmr.msra.gmra.mrb[0].mxu1 %vm258_vm0, %v1312_v52  ;;  %v1039_v24 = vor.u32 %v1038_v15, %v1035_v14 }
  0x30   : > { %1479 = vmatmul.mubr.msk.bf16.vlgmr.msra.gmra.mrb[0].mxu0 %vm258_vm0, %v1565_v47  ;;  %1459 = vmatpush3.bf16.msra.mxu1 %v1699_v55  ;;  %v1380_v55 = vld [vmem:[%s1652_s28 + $0x1c] sm:$0x1]  ;;  %v1031_v18 = vsel %vm1687_vm3, %v1026_v13, %v1030_v12  ;;  %v1053_v25 = vor.u32 %v1052_v16, %v1049_v7  ;;  %v1058_v30 = vrot.slane %v1056_v26, 5 }
  0x31   : > { %1483 = vmatpush3.bf16.msra.mxu0 %v1564_v20  ;;  %1460 = vmatprep.mubr.msk.bf16.mxu1 %vm258_vm0, %v1567_v53  ;;  %v1570_v20 = vld [vmem:[%s1652_s28 + $0x60] ss:$8 sps:$4 sm:$0xff]   ;;  %v1042_v22 = vshll.u32 %v1380_v55, 16  ;;  %v1385_v23 = vcombine.low %v1017_v17, %v1031_v18  ;;  %v1040_v27 = vrot.slane %v1039_v24, 4 }
  0x32   : > { %1484 = vmatprep.mubr.msk.bf16.mxu0 %vm258_vm0, %v1568_v58  ;;  %1488 = vmatprep.subr.bf16.mxu0 %v1569_v48  ;;  %v1054_v29 = vrot.slane %v1053_v25, 4 }
  0x33   : > { %v1044_v28 = vrot.slane %v1042_v22, 5 }
  0x34   : > { %v1059_v32 = vsel %vm1687_vm3, %v1054_v29, %v1058_v30 }
  0x35   : > { %v1045_v31 = vsel %vm1687_vm3, %v1040_v27, %v1044_v28 }
  0x36   : > { %v1386_v33 = vcombine.low %v1045_v31, %v1059_v32 }
  0x3b   : > { %1461 = vmatmul.mubr.msk.bf16.vlgmr.msra.gmra.mrb[0].mxu1 %vm258_vm0, %v1570_v20 }
  0x3c   : > { %1485 = vmatmul.mubr.msk.bf16.vlgmr.msra.gmra.mrb[0].mxu0 %vm258_vm0, %v1571_v21 }
  0x3d   : > { %1489 = vmatpush3.bf16.msra.mxu0 %v1569_v48  ;;  %1490 = vmatprep.mubr.msk.bf16.mxu0 %vm258_vm0, %v1385_v23 }
  0x48   : > { %1491 = vmatmul.mubr.msk.bf16.vlgmr.msra.gmra.mrb[0].mxu0 %vm258_vm0, %v1386_v33 }
 0x10e   : > { %v1462_v34 = vpop.f32.mrb[0].mxu1 }
 0x10f   : > { %v590_v36 = vpop.f32.mrb[1].mxu1 }
 0x110   : > { %v1463_v37 = vpop.f32.mrb[2].mxu1 }
 0x111   : > { %v593_v6 = vpop.f32.mrb[3].mxu1 }
 0x11b   : > { %v1492_v38 = vpop.f32.mrb[0].mxu0 }
 0x11c   : > { %v1494_v40 = vadd.f32 %v1492_v38, %v1462_v34  ;;  %v1115_v41 = vpop.f32.mrb[1].mxu0 }
 0x11d   : > { %v1495_v42 = vadd.f32 %v1115_v41, %v590_v36  ;;  %v1493_v43 = vpop.f32.mrb[2].mxu0 }
 0x11e   : > { %v1143_v35 = vadd.f32 %v1494_v40, %v1390_v39  ;;  %v1496_v44 = vadd.f32 %v1493_v43, %v1463_v37  ;;  %v1118_v45 = vpop.f32.mrb[3].mxu0 }
 0x11f   : > { %v1141_v46 = vadd.f32 %v1495_v42, %v1390_v39  ;;  %v1497_v47 = vadd.f32 %v1118_v45, %v593_v6 }
 0x120   : > { %v1151_v48 = vmul.f32 0.01, %v1143_v35  ;;  %v1144_v49 = vadd.f32 %v1496_v44, %v1390_v39  ;;  %vm1147_vm4 = vcmp.gt.f32.partialorder %v1143_v35, 0.0 }
 0x121   : > { %v1149_v50 = vmul.f32 0.01, %v1141_v46  ;;  %v1142_v51 = vadd.f32 %v1497_v47, %v1390_v39  ;;  %vm1145_vm5 = vcmp.gt.f32.partialorder %v1141_v46, 0.0 }
 0x122   : > { %vm1148_vm6 = vcmp.gt.f32.partialorder %v1144_v49, 0.0  ;;  %v1152_v52 = vmul.f32 0.01, %v1144_v49  ;;  %v1155_v54 = vsel %vm1147_vm4, %v1143_v35, %v1151_v48 }
 0x123   : > { %vm1146_vm7 = vcmp.gt.f32.partialorder %v1142_v51, 0.0  ;;  %v1150_v53 = vmul.f32 0.01, %v1142_v51  ;;  %v1153_v57 = vsel %vm1145_vm5, %v1141_v46, %v1149_v50 }
 0x124   : > { %v1156_v56 = vsel %vm1148_vm6, %v1144_v49, %v1152_v52 }
 0x125   : > { %v1410_v58 = vpack.c.bf16 %v1156_v56, %v1155_v54  ;;  %v1154_v59 = vsel %vm1146_vm7, %v1142_v51, %v1150_v53 }
 0x126   : > { %v1405_v60 = vpack.c.bf16 %v1154_v59, %v1153_v57 }
 0x127   : > { %1412 = vst [vmem:[%s226_s21 + $0x8] sm:$0xff] %v1410_v58  }
 0x128   : > { %1406 = vst [vmem:[%s226_s21] sm:$0xff] %v1405_v60  }
 0x129 PF: > { %s13_s14 = sadd.s32 1, %s1594_s14   ;;  %s1788_s12 = smov %s1590_s13 }
 0x12a   : > { %p10_p6 = scmp.ge.s32.totalorder %s13_s14, 4   ;;  %s1789_s13 = smov %s1791_s15 }
 0x12c   :  { %12 = sbr.rel (!%p10_p6) target bundleno = 2 (0x2), region = 81 }

// kernel: forward.13
= control target key start
LH: loop header
LB: loop body
LE: loop exit
PB: predicated region body
PF: predicated region fallthrough
CT: control target
= control target key end

     0   :  { %s1801_s12 = smov 0   ;;  %s1803_s13 = smov 0   ;;  %s2083_s0 = inlined_call_operand.vmem [shape: bf16[2,6,10,32], index: 0, kind: input, shape index: {}]   ;;  %s2084_s1 = inlined_call_operand.vmem [shape: bf16[9,32,128], index: 1, kind: input, shape index: {}]   ;;  %s2085_s2 = inlined_call_operand.vmem [shape: f32[1,128], index: 2, kind: input, shape index: {}]   ;;  %s2086_s3 = inlined_call_operand.vmem [shape: bf16[2,32,128], index: 3, kind: output, shape index: {}]  }
   0x1   :  { %s1805_s14 = smov 0  }
   0x2 LB: > { %s25_s15 = sadd.s32 1, %s1775_s13  ;;  %p1411_p0 = scmp.ge.s32.totalorder %s1779_s14, 1  ;;  %s1779_s14 = sphi %s1805_s14, %s13_s14   ;;  %s1775_s13 = sphi %s1803_s13, %s2092_s13   ;;  %s1771_s12 = sphi %s1801_s12, %s2091_s12  }
   0x3   : > { %p27_p1 = scmp.ge.s32.totalorder %s25_s15, 2  ;;  %p168_p2 = scmp.lt.s32.totalorder %s1779_s14, 3 }
   0x5   : > { %s2094_s15 = smov (%p27_p1, %s25_s15), 0  ;;  %p169_p3 = pnand %p1411_p0, %p168_p2 }
   0x6   : > { %v1733_v0 = vld [vmem:[%s2084_s1 + $0x40] sm:$0xff] (!%p169_p3)   ;;  %p202_p4 = scmp.lt.s32.totalorder (!%p169_p3), %s1771_s12, 1  ;;  %v1734_v1 = vld [vmem:[%s2084_s1 + $0x10] sm:$0xff] (!%p169_p3)   ;;  %v1735_v2 = vld [vmem:[%s2084_s1 + $0x48] sm:$0xff] (!%p169_p3)   ;;  %vm235_vm0 = vsmask.f32 (!%p169_p3), 3328 }
   0x7   : > { %172 = sbr.rel (%p169_p3) target bundleno = 318 (0x13e), region = 32  ;;  %1636 = vmatprep.subr.bf16.mxu0 (!%p169_p3), %v1733_v0  ;;  %1604 = vmatprep.subr.bf16.mxu1 (!%p169_p3), %v1734_v1  ;;  %v1736_v3 = vld [vmem:[%s2084_s1 + $0x18] sm:$0xff] (!%p169_p3)   ;;  %v1837_v4 = vld [vmem:[%s2084_s1 + $0x50] sm:$0xff] (!%p169_p3)   ;;  %v1847_v5 = vld [vmem:[%s2084_s1] sm:$0xff] (!%p169_p3)   ;;  %vm236_vm1 = vsmask.f32 (!%p169_p3), 7440 }
   0x8   : > { %1637 = vmatpush3.bf16.msra.mxu0 (!%p169_p3), %v1733_v0  ;;  %1605 = vmatpush3.bf16.msra.mxu1 (!%p169_p3), %v1734_v1  ;;  %vm1880_vm2 = vmor (!%p169_p3), %vm235_vm0, %vm236_vm1  ;;  %vm317_vm3 = vcmask (!%p169_p3), 261120   ;;  %vm462_vm4 = vcmask (!%p169_p3), 1042432   ;;  %vm463_vm5 = vcmask (!%p169_p3), 1046532  }
   0x9   : > { %1638 = vmatprep.subr.bf16.mxu0 (!%p169_p3), %v1735_v2  ;;  %1606 = vmatprep.subr.bf16.mxu1 (!%p169_p3), %v1736_v3  ;;  %vm1936_vm6 = vmor (!%p169_p3), %vm462_vm4, %vm463_vm5 }
   0xc   : > { %1639 = vmatpush3.bf16.msra.mxu0 (!%p169_p3), %v1735_v2  ;;  %1607 = vmatpush3.bf16.msra.mxu1 (!%p169_p3), %v1736_v3 }
   0xd   : > { %1644 = vmatprep.subr.bf16.mxu0 (!%p169_p3), %v1837_v4  ;;  %1612 = vmatprep.subr.bf16.mxu1 (!%p169_p3), %v1847_v5 }
   0xe   : > { %s2096_s12 = smov (!%p202_p4, %s1771_s12), 1 }
   0xf   : > { %s1708_s24 = smul.u32 48, %s2096_s12  ;;  %s1552_s8 = sshll.u32 %s2096_s12, 4 }
  0x10   : > { %s221_s11 = scalar_lea.vmem %s2086_s3, %s1552_s8 }
  0x11   : > { %s1842_s29 = scalar_lea.vmem %s2083_s0, %s1708_s24 }
  0x12   : > { %v1850_v6 = vld [vmem:[%s1842_s29] sm:$0xf]  ;;  %v1853_v7 = vld [vmem:[%s1842_s29 + $0x8] sm:$0xf]  ;;  %v1856_v8 = vld [vmem:[%s1842_s29 + $0x4] sm:$0x1] }
  0x13   : > { %v1859_v9 = vld [vmem:[%s1842_s29 + $0xc] sm:$0x1]  ;;  %v239_v10 = vshrl.u32 %v1850_v6, 16  ;;  %v242_v11 = vshll.u32 %v1850_v6, 16  ;;  %v248_v12 = vshll.u32 %v1856_v8, 16  ;;  %v253_v13 = vshrl.u32 %v1853_v7, 16 }
  0x14   : > { %v256_v14 = vshll.u32 %v1853_v7, 16  ;;  %v262_v15 = vshll.u32 %v1859_v9, 16  ;;  %v1459_v16 = vld [vmem:[%s1842_s29 + $0x8] sm:$0xf]  ;;  %v1871_v21 = vld [vmem:[%s1842_s29 + $0xc] sm:$0x1] }
  0x15   : > { %v241_v17 = vrot.slane %v239_v10, 4  ;;  %v244_v18 = vrot.slane %v242_v11, 5  ;;  %v250_v19 = vrot.slane %v248_v12, 5  ;;  %v255_v20 = vrot.slane %v253_v13, 4  ;;  %v1461_v24 = vld [vmem:[%s1842_s29 + $0x10] sm:$0xf] }
  0x16   : > { %v258_v22 = vrot.slane %v256_v14, 5  ;;  %v264_v23 = vrot.slane %v262_v15, 5  ;;  %v1875_v25 = vld [vmem:[%s1842_s29 + $0x14] sm:$0x1]  ;;  %v663_v27 = vshrl.u32 %v1459_v16, 16  ;;  %v666_v28 = vshll.u32 %v1459_v16, 16 }
  0x17   : > { %v245_v26 = vor.u32 %v244_v18, %v241_v17  ;;  %v672_v29 = vshll.u32 %v1871_v21, 16  ;;  %v677_v32 = vshrl.u32 %v1461_v24, 16  ;;  %v680_v33 = vshll.u32 %v1461_v24, 16  ;;  %v1886_v35 = vld [vmem:[%s1842_s29 + $0x10] sm:$0xf] }
  0x18   : > { %v259_v31 = vor.u32 %v258_v22, %v255_v20  ;;  %v686_v34 = vshll.u32 %v1875_v25, 16  ;;  %v665_v37 = vrot.slane %v663_v27, 4  ;;  %v668_v38 = vrot.slane %v666_v28, 5  ;;  %v1889_v39 = vld [vmem:[%s1842_s29 + $0x18] sm:$0xf] }
  0x19   : > { %v246_v36 = vrot.slane %v245_v26, 4  ;;  %v679_v41 = vrot.slane %v677_v32, 4  ;;  %v682_v42 = vrot.slane %v680_v33, 5  ;;  %v1892_v43 = vld [vmem:[%s1842_s29 + $0x14] sm:$0x1]  ;;  %v674_v46 = vrot.slane %v672_v29, 5 }
  0x1a   : > { %v260_v40 = vrot.slane %v259_v31, 4  ;;  %v669_v45 = vor.u32 %v668_v38, %v665_v37  ;;  %v688_v47 = vrot.slane %v686_v34, 5  ;;  %v1899_v50 = vld [vmem:[%s1842_s29 + $0x1c] sm:$0x1]  ;;  %v267_v51 = vshrl.u32 %v1886_v35, 16  ;;  %v1740_v38 = vld [vmem:[%s2084_s1 + $0x8] sm:$0xff]  }
  0x1b   : > { %v251_v44 = vsel %vm1880_vm2, %v246_v36, %v250_v19  ;;  %v683_v49 = vor.u32 %v682_v42, %v679_v41  ;;  %v270_v52 = vshll.u32 %v1886_v35, 16  ;;  %v1463_v53 = vld [vmem:[%s1842_s29 + $0x18] sm:$0xf]  ;;  %v276_v56 = vshll.u32 %v1892_v43, 16  ;;  %v1907_v58 = vld [vmem:[%s1842_s29 + $0x1c] sm:$0x1] }
  0x1c   : > { %v265_v48 = vsel %vm1880_vm2, %v260_v40, %v264_v23  ;;  %v670_v55 = vrot.slane %v669_v45, 4  ;;  %v281_v57 = vshrl.u32 %v1889_v39, 16  ;;  %v269_v60 = vrot.slane %v267_v51, 4  ;;  %v1465_v2 = vld [vmem:[%s1842_s29 + $0x20] sm:$0xf] }
  0x1d   : > { %v1419_v54 = vcombine.low %v251_v44, %v265_v48  ;;  %v684_v59 = vrot.slane %v683_v49, 4  ;;  %v272_v61 = vrot.slane %v270_v52, 5  ;;  %v284_v62 = vshll.u32 %v1889_v39, 16  ;;  %v1918_v13 = vld [vmem:[%s1842_s29 + $0x24] sm:$0x1] }
  0x1e   : > { %v675_v63 = vsel %vm1880_vm2, %v670_v55, %v674_v46  ;;  %v283_v0 = vrot.slane %v281_v57, 4  ;;  %v290_v1 = vshll.u32 %v1899_v50, 16  ;;  %v278_v11 = vrot.slane %v276_v56, 5  ;;  %v1477_v17 = vld [vmem:[%s1842_s29 + $0x8] sm:$0xe] }
  0x1f   : > { %1608 = vmatprep.mubr.msk.bf16.mxu1 %vm317_vm3, %v1419_v54  ;;  %v689_v3 = vsel %vm1880_vm2, %v684_v59, %v688_v47  ;;  %v273_v10 = vor.u32 %v272_v61, %v269_v60  ;;  %v286_v12 = vrot.slane %v284_v62, 5  ;;  %v691_v16 = vshrl.u32 %v1463_v53, 16  ;;  %v1478_v33 = vld [vmem:[%s1842_s29 + $0x10] sm:$0xe]  ;;  %v450_v54 = vld [vmem:[%s1842_s29] sm:$0xe] }
  0x20   : > { %v1471_v14 = vcombine.low %v675_v63, %v689_v3  ;;  %v292_v15 = vrot.slane %v290_v1, 5  ;;  %v694_v20 = vshll.u32 %v1463_v53, 16  ;;  %v700_v22 = vshll.u32 %v1907_v58, 16  ;;  %v1479_v56 = vld [vmem:[%s1842_s29 + $0x18] sm:$0xe] }
  0x21   : > { %v274_v18 = vrot.slane %v273_v10, 4  ;;  %v287_v19 = vor.u32 %v286_v12, %v283_v0  ;;  %v693_v23 = vrot.slane %v691_v16, 4  ;;  %v705_v24 = vshrl.u32 %v1465_v2, 16  ;;  %v1480_v60 = vld [vmem:[%s1842_s29 + $0x20] sm:$0xe] }
  0x22   : > { %1640 = vmatprep.mubr.msk.bf16.mxu0 %vm317_vm3, %v1471_v14  ;;  %v708_v26 = vshll.u32 %v1465_v2, 16  ;;  %v714_v27 = vshll.u32 %v1918_v13, 16  ;;  %v814_v28 = vrot.slane %v1871_v21, 5  ;;  %v696_v32 = vrot.slane %v694_v20, 5  ;;  %v1742_v2 = vld [vmem:[%s2084_s1 + $0x60] sm:$0xff]  }
  0x23   : > { %v279_v29 = vsel %vm1880_vm2, %v274_v18, %v278_v11  ;;  %v288_v31 = vrot.slane %v287_v19, 4  ;;  %v818_v34 = vrot.slane %v1875_v25, 5  ;;  %v707_v36 = vrot.slane %v705_v24, 4  ;;  %v1509_v16 = vld [vmem:[%s1842_s29 + $0x10] sm:$0xf]  ;;  %v1746_v19 = vld [vmem:[%s2084_s1 + $0x28] sm:$0xff]  }
  0x24   : > { %v710_v37 = vrot.slane %v708_v26, 5  ;;  %v1425_v40 = vcombine.low %v1850_v6, %v1853_v7  ;;  %v697_v25 = vor.u32 %v696_v32, %v693_v23  ;;  %v702_v42 = vrot.slane %v700_v22, 5  ;;  %v1991_v20 = vld [vmem:[%s1842_s29 + $0x14] sm:$0x1]  ;;  %v1994_v22 = vld [vmem:[%s1842_s29 + $0x1c] sm:$0x1] }
  0x25   : > { %v293_v41 = vsel %vm1880_vm2, %v288_v31, %v292_v15  ;;  %v1481_v44 = vrot.slane %v1477_v17, 9  ;;  %v716_v47 = vrot.slane %v714_v27, 5  ;;  %v1482_v48 = vrot.slane %v1478_v33, 9  ;;  %v453_v15 = vld [vmem:[%s1842_s29 + $0x18] sm:$0xe] }
  0x26   : > { %v1420_v45 = vcombine.low %v279_v29, %v293_v41  ;;  %v711_v46 = vor.u32 %v710_v37, %v707_v36  ;;  %v467_v6 = vrot.slane %v1856_v8, 5  ;;  %v698_v7 = vrot.slane %v697_v25, 4  ;;  %v1739_v8 = vld [vmem:[%s2084_s1 + $0x58] sm:$0xff]   ;;  %v1750_v37 = vld [vmem:[%s2084_s1 + $0x30] sm:$0xff]  }
  0x27   : > { %v815_v49 = vsel %vm1936_vm6, %v1481_v44, %v814_v28  ;;  %v471_v51 = vrot.slane %v1859_v9, 5  ;;  %v819_v53 = vsel %vm1936_vm6, %v1482_v48, %v818_v34  ;;  %v451_v9 = vld [vmem:[%s1842_s29 + $0x8] sm:$0xe]  ;;  %v1431_v61 = vrot.slane %v450_v54, 9  ;;  %v1511_v17 = vld [vmem:[%s1842_s29 + $0x18] sm:$0xf] }
  0x28   : > { %1609 = vmatmul.mubr.msk.bf16.vlgmr.msra.gmra.mrb[0].mxu1 %vm317_vm3, %v1420_v45  ;;  %v712_v52 = vrot.slane %v711_v46, 4  ;;  %v703_v55 = vsel %vm1880_vm2, %v698_v7, %v702_v42  ;;  %v1489_v59 = vcombine.low %v815_v49, %v819_v53  ;;  %v1432_v62 = vrot.slane %v451_v9, 9  ;;  %v1513_v42 = vld [vmem:[%s1842_s29 + $0x20] sm:$0xf]  ;;  %v1515_v44 = vld [vmem:[%s1842_s29 + $0x28] sm:$0xf] }
  0x29   : > { %1613 = vmatpush3.bf16.msra.mxu1 %v1847_v5  ;;  %1616 = vmatprep.mubr.msk.bf16.mxu1 %vm317_vm3, %v1425_v40  ;;  %v1744_v5 = vld [vmem:[%s2084_s1 + $0x20] sm:$0xff]   ;;  %v822_v0 = vrot.slane %v1907_v58, 5  ;;  %v826_v1 = vrot.slane %v1918_v13, 5  ;;  %v1483_v3 = vrot.slane %v1479_v56, 9  ;;  %v1484_v10 = vrot.slane %v1480_v60, 9  ;;  %v1748_v49 = vld [vmem:[%s2084_s1 + $0x70] sm:$0xff]  }
  0x2a   : > { %v717_v57 = vsel %vm1880_vm2, %v712_v52, %v716_v47  ;;  %1614 = vmatprep.subr.bf16.mxu1 %v1740_v38  ;;  %v468_v58 = vsel %vm1936_vm6, %v1431_v61, %v467_v6  ;;  %v472_v11 = vsel %vm1936_vm6, %v1432_v62, %v471_v51  ;;  %v1426_v12 = vcombine.low %v1886_v35, %v1889_v39  ;;  %v452_v13 = vld [vmem:[%s1842_s29 + $0x10] sm:$0xe]  ;;  %v1514_v9 = vld [vmem:[%s1842_s29 + $0x24] sm:$0x1] }
  0x2b   : > { %v1472_v63 = vcombine.low %v703_v55, %v717_v57  ;;  %v823_v14 = vsel %vm1936_vm6, %v1483_v3, %v822_v0  ;;  %v827_v18 = vsel %vm1936_vm6, %v1484_v10, %v826_v1  ;;  %v1010_v35 = vshrl.u32 %v1509_v16, 16  ;;  %v1753_v56 = vld [vmem:[%s1842_s29 + $0x8] ss:$8 sps:$4 sm:$0xff]  }
  0x2c   : > { %v1013_v39 = vshll.u32 %v1509_v16, 16  ;;  %v1024_v23 = vshrl.u32 %v1511_v17, 16  ;;  %v475_v24 = vrot.slane %v1892_v43, 5  ;;  %v1027_v26 = vshll.u32 %v1511_v17, 16  ;;  %v1745_v43 = vld [vmem:[%s2084_s1 + $0x68] sm:$0xff]   ;;  %v1754_v17 = vld [vmem:[%s2084_s1 + $0x80] sm:$0xff]  }
  0x2d   : > { %1641 = vmatmul.mubr.msk.bf16.vlgmr.msra.gmra.mrb[0].mxu0 %vm317_vm3, %v1472_v63  ;;  %1615 = vmatpush3.bf16.msra.mxu1 %v1740_v38  ;;  %v479_v27 = vrot.slane %v1899_v50, 5  ;;  %v1012_v28 = vrot.slane %v1010_v35, 4  ;;  %v1490_v32 = vcombine.low %v823_v14, %v827_v18  ;;  %v1433_v33 = vrot.slane %v452_v13, 9  ;;  %v1747_v50 = vld [vmem:[%s1842_s29 + $0x10] ss:$8 sps:$4 sm:$0xff]  }
  0x2e   : > { %1645 = vmatpush3.bf16.msra.mxu0 %v1837_v4  ;;  %1648 = vmatprep.mubr.msk.bf16.mxu0 %vm317_vm3, %v1489_v59  ;;  %v1439_v4 = vcombine.low %v468_v58, %v472_v11  ;;  %v1015_v29 = vrot.slane %v1013_v39, 5  ;;  %v1026_v31 = vrot.slane %v1024_v23, 4  ;;  %v1434_v34 = vrot.slane %v453_v15, 9  ;;  %v1749_v0 = vld [vmem:[%s1842_s29 + $0x20] ss:$8 sps:$4 sm:$0xff]   ;;  %v1751_v11 = vld [vmem:[%s2084_s1 + $0x78] sm:$0xff]  }
  0x2f   : > { %1646 = vmatprep.subr.bf16.mxu0 %v1739_v8  ;;  %1620 = vmatprep.subr.bf16.mxu1 %v1744_v5  ;;  %v1029_v36 = vrot.slane %v1027_v26, 5  ;;  %v1019_v40 = vshll.u32 %v1991_v20, 16  ;;  %v1033_v25 = vshll.u32 %v1994_v22, 16  ;;  %v476_v45 = vsel %vm1936_vm6, %v1433_v33, %v475_v24  ;;  %v1528_v13 = vld [vmem:[%s1842_s29 + $0x18] sm:$0xe] }
  0x30   : > { %v1016_v38 = vor.u32 %v1015_v29, %v1012_v28  ;;  %v480_v46 = vsel %vm1936_vm6, %v1434_v34, %v479_v27  ;;  %v1038_v47 = vshrl.u32 %v1513_v42, 16  ;;  %v1041_v48 = vshll.u32 %v1513_v42, 16  ;;  %v1755_v23 = vld [vmem:[%s1842_s29 + $0x18] ss:$8 sps:$4 sm:$0xff]  }
  0x31   : > { %v1030_v41 = vor.u32 %v1029_v36, %v1026_v31  ;;  %v1052_v6 = vshrl.u32 %v1515_v44, 16  ;;  %v1055_v7 = vshll.u32 %v1515_v44, 16  ;;  %v1021_v52 = vrot.slane %v1019_v40, 5  ;;  %v1529_v31 = vld [vmem:[%s1842_s29 + $0x20] sm:$0xe] }
  0x32   : > { %1647 = vmatpush3.bf16.msra.mxu0 %v1739_v8  ;;  %v1017_v51 = vrot.slane %v1016_v38, 4  ;;  %v1035_v54 = vrot.slane %v1033_v25, 5  ;;  %v1440_v55 = vcombine.low %v476_v45, %v480_v46  ;;  %v1752_v8 = vld [vmem:[%s2084_s1 + $0x38] sm:$0xff]   ;;  %v1040_v57 = vrot.slane %v1038_v47, 4  ;;  %v1545_v44 = vld [vmem:[%s2085_s2] ss:$0 sm:$0xff] }
  0x33   : > { %1652 = vmatprep.subr.bf16.mxu0 %v1742_v2  ;;  %v1031_v53 = vrot.slane %v1030_v41, 4  ;;  %v1043_v59 = vrot.slane %v1041_v48, 5  ;;  %v1054_v60 = vrot.slane %v1052_v6, 4  ;;  %v1057_v61 = vrot.slane %v1055_v7, 5 }
  0x34   : > { %1617 = vmatmul.mubr.msk.bf16.vlgmr.msra.gmra.mrb[0].mxu1 %vm317_vm3, %v1426_v12  ;;  %v1022_v62 = vsel %vm1880_vm2, %v1017_v51, %v1021_v52  ;;  %v1047_v1 = vshll.u32 %v1514_v9, 16  ;;  %v1527_v12 = vld [vmem:[%s1842_s29 + $0x10] sm:$0xe]  ;;  %v1532_v35 = vrot.slane %v1528_v13, 9  ;;  %v1165_v39 = vrot.slane %v1994_v22, 5  ;;  %v1756_v22 = vld [vmem:[%s2084_s1 + $0x88] sm:$0xff]  }
  0x35   : > { %1621 = vmatpush3.bf16.msra.mxu1 %v1744_v5  ;;  %1624 = vmatprep.mubr.msk.bf16.mxu1 %vm317_vm3, %v1439_v4  ;;  %v1036_v63 = vsel %vm1880_vm2, %v1031_v53, %v1035_v54  ;;  %v1516_v5 = vld [vmem:[%s1842_s29 + $0x2c] sm:$0x1]  ;;  %v1044_v3 = vor.u32 %v1043_v59, %v1040_v57  ;;  %v1058_v10 = vor.u32 %v1057_v61, %v1054_v60  ;;  %v1531_v18 = vrot.slane %v1527_v12, 9 }
  0x36   : > { %1622 = vmatprep.subr.bf16.mxu1 %v1746_v19  ;;  %v1061_v58 = vshll.u32 %v1516_v5, 16  ;;  %v1049_v4 = vrot.slane %v1047_v1, 5  ;;  %v1166_v28 = vsel %vm1936_vm6, %v1532_v35, %v1165_v39  ;;  %v1533_v30 = vrot.slane %v1529_v31, 9 }
  0x37   : > { %v1045_v14 = vrot.slane %v1044_v3, 4  ;;  %v1059_v15 = vrot.slane %v1058_v10, 4  ;;  %v1169_v33 = vrot.slane %v1514_v9, 5  ;;  %v1173_v36 = vrot.slane %v1516_v5, 5 }
  0x38   : > { %v1063_v16 = vrot.slane %v1061_v58, 5 }
  0x39   : > { %1649 = vmatmul.mubr.msk.bf16.vlgmr.msra.gmra.mrb[0].mxu0 %vm317_vm3, %v1490_v32  ;;  %1623 = vmatpush3.bf16.msra.mxu1 %v1746_v19  ;;  %v1161_v19 = vrot.slane %v1991_v20, 5  ;;  %v1050_v24 = vsel %vm1880_vm2, %v1045_v14, %v1049_v4  ;;  %v1530_v32 = vld [vmem:[%s1842_s29 + $0x28] sm:$0xe] }
  0x3a   : > { %1653 = vmatpush3.bf16.msra.mxu0 %v1742_v2  ;;  %1656 = vmatprep.mubr.msk.bf16.mxu0 %vm317_vm3, %v1747_v50  ;;  %v1521_v2 = vcombine.low %v1022_v62, %v1036_v63  ;;  %v1064_v26 = vsel %vm1880_vm2, %v1059_v15, %v1063_v16  ;;  %v1534_v34 = vrot.slane %v1530_v32, 9 }
  0x3b   : > { %1654 = vmatprep.subr.bf16.mxu0 %v1745_v43  ;;  %1628 = vmatprep.subr.bf16.mxu1 %v1750_v37  ;;  %v1162_v27 = vsel %vm1936_vm6, %v1531_v18, %v1161_v19  ;;  %v1522_v20 = vcombine.low %v1050_v24, %v1064_v26 }
  0x3c   : > { %v1539_v29 = vcombine.low %v1162_v27, %v1166_v28  ;;  %v1174_v50 = vsel %vm1936_vm6, %v1534_v34, %v1173_v36 }
  0x3e   : > { %1655 = vmatpush3.bf16.msra.mxu0 %v1745_v43  ;;  %v1170_v43 = vsel %vm1936_vm6, %v1533_v30, %v1169_v33 }
  0x3f   : > { %1660 = vmatprep.subr.bf16.mxu0 %v1748_v49 }
  0x40   : > { %1625 = vmatmul.mubr.msk.bf16.vlgmr.msra.gmra.mrb[0].mxu1 %vm317_vm3, %v1440_v55 }
  0x41   : > { %1629 = vmatpush3.bf16.msra.mxu1 %v1750_v37  ;;  %1632 = vmatprep.mubr.msk.bf16.mxu1 %vm317_vm3, %v1753_v56  ;;  %v1540_v37 = vcombine.low %v1170_v43, %v1174_v50 }
  0x42   : > { %1630 = vmatprep.subr.bf16.mxu1 %v1752_v8 }
  0x45   : > { %1657 = vmatmul.mubr.msk.bf16.vlgmr.msra.gmra.mrb[0].mxu0 %vm317_vm3, %v1749_v0  ;;  %1631 = vmatpush3.bf16.msra.mxu1 %v1752_v8 }
  0x46   : > { %1661 = vmatpush3.bf16.msra.mxu0 %v1748_v49  ;;  %1664 = vmatprep.mubr.msk.bf16.mxu0 %vm317_vm3, %v1521_v2 }
  0x47   : > { %1662 = vmatprep.subr.bf16.mxu0 %v1751_v11 }
  0x4a   : > { %1663 = vmatpush3.bf16.msra.mxu0 %v1751_v11 }
  0x4b   : > { %1668 = vmatprep.subr.bf16.mxu0 %v1754_v17 }
  0x4c   : > { %1633 = vmatmul.mubr.msk.bf16.vlgmr.msra.gmra.mrb[0].mxu1 %vm317_vm3, %v1755_v23 }
  0x51   : > { %1665 = vmatmul.mubr.msk.bf16.vlgmr.msra.gmra.mrb[0].mxu0 %vm317_vm3, %v1522_v20 }
  0x52   : > { %1669 = vmatpush3.bf16.msra.mxu0 %v1754_v17  ;;  %1672 = vmatprep.mubr.msk.bf16.mxu0 %vm317_vm3, %v1539_v29 }
  0x53   : > { %1670 = vmatprep.subr.bf16.mxu0 %v1756_v22 }
  0x56   : > { %1671 = vmatpush3.bf16.msra.mxu0 %v1756_v22 }
  0x5d   : > { %1673 = vmatmul.mubr.msk.bf16.vlgmr.msra.gmra.mrb[0].mxu0 %vm317_vm3, %v1540_v37 }
 0x11f   : > { %v1634_v38 = vpop.f32.mrb[0].mxu1 }
 0x120   : > { %v635_v40 = vpop.f32.mrb[1].mxu1 }
 0x121   : > { %v1635_v41 = vpop.f32.mrb[2].mxu1 }
 0x122   : > { %v638_v25 = vpop.f32.mrb[3].mxu1 }
 0x130   : > { %v1674_v42 = vpop.f32.mrb[0].mxu0 }
 0x131   : > { %v1676_v45 = vadd.f32 %v1674_v42, %v1634_v38  ;;  %v1238_v46 = vpop.f32.mrb[1].mxu0 }
 0x132   : > { %v1677_v47 = vadd.f32 %v1238_v46, %v635_v40  ;;  %v1675_v48 = vpop.f32.mrb[2].mxu0 }
 0x133   : > { %v1266_v6 = vadd.f32 %v1676_v45, %v1545_v44  ;;  %v1678_v21 = vadd.f32 %v1675_v48, %v1635_v41  ;;  %v1241_v7 = vpop.f32.mrb[3].mxu0 }
 0x134   : > { %v1264_v49 = vadd.f32 %v1677_v47, %v1545_v44  ;;  %v1679_v51 = vadd.f32 %v1241_v7, %v638_v25 }
 0x135   : > { %v1274_v52 = vmul.f32 0.01, %v1266_v6  ;;  %v1267_v53 = vadd.f32 %v1678_v21, %v1545_v44  ;;  %vm1270_vm7 = vcmp.gt.f32.partialorder %v1266_v6, 0.0 }
 0x136   : > { %v1272_v54 = vmul.f32 0.01, %v1264_v49  ;;  %v1265_v55 = vadd.f32 %v1679_v51, %v1545_v44  ;;  %vm1268_vm8 = vcmp.gt.f32.partialorder %v1264_v49, 0.0 }
 0x137   : > { %vm1271_vm9 = vcmp.gt.f32.partialorder %v1267_v53, 0.0  ;;  %v1275_v8 = vmul.f32 0.01, %v1267_v53  ;;  %v1278_v9 = vsel %vm1270_vm7, %v1266_v6, %v1274_v52 }
 0x138   : > { %vm1269_vm10 = vcmp.gt.f32.partialorder %v1265_v55, 0.0  ;;  %v1273_v56 = vmul.f32 0.01, %v1265_v55  ;;  %v1276_v59 = vsel %vm1268_vm8, %v1264_v49, %v1272_v54 }
 0x139   : > { %v1279_v57 = vsel %vm1271_vm9, %v1267_v53, %v1275_v8 }
 0x13a   : > { %v1565_v60 = vpack.c.bf16 %v1279_v57, %v1278_v9  ;;  %v1277_v61 = vsel %vm1269_vm10, %v1265_v55, %v1273_v56 }
 0x13b   : > { %v1560_v62 = vpack.c.bf16 %v1277_v61, %v1276_v59 }
 0x13c   : > { %1567 = vst [vmem:[%s221_s11 + $0x8] sm:$0xff] %v1565_v60  }
 0x13d   : > { %1561 = vst [vmem:[%s221_s11] sm:$0xff] %v1560_v62  }
 0x13e PF: > { %s13_s14 = sadd.s32 1, %s1779_s14   ;;  %s2091_s12 = smov %s1775_s13 }
 0x13f   : > { %p10_p5 = scmp.ge.s32.totalorder %s13_s14, 4   ;;  %s2092_s13 = smov %s2094_s15 }
 0x141   :  { %12 = sbr.rel (!%p10_p5) target bundleno = 2 (0x2), region = 78 }

// kernel: forward.14
= control target key start
LH: loop header
LB: loop body
LE: loop exit
PB: predicated region body
PF: predicated region fallthrough
CT: control target
= control target key end

     0   :  { %s1382_s12 = smov 0   ;;  %s1384_s13 = smov 0   ;;  %s1560_s0 = inlined_call_operand.vmem [shape: bf16[8,3,9,32], index: 0, kind: input, shape index: {}]   ;;  %s1561_s1 = inlined_call_operand.vmem [shape: bf16[9,32,128], index: 1, kind: input, shape index: {}]   ;;  %s1562_s2 = inlined_call_operand.vmem [shape: f32[1,128], index: 2, kind: input, shape index: {}]   ;;  %s1563_s3 = inlined_call_operand.vmem [shape: bf16[2,16,128], index: 3, kind: output, shape index: {}]  }
   0x1   :  { %s1386_s14 = smov 0  }
   0x2 LB: > { %s25_s15 = sadd.s32 1, %s1354_s13  ;;  %p1082_p0 = scmp.ge.s32.totalorder %s1358_s14, 1  ;;  %s1358_s14 = sphi %s1386_s14, %s13_s14   ;;  %s1354_s13 = sphi %s1384_s13, %s1567_s13   ;;  %s1350_s12 = sphi %s1382_s12, %s1566_s12  }
   0x3   : > { %p27_p1 = scmp.ge.s32.totalorder %s25_s15, 2  ;;  %p170_p2 = scmp.lt.s32.totalorder %s1358_s14, 3 }
   0x5   : > { %s1569_s15 = smov (%p27_p1, %s25_s15), 0  ;;  %p171_p3 = pnand %p1082_p0, %p170_p2 }
   0x6   : > { %v1312_v0 = vld [vmem:[%s1561_s1 + $0x10] sm:$0xff] (!%p171_p3)   ;;  %v1360_v1 = vmov (!%p171_p3), 0.0   ;;  %v1313_v2 = vld [vmem:[%s1561_s1] sm:$0xff] (!%p171_p3)   ;;  %v1314_v3 = vld [vmem:[%s1561_s1 + $0x18] sm:$0xff] (!%p171_p3)   ;;  %vm1361_vm0 = vmmov (!%p171_p3), 0   ;;  %s1083_s22 = sshll.u32 (!%p171_p3), %s1350_s12, 2 }
   0x7   : > { %174 = sbr.rel (%p171_p3) target bundleno = 280 (0x118), region = 32  ;;  %1213 = vmatprep.subr.bf16.mxu0 (!%p171_p3), %v1360_v1  ;;  %1221 = vmatprep.subr.bf16.mxu1 (!%p171_p3), %v1360_v1  ;;  %v1315_v4 = vld [vmem:[%s1561_s1 + $0x8] sm:$0xff] (!%p171_p3)   ;;  %p206_p4 = scmp.lt.s32.totalorder (!%p171_p3), %s1083_s22, 7  ;;  %vm259_vm1 = vcmask (!%p171_p3), 261120   ;;  %v1318_v5 = vld [vmem:[%s1561_s1 + $0x20] sm:$0xff] (!%p171_p3)   ;;  %v1319_v6 = vld [vmem:[%s1561_s1 + $0x30] sm:$0xff] (!%p171_p3)  }
   0x8   : > { %1214 = vmatpush3.bf16.msra.mxu0 (!%p171_p3), %v1312_v0  ;;  %1217 = vmatprep.mubr.msk.bf16.mxu0 (!%p171_p3), %vm1361_vm0, %v1360_v1  ;;  %vm369_vm2 = vsmask.f32 (!%p171_p3), 3328  ;;  %vm370_vm3 = vsmask.f32 (!%p171_p3), 7440  ;;  %v1320_v9 = vld [vmem:[%s1561_s1 + $0x28] sm:$0xff] (!%p171_p3)   ;;  %v1321_v10 = vld [vmem:[%s1561_s1 + $0x38] sm:$0xff] (!%p171_p3)  }
   0x9   : > { %1222 = vmatpush3.bf16.msra.mxu1 (!%p171_p3), %v1313_v2  ;;  %1215 = vmatprep.subr.bf16.mxu0 (!%p171_p3), %v1360_v1  ;;  %vm1456_vm4 = vmor (!%p171_p3), %vm369_vm2, %vm370_vm3  ;;  %v1324_v31 = vld [vmem:[%s1561_s1 + $0x50] sm:$0xff] (!%p171_p3)   ;;  %v1322_v34 = vld [vmem:[%s1561_s1 + $0x40] sm:$0xff] (!%p171_p3)   ;;  %p219_p5 = scmp.lt.s32.totalorder (!%p171_p3), %s1350_s12, 1 }
   0xa   : > { %1223 = vmatprep.subr.bf16.mxu1 (!%p171_p3), %v1360_v1  ;;  %1225 = vmatprep.mubr.msk.bf16.mxu1 (!%p171_p3), %vm1361_vm0, %v1360_v1  ;;  %v1326_v44 = vld [vmem:[%s1561_s1 + $0x58] sm:$0xff] (!%p171_p3)   ;;  %v1325_v51 = vld [vmem:[%s1561_s1 + $0x48] sm:$0xff] (!%p171_p3)   ;;  %v1328_v60 = vld [vmem:[%s1561_s1 + $0x60] sm:$0xff] (!%p171_p3)  }
   0xb   : > { %v1329_v63 = vld [vmem:[%s1561_s1 + $0x70] sm:$0xff] (!%p171_p3)  }
   0xc   : > { %1216 = vmatpush3.bf16.msra.mxu0 (!%p171_p3), %v1314_v3 }
   0xd   : > { %1224 = vmatpush3.bf16.msra.mxu1 (!%p171_p3), %v1315_v4  ;;  %1229 = vmatprep.subr.bf16.mxu0 (!%p171_p3), %v1360_v1 }
   0xe   : > { %s1571_s22 = smov (!%p206_p4, %s1083_s22), 7  ;;  %1237 = vmatprep.subr.bf16.mxu1 %v1360_v1  ;;  %s1573_s12 = smov (!%p219_p5, %s1350_s12), 1 }
   0xf   : > { %s1285_s25 = smul.u32 24, %s1571_s22  ;;  %s1178_s9 = sshll.u32 %s1573_s12, 3 }
  0x10   : > { %s226_s16 = scalar_lea.vmem %s1563_s3, %s1178_s9 }
  0x11   : > { %s1434_s5 = scalar_lea.vmem %s1560_s0, %s1285_s25 }
  0x12   : > { %v1316_v7 = vld [vmem:[%s1434_s5 + $0x18] ss:$8 sps:$4 sm:$0xff]   ;;  %v366_v12 = vld [vmem:[%s1434_s5 + $0x4] sm:$0x1]  ;;  %v367_v13 = vld [vmem:[%s1434_s5 + $0x8] sm:$0xf] }
  0x13   : > { %v1317_v8 = vld [vmem:[%s1434_s5] ss:$8 sps:$4 sm:$0xff]   ;;  %1218 = vmatmul.mubr.msk.bf16.vlgmr.msra.gmra.mrb[0].mxu0 %vm259_vm1, %v1316_v7  ;;  %v368_v14 = vld [vmem:[%s1434_s5 + $0xc] sm:$0x1]  ;;  %v382_v17 = vshll.u32 %v366_v12, 16  ;;  %v387_v18 = vshrl.u32 %v367_v13, 16 }
  0x14   : > { %v365_v11 = vld [vmem:[%s1434_s5] sm:$0xf]  ;;  %1226 = vmatmul.mubr.msk.bf16.vlgmr.msra.gmra.mrb[0].mxu1 %vm259_vm1, %v1317_v8  ;;  %1230 = vmatpush3.bf16.msra.mxu0 %v1318_v5  ;;  %v390_v19 = vshll.u32 %v367_v13, 16  ;;  %v396_v20 = vshll.u32 %v368_v14, 16  ;;  %v1323_v28 = vld [vmem:[%s1434_s5 + $0x30] ss:$8 sps:$4 sm:$0xff]  }
  0x15   : > { %v373_v15 = vshrl.u32 %v365_v11, 16  ;;  %v376_v16 = vshll.u32 %v365_v11, 16  ;;  %1231 = vmatprep.subr.bf16.mxu0 %v1360_v1  ;;  %1238 = vmatpush3.bf16.msra.mxu1 %v1319_v6  ;;  %v389_v23 = vrot.slane %v387_v18, 4  ;;  %v384_v25 = vrot.slane %v382_v17, 5  ;;  %v1129_v36 = vld [vmem:[%s1434_s5 + $0x30] sm:$0xf] }
  0x16   : > { %1239 = vmatprep.subr.bf16.mxu1 %v1360_v1  ;;  %1233 = vmatprep.mubr.msk.bf16.mxu0 %vm1361_vm0, %v1360_v1  ;;  %v392_v26 = vrot.slane %v390_v19, 5  ;;  %v398_v30 = vrot.slane %v396_v20, 5  ;;  %v1130_v37 = vld [vmem:[%s1434_s5 + $0x34] sm:$0x1]  ;;  %v1131_v39 = vld [vmem:[%s1434_s5 + $0x38] sm:$0xf] }
  0x17   : > { %v375_v21 = vrot.slane %v373_v15, 4  ;;  %v378_v22 = vrot.slane %v376_v16, 5  ;;  %1241 = vmatprep.mubr.msk.bf16.mxu1 %vm1361_vm0, %v1360_v1  ;;  %v1132_v40 = vld [vmem:[%s1434_s5 + $0x3c] sm:$0x1]  ;;  %v613_v41 = vshrl.u32 %v1129_v36, 16  ;;  %v616_v42 = vshll.u32 %v1129_v36, 16 }
  0x18   : > { %1232 = vmatpush3.bf16.msra.mxu0 %v1320_v9  ;;  %v393_v29 = vor.u32 %v392_v26, %v389_v23  ;;  %v622_v45 = vshll.u32 %v1130_v37, 16  ;;  %v627_v46 = vshrl.u32 %v1131_v39, 16  ;;  %v630_v47 = vshll.u32 %v1131_v39, 16  ;;  %v1327_v58 = vld [vmem:[%s1434_s5 + $0x48] ss:$8 sps:$4 sm:$0xff]   ;;  %v1331_v16 = vld [vmem:[%s1561_s1 + $0x78] sm:$0xff]  }
  0x19   : > { %v379_v27 = vor.u32 %v378_v22, %v375_v21  ;;  %1240 = vmatpush3.bf16.msra.mxu1 %v1321_v10  ;;  %1245 = vmatprep.subr.bf16.mxu0 %v1360_v1  ;;  %v615_v48 = vrot.slane %v613_v41, 4  ;;  %v618_v49 = vrot.slane %v616_v42, 5  ;;  %v636_v50 = vshll.u32 %v1132_v40, 16  ;;  %v1161_v2 = vld [vmem:[%s1434_s5 + $0x8] sm:$0xf]  ;;  %v1333_v22 = vld [vmem:[%s1561_s1 + $0x80] sm:$0xff]  }
  0x1a   : > { %1253 = vmatprep.subr.bf16.mxu1 %v1360_v1  ;;  %v394_v33 = vrot.slane %v393_v29, 4  ;;  %v629_v52 = vrot.slane %v627_v46, 4  ;;  %v632_v53 = vrot.slane %v630_v47, 5  ;;  %v624_v55 = vrot.slane %v622_v45, 5  ;;  %v1162_v3 = vld [vmem:[%s1434_s5 + $0xc] sm:$0x1] }
  0x1b   : > { %v380_v32 = vrot.slane %v379_v27, 4  ;;  %v619_v54 = vor.u32 %v618_v49, %v615_v48  ;;  %v638_v56 = vrot.slane %v636_v50, 5  ;;  %v1163_v5 = vld [vmem:[%s1434_s5 + $0x10] sm:$0xf]  ;;  %v1164_v6 = vld [vmem:[%s1434_s5 + $0x14] sm:$0x1] }
  0x1c   : > { %1242 = vmatmul.mubr.msk.bf16.vlgmr.msra.gmra.mrb[4].mxu1 %vm259_vm1, %v1323_v28  ;;  %v399_v38 = vsel %vm1456_vm4, %v394_v33, %v398_v30  ;;  %v633_v57 = vor.u32 %v632_v53, %v629_v52  ;;  %v853_v7 = vshrl.u32 %v1161_v2, 16  ;;  %v856_v8 = vshll.u32 %v1161_v2, 16  ;;  %v1330_v11 = vld [vmem:[%s1561_s1 + $0x68] sm:$0xff]  }
  0x1d   : > { %v385_v35 = vsel %vm1456_vm4, %v380_v32, %v384_v25  ;;  %1254 = vmatpush3.bf16.msra.mxu1 %v1324_v31  ;;  %1257 = vmatprep.mubr.msk.bf16.mxu1 %vm1361_vm0, %v1360_v1  ;;  %v620_v59 = vrot.slane %v619_v54, 4  ;;  %v867_v9 = vshrl.u32 %v1163_v5, 16  ;;  %v870_v10 = vshll.u32 %v1163_v5, 16  ;;  %v1332_v20 = vld [vmem:[%s1434_s5 + $0x8] ss:$8 sps:$4 sm:$0xff]  }
  0x1e   : > { %v1105_v43 = vcombine.low %v385_v35, %v399_v38  ;;  %1255 = vmatprep.subr.bf16.mxu1 %v1360_v1  ;;  %v634_v61 = vrot.slane %v633_v57, 4  ;;  %v855_v12 = vrot.slane %v853_v7, 4  ;;  %v858_v13 = vrot.slane %v856_v8, 5  ;;  %v1334_v23 = vld [vmem:[%s1434_s5 + $0x20] ss:$8 sps:$4 sm:$0xff]  }
  0x1f   : > { %v625_v62 = vsel %vm1456_vm4, %v620_v59, %v624_v55  ;;  %v862_v14 = vshll.u32 %v1162_v3, 16  ;;  %v876_v15 = vshll.u32 %v1164_v6, 16  ;;  %v869_v17 = vrot.slane %v867_v9, 4  ;;  %v1335_v29 = vld [vmem:[%s1561_s1 + $0x88] sm:$0xff]  }
  0x20   : > { %1234 = vmatmul.mubr.msk.bf16.vlgmr.msra.gmra.mrb[4].mxu0 %vm259_vm1, %v1105_v43  ;;  %v639_v0 = vsel %vm1456_vm4, %v634_v61, %v638_v56  ;;  %v872_v18 = vrot.slane %v870_v10, 5  ;;  %v859_v19 = vor.u32 %v858_v13, %v855_v12 }
  0x21   : > { %1246 = vmatpush3.bf16.msra.mxu0 %v1322_v34  ;;  %1249 = vmatprep.mubr.msk.bf16.mxu0 %vm1361_vm0, %v1360_v1  ;;  %v1137_v4 = vcombine.low %v625_v62, %v639_v0  ;;  %v864_v26 = vrot.slane %v862_v14, 5  ;;  %v878_v27 = vrot.slane %v876_v15, 5  ;;  %v1173_v15 = vld [vmem:[%s1562_s2] ss:$0 sm:$0xff] }
  0x22   : > { %1247 = vmatprep.subr.bf16.mxu0 %v1360_v1  ;;  %1256 = vmatpush3.bf16.msra.mxu1 %v1326_v44  ;;  %v873_v21 = vor.u32 %v872_v18, %v869_v17  ;;  %v860_v25 = vrot.slane %v859_v19, 4 }
  0x23   : > { %1269 = vmatprep.subr.bf16.mxu1 %v1360_v1 }
  0x24   : > { %v874_v28 = vrot.slane %v873_v21, 4  ;;  %v865_v30 = vsel %vm1456_vm4, %v860_v25, %v864_v26 }
  0x25   : > { %1248 = vmatpush3.bf16.msra.mxu0 %v1325_v51  ;;  %1258 = vmatmul.mubr.msk.bf16.vlgmr.msra.gmra.mrb[8].mxu1 %vm259_vm1, %v1137_v4 }
  0x26   : > { %1261 = vmatprep.subr.bf16.mxu0 %v1360_v1  ;;  %1270 = vmatpush3.bf16.msra.mxu1 %v1329_v63  ;;  %v879_v31 = vsel %vm1456_vm4, %v874_v28, %v878_v27 }
  0x27   : > { %1271 = vmatprep.subr.bf16.mxu1 %v1360_v1  ;;  %1273 = vmatprep.mubr.msk.bf16.mxu1 %vm1361_vm0, %v1360_v1  ;;  %v1169_v32 = vcombine.low %v865_v30, %v879_v31 }
  0x28   : > { %1250 = vmatmul.mubr.msk.bf16.vlgmr.msra.gmra.mrb[8].mxu0 %vm259_vm1, %v1327_v58 }
  0x29   : > { %1262 = vmatpush3.bf16.msra.mxu0 %v1328_v60  ;;  %1265 = vmatprep.mubr.msk.bf16.mxu0 %vm1361_vm0, %v1360_v1 }
  0x2a   : > { %1263 = vmatprep.subr.bf16.mxu0 %v1360_v1  ;;  %1272 = vmatpush3.bf16.msra.mxu1 %v1331_v16 }
  0x2d   : > { %1264 = vmatpush3.bf16.msra.mxu0 %v1330_v11  ;;  %1274 = vmatmul.mubr.msk.bf16.vlgmr.msra.gmra.mrb[12].mxu1 %vm259_vm1, %v1334_v23 }
  0x2e   : > { %1277 = vmatprep.subr.bf16.mxu0 %v1360_v1 }
  0x30   : > { %1266 = vmatmul.mubr.msk.bf16.vlgmr.msra.gmra.mrb[12].mxu0 %vm259_vm1, %v1332_v20 }
  0x31   : > { %1278 = vmatpush3.bf16.msra.mxu0 %v1333_v22  ;;  %1281 = vmatprep.mubr.msk.bf16.mxu0 %vm1361_vm0, %v1360_v1 }
  0x32   : > { %1279 = vmatprep.subr.bf16.mxu0 %v1360_v1 }
  0x35   : > { %1280 = vmatpush3.bf16.msra.mxu0 %v1335_v29 }
  0x38   : > { %1282 = vmatmul.mubr.msk.bf16.vlgmr.msra.gmra.mrb[16].mxu0 %vm259_vm1, %v1169_v32 }
  0xe6   : > { %v297_v33 = vpop.f32.mrb[0].mxu0 }
  0xe7   : > { %v358_v34 = vpop.f32.mrb[0].mxu1  ;;  %v1219_v35 = vpop.f32.mrb[1].mxu0 }
  0xe8   : > { %v359_v36 = vadd.f32 %v358_v34, %v297_v33  ;;  %v1227_v37 = vpop.f32.mrb[1].mxu1  ;;  %v300_v38 = vpop.f32.mrb[2].mxu0 }
  0xe9   : > { %v361_v39 = vpop.f32.mrb[2].mxu1  ;;  %v1220_v40 = vpop.f32.mrb[3].mxu0 }
  0xea   : > { %v362_v41 = vadd.f32 %v361_v39, %v300_v38  ;;  %v1228_v24 = vpop.f32.mrb[3].mxu1 }
  0xef   : > { %v528_v42 = vpop.f32.mrb[4].mxu1 }
  0xf0   : > { %v1243_v43 = vpop.f32.mrb[5].mxu1 }
  0xf1   : > { %v531_v44 = vpop.f32.mrb[6].mxu1 }
  0xf2   : > { %v1244_v45 = vpop.f32.mrb[7].mxu1 }
  0xf3   : > { %v457_v46 = vpop.f32.mrb[4].mxu0 }
  0xf4   : > { %v464_v1 = vadd.f32 %v457_v46, %v359_v36  ;;  %v1235_v47 = vpop.f32.mrb[5].mxu0 }
  0xf5   : > { %v460_v48 = vpop.f32.mrb[6].mxu0 }
  0xf6   : > { %v465_v49 = vadd.f32 %v460_v48, %v362_v41  ;;  %v535_v50 = vadd.f32 %v528_v42, %v464_v1  ;;  %v1236_v51 = vpop.f32.mrb[7].mxu0 }
  0xf8   : > { %v536_v52 = vadd.f32 %v531_v44, %v465_v49  ;;  %v697_v56 = vpop.f32.mrb[8].mxu1 }
  0xf9   : > { %v1259_v58 = vpop.f32.mrb[9].mxu1 }
  0xfa   : > { %v700_v62 = vpop.f32.mrb[10].mxu1 }
  0xfb   : > { %v599_v53 = vpop.f32.mrb[8].mxu0  ;;  %v1260_v63 = vpop.f32.mrb[11].mxu1 }
  0xfc   : > { %v606_v54 = vadd.f32 %v599_v53, %v535_v50  ;;  %v1251_v55 = vpop.f32.mrb[9].mxu0 }
  0xfd   : > { %v602_v57 = vpop.f32.mrb[10].mxu0 }
  0xfe   : > { %v607_v59 = vadd.f32 %v602_v57, %v536_v52  ;;  %v704_v60 = vadd.f32 %v697_v56, %v606_v54  ;;  %v1252_v61 = vpop.f32.mrb[11].mxu0 }
 0x100   : > { %v705_v0 = vadd.f32 %v700_v62, %v607_v59  ;;  %v839_v5 = vpop.f32.mrb[12].mxu1 }
 0x101   : > { %v1275_v7 = vpop.f32.mrb[13].mxu1 }
 0x102   : > { %v842_v11 = vpop.f32.mrb[14].mxu1 }
 0x103   : > { %v768_v2 = vpop.f32.mrb[12].mxu0  ;;  %v1276_v12 = vpop.f32.mrb[15].mxu1 }
 0x104   : > { %v775_v3 = vadd.f32 %v768_v2, %v704_v60  ;;  %v1267_v4 = vpop.f32.mrb[13].mxu0 }
 0x105   : > { %v771_v6 = vpop.f32.mrb[14].mxu0 }
 0x106   : > { %v776_v8 = vadd.f32 %v771_v6, %v705_v0  ;;  %v846_v9 = vadd.f32 %v839_v5, %v775_v3  ;;  %v1268_v10 = vpop.f32.mrb[15].mxu0 }
 0x108   : > { %v847_v13 = vadd.f32 %v842_v11, %v776_v8 }
 0x10b   : > { %v937_v14 = vpop.f32.mrb[16].mxu0 }
 0x10c   : > { %v944_v16 = vadd.f32 %v937_v14, %v846_v9  ;;  %v1283_v17 = vpop.f32.mrb[17].mxu0 }
 0x10d   : > { %v940_v18 = vpop.f32.mrb[18].mxu0 }
 0x10e   : > { %v953_v19 = vadd.f32 %v1173_v15, %v944_v16  ;;  %v945_v20 = vadd.f32 %v940_v18, %v847_v13  ;;  %v1284_v21 = vpop.f32.mrb[19].mxu0 }
 0x110   : > { %v957_v22 = vmul.f32 0.01, %v953_v19  ;;  %v954_v23 = vadd.f32 %v1173_v15, %v945_v20  ;;  %vm955_vm5 = vcmp.gt.f32.partialorder %v953_v19, 0.0 }
 0x112   : > { %vm956_vm6 = vcmp.gt.f32.partialorder %v954_v23, 0.0  ;;  %v958_v25 = vmul.f32 0.01, %v954_v23  ;;  %v959_v26 = vsel %vm955_vm5, %v953_v19, %v957_v22 }
 0x114   : > { %v960_v27 = vsel %vm956_vm6, %v954_v23, %v958_v25 }
 0x115   : > { %v1184_v28 = vpack.c.bf16 %v960_v27, %v959_v26 }
 0x117   : > { %1185 = vst [vmem:[%s226_s16] sm:$0xff] %v1184_v28  }
 0x118 PF: > { %s13_s14 = sadd.s32 1, %s1358_s14   ;;  %s1566_s12 = smov %s1354_s13 }
 0x119   : > { %p10_p6 = scmp.ge.s32.totalorder %s13_s14, 4   ;;  %s1567_s13 = smov %s1569_s15 }
 0x11b   :  { %12 = sbr.rel (!%p10_p6) target bundleno = 2 (0x2), region = 81 }

// kernel: forward.15
= control target key start
LH: loop header
LB: loop body
LE: loop exit
PB: predicated region body
PF: predicated region fallthrough
CT: control target
= control target key end

     0   :  { %s1672_s12 = smov 0   ;;  %s1674_s13 = smov 0   ;;  %s1954_s0 = inlined_call_operand.vmem [shape: bf16[2,4,10,64], index: 0, kind: input, shape index: {}]   ;;  %s1955_s1 = inlined_call_operand.vmem [shape: bf16[9,64,128], index: 1, kind: input, shape index: {}]   ;;  %s1956_s2 = inlined_call_operand.vmem [shape: f32[1,128], index: 2, kind: input, shape index: {}]   ;;  %s1957_s3 = inlined_call_operand.vmem [shape: bf16[2,16,128], index: 3, kind: output, shape index: {}]  }
   0x1   :  { %s1676_s14 = smov 0  }
   0x2 LB: > { %s25_s15 = sadd.s32 1, %s1644_s13  ;;  %p1249_p0 = scmp.ge.s32.totalorder %s1648_s14, 1  ;;  %s1648_s14 = sphi %s1676_s14, %s13_s14   ;;  %s1644_s13 = sphi %s1674_s13, %s1963_s13   ;;  %s1640_s12 = sphi %s1672_s12, %s1962_s12  }
   0x3   : > { %p27_p1 = scmp.ge.s32.totalorder %s25_s15, 2  ;;  %p168_p2 = scmp.lt.s32.totalorder %s1648_s14, 3 }
   0x5   : > { %s1965_s15 = smov (%p27_p1, %s25_s15), 0  ;;  %p169_p3 = pnand %p1249_p0, %p168_p2 }
   0x6   : > { %v1587_v0 = vld [vmem:[%s1955_s1 + $0x20] sm:$0xff] (!%p169_p3)   ;;  %v1650_v1 = vmov (!%p169_p3), 0.0   ;;  %v1589_v3 = vld [vmem:[%s1955_s1 + $0x28] sm:$0xff] (!%p169_p3)   ;;  %vm1651_vm0 = vmmov (!%p169_p3), 0   ;;  %p202_p4 = scmp.lt.s32.totalorder (!%p169_p3), %s1640_s12, 1  ;;  %v1591_v5 = vld [vmem:[%s1955_s1 + $0x30] sm:$0xff] (!%p169_p3)  }
   0x7   : > { %172 = sbr.rel (%p169_p3) target bundleno = 318 (0x13e), region = 32  ;;  %1453 = vmatprep.subr.bf16.mxu0 (!%p169_p3), %v1650_v1  ;;  %1465 = vmatprep.subr.bf16.mxu1 (!%p169_p3), %v1650_v1  ;;  %v1588_v2 = vld [vmem:[%s1955_s1] sm:$0xff] (!%p169_p3)   ;;  %v1590_v4 = vld [vmem:[%s1955_s1 + $0x8] sm:$0xff] (!%p169_p3)   ;;  %v1592_v6 = vld [vmem:[%s1955_s1 + $0x10] sm:$0xff] (!%p169_p3)   ;;  %vm235_vm1 = vsmask.f32 (!%p169_p3), 3328 }
   0x8   : > { %1454 = vmatpush3.bf16.msra.mxu0 (!%p169_p3), %v1587_v0  ;;  %1461 = vmatprep.mubr.msk.bf16.mxu0 (!%p169_p3), %vm1651_vm0, %v1650_v1  ;;  %v1593_v10 = vld [vmem:[%s1955_s1 + $0x38] sm:$0xff] (!%p169_p3)   ;;  %vm236_vm2 = vsmask.f32 (!%p169_p3), 7440  ;;  %vm302_vm4 = vcmask (!%p169_p3), 523264   ;;  %v1597_v29 = vld [vmem:[%s1955_s1 + $0x60] sm:$0xff] (!%p169_p3)   ;;  %v1599_v35 = vld [vmem:[%s1955_s1 + $0x68] sm:$0xff] (!%p169_p3)  }
   0x9   : > { %1466 = vmatpush3.bf16.msra.mxu1 (!%p169_p3), %v1588_v2  ;;  %1455 = vmatprep.subr.bf16.mxu0 (!%p169_p3), %v1650_v1  ;;  %v1594_v11 = vld [vmem:[%s1955_s1 + $0x18] sm:$0xff] (!%p169_p3)   ;;  %vm1745_vm3 = vmor (!%p169_p3), %vm235_vm1, %vm236_vm2  ;;  %v1596_v33 = vld [vmem:[%s1955_s1 + $0x40] sm:$0xff] (!%p169_p3)   ;;  %vm426_vm5 = vcmask (!%p169_p3), 1042432   ;;  %vm427_vm6 = vcmask (!%p169_p3), 1046532  }
   0xa   : > { %1467 = vmatprep.subr.bf16.mxu1 (!%p169_p3), %v1650_v1  ;;  %1473 = vmatprep.mubr.msk.bf16.mxu1 (!%p169_p3), %vm1651_vm0, %v1650_v1  ;;  %v1598_v37 = vld [vmem:[%s1955_s1 + $0x48] sm:$0xff] (!%p169_p3)   ;;  %v1601_v38 = vld [vmem:[%s1955_s1 + $0x70] sm:$0xff] (!%p169_p3)   ;;  %vm1783_vm7 = vmor (!%p169_p3), %vm426_vm5, %vm427_vm6 }
   0xb   : > { %v1600_v44 = vld [vmem:[%s1955_s1 + $0x50] sm:$0xff] (!%p169_p3)   ;;  %v1603_v46 = vld [vmem:[%s1955_s1 + $0x78] sm:$0xff] (!%p169_p3)   ;;  %v1606_v54 = vld [vmem:[%s1955_s1 + $0xa0] sm:$0xff] (!%p169_p3)  }
   0xc   : > { %1456 = vmatpush3.bf16.msra.mxu0 (!%p169_p3), %v1589_v3  ;;  %v1602_v49 = vld [vmem:[%s1955_s1 + $0x58] sm:$0xff] (!%p169_p3)   ;;  %v1604_v59 = vld [vmem:[%s1955_s1 + $0x80] sm:$0xff] (!%p169_p3)   ;;  %v1608_v60 = vld [vmem:[%s1955_s1 + $0xa8] sm:$0xff] (!%p169_p3)  }
   0xd   : > { %1468 = vmatpush3.bf16.msra.mxu1 (!%p169_p3), %v1590_v4  ;;  %1457 = vmatprep.subr.bf16.mxu0 (!%p169_p3), %v1650_v1  ;;  %v1622_v23 = vld [vmem:[%s1955_s1 + $0x100] sm:$0xff] (!%p169_p3)  }
   0xe   : > { %s1967_s12 = smov (!%p202_p4, %s1640_s12), 1  ;;  %1469 = vmatprep.subr.bf16.mxu1 %v1650_v1 }
   0xf   : > { %s1399_s26 = sshll.u32 %s1967_s12, 5 }
  0x10   : > { %s1723_s4 = scalar_lea.vmem %s1954_s0, %s1399_s26  ;;  %1458 = vmatpush3.bf16.msra.mxu0 %v1591_v5  ;;  %s1400_s26 = sshll.u32 %s1967_s12, 3 }
  0x11   : > { %v223_v7 = vld [vmem:[%s1723_s4] sm:$0xf]  ;;  %v224_v8 = vld [vmem:[%s1723_s4 + $0x8] sm:$0xf]  ;;  %v1729_v9 = vld [vmem:[%s1723_s4 + $0x4] sm:$0x1]  ;;  %1470 = vmatpush3.bf16.msra.mxu1 %v1592_v6  ;;  %1459 = vmatprep.subr.bf16.mxu0 %v1650_v1  ;;  %s221_s29 = scalar_lea.vmem %s1957_s3, %s1400_s26 }
  0x12   : > { %v1738_v12 = vld [vmem:[%s1723_s4 + $0xc] sm:$0x1]  ;;  %v239_v13 = vshrl.u32 %v223_v7, 16  ;;  %v242_v14 = vshll.u32 %v223_v7, 16  ;;  %v248_v15 = vshll.u32 %v1729_v9, 16  ;;  %v253_v16 = vshrl.u32 %v224_v8, 16  ;;  %1471 = vmatprep.subr.bf16.mxu1 %v1650_v1 }
  0x13   : > { %v256_v17 = vshll.u32 %v224_v8, 16  ;;  %v262_v18 = vshll.u32 %v1738_v12, 16  ;;  %v1268_v26 = vcombine.low %v223_v7, %v224_v8  ;;  %v420_v39 = vld [vmem:[%s1723_s4] sm:$0xe]  ;;  %v421_v40 = vld [vmem:[%s1723_s4 + $0x8] sm:$0xe] }
  0x14   : > { %v241_v19 = vrot.slane %v239_v13, 4  ;;  %v244_v20 = vrot.slane %v242_v14, 5  ;;  %v255_v21 = vrot.slane %v253_v16, 4  ;;  %1460 = vmatpush3.bf16.msra.mxu0 %v1593_v10  ;;  %v250_v25 = vrot.slane %v248_v15, 5  ;;  %v1306_v48 = vld [vmem:[%s1723_s4 + $0x8] sm:$0xf] }
  0x15   : > { %v258_v22 = vrot.slane %v256_v17, 5  ;;  %1472 = vmatpush3.bf16.msra.mxu1 %v1594_v11  ;;  %v264_v28 = vrot.slane %v262_v18, 5  ;;  %1477 = vmatprep.subr.bf16.mxu0 %v1650_v1  ;;  %v431_v41 = vrot.slane %v1729_v9, 5  ;;  %v435_v42 = vrot.slane %v1738_v12, 5  ;;  %v1605_v51 = vld [vmem:[%s1723_s4 + $0x8] ss:$8 sps:$4 sm:$0xff]  }
  0x16   : > { %v245_v24 = vor.u32 %v244_v20, %v241_v19  ;;  %1489 = vmatprep.subr.bf16.mxu1 %v1650_v1  ;;  %v1274_v45 = vrot.slane %v420_v39, 9  ;;  %v1275_v47 = vrot.slane %v421_v40, 9  ;;  %v1308_v52 = vld [vmem:[%s1723_s4 + $0x10] sm:$0xf]  ;;  %v611_v55 = vshrl.u32 %v1306_v48, 16  ;;  %v1607_v7 = vld [vmem:[%s1955_s1 + $0x88] sm:$0xff]  }
  0x17   : > { %v259_v27 = vor.u32 %v258_v22, %v255_v21  ;;  %v614_v56 = vshll.u32 %v1306_v48, 16  ;;  %v625_v57 = vshrl.u32 %v1308_v52, 16  ;;  %v628_v58 = vshll.u32 %v1308_v52, 16  ;;  %v1307_v61 = vld [vmem:[%s1723_s4 + $0xc] sm:$0x1]  ;;  %v1610_v8 = vld [vmem:[%s1955_s1 + $0xb0] sm:$0xff]  }
  0x18   : > { %v246_v30 = vrot.slane %v245_v24, 4  ;;  %1474 = vmatmul.mubr.msk.bf16.vlgmr.msra.gmra.mrb[0].mxu1 %vm302_vm4, %v1268_v26  ;;  %v432_v50 = vsel %vm1783_vm7, %v1274_v45, %v431_v41  ;;  %v436_v53 = vsel %vm1783_vm7, %v1275_v47, %v435_v42  ;;  %v1309_v63 = vld [vmem:[%s1723_s4 + $0x14] sm:$0x1]  ;;  %v613_v0 = vrot.slane %v611_v55, 4  ;;  %v1324_v3 = vld [vmem:[%s1723_s4 + $0x8] sm:$0xe] }
  0x19   : > { %v260_v31 = vrot.slane %v259_v27, 4  ;;  %1490 = vmatpush3.bf16.msra.mxu1 %v1597_v29  ;;  %1497 = vmatprep.mubr.msk.bf16.mxu1 %vm1651_vm0, %v1650_v1  ;;  %v1284_v62 = vcombine.low %v432_v50, %v436_v53  ;;  %v616_v2 = vrot.slane %v614_v56, 5  ;;  %v627_v4 = vrot.slane %v625_v57, 4  ;;  %v1325_v6 = vld [vmem:[%s1723_s4 + $0x10] sm:$0xe]  ;;  %v1612_v18 = vld [vmem:[%s1955_s1 + $0xb8] sm:$0xff]  }
  0x1a   : > { %v251_v32 = vsel %vm1745_vm3, %v246_v30, %v250_v25  ;;  %1491 = vmatprep.subr.bf16.mxu1 %v1650_v1  ;;  %v630_v5 = vrot.slane %v628_v58, 5  ;;  %v620_v9 = vshll.u32 %v1307_v61, 16  ;;  %v634_v10 = vshll.u32 %v1309_v63, 16  ;;  %v1609_v17 = vld [vmem:[%s1955_s1 + $0x90] sm:$0xff]   ;;  %v1360_v27 = vld [vmem:[%s1723_s4 + $0x18] sm:$0xf] }
  0x1b   : > { %v265_v34 = vsel %vm1745_vm3, %v260_v31, %v264_v28  ;;  %v617_v11 = vor.u32 %v616_v2, %v613_v0  ;;  %v1326_v12 = vrot.slane %v1324_v3, 9  ;;  %v728_v13 = vrot.slane %v1307_v61, 5  ;;  %v1358_v26 = vld [vmem:[%s1723_s4 + $0x10] sm:$0xf]  ;;  %v1611_v31 = vld [vmem:[%s1955_s1 + $0x98] sm:$0xff]   ;;  %v1613_v45 = vld [vmem:[%s1955_s1 + $0xc0] sm:$0xff]  }
  0x1c   : > { %v1262_v36 = vcombine.low %v251_v32, %v265_v34  ;;  %v631_v14 = vor.u32 %v630_v5, %v627_v4  ;;  %v1327_v15 = vrot.slane %v1325_v6, 9  ;;  %v732_v16 = vrot.slane %v1309_v63, 5  ;;  %v1856_v34 = vld [vmem:[%s1723_s4 + $0x14] sm:$0x1]  ;;  %v1620_v58 = vld [vmem:[%s1955_s1 + $0xf8] sm:$0xff]   ;;  %v1623_v0 = vld [vmem:[%s1955_s1 + $0x108] sm:$0xff]  }
  0x1d   : > { %1492 = vmatpush3.bf16.msra.mxu1 %v1599_v35  ;;  %v618_v19 = vrot.slane %v617_v11, 4  ;;  %v622_v20 = vrot.slane %v620_v9, 5  ;;  %v636_v22 = vrot.slane %v634_v10, 5  ;;  %v729_v24 = vsel %vm1783_vm7, %v1326_v12, %v728_v13  ;;  %v1618_v52 = vld [vmem:[%s1955_s1 + $0xf0] sm:$0xff]   ;;  %v1377_v3 = vld [vmem:[%s1723_s4 + $0x18] sm:$0xe] }
  0x1e   : > { %1462 = vmatmul.mubr.msk.bf16.vlgmr.msra.gmra.mrb[0].mxu0 %vm302_vm4, %v1262_v36  ;;  %1493 = vmatprep.subr.bf16.mxu1 %v1650_v1  ;;  %v632_v21 = vrot.slane %v631_v14, 4  ;;  %v733_v25 = vsel %vm1783_vm7, %v1327_v15, %v732_v16  ;;  %v908_v28 = vshrl.u32 %v1358_v26, 16  ;;  %v911_v29 = vshll.u32 %v1358_v26, 16  ;;  %v1617_v57 = vld [vmem:[%s1955_s1 + $0xd0] sm:$0xff]   ;;  %v1625_v9 = vld [vmem:[%s1955_s1 + $0x118] sm:$0xff]  }
  0x1f   : > { %1478 = vmatpush3.bf16.msra.mxu0 %v1596_v33  ;;  %1485 = vmatprep.mubr.msk.bf16.mxu0 %vm1651_vm0, %v1650_v1  ;;  %v922_v30 = vshrl.u32 %v1360_v27, 16  ;;  %v623_v32 = vsel %vm1745_vm3, %v618_v19, %v622_v20  ;;  %v1336_v33 = vcombine.low %v729_v24, %v733_v25  ;;  %v925_v35 = vshll.u32 %v1360_v27, 16  ;;  %v1621_v63 = vld [vmem:[%s1723_s4 + $0x10] ss:$8 sps:$4 sm:$0xff]  }
  0x20   : > { %1479 = vmatprep.subr.bf16.mxu0 %v1650_v1  ;;  %v637_v36 = vsel %vm1745_vm3, %v632_v21, %v636_v22  ;;  %v910_v39 = vrot.slane %v908_v28, 4  ;;  %v913_v40 = vrot.slane %v911_v29, 5  ;;  %v917_v48 = vshll.u32 %v1856_v34, 16  ;;  %v1376_v2 = vld [vmem:[%s1723_s4 + $0x10] sm:$0xe] }
  0x21   : > { %1494 = vmatpush3.bf16.msra.mxu1 %v1601_v38  ;;  %v1864_v38 = vld [vmem:[%s1723_s4 + $0x1c] sm:$0x1]  ;;  %v924_v41 = vrot.slane %v922_v30, 4  ;;  %v927_v42 = vrot.slane %v925_v35, 5  ;;  %v1624_v4 = vld [vmem:[%s1955_s1 + $0x110] sm:$0xff]   ;;  %v1378_v5 = vrot.slane %v1376_v2, 9 }
  0x22   : > { %1495 = vmatprep.subr.bf16.mxu1 %v1650_v1  ;;  %v914_v47 = vor.u32 %v913_v40, %v910_v39  ;;  %v931_v50 = vshll.u32 %v1864_v38, 16  ;;  %v1025_v6 = vrot.slane %v1856_v34, 5 }
  0x23   : > { %1480 = vmatpush3.bf16.msra.mxu0 %v1598_v37  ;;  %v1614_v37 = vld [vmem:[%s1955_s1 + $0xe0] sm:$0xff]  }
  0x24   : > { %1481 = vmatprep.subr.bf16.mxu0 %v1650_v1  ;;  %v915_v53 = vrot.slane %v914_v47, 4  ;;  %v933_v56 = vrot.slane %v931_v50, 5  ;;  %v1026_v10 = vsel %vm1783_vm7, %v1378_v5, %v1025_v6 }
  0x25   : > { %1496 = vmatpush3.bf16.msra.mxu1 %v1603_v46  ;;  %v1616_v46 = vld [vmem:[%s1955_s1 + $0xe8] sm:$0xff]  }
  0x26   : > { %1513 = vmatprep.subr.bf16.mxu1 %v1650_v1 }
  0x27   : > { %1482 = vmatpush3.bf16.msra.mxu0 %v1600_v44  ;;  %v1318_v44 = vcombine.low %v623_v32, %v637_v36 }
  0x28   : > { %1483 = vmatprep.subr.bf16.mxu0 %v1650_v1  ;;  %1498 = vmatmul.mubr.msk.bf16.vlgmr.msra.gmra.mrb[4].mxu1 %vm302_vm4, %v1605_v51  ;;  %v1615_v51 = vld [vmem:[%s1955_s1 + $0xc8] sm:$0xff]  }
  0x29   : > { %1514 = vmatpush3.bf16.msra.mxu1 %v1606_v54  ;;  %1521 = vmatprep.mubr.msk.bf16.mxu1 %vm1651_vm0, %v1650_v1  ;;  %v919_v54 = vrot.slane %v917_v48, 5 }
  0x2a   : > { %1515 = vmatprep.subr.bf16.mxu1 %v1650_v1 }
  0x2b   : > { %1484 = vmatpush3.bf16.msra.mxu0 %v1602_v49  ;;  %v928_v49 = vor.u32 %v927_v42, %v924_v41 }
  0x2c   : > { %1501 = vmatprep.subr.bf16.mxu0 %v1650_v1 }
  0x2d   : > { %1516 = vmatpush3.bf16.msra.mxu1 %v1608_v60  ;;  %v929_v55 = vrot.slane %v928_v49, 4 }
  0x2e   : > { %1486 = vmatmul.mubr.msk.bf16.vlgmr.msra.gmra.mrb[4].mxu0 %vm302_vm4, %v1284_v62  ;;  %1517 = vmatprep.subr.bf16.mxu1 %v1650_v1  ;;  %v1619_v62 = vld [vmem:[%s1955_s1 + $0xd8] sm:$0xff]  }
  0x2f   : > { %1502 = vmatpush3.bf16.msra.mxu0 %v1604_v59  ;;  %1509 = vmatprep.mubr.msk.bf16.mxu0 %vm1651_vm0, %v1650_v1  ;;  %v920_v59 = vsel %vm1745_vm3, %v915_v53, %v919_v54  ;;  %v934_v60 = vsel %vm1745_vm3, %v929_v55, %v933_v56 }
  0x30   : > { %1503 = vmatprep.subr.bf16.mxu0 %v1650_v1  ;;  %v1370_v61 = vcombine.low %v920_v59, %v934_v60  ;;  %v1394_v60 = vld [vmem:[%s1956_s2] ss:$0 sm:$0xff] }
  0x31   : > { %1518 = vmatpush3.bf16.msra.mxu1 %v1610_v8  ;;  %v1029_v8 = vrot.slane %v1864_v38, 5 }
  0x32   : > { %1519 = vmatprep.subr.bf16.mxu1 %v1650_v1 }
  0x33   : > { %1504 = vmatpush3.bf16.msra.mxu0 %v1607_v7  ;;  %v1379_v7 = vrot.slane %v1377_v3, 9 }
  0x34   : > { %1505 = vmatprep.subr.bf16.mxu0 %v1650_v1 }
  0x35   : > { %1520 = vmatpush3.bf16.msra.mxu1 %v1612_v18  ;;  %v1030_v11 = vsel %vm1783_vm7, %v1379_v7, %v1029_v8 }
  0x36   : > { %1537 = vmatprep.subr.bf16.mxu1 %v1650_v1  ;;  %v1388_v12 = vcombine.low %v1026_v10, %v1030_v11 }
  0x37   : > { %1506 = vmatpush3.bf16.msra.mxu0 %v1609_v17 }
  0x38   : > { %1507 = vmatprep.subr.bf16.mxu0 %v1650_v1  ;;  %1522 = vmatmul.mubr.msk.bf16.vlgmr.msra.gmra.mrb[8].mxu1 %vm302_vm4, %v1336_v33 }
  0x39   : > { %1538 = vmatpush3.bf16.msra.mxu1 %v1614_v37  ;;  %1545 = vmatprep.mubr.msk.bf16.mxu1 %vm1651_vm0, %v1650_v1 }
  0x3a   : > { %1539 = vmatprep.subr.bf16.mxu1 %v1650_v1 }
  0x3b   : > { %1508 = vmatpush3.bf16.msra.mxu0 %v1611_v31 }
  0x3c   : > { %1525 = vmatprep.subr.bf16.mxu0 %v1650_v1 }
  0x3d   : > { %1540 = vmatpush3.bf16.msra.mxu1 %v1616_v46 }
  0x3e   : > { %1510 = vmatmul.mubr.msk.bf16.vlgmr.msra.gmra.mrb[8].mxu0 %vm302_vm4, %v1318_v44  ;;  %1541 = vmatprep.subr.bf16.mxu1 %v1650_v1 }
  0x3f   : > { %1526 = vmatpush3.bf16.msra.mxu0 %v1613_v45  ;;  %1533 = vmatprep.mubr.msk.bf16.mxu0 %vm1651_vm0, %v1650_v1 }
  0x40   : > { %1527 = vmatprep.subr.bf16.mxu0 %v1650_v1 }
  0x41   : > { %1542 = vmatpush3.bf16.msra.mxu1 %v1618_v52 }
  0x42   : > { %1543 = vmatprep.subr.bf16.mxu1 %v1650_v1 }
  0x43   : > { %1528 = vmatpush3.bf16.msra.mxu0 %v1615_v51 }
  0x44   : > { %1529 = vmatprep.subr.bf16.mxu0 %v1650_v1 }
  0x45   : > { %1544 = vmatpush3.bf16.msra.mxu1 %v1620_v58 }
  0x47   : > { %1530 = vmatpush3.bf16.msra.mxu0 %v1617_v57 }
  0x48   : > { %1531 = vmatprep.subr.bf16.mxu0 %v1650_v1  ;;  %1546 = vmatmul.mubr.msk.bf16.vlgmr.msra.gmra.mrb[12].mxu1 %vm302_vm4, %v1370_v61 }
  0x4b   : > { %1532 = vmatpush3.bf16.msra.mxu0 %v1619_v62 }
  0x4c   : > { %1549 = vmatprep.subr.bf16.mxu0 %v1650_v1 }
  0x4e   : > { %1534 = vmatmul.mubr.msk.bf16.vlgmr.msra.gmra.mrb[12].mxu0 %vm302_vm4, %v1621_v63 }
  0x4f   : > { %1550 = vmatpush3.bf16.msra.mxu0 %v1622_v23  ;;  %1557 = vmatprep.mubr.msk.bf16.mxu0 %vm1651_vm0, %v1650_v1 }
  0x50   : > { %1551 = vmatprep.subr.bf16.mxu0 %v1650_v1 }
  0x53   : > { %1552 = vmatpush3.bf16.msra.mxu0 %v1623_v0 }
  0x54   : > { %1553 = vmatprep.subr.bf16.mxu0 %v1650_v1 }
  0x57   : > { %1554 = vmatpush3.bf16.msra.mxu0 %v1624_v4 }
  0x58   : > { %1555 = vmatprep.subr.bf16.mxu0 %v1650_v1 }
  0x5b   : > { %1556 = vmatpush3.bf16.msra.mxu0 %v1625_v9 }
  0x5e   : > { %1558 = vmatmul.mubr.msk.bf16.vlgmr.msra.gmra.mrb[16].mxu0 %vm302_vm4, %v1388_v12 }
  0xeb   : > { %v413_v13 = vpop.f32.mrb[0].mxu1 }
  0xec   : > { %v1475_v14 = vpop.f32.mrb[1].mxu1 }
  0xed   : > { %v416_v15 = vpop.f32.mrb[2].mxu1 }
  0xee   : > { %v1476_v16 = vpop.f32.mrb[3].mxu1 }
  0xf1   : > { %v340_v17 = vpop.f32.mrb[0].mxu0 }
  0xf2   : > { %v414_v18 = vadd.f32 %v413_v13, %v340_v17  ;;  %v1463_v19 = vpop.f32.mrb[1].mxu0 }
  0xf3   : > { %v343_v20 = vpop.f32.mrb[2].mxu0 }
  0xf4   : > { %v417_v21 = vadd.f32 %v416_v15, %v343_v20  ;;  %v1464_v22 = vpop.f32.mrb[3].mxu0 }
  0xfb   : > { %v597_v24 = vpop.f32.mrb[4].mxu1 }
  0xfc   : > { %v1499_v25 = vpop.f32.mrb[5].mxu1 }
  0xfd   : > { %v600_v43 = vpop.f32.mrb[6].mxu1 }
  0xfe   : > { %v1500_v26 = vpop.f32.mrb[7].mxu1 }
 0x101   : > { %v510_v27 = vpop.f32.mrb[4].mxu0 }
 0x102   : > { %v517_v1 = vadd.f32 %v510_v27, %v414_v18  ;;  %v1487_v28 = vpop.f32.mrb[5].mxu0 }
 0x103   : > { %v513_v29 = vpop.f32.mrb[6].mxu0 }
 0x104   : > { %v518_v30 = vadd.f32 %v513_v29, %v417_v21  ;;  %v604_v31 = vadd.f32 %v597_v24, %v517_v1  ;;  %v1488_v32 = vpop.f32.mrb[7].mxu0 }
 0x106   : > { %v605_v33 = vadd.f32 %v600_v43, %v518_v30 }
 0x10b   : > { %v807_v34 = vpop.f32.mrb[8].mxu1 }
 0x10c   : > { %v1523_v35 = vpop.f32.mrb[9].mxu1 }
 0x10d   : > { %v810_v36 = vpop.f32.mrb[10].mxu1 }
 0x10e   : > { %v1524_v37 = vpop.f32.mrb[11].mxu1 }
 0x111   : > { %v711_v38 = vpop.f32.mrb[8].mxu0 }
 0x112   : > { %v718_v39 = vadd.f32 %v711_v38, %v604_v31  ;;  %v1511_v40 = vpop.f32.mrb[9].mxu0 }
 0x113   : > { %v714_v41 = vpop.f32.mrb[10].mxu0 }
 0x114   : > { %v719_v42 = vadd.f32 %v714_v41, %v605_v33  ;;  %v814_v44 = vadd.f32 %v807_v34, %v718_v39  ;;  %v1512_v45 = vpop.f32.mrb[11].mxu0 }
 0x116   : > { %v815_v46 = vadd.f32 %v810_v36, %v719_v42 }
 0x11b   : > { %v1008_v47 = vpop.f32.mrb[12].mxu1 }
 0x11c   : > { %v1547_v48 = vpop.f32.mrb[13].mxu1 }
 0x11d   : > { %v1011_v49 = vpop.f32.mrb[14].mxu1 }
 0x11e   : > { %v1548_v50 = vpop.f32.mrb[15].mxu1 }
 0x121   : > { %v894_v51 = vpop.f32.mrb[12].mxu0 }
 0x122   : > { %v901_v52 = vadd.f32 %v894_v51, %v814_v44  ;;  %v1535_v53 = vpop.f32.mrb[13].mxu0 }
 0x123   : > { %v897_v54 = vpop.f32.mrb[14].mxu0 }
 0x124   : > { %v902_v55 = vadd.f32 %v897_v54, %v815_v46  ;;  %v1015_v56 = vadd.f32 %v1008_v47, %v901_v52  ;;  %v1536_v57 = vpop.f32.mrb[15].mxu0 }
 0x126   : > { %v1016_v58 = vadd.f32 %v1011_v49, %v902_v55 }
 0x131   : > { %v1104_v59 = vpop.f32.mrb[16].mxu0 }
 0x132   : > { %v1111_v61 = vadd.f32 %v1104_v59, %v1015_v56  ;;  %v1559_v62 = vpop.f32.mrb[17].mxu0 }
 0x133   : > { %v1107_v63 = vpop.f32.mrb[18].mxu0 }
 0x134   : > { %v1120_v23 = vadd.f32 %v1394_v60, %v1111_v61  ;;  %v1112_v0 = vadd.f32 %v1107_v63, %v1016_v58  ;;  %v1560_v2 = vpop.f32.mrb[19].mxu0 }
 0x136   : > { %v1124_v3 = vmul.f32 0.01, %v1120_v23  ;;  %v1121_v4 = vadd.f32 %v1394_v60, %v1112_v0  ;;  %vm1122_vm8 = vcmp.gt.f32.partialorder %v1120_v23, 0.0 }
 0x138   : > { %vm1123_vm9 = vcmp.gt.f32.partialorder %v1121_v4, 0.0  ;;  %v1125_v5 = vmul.f32 0.01, %v1121_v4  ;;  %v1126_v6 = vsel %vm1122_vm8, %v1120_v23, %v1124_v3 }
 0x13a   : > { %v1127_v7 = vsel %vm1123_vm9, %v1121_v4, %v1125_v5 }
 0x13b   : > { %v1406_v8 = vpack.c.bf16 %v1127_v7, %v1126_v6 }
 0x13d   : > { %1407 = vst [vmem:[%s221_s29] sm:$0xff] %v1406_v8  }
 0x13e PF: > { %s13_s14 = sadd.s32 1, %s1648_s14   ;;  %s1962_s12 = smov %s1644_s13 }
 0x13f   : > { %p10_p5 = scmp.ge.s32.totalorder %s13_s14, 4   ;;  %s1963_s13 = smov %s1965_s15 }
 0x141   :  { %12 = sbr.rel (!%p10_p5) target bundleno = 2 (0x2), region = 78 }

// kernel: forward.17
= control target key start
LH: loop header
LB: loop body
LE: loop exit
PB: predicated region body
PF: predicated region fallthrough
CT: control target
= control target key end

     0   :  { %v244_v0 = vmov 0.0   ;;  %vm245_vm0 = vmmov 0   ;;  %vm159_vm2 = vcmask 1041408   ;;  %v246_v25 = vmov 0   ;;  %s316_s1 = inlined_call_operand.vmem [shape: bf16[128,128], index: 1, kind: input, shape index: {}]   ;;  %s317_s0 = inlined_call_operand.vmem [shape: bf16[2,128], index: 0, kind: input, shape index: {}]   ;;  %s318_s4 = inlined_call_operand.<no memory space> [shape: f32[1,1], index: 4, kind: input, shape index: {}]   ;;  %s319_s2 = inlined_call_operand.vmem [shape: f32[1,128], index: 2, kind: input, shape index: {}]   ;;  %s320_s3 = inlined_call_operand.vmem [shape: f32[1,128], index: 3, kind: input, shape index: {}]   ;;  %s321_s5 = inlined_call_operand.vmem [shape: f32[2,128], index: 5, kind: output, shape index: {}]  }
   0x1   :  { %208 = vmatprep.subr.bf16.mxu0 %v244_v0  ;;  %27 = vst [vmem:[#allocation2] sm:$0x3] %v244_v0  ;;  %v232_v1 = vld [vmem:[%s316_s1] sm:$0xff]   ;;  %224 = vmatprep.mubr.msk.bf16.mxu0 %vm245_vm0, %v244_v0  ;;  %v233_v2 = vld [vmem:[%s316_s1 + $0x8] sm:$0xff]   ;;  %v234_v3 = vld [vmem:[%s316_s1 + $0x10] sm:$0xff]   ;;  %v10_v10 = vstv %s318_s4 }
   0x2   :  { %209 = vmatpush3.bf16.msra.mxu0 %v232_v1  ;;  %v235_v4 = vld [vmem:[%s316_s1 + $0x18] sm:$0xff]   ;;  %v236_v5 = vld [vmem:[%s316_s1 + $0x20] sm:$0xff]   ;;  %v237_v6 = vld [vmem:[%s316_s1 + $0x28] sm:$0xff]   ;;  %11 = vst [vmem:[#allocation3] sm:$0x1] %v10_v10  ;;  %231 = vset.pattern.permute.xlu0 %v246_v25 }
   0x3   :  { %210 = vmatprep.subr.bf16.mxu0 %v244_v0  ;;  %v238_v7 = vld [vmem:[%s316_s1 + $0x30] sm:$0xff]   ;;  %v239_v8 = vld [vmem:[%s316_s1 + $0x38] sm:$0xff]   ;;  %v29_v9 = vld [vmem:[%s317_s0] sm:$0x1] }
   0x4   :  { %v195_v17 = vld [vmem:[%s319_s2] ss:$0 sm:$0xff] }
   0x5   :  { %v196_v21 = vld [vmem:[%s320_s3] ss:$0 sm:$0xff] }
   0x6   :  { %211 = vmatpush3.bf16.msra.mxu0 %v233_v2 }
   0x7   :  { %212 = vmatprep.subr.bf16.mxu0 %v244_v0 }
   0x8   :  { %v28_v11 = vld [vmem:[#allocation2] sm:$0x3] }
   0x9   :  { %v197_v26 = vld [vmem:[#allocation3] ss:$0 sm:$0xff] }
   0xa   :  { %213 = vmatpush3.bf16.msra.mxu0 %v234_v3 }
   0xb   :  { %214 = vmatprep.subr.bf16.mxu0 %v244_v0 }
   0xe   :  { %215 = vmatpush3.bf16.msra.mxu0 %v235_v4 }
   0xf   :  { %216 = vmatprep.subr.bf16.mxu0 %v244_v0 }
  0x12   :  { %217 = vmatpush3.bf16.msra.mxu0 %v236_v5 }
  0x13   :  { %218 = vmatprep.subr.bf16.mxu0 %v244_v0 }
  0x16   :  { %219 = vmatpush3.bf16.msra.mxu0 %v237_v6 }
  0x17   :  { %220 = vmatprep.subr.bf16.mxu0 %v244_v0 }
  0x1a   :  { %221 = vmatpush3.bf16.msra.mxu0 %v238_v7 }
  0x1b   :  { %222 = vmatprep.subr.bf16.mxu0 %v244_v0 }
  0x1e   :  { %223 = vmatpush3.bf16.msra.mxu0 %v239_v8 }
  0x21   :  { %225 = vmatmul.mubr.bf16.vlgmr.msra.gmra.mrb[0].mxu0 %v29_v9 }
  0xf4   :  { %v128_v12 = vpop.f32.mrb[0].mxu0 }
  0xf5   :  { %v134_v13 = vadd.f32 %v128_v12, %v28_v11  ;;  %v226_v14 = vpop.f32.mrb[1].mxu0 }
  0xf6   :  { %v131_v15 = vpop.f32.mrb[2].mxu0 }
  0xf7   :  { %135 = vst [vmem:[#allocation2] sm:$0x3] %v134_v13  ;;  %v227_v16 = vpop.f32.mrb[3].mxu0 }
  0xfe   :  { %v139_v18 = vld [vmem:[#allocation2] sm:$0x3] }
  0xff   :  { %v147_v19 = vadd.f32 %v195_v17, %v139_v18 }
 0x101   :  { %vm148_vm1 = vcmp.gt.f32.partialorder %v147_v19, 0.0  ;;  %v149_v20 = vmul.f32 0.01, %v147_v19 }
 0x103   :  { %v150_v22 = vsel %vm148_vm1, %v147_v19, %v149_v20 }
 0x104   :  { %v158_v23 = vmul.f32 %v196_v21, %v150_v22 }
 0x106   :  { %v160_v24 = vsel %vm159_vm2, %v158_v23, 0.0 }
 0x107   :  { %161 = vadd.xlane.f32.xlu0 %v160_v24 }
 0x194   :  { %v162_v27 = vpop.xlane.xlu0 %161 }
 0x195   :  { %v170_v28 = vadd.f32 %v197_v26, %v162_v27 }
 0x197   :  { %v198_v29 = vmul.f32 -1.442695, %v170_v28 }
 0x199   :  { %240 = vpow2.f32 %v198_v29 }
 0x1a3   :  { %v241_v30 = vpop.eup %240 }
 0x1a4   :  { %v174_v31 = vadd.f32 1.0, %v241_v30 }
 0x1a6   :  { %242 = vrcp.f32 %v174_v31 }
 0x1b0   :  { %v243_v32 = vpop.eup %242 }
 0x1b1   :  { %179 = vperm.xlu0 %231, %v243_v32  }
 0x230   :  { %v180_v33 = vpop.permute.xlu0 %179 }
 0x231   :  { %182 = vst [vmem:[%s321_s5] sm:$0x3] %v180_v33 }

// kernel: forward.16
= control target key start
LH: loop header
LB: loop body
LE: loop exit
PB: predicated region body
PF: predicated region fallthrough
CT: control target
= control target key end

     0   :  { %s1482_s12 = smov 0   ;;  %s1484_s13 = smov 0   ;;  %s1705_s0 = inlined_call_operand.vmem [shape: bf16[8,2,9,64], index: 0, kind: input, shape index: {}]   ;;  %s1706_s1 = inlined_call_operand.vmem [shape: bf16[9,64,128], index: 1, kind: input, shape index: {}]   ;;  %s1707_s2 = inlined_call_operand.vmem [shape: f32[1,128], index: 2, kind: input, shape index: {}]   ;;  %s1708_s3 = inlined_call_operand.vmem [shape: bf16[2,8,128], index: 3, kind: output, shape index: {}]  }
   0x1   :  { %s1486_s14 = smov 0  }
   0x2 LB: > { %s25_s15 = sadd.s32 1, %s1454_s13  ;;  %p1088_p0 = scmp.ge.s32.totalorder %s1458_s14, 1  ;;  %s1458_s14 = sphi %s1486_s14, %s13_s14   ;;  %s1454_s13 = sphi %s1484_s13, %s1710_s13   ;;  %s1450_s12 = sphi %s1482_s12, %s1709_s12  }
   0x3   : > { %p27_p1 = scmp.ge.s32.totalorder %s25_s15, 2  ;;  %p170_p2 = scmp.lt.s32.totalorder %s1458_s14, 3 }
   0x5   : > { %s1712_s15 = smov (%p27_p1, %s25_s15), 0  ;;  %p171_p3 = pnand %p1088_p0, %p170_p2 }
   0x6   : > { %v1397_v0 = vld [vmem:[%s1706_s1 + $0x20] sm:$0xff] (!%p171_p3)   ;;  %v1460_v1 = vmov (!%p171_p3), 0.0   ;;  %v1399_v3 = vld [vmem:[%s1706_s1 + $0x28] sm:$0xff] (!%p171_p3)   ;;  %vm1461_vm0 = vmmov (!%p171_p3), 0   ;;  %s1089_s22 = sshll.u32 (!%p171_p3), %s1450_s12, 2  ;;  %v1401_v5 = vld [vmem:[%s1706_s1 + $0x30] sm:$0xff] (!%p171_p3)  }
   0x7   : > { %174 = sbr.rel (%p171_p3) target bundleno = 309 (0x135), region = 32  ;;  %1263 = vmatprep.subr.bf16.mxu0 (!%p171_p3), %v1460_v1  ;;  %1275 = vmatprep.subr.bf16.mxu1 (!%p171_p3), %v1460_v1  ;;  %v1398_v2 = vld [vmem:[%s1706_s1] sm:$0xff] (!%p171_p3)   ;;  %v1400_v4 = vld [vmem:[%s1706_s1 + $0x8] sm:$0xff] (!%p171_p3)   ;;  %p205_p4 = scmp.lt.s32.totalorder (!%p171_p3), %s1089_s22, 7  ;;  %v1402_v6 = vld [vmem:[%s1706_s1 + $0x10] sm:$0xff] (!%p171_p3)   ;;  %vm270_vm1 = vcmask (!%p171_p3), 523264  }
   0x8   : > { %1264 = vmatpush3.bf16.msra.mxu0 (!%p171_p3), %v1397_v0  ;;  %1271 = vmatprep.mubr.msk.bf16.mxu0 (!%p171_p3), %vm1461_vm0, %v1460_v1  ;;  %v1403_v7 = vld [vmem:[%s1706_s1 + $0x38] sm:$0xff] (!%p171_p3)   ;;  %v1405_v9 = vld [vmem:[%s1706_s1 + $0x40] sm:$0xff] (!%p171_p3)   ;;  %v1407_v14 = vld [vmem:[%s1706_s1 + $0x48] sm:$0xff] (!%p171_p3)   ;;  %p218_p5 = scmp.lt.s32.totalorder (!%p171_p3), %s1450_s12, 1 }
   0x9   : > { %1276 = vmatpush3.bf16.msra.mxu1 (!%p171_p3), %v1398_v2  ;;  %1265 = vmatprep.subr.bf16.mxu0 (!%p171_p3), %v1460_v1  ;;  %v1404_v8 = vld [vmem:[%s1706_s1 + $0x18] sm:$0xff] (!%p171_p3)   ;;  %v1406_v12 = vld [vmem:[%s1706_s1 + $0x60] sm:$0xff] (!%p171_p3)   ;;  %v1408_v15 = vld [vmem:[%s1706_s1 + $0x68] sm:$0xff] (!%p171_p3)  }
   0xa   : > { %1277 = vmatprep.subr.bf16.mxu1 (!%p171_p3), %v1460_v1  ;;  %1283 = vmatprep.mubr.msk.bf16.mxu1 (!%p171_p3), %vm1461_vm0, %v1460_v1  ;;  %v1409_v17 = vld [vmem:[%s1706_s1 + $0x50] sm:$0xff] (!%p171_p3)   ;;  %v1411_v21 = vld [vmem:[%s1706_s1 + $0x58] sm:$0xff] (!%p171_p3)   ;;  %v1414_v24 = vld [vmem:[%s1706_s1 + $0x80] sm:$0xff] (!%p171_p3)  }
   0xb   : > { %v1410_v18 = vld [vmem:[%s1706_s1 + $0x70] sm:$0xff] (!%p171_p3)   ;;  %v1412_v22 = vld [vmem:[%s1706_s1 + $0x78] sm:$0xff] (!%p171_p3)   ;;  %v1415_v26 = vld [vmem:[%s1706_s1 + $0xa0] sm:$0xff] (!%p171_p3)  }
   0xc   : > { %1266 = vmatpush3.bf16.msra.mxu0 (!%p171_p3), %v1399_v3  ;;  %v1416_v27 = vld [vmem:[%s1706_s1 + $0x88] sm:$0xff] (!%p171_p3)   ;;  %v1418_v30 = vld [vmem:[%s1706_s1 + $0x90] sm:$0xff] (!%p171_p3)   ;;  %v1420_v33 = vld [vmem:[%s1706_s1 + $0x98] sm:$0xff] (!%p171_p3)  }
   0xd   : > { %1278 = vmatpush3.bf16.msra.mxu1 (!%p171_p3), %v1400_v4  ;;  %1267 = vmatprep.subr.bf16.mxu0 (!%p171_p3), %v1460_v1  ;;  %v1417_v29 = vld [vmem:[%s1706_s1 + $0xa8] sm:$0xff] (!%p171_p3)   ;;  %v1419_v32 = vld [vmem:[%s1706_s1 + $0xb0] sm:$0xff] (!%p171_p3)   ;;  %v1421_v36 = vld [vmem:[%s1706_s1 + $0xb8] sm:$0xff] (!%p171_p3)  }
   0xe   : > { %s1714_s22 = smov (!%p205_p4, %s1089_s22), 7  ;;  %1279 = vmatprep.subr.bf16.mxu1 %v1460_v1  ;;  %v1422_v38 = vld [vmem:[%s1706_s1 + $0xc0] sm:$0xff]   ;;  %v1425_v41 = vld [vmem:[%s1706_s1 + $0xc8] sm:$0xff]   ;;  %v1427_v43 = vld [vmem:[%s1706_s1 + $0xd0] sm:$0xff]   ;;  %s1716_s12 = smov (!%p218_p5, %s1450_s12), 1 }
   0xf   : > { %s1217_s29 = sshll.u32 %s1714_s22, 4  ;;  %v1424_v40 = vld [vmem:[%s1706_s1 + $0xe0] sm:$0xff]   ;;  %v1426_v42 = vld [vmem:[%s1706_s1 + $0xe8] sm:$0xff]   ;;  %v1428_v44 = vld [vmem:[%s1706_s1 + $0xf0] sm:$0xff]   ;;  %s1092_s27 = sshll.u32 %s1716_s12, 2 }
  0x10   : > { %1268 = vmatpush3.bf16.msra.mxu0 %v1401_v5  ;;  %s1537_s7 = scalar_lea.vmem %s1705_s0, %s1217_s29  ;;  %v1429_v45 = vld [vmem:[%s1706_s1 + $0xd8] sm:$0xff]   ;;  %v1431_v48 = vld [vmem:[%s1706_s1 + $0x100] sm:$0xff]   ;;  %v1432_v51 = vld [vmem:[%s1706_s1 + $0x108] sm:$0xff]   ;;  %s224_s30 = scalar_lea.vmem %s1708_s3, %s1092_s27 }
  0x11   : > { %1280 = vmatpush3.bf16.msra.mxu1 %v1402_v6  ;;  %1269 = vmatprep.subr.bf16.mxu0 %v1460_v1  ;;  %v1093_v10 = vld [vmem:[%s1537_s7 + $0x10] sm:$0xf]  ;;  %v226_v11 = vld [vmem:[%s1537_s7] sm:$0xf]  ;;  %v1430_v46 = vld [vmem:[%s1706_s1 + $0xf8] sm:$0xff]  }
  0x12   : > { %1281 = vmatprep.subr.bf16.mxu1 %v1460_v1  ;;  %v1413_v13 = vld [vmem:[%s1537_s7] sm:$0x1f]   ;;  %v1140_v37 = vld [vmem:[%s1537_s7 + $0x30] sm:$0xf]  ;;  %v1170_v47 = vld [vmem:[%s1537_s7 + $0x8] sm:$0xf] }
  0x13   : > { %v400_v16 = vshll.u32 %v1413_v13, 16  ;;  %v398_v19 = vshrl.u32 %v1413_v13, 16  ;;  %v1126_v25 = vld [vmem:[%s1537_s7 + $0x20] sm:$0xf]  ;;  %v1184_v49 = vld [vmem:[%s1537_s7 + $0x18] sm:$0xf] }
  0x14   : > { %1270 = vmatpush3.bf16.msra.mxu0 %v1403_v7  ;;  %v1423_v28 = vld [vmem:[%s1537_s7 + $0x20] sm:$0x1f]   ;;  %v1435_v50 = vld [vmem:[%s1537_s7 + $0x8] sm:$0x1f]   ;;  %v1433_v53 = vld [vmem:[%s1706_s1 + $0x110] sm:$0xff]  }
  0x15   : > { %1282 = vmatpush3.bf16.msra.mxu1 %v1404_v8  ;;  %1287 = vmatprep.subr.bf16.mxu0 %v1460_v1  ;;  %v402_v20 = vrot.slane %v400_v16, 1  ;;  %v649_v31 = vshll.u32 %v1423_v28, 16  ;;  %v647_v34 = vshrl.u32 %v1423_v28, 16  ;;  %v898_v52 = vshll.u32 %v1435_v50, 16  ;;  %v1434_v56 = vld [vmem:[%s1706_s1 + $0x118] sm:$0xff]  }
  0x16   : > { %1299 = vmatprep.subr.bf16.mxu1 %v1460_v1  ;;  %v896_v54 = vshrl.u32 %v1435_v50, 16 }
  0x17   : > { %1272 = vmatmul.mubr.msk.bf16.vlgmr.msra.gmra.mrb[0].mxu0 %vm270_vm1, %v1093_v10  ;;  %v403_v23 = vor.u32 %v402_v20, %v398_v19  ;;  %v651_v35 = vrot.slane %v649_v31, 1  ;;  %v900_v55 = vrot.slane %v898_v52, 1 }
  0x18   : > { %1284 = vmatmul.mubr.msk.bf16.vlgmr.msra.gmra.mrb[0].mxu1 %vm270_vm1, %v226_v11  ;;  %1288 = vmatpush3.bf16.msra.mxu0 %v1405_v9 }
  0x19   : > { %1300 = vmatpush3.bf16.msra.mxu1 %v1406_v12  ;;  %1289 = vmatprep.subr.bf16.mxu0 %v1460_v1  ;;  %v652_v39 = vor.u32 %v651_v35, %v647_v34  ;;  %v901_v57 = vor.u32 %v900_v55, %v896_v54  ;;  %v1214_v34 = vld [vmem:[%s1707_s2] ss:$0 sm:$0xff] }
  0x1a   : > { %1301 = vmatprep.subr.bf16.mxu1 %v1460_v1  ;;  %1295 = vmatprep.mubr.msk.bf16.mxu0 %vm1461_vm0, %v1460_v1 }
  0x1b   : > { %1307 = vmatprep.mubr.msk.bf16.mxu1 %vm1461_vm0, %v1460_v1 }
  0x1c   : > { %1290 = vmatpush3.bf16.msra.mxu0 %v1407_v14 }
  0x1d   : > { %1302 = vmatpush3.bf16.msra.mxu1 %v1408_v15  ;;  %1291 = vmatprep.subr.bf16.mxu0 %v1460_v1 }
  0x1e   : > { %1303 = vmatprep.subr.bf16.mxu1 %v1460_v1 }
  0x20   : > { %1292 = vmatpush3.bf16.msra.mxu0 %v1409_v17 }
  0x21   : > { %1304 = vmatpush3.bf16.msra.mxu1 %v1410_v18  ;;  %1293 = vmatprep.subr.bf16.mxu0 %v1460_v1 }
  0x22   : > { %1305 = vmatprep.subr.bf16.mxu1 %v1460_v1 }
  0x24   : > { %1294 = vmatpush3.bf16.msra.mxu0 %v1411_v21 }
  0x25   : > { %1306 = vmatpush3.bf16.msra.mxu1 %v1412_v22  ;;  %1311 = vmatprep.subr.bf16.mxu0 %v1460_v1 }
  0x26   : > { %1323 = vmatprep.subr.bf16.mxu1 %v1460_v1 }
  0x27   : > { %1296 = vmatmul.mubr.msk.bf16.vlgmr.msra.gmra.mrb[4].mxu0 %vm270_vm1, %v403_v23 }
  0x28   : > { %1312 = vmatpush3.bf16.msra.mxu0 %v1414_v24  ;;  %1308 = vmatmul.mubr.msk.bf16.vlgmr.msra.gmra.mrb[4].mxu1 %vm270_vm1, %v1126_v25 }
  0x29   : > { %1324 = vmatpush3.bf16.msra.mxu1 %v1415_v26  ;;  %1313 = vmatprep.subr.bf16.mxu0 %v1460_v1 }
  0x2a   : > { %1325 = vmatprep.subr.bf16.mxu1 %v1460_v1  ;;  %1319 = vmatprep.mubr.msk.bf16.mxu0 %vm1461_vm0, %v1460_v1 }
  0x2b   : > { %1331 = vmatprep.mubr.msk.bf16.mxu1 %vm1461_vm0, %v1460_v1 }
  0x2c   : > { %1314 = vmatpush3.bf16.msra.mxu0 %v1416_v27 }
  0x2d   : > { %1326 = vmatpush3.bf16.msra.mxu1 %v1417_v29  ;;  %1315 = vmatprep.subr.bf16.mxu0 %v1460_v1 }
  0x2e   : > { %1327 = vmatprep.subr.bf16.mxu1 %v1460_v1 }
  0x30   : > { %1316 = vmatpush3.bf16.msra.mxu0 %v1418_v30 }
  0x31   : > { %1328 = vmatpush3.bf16.msra.mxu1 %v1419_v32  ;;  %1317 = vmatprep.subr.bf16.mxu0 %v1460_v1 }
  0x32   : > { %1329 = vmatprep.subr.bf16.mxu1 %v1460_v1 }
  0x34   : > { %1318 = vmatpush3.bf16.msra.mxu0 %v1420_v33 }
  0x35   : > { %1330 = vmatpush3.bf16.msra.mxu1 %v1421_v36  ;;  %1335 = vmatprep.subr.bf16.mxu0 %v1460_v1 }
  0x36   : > { %1347 = vmatprep.subr.bf16.mxu1 %v1460_v1 }
  0x37   : > { %1320 = vmatmul.mubr.msk.bf16.vlgmr.msra.gmra.mrb[8].mxu0 %vm270_vm1, %v1140_v37 }
  0x38   : > { %1336 = vmatpush3.bf16.msra.mxu0 %v1422_v38  ;;  %1332 = vmatmul.mubr.msk.bf16.vlgmr.msra.gmra.mrb[8].mxu1 %vm270_vm1, %v652_v39 }
  0x39   : > { %1348 = vmatpush3.bf16.msra.mxu1 %v1424_v40  ;;  %1337 = vmatprep.subr.bf16.mxu0 %v1460_v1 }
  0x3a   : > { %1349 = vmatprep.subr.bf16.mxu1 %v1460_v1  ;;  %1343 = vmatprep.mubr.msk.bf16.mxu0 %vm1461_vm0, %v1460_v1 }
  0x3b   : > { %1355 = vmatprep.mubr.msk.bf16.mxu1 %vm1461_vm0, %v1460_v1 }
  0x3c   : > { %1338 = vmatpush3.bf16.msra.mxu0 %v1425_v41 }
  0x3d   : > { %1350 = vmatpush3.bf16.msra.mxu1 %v1426_v42  ;;  %1339 = vmatprep.subr.bf16.mxu0 %v1460_v1 }
  0x3e   : > { %1351 = vmatprep.subr.bf16.mxu1 %v1460_v1 }
  0x40   : > { %1340 = vmatpush3.bf16.msra.mxu0 %v1427_v43 }
  0x41   : > { %1352 = vmatpush3.bf16.msra.mxu1 %v1428_v44  ;;  %1341 = vmatprep.subr.bf16.mxu0 %v1460_v1 }
  0x42   : > { %1353 = vmatprep.subr.bf16.mxu1 %v1460_v1 }
  0x44   : > { %1342 = vmatpush3.bf16.msra.mxu0 %v1429_v45 }
  0x45   : > { %1354 = vmatpush3.bf16.msra.mxu1 %v1430_v46  ;;  %1359 = vmatprep.subr.bf16.mxu0 %v1460_v1 }
  0x47   : > { %1344 = vmatmul.mubr.msk.bf16.vlgmr.msra.gmra.mrb[12].mxu0 %vm270_vm1, %v1170_v47 }
  0x48   : > { %1360 = vmatpush3.bf16.msra.mxu0 %v1431_v48  ;;  %1356 = vmatmul.mubr.msk.bf16.vlgmr.msra.gmra.mrb[12].mxu1 %vm270_vm1, %v1184_v49 }
  0x49   : > { %1361 = vmatprep.subr.bf16.mxu0 %v1460_v1  ;;  %1367 = vmatprep.mubr.msk.bf16.mxu0 %vm1461_vm0, %v1460_v1 }
  0x4c   : > { %1362 = vmatpush3.bf16.msra.mxu0 %v1432_v51 }
  0x4d   : > { %1363 = vmatprep.subr.bf16.mxu0 %v1460_v1 }
  0x50   : > { %1364 = vmatpush3.bf16.msra.mxu0 %v1433_v53 }
  0x51   : > { %1365 = vmatprep.subr.bf16.mxu0 %v1460_v1 }
  0x54   : > { %1366 = vmatpush3.bf16.msra.mxu0 %v1434_v56 }
  0x57   : > { %1368 = vmatmul.mubr.msk.bf16.vlgmr.msra.gmra.mrb[16].mxu0 %vm270_vm1, %v901_v57 }
  0xea   : > { %v308_v58 = vpop.f32.mrb[0].mxu0 }
  0xeb   : > { %v1273_v59 = vpop.f32.mrb[1].mxu0  ;;  %v375_v60 = vpop.f32.mrb[0].mxu1 }
  0xec   : > { %v376_v61 = vadd.f32 %v375_v60, %v308_v58  ;;  %v311_v62 = vpop.f32.mrb[2].mxu0  ;;  %v1285_v63 = vpop.f32.mrb[1].mxu1 }
  0xed   : > { %v1274_v0 = vpop.f32.mrb[3].mxu0  ;;  %v378_v2 = vpop.f32.mrb[2].mxu1 }
  0xee   : > { %v1286_v3 = vpop.f32.mrb[3].mxu1 }
  0xfa   : > { %v465_v4 = vpop.f32.mrb[4].mxu0 }
  0xfb   : > { %v471_v5 = vadd.f32 %v465_v4, %v376_v61  ;;  %v1297_v6 = vpop.f32.mrb[5].mxu0  ;;  %v544_v7 = vpop.f32.mrb[4].mxu1 }
  0xfc   : > { %v468_v8 = vpop.f32.mrb[6].mxu0  ;;  %v1309_v9 = vpop.f32.mrb[5].mxu1 }
  0xfd   : > { %v550_v1 = vadd.f32 %v544_v7, %v471_v5  ;;  %v1298_v10 = vpop.f32.mrb[7].mxu0  ;;  %v547_v11 = vpop.f32.mrb[6].mxu1 }
  0xfe   : > { %v1310_v12 = vpop.f32.mrb[7].mxu1 }
 0x10a   : > { %v623_v13 = vpop.f32.mrb[8].mxu0 }
 0x10b   : > { %v629_v14 = vadd.f32 %v623_v13, %v550_v1  ;;  %v1321_v15 = vpop.f32.mrb[9].mxu0  ;;  %v714_v16 = vpop.f32.mrb[8].mxu1 }
 0x10c   : > { %v626_v17 = vpop.f32.mrb[10].mxu0  ;;  %v1333_v18 = vpop.f32.mrb[9].mxu1 }
 0x10d   : > { %v720_v19 = vadd.f32 %v714_v16, %v629_v14  ;;  %v1322_v20 = vpop.f32.mrb[11].mxu0  ;;  %v717_v21 = vpop.f32.mrb[10].mxu1 }
 0x10e   : > { %v1334_v22 = vpop.f32.mrb[11].mxu1 }
 0x11a   : > { %v793_v23 = vpop.f32.mrb[12].mxu0 }
 0x11b   : > { %v799_v24 = vadd.f32 %v793_v23, %v720_v19  ;;  %v1345_v25 = vpop.f32.mrb[13].mxu0  ;;  %v872_v26 = vpop.f32.mrb[12].mxu1 }
 0x11c   : > { %v796_v27 = vpop.f32.mrb[14].mxu0  ;;  %v1357_v28 = vpop.f32.mrb[13].mxu1 }
 0x11d   : > { %v878_v29 = vadd.f32 %v872_v26, %v799_v24  ;;  %v1346_v30 = vpop.f32.mrb[15].mxu0  ;;  %v875_v31 = vpop.f32.mrb[14].mxu1 }
 0x11e   : > { %v1358_v32 = vpop.f32.mrb[15].mxu1 }
 0x12a   : > { %v963_v33 = vpop.f32.mrb[16].mxu0 }
 0x12b   : > { %v969_v35 = vadd.f32 %v963_v33, %v878_v29  ;;  %v1369_v36 = vpop.f32.mrb[17].mxu0 }
 0x12c   : > { %v966_v37 = vpop.f32.mrb[18].mxu0 }
 0x12d   : > { %v977_v38 = vadd.f32 %v1214_v34, %v969_v35  ;;  %v1370_v39 = vpop.f32.mrb[19].mxu0 }
 0x12f   : > { %vm978_vm2 = vcmp.gt.f32.partialorder %v977_v38, 0.0  ;;  %v979_v40 = vmul.f32 0.01, %v977_v38 }
 0x131   : > { %v980_v41 = vsel %vm978_vm2, %v977_v38, %v979_v40 }
 0x132   : > { %v981_v42 = vpack.c.bf16 %v980_v41, %v980_v41 }
 0x134   : > { %982 = vst [vmem:[%s224_s30] sm:$0xf] %v981_v42 }
 0x135 PF: > { %s13_s14 = sadd.s32 1, %s1458_s14   ;;  %s1709_s12 = smov %s1454_s13 }
 0x136   : > { %p10_p6 = scmp.ge.s32.totalorder %s13_s14, 4   ;;  %s1710_s13 = smov %s1712_s15 }
 0x138   :  { %12 = sbr.rel (!%p10_p6) target bundleno = 2 (0x2), region = 81 }

</bundles_post_ra>
